<compile_context>
chip_gen: v7x
topology: tpu7x:2x2x1
jax: 0.10.0
libtpu: 0.0.40
codegen_flags: <defaults>
</compile_context>

<pallas_src>
import functools

import numpy as np
import jax
import jax.numpy as jnp
from jax.experimental import pallas as pl
from jax.experimental.pallas import tpu as pltpu


N_LAYERS = 8            # 14 torch convs merged into 8 fused convs
HALO = N_LAYERS         # receptive-field radius of the fused chain (1 px/conv)
MATMUL_DTYPE = jnp.bfloat16   # MXU operand dtype (accumulation stays f32)
_ACTS = ("relu", "relu", "relu", "sigmoid", "relu", "relu", "relu", "sigmoid")


def _round_up(x, m):
    return (x + m - 1) // m * m


# ---------------------------------------------------------------------------
# Fused kernel: the whole DCRetinex chain for one (image, row-block) tile.
# ---------------------------------------------------------------------------
def _make_kernel(H, W, TH, layout, num):
    P = W + 2                                    # padded row width
    TS = TH + 2 * HALO                           # strip rows per block
    S = TS * P                                   # conv-output width (flat, lanes)
    FLAT_IN = _round_up((TS + 2) * P + 2, 128)   # padded-input width (flat)
    OUT0 = HALO * P                              # first lane of the TH valid rows

    def kernel(x_ref, w_ref, b_ref, g_ref, o_l, o_r, o_x):
        # x_ref: (1,1,3,FLAT_IN) zero-bordered flat strip (channel-major)
        # w_ref: (ROWS, CINmax)  packed per-(layer,tap) weight blocks, bf16
        # b_ref: (COUTmax, 8)    packed biases, one column per layer, f32
        # g_ref: (1, S)          strip-row id per flat position (-big on pad cols)
        # o_*  : (1,1,C, TH*P)   lane-dense outputs (central TH rows only)
        j = pl.program_id(1)
        r0 = j * TH                              # first image row of this block
        guide = g_ref[...]
        # Strip row h maps to image row r0 - HALO + h.  Keep only positions that
        # are real image pixels when re-padding between convs, so the true zero
        # padding at the image border is reproduced exactly.
        keep = (guide >= HALO - r0) & (guide < H + HALO - r0)

        def conv(xp, lidx):
            """SAME 3x3 conv: 9 accumulated (Cout,Cin)x(Cin,S) MXU matmuls."""
            base, rstride, cin, cout = layout[lidx]
            xp_mm = xp.astype(MATMUL_DTYPE)
            acc = jnp.zeros((cout, S), jnp.float32)
            for t in range(9):                   # static unroll over taps
                off = (t // 3) * P + (t % 3)     # static lane offset
                tap = xp_mm[:, off:off + S]
                r = base + t * rstride           # static, 8-aligned row offset
                wt = w_ref[r:r + cout, 0:cin]
                acc = acc + jnp.dot(wt, tap, preferred_element_type=jnp.float32)
            acc = acc + b_ref[0:cout, lidx:lidx + 1]
            if _ACTS[lidx] == "relu":
                return jnp.maximum(acc, 0.0)
            return jax.nn.sigmoid(acc)           # EUP

        def repad(a):
            """(C,S) activation -> next conv's zero-bordered (C,FLAT_IN) input."""
            c = a.shape[0]
            clean = jnp.where(keep, a, 0.0)      # zero pad cols / out-of-image rows
            lead = jnp.zeros((c, P + 1), a.dtype)
            tail = jnp.zeros((c, FLAT_IN - S - (P + 1)), a.dtype)
            return jnp.concatenate([lead, clean, tail], axis=1)

        x = x_ref[0, 0].astype(jnp.float32)      # (3, FLAT_IN)

        a1 = conv(x, 0)                          # fl conv1            (num, S)
        h = conv(repad(a1), 1)                   # fl conv2            (num, S)
        d1 = conv(repad(h), 2)                   # [c_d1 | d_d1]
        cd = conv(repad(d1), 3)                  # [c(3) | d(1)]       sigmoid
        u1 = conv(repad(cd), 4)                  # [c_u1 | d_u1]
        u2 = conv(repad(u1), 5)                  # [c_u2 | d_u2]       (2num, S)
        u = u2[:num] + u2[num:] + 2.0 * h        # (upd_c + h) + (upd_d + h)
        h1 = conv(repad(u), 6)                   # [r1 | l1]
        rl = conv(repad(h1), 7)                  # [R(3) | L(1)]       sigmoid

        ctr = slice(OUT0, OUT0 + TH * P)         # central TH rows, lane-dense
        o_r[0, 0] = rl[0:3, ctr].astype(o_r.dtype)
        o_l[0, 0] = rl[3:4, ctr].astype(o_l.dtype)
        o_x[0, 0] = (cd[3:4, ctr] * cd[0:3, ctr]).astype(o_x.dtype)   # d * c

    return kernel, FLAT_IN


# ---------------------------------------------------------------------------
# Wrapper around pallas_call
# ---------------------------------------------------------------------------
def _vmem_limit_bytes():
    # ~96 MiB on v5e/v6e (128 MiB VMEM), ~48 MiB on v7x (64 MiB / TensorCore).
    try:
        cap = int(pltpu.get_tpu_info().vmem_capacity_bytes)
    except Exception:
        cap = 64 * 1024 * 1024
    return int(min(cap * 3 // 4, 100 * 1024 * 1024))


def _pick_row_block(H, W, num, vmem_limit):
    """Largest divisor of H whose fused working set fits the VMEM budget."""
    P = W + 2
    cmax = 2 * num
    best = 1
    for th in range(1, H + 1):
        if H % th:
            continue
        flat = (th + 2 * HALO + 2) * P
        if 8 * cmax * flat * 4 <= vmem_limit // 3:   # ~8 live f32 activations
            best = th
    return best


@functools.partial(jax.jit, static_argnums=(3, 4))
def dcretinex_forward(x_nchw, wpk, bpk, layout, row_block=None):
    """Fused DCRetinex forward.  Returns (L, R, d*c) in NCHW like the module."""
    N, c_in, H, W = x_nchw.shape
    assert c_in == 3
    num = layout[1][3]
    vmem_limit = _vmem_limit_bytes()
    TH = row_block if row_block is not None else _pick_row_block(H, W, num, vmem_limit)
    assert H % TH == 0   # TODO(synk): ragged last row-block
    NB = H // TH
    P = W + 2
    TS = TH + 2 * HALO

    kernel, FLAT_IN = _make_kernel(H, W, TH, layout, num)
    OUT_W = TH * P

    # Plain-XLA layout plumbing (cheap): zero-pad the image, cut overlapping
    # row strips (TH rows + 8-row halo each side + 1 conv-pad row), flatten
    # each strip row-major and pad the flat axis to a multiple of 128.
    xpad = jnp.pad(x_nchw, ((0, 0), (0, 0), (HALO + 1, HALO + 1), (1, 1)))
    strips = jnp.stack(
        [xpad[:, :, j * TH: j * TH + TS + 2, :] for j in range(NB)], axis=1)
    xin = strips.reshape(N, NB, 3, (TS + 2) * P)
    xin = jnp.pad(xin, ((0, 0), (0, 0), (0, 0), (0, FLAT_IN - (TS + 2) * P)))

    # Strip-row id per flat output position; pad columns get a sentinel so the
    # in-kernel keep-mask needs no vector div/mod.
    k = jnp.arange(TS * P, dtype=jnp.int32)
    row = k // P
    col = k - row * P
    guide = jnp.where(col < W, row, jnp.int32(-(2 ** 20)))
    guide = guide.astype(jnp.int32).reshape(1, TS * P)

    dt = x_nchw.dtype
    out_shape = (jax.ShapeDtypeStruct((N, NB, 1, OUT_W), dt),   # L
                 jax.ShapeDtypeStruct((N, NB, 3, OUT_W), dt),   # R
                 jax.ShapeDtypeStruct((N, NB, 3, OUT_W), dt))   # d*c

    in_specs = [
        pl.BlockSpec((1, 1, 3, FLAT_IN), lambda n, j: (n, j, 0, 0)),
        pl.BlockSpec(wpk.shape, lambda n, j: (0, 0)),   # resident packed weights
        pl.BlockSpec(bpk.shape, lambda n, j: (0, 0)),   # resident packed biases
        pl.BlockSpec(guide.shape, lambda n, j: (0, 0)),
    ]
    out_specs = (
        pl.BlockSpec((1, 1, 1, OUT_W), lambda n, j: (n, j, 0, 0)),
        pl.BlockSpec((1, 1, 3, OUT_W), lambda n, j: (n, j, 0, 0)),
        pl.BlockSpec((1, 1, 3, OUT_W), lambda n, j: (n, j, 0, 0)),
    )

    L, R, X = pl.pallas_call(
        kernel,
        out_shape=out_shape,
        grid=(N, NB),
        in_specs=in_specs,
        out_specs=out_specs,
        compiler_params=pltpu.CompilerParams(
            dimension_semantics=("parallel", "parallel"),
            vmem_limit_bytes=vmem_limit),
    )(xin, wpk, bpk, guide)

    def unflat(o, C):
        o = o.reshape(N, NB, C, TH, P)[:, :, :, :, :W]
        return o.transpose(0, 2, 1, 3, 4).reshape(N, C, H, W)

    return unflat(L, 1), unflat(R, 3), unflat(X, 3)


# ---------------------------------------------------------------------------
# Parameter init (matching the torch module), conv merging and packing
# ---------------------------------------------------------------------------
def _conv_params(key, cin, cout, scale=0.05):
    kw, kb = jax.random.split(key)
    w = scale * jax.random.normal(kw, (3, 3, cin, cout), jnp.float32)   # HWIO
    b = scale * jax.random.normal(kb, (cout,), jnp.float32)
    return (w, b)


def init_dcretinex_params(key, num=32, rate=0.5):
    half = int(num * rate)
    layers = [
        ("fl1", 3, num), ("fl2", num, num),
        ("c_d1", num, num), ("c_d2", num, 3),
        ("c_u1", 3, num), ("c_u2", num, num),
        ("d_d1", num, half), ("d_d2", half, 1),
        ("d_u1", 1, half), ("d_u2", half, num),
        ("h_r1", num, num), ("h_r2", num, 3),
        ("h_l1", num, num), ("h_l2", num, 1),
    ]
    keys = jax.random.split(key, len(layers))
    return {name: _conv_params(k, cin, cout)
            for k, (name, cin, cout) in zip(keys, layers)}


def _merge_params(p):
    """Merge the 14 per-branch convs into 8 fused convs (HWIO weights)."""
    num = p["fl2"][0].shape[3]
    half = p["d_d1"][0].shape[3]

    w_cd1, b_cd1 = p["c_d1"]; w_cd2, b_cd2 = p["c_d2"]
    w_cu1, b_cu1 = p["c_u1"]; w_cu2, b_cu2 = p["c_u2"]
    w_dd1, b_dd1 = p["d_d1"]; w_dd2, b_dd2 = p["d_d2"]
    w_du1, b_du1 = p["d_u1"]; w_du2, b_du2 = p["d_u2"]
    w_r1, b_r1 = p["h_r1"]; w_r2, b_r2 = p["h_r2"]
    w_l1, b_l1 = p["h_l1"]; w_l2, b_l2 = p["h_l2"]

    # down1: shared input h -> [c_d1(num) | d_d1(half)]
    w_down1 = jnp.concatenate([w_cd1, w_dd1], axis=3)
    b_down1 = jnp.concatenate([b_cd1, b_dd1])
    # down2: block-diagonal [c-path(num) | d-path(half)] -> [c(3) | d(1)]
    w_down2 = jnp.zeros((3, 3, num + half, 4), jnp.float32)
    w_down2 = w_down2.at[:, :, :num, :3].set(w_cd2)
    w_down2 = w_down2.at[:, :, num:, 3:].set(w_dd2)
    b_down2 = jnp.concatenate([b_cd2, b_dd2])
    # up1: block-diagonal [c(3) | d(1)] -> [c_u1(num) | d_u1(half)]
    w_up1 = jnp.zeros((3, 3, 4, num + half), jnp.float32)
    w_up1 = w_up1.at[:, :, :3, :num].set(w_cu1)
    w_up1 = w_up1.at[:, :, 3:, num:].set(w_du1)
    b_up1 = jnp.concatenate([b_cu1, b_du1])
    # up2: block-diagonal -> [c_u2(num) | d_u2(num)]
    w_up2 = jnp.zeros((3, 3, num + half, 2 * num), jnp.float32)
    w_up2 = w_up2.at[:, :, :num, :num].set(w_cu2)
    w_up2 = w_up2.at[:, :, num:, num:].set(w_du2)
    b_up2 = jnp.concatenate([b_cu2, b_du2])
    # head1: shared input u -> [r1(num) | l1(num)]
    w_h1 = jnp.concatenate([w_r1, w_l1], axis=3)
    b_h1 = jnp.concatenate([b_r1, b_l1])
    # head2: block-diagonal -> [R(3) | L(1)]
    w_h2 = jnp.zeros((3, 3, 2 * num, 4), jnp.float32)
    w_h2 = w_h2.at[:, :, :num, :3].set(w_r2)
    w_h2 = w_h2.at[:, :, num:, 3:].set(w_l2)
    b_h2 = jnp.concatenate([b_r2, b_l2])

    return [p["fl1"], p["fl2"], (w_down1, b_down1), (w_down2, b_down2),
            (w_up1, b_up1), (w_up2, b_up2), (w_h1, b_h1), (w_h2, b_h2)]


def pack_dcretinex_params(p):
    """Pack the 8 merged convs into one bf16 weight operand + one f32 bias
    operand.  Layer-l / tap-t weight block (w[dy,dx].T, shape (Cout,Cin)) sits
    at rows [base_l + t*rstride_l, +Cout), cols [0,Cin); offsets 8-aligned."""
    merged = _merge_params(p)
    cins = [int(w.shape[2]) for w, _ in merged]
    couts = [int(w.shape[3]) for w, _ in merged]
    cinp = max(cins)
    coutp = _round_up(max(couts), 8)
    rstrides = [_round_up(c, 8) for c in couts]
    bases, off = [], 0
    for rs in rstrides:
        bases.append(off)
        off += 9 * rs
    wpk = np.zeros((off, cinp), np.float32)
    bpk = np.zeros((coutp, N_LAYERS), np.float32)
    for l, (w, b) in enumerate(merged):
        wl, bl = np.asarray(w), np.asarray(b)
        for t in range(9):
            r = bases[l] + t * rstrides[l]
            wpk[r:r + couts[l], :cins[l]] = wl[t // 3, t % 3].T
        bpk[:couts[l], l] = bl
    layout = tuple((bases[l], rstrides[l], cins[l], couts[l])
                   for l in range(N_LAYERS))
    return jnp.asarray(wpk, MATMUL_DTYPE), jnp.asarray(bpk, jnp.float32), layout


# ---------------------------------------------------------------------------
# Plain-JAX per-layer reference of the original torch module
# ---------------------------------------------------------------------------
def _conv_ref(x, w, b, act):
    y = jax.lax.conv_general_dilated(
        x, w, window_strides=(1, 1), padding="SAME",
        dimension_numbers=("NHWC", "HWIO", "NHWC"),
        precision=jax.lax.Precision.HIGHEST) + b
    if act == "relu":
        return jnp.maximum(y, 0.0)
    return jax.nn.sigmoid(y)


def dcretinex_reference(x_nchw, p):
    x = jnp.transpose(x_nchw, (0, 2, 3, 1))
    h = _conv_ref(x, *p["fl1"], "relu")
    h = _conv_ref(h, *p["fl2"], "relu")
    c = _conv_ref(h, *p["c_d1"], "relu")
    c = _conv_ref(c, *p["c_d2"], "sigmoid")
    u1 = _conv_ref(c, *p["c_u1"], "relu")
    u1 = _conv_ref(u1, *p["c_u2"], "relu") + h
    d = _conv_ref(h, *p["d_d1"], "relu")
    d = _conv_ref(d, *p["d_d2"], "sigmoid")
    u2 = _conv_ref(d, *p["d_u1"], "relu")
    u2 = _conv_ref(u2, *p["d_u2"], "relu") + h
    u = u1 + u2
    X = d * c
    R = _conv_ref(u, *p["h_r1"], "relu")
    R = _conv_ref(R, *p["h_r2"], "sigmoid")
    L = _conv_ref(u, *p["h_l1"], "relu")
    L = _conv_ref(L, *p["h_l2"], "sigmoid")
    to_nchw = lambda t: jnp.transpose(t, (0, 3, 1, 2))
    return to_nchw(L), to_nchw(R), to_nchw(X)


# ---------------------------------------------------------------------------
# Main
# ---------------------------------------------------------------------------
if __name__ == "__main__":
    key = jax.random.PRNGKey(0)
    kx, kp = jax.random.split(key)

    N, H, W, NUM = 2, 16, 16, 32        # module default num=64; small demo
    x = jax.random.normal(kx, (N, 3, H, W), jnp.float32)
    raw = init_dcretinex_params(kp, num=NUM)
    wpk, bpk, layout = pack_dcretinex_params(raw)

    L_ref, R_ref, X_ref = dcretinex_reference(x, raw)

    tol = 3e-2   # bf16 MXU operands vs. f32 per-layer reference
    # row_block=8 exercises the multi-row-block halo path; None = auto (1 block).
    for rb in (8, None):
        L, R, X = dcretinex_forward(x, wpk, bpk, layout, rb)
        jax.block_until_ready((L, R, X))
        assert L.shape == (N, 1, H, W)
        assert R.shape == (N, 3, H, W)
        assert X.shape == (N, 3, H, W)
        assert float(jnp.max(jnp.abs(L - L_ref))) < tol, "L mismatch"
        assert float(jnp.max(jnp.abs(R - R_ref))) < tol, "R mismatch"
        assert float(jnp.max(jnp.abs(X - X_ref))) < tol, "X mismatch"

    print("KERNEL_OK")
</pallas_src>

<mosaic_0001>
module attributes {stable_mosaic.version = 11 : i64} {
  func.func @kernel(%arg0: i32, %arg1: i32, %arg2: memref<1x1x3x512xf32, #tpu.memory_space<vmem>>, %arg3: memref<2736x64xbf16, #tpu.memory_space<vmem>>, %arg4: memref<64x8xf32, #tpu.memory_space<vmem>>, %arg5: memref<1x432xi32, #tpu.memory_space<vmem>>, %arg6: memref<1x1x1x144xf32, #tpu.memory_space<vmem>>, %arg7: memref<1x1x3x144xf32, #tpu.memory_space<vmem>>, %arg8: memref<1x1x3x144xf32, #tpu.memory_space<vmem>>) attributes {dimension_semantics = [#tpu.dimension_semantics<parallel>, #tpu.dimension_semantics<parallel>], iteration_bounds = array<i64: 2, 2>, scalar_prefetch = 0 : i64, scratch_operands = 0 : i64, tpu.core_type = #tpu.core_type<tc>, window_params = [{transform_indices = @transform_0, window_bounds = array<i64: 1, 1, 3, 512>}, {pipeline_mode = #tpu.pipeline_mode<synchronous>, transform_indices = @transform_1, window_bounds = array<i64: 2736, 64>}, {pipeline_mode = #tpu.pipeline_mode<synchronous>, transform_indices = @transform_2, window_bounds = array<i64: 64, 8>}, {pipeline_mode = #tpu.pipeline_mode<synchronous>, transform_indices = @transform_3, window_bounds = array<i64: 1, 432>}, {transform_indices = @transform_4, window_bounds = array<i64: 1, 1, 1, 144>}, {transform_indices = @transform_5, window_bounds = array<i64: 1, 1, 3, 144>}, {transform_indices = @transform_6, window_bounds = array<i64: 1, 1, 3, 144>}]} {
    %c8_i32 = arith.constant 8 : i32
    %0 = arith.muli %arg1, %c8_i32 : i32
    %c0 = arith.constant 0 : index
    %c0_0 = arith.constant 0 : index
    %1 = vector.load %arg5[%c0, %c0_0] : memref<1x432xi32, #tpu.memory_space<vmem>>, vector<1x432xi32>
    %c8_i32_1 = arith.constant 8 : i32
    %2 = arith.subi %c8_i32_1, %0 : i32
    %3 = vector.broadcast %2 : i32 to vector<1x432xi32>
    %4 = arith.cmpi sge, %1, %3 : vector<1x432xi32>
    %c24_i32 = arith.constant 24 : i32
    %5 = arith.subi %c24_i32, %0 : i32
    %6 = vector.broadcast %5 : i32 to vector<1x432xi32>
    %7 = arith.cmpi slt, %1, %6 : vector<1x432xi32>
    %8 = arith.andi %4, %7 : vector<1x432xi1>
    %c0_2 = arith.constant 0 : index
    %c0_3 = arith.constant 0 : index
    %c0_4 = arith.constant 0 : index
    %c0_5 = arith.constant 0 : index
    %9 = vector.load %arg2[%c0_2, %c0_3, %c0_4, %c0_5] : memref<1x1x3x512xf32, #tpu.memory_space<vmem>>, vector<1x1x3x512xf32>
    %10 = vector.shape_cast %9 : vector<1x1x3x512xf32> to vector<3x512xf32>
    %11 = arith.truncf %10 : vector<3x512xf32> to vector<3x512xbf16>
    %cst = arith.constant 0.000000e+00 : f32
    %12 = vector.broadcast %cst : f32 to vector<32x432xf32>
    %13 = vector.extract_strided_slice %11 {offsets = [0, 0], sizes = [3, 432], strides = [1, 1]} : vector<3x512xbf16> to vector<3x432xbf16>
    %c0_6 = arith.constant 0 : index
    %c0_7 = arith.constant 0 : index
    %14 = vector.load %arg3[%c0_6, %c0_7] : memref<2736x64xbf16, #tpu.memory_space<vmem>>, vector<32x3xbf16>
    %cst_8 = arith.constant dense<0.000000e+00> : vector<32x432xf32>
    %15 = tpu.matmul %14, %13, %cst_8 {dimension_numbers = #tpu.dot_dimension_numbers<[1], [0], [0], [1], [0, 0, 1, 1], [], []>} : vector<32x3xbf16>, vector<3x432xbf16>, vector<32x432xf32> -> vector<32x432xf32>
    %16 = arith.addf %12, %15 : vector<32x432xf32>
    %17 = vector.extract_strided_slice %11 {offsets = [0, 1], sizes = [3, 432], strides = [1, 1]} : vector<3x512xbf16> to vector<3x432xbf16>
    %c32 = arith.constant 32 : index
    %c0_9 = arith.constant 0 : index
    %18 = vector.load %arg3[%c32, %c0_9] : memref<2736x64xbf16, #tpu.memory_space<vmem>>, vector<32x3xbf16>
    %cst_10 = arith.constant dense<0.000000e+00> : vector<32x432xf32>
    %19 = tpu.matmul %18, %17, %cst_10 {dimension_numbers = #tpu.dot_dimension_numbers<[1], [0], [0], [1], [0, 0, 1, 1], [], []>} : vector<32x3xbf16>, vector<3x432xbf16>, vector<32x432xf32> -> vector<32x432xf32>
    %20 = arith.addf %16, %19 : vector<32x432xf32>
    %21 = vector.extract_strided_slice %11 {offsets = [0, 2], sizes = [3, 432], strides = [1, 1]} : vector<3x512xbf16> to vector<3x432xbf16>
    %c64 = arith.constant 64 : index
    %c0_11 = arith.constant 0 : index
    %22 = vector.load %arg3[%c64, %c0_11] : memref<2736x64xbf16, #tpu.memory_space<vmem>>, vector<32x3xbf16>
    %cst_12 = arith.constant dense<0.000000e+00> : vector<32x432xf32>
    %23 = tpu.matmul %22, %21, %cst_12 {dimension_numbers = #tpu.dot_dimension_numbers<[1], [0], [0], [1], [0, 0, 1, 1], [], []>} : vector<32x3xbf16>, vector<3x432xbf16>, vector<32x432xf32> -> vector<32x432xf32>
    %24 = arith.addf %20, %23 : vector<32x432xf32>
    %25 = vector.extract_strided_slice %11 {offsets = [0, 18], sizes = [3, 432], strides = [1, 1]} : vector<3x512xbf16> to vector<3x432xbf16>
    %c96 = arith.constant 96 : index
    %c0_13 = arith.constant 0 : index
    %26 = vector.load %arg3[%c96, %c0_13] : memref<2736x64xbf16, #tpu.memory_space<vmem>>, vector<32x3xbf16>
    %cst_14 = arith.constant dense<0.000000e+00> : vector<32x432xf32>
    %27 = tpu.matmul %26, %25, %cst_14 {dimension_numbers = #tpu.dot_dimension_numbers<[1], [0], [0], [1], [0, 0, 1, 1], [], []>} : vector<32x3xbf16>, vector<3x432xbf16>, vector<32x432xf32> -> vector<32x432xf32>
    %28 = arith.addf %24, %27 : vector<32x432xf32>
    %29 = vector.extract_strided_slice %11 {offsets = [0, 19], sizes = [3, 432], strides = [1, 1]} : vector<3x512xbf16> to vector<3x432xbf16>
    %c128 = arith.constant 128 : index
    %c0_15 = arith.constant 0 : index
    %30 = vector.load %arg3[%c128, %c0_15] : memref<2736x64xbf16, #tpu.memory_space<vmem>>, vector<32x3xbf16>
    %cst_16 = arith.constant dense<0.000000e+00> : vector<32x432xf32>
    %31 = tpu.matmul %30, %29, %cst_16 {dimension_numbers = #tpu.dot_dimension_numbers<[1], [0], [0], [1], [0, 0, 1, 1], [], []>} : vector<32x3xbf16>, vector<3x432xbf16>, vector<32x432xf32> -> vector<32x432xf32>
    %32 = arith.addf %28, %31 : vector<32x432xf32>
    %33 = vector.extract_strided_slice %11 {offsets = [0, 20], sizes = [3, 432], strides = [1, 1]} : vector<3x512xbf16> to vector<3x432xbf16>
    %c160 = arith.constant 160 : index
    %c0_17 = arith.constant 0 : index
    %34 = vector.load %arg3[%c160, %c0_17] : memref<2736x64xbf16, #tpu.memory_space<vmem>>, vector<32x3xbf16>
    %cst_18 = arith.constant dense<0.000000e+00> : vector<32x432xf32>
    %35 = tpu.matmul %34, %33, %cst_18 {dimension_numbers = #tpu.dot_dimension_numbers<[1], [0], [0], [1], [0, 0, 1, 1], [], []>} : vector<32x3xbf16>, vector<3x432xbf16>, vector<32x432xf32> -> vector<32x432xf32>
    %36 = arith.addf %32, %35 : vector<32x432xf32>
    %37 = vector.extract_strided_slice %11 {offsets = [0, 36], sizes = [3, 432], strides = [1, 1]} : vector<3x512xbf16> to vector<3x432xbf16>
    %c192 = arith.constant 192 : index
    %c0_19 = arith.constant 0 : index
    %38 = vector.load %arg3[%c192, %c0_19] : memref<2736x64xbf16, #tpu.memory_space<vmem>>, vector<32x3xbf16>
    %cst_20 = arith.constant dense<0.000000e+00> : vector<32x432xf32>
    %39 = tpu.matmul %38, %37, %cst_20 {dimension_numbers = #tpu.dot_dimension_numbers<[1], [0], [0], [1], [0, 0, 1, 1], [], []>} : vector<32x3xbf16>, vector<3x432xbf16>, vector<32x432xf32> -> vector<32x432xf32>
    %40 = arith.addf %36, %39 : vector<32x432xf32>
    %41 = vector.extract_strided_slice %11 {offsets = [0, 37], sizes = [3, 432], strides = [1, 1]} : vector<3x512xbf16> to vector<3x432xbf16>
    %c224 = arith.constant 224 : index
    %c0_21 = arith.constant 0 : index
    %42 = vector.load %arg3[%c224, %c0_21] : memref<2736x64xbf16, #tpu.memory_space<vmem>>, vector<32x3xbf16>
    %cst_22 = arith.constant dense<0.000000e+00> : vector<32x432xf32>
    %43 = tpu.matmul %42, %41, %cst_22 {dimension_numbers = #tpu.dot_dimension_numbers<[1], [0], [0], [1], [0, 0, 1, 1], [], []>} : vector<32x3xbf16>, vector<3x432xbf16>, vector<32x432xf32> -> vector<32x432xf32>
    %44 = arith.addf %40, %43 : vector<32x432xf32>
    %45 = vector.extract_strided_slice %11 {offsets = [0, 38], sizes = [3, 432], strides = [1, 1]} : vector<3x512xbf16> to vector<3x432xbf16>
    %c256 = arith.constant 256 : index
    %c0_23 = arith.constant 0 : index
    %46 = vector.load %arg3[%c256, %c0_23] : memref<2736x64xbf16, #tpu.memory_space<vmem>>, vector<32x3xbf16>
    %cst_24 = arith.constant dense<0.000000e+00> : vector<32x432xf32>
    %47 = tpu.matmul %46, %45, %cst_24 {dimension_numbers = #tpu.dot_dimension_numbers<[1], [0], [0], [1], [0, 0, 1, 1], [], []>} : vector<32x3xbf16>, vector<3x432xbf16>, vector<32x432xf32> -> vector<32x432xf32>
    %48 = arith.addf %44, %47 : vector<32x432xf32>
    %c0_25 = arith.constant 0 : index
    %c0_26 = arith.constant 0 : index
    %49 = vector.load %arg4[%c0_25, %c0_26] : memref<64x8xf32, #tpu.memory_space<vmem>>, vector<32x1xf32>
    %50 = vector.broadcast %49 : vector<32x1xf32> to vector<32x432xf32>
    %51 = arith.addf %48, %50 : vector<32x432xf32>
    %cst_27 = arith.constant 0.000000e+00 : f32
    %52 = vector.broadcast %cst_27 : f32 to vector<32x432xf32>
    %53 = arith.maximumf %51, %52 : vector<32x432xf32>
    %cst_28 = arith.constant 0.000000e+00 : f32
    %54 = vector.shape_cast %8 : vector<1x432xi1> to vector<1x432xi1>
    %55 = vector.broadcast %54 : vector<1x432xi1> to vector<32x432xi1>
    %56 = vector.broadcast %cst_28 : f32 to vector<32x432xf32>
    %57 = arith.select %55, %53, %56 : vector<32x432xi1>, vector<32x432xf32>
    %cst_29 = arith.constant 0.000000e+00 : f32
    %58 = vector.broadcast %cst_29 : f32 to vector<32x19xf32>
    %cst_30 = arith.constant 0.000000e+00 : f32
    %59 = vector.broadcast %cst_30 : f32 to vector<32x61xf32>
    %60 = tpu.concatenate %58, %57, %59 in 1 : vector<32x19xf32>, vector<32x432xf32>, vector<32x61xf32> -> vector<32x512xf32>
    %61 = arith.truncf %60 : vector<32x512xf32> to vector<32x512xbf16>
    %cst_31 = arith.constant 0.000000e+00 : f32
    %62 = vector.broadcast %cst_31 : f32 to vector<32x432xf32>
    %63 = vector.extract_strided_slice %61 {offsets = [0, 0], sizes = [32, 432], strides = [1, 1]} : vector<32x512xbf16> to vector<32x432xbf16>
    %c288 = arith.constant 288 : index
    %c0_32 = arith.constant 0 : index
    %64 = vector.load %arg3[%c288, %c0_32] : memref<2736x64xbf16, #tpu.memory_space<vmem>>, vector<32x32xbf16>
    %cst_33 = arith.constant dense<0.000000e+00> : vector<32x432xf32>
    %65 = tpu.matmul %64, %63, %cst_33 {dimension_numbers = #tpu.dot_dimension_numbers<[1], [0], [0], [1], [0, 0, 1, 1], [], []>} : vector<32x32xbf16>, vector<32x432xbf16>, vector<32x432xf32> -> vector<32x432xf32>
    %66 = arith.addf %62, %65 : vector<32x432xf32>
    %67 = vector.extract_strided_slice %61 {offsets = [0, 1], sizes = [32, 432], strides = [1, 1]} : vector<32x512xbf16> to vector<32x432xbf16>
    %c320 = arith.constant 320 : index
    %c0_34 = arith.constant 0 : index
    %68 = vector.load %arg3[%c320, %c0_34] : memref<2736x64xbf16, #tpu.memory_space<vmem>>, vector<32x32xbf16>
    %cst_35 = arith.constant dense<0.000000e+00> : vector<32x432xf32>
    %69 = tpu.matmul %68, %67, %cst_35 {dimension_numbers = #tpu.dot_dimension_numbers<[1], [0], [0], [1], [0, 0, 1, 1], [], []>} : vector<32x32xbf16>, vector<32x432xbf16>, vector<32x432xf32> -> vector<32x432xf32>
    %70 = arith.addf %66, %69 : vector<32x432xf32>
    %71 = vector.extract_strided_slice %61 {offsets = [0, 2], sizes = [32, 432], strides = [1, 1]} : vector<32x512xbf16> to vector<32x432xbf16>
    %c352 = arith.constant 352 : index
    %c0_36 = arith.constant 0 : index
    %72 = vector.load %arg3[%c352, %c0_36] : memref<2736x64xbf16, #tpu.memory_space<vmem>>, vector<32x32xbf16>
    %cst_37 = arith.constant dense<0.000000e+00> : vector<32x432xf32>
    %73 = tpu.matmul %72, %71, %cst_37 {dimension_numbers = #tpu.dot_dimension_numbers<[1], [0], [0], [1], [0, 0, 1, 1], [], []>} : vector<32x32xbf16>, vector<32x432xbf16>, vector<32x432xf32> -> vector<32x432xf32>
    %74 = arith.addf %70, %73 : vector<32x432xf32>
    %75 = vector.extract_strided_slice %61 {offsets = [0, 18], sizes = [32, 432], strides = [1, 1]} : vector<32x512xbf16> to vector<32x432xbf16>
    %c384 = arith.constant 384 : index
    %c0_38 = arith.constant 0 : index
    %76 = vector.load %arg3[%c384, %c0_38] : memref<2736x64xbf16, #tpu.memory_space<vmem>>, vector<32x32xbf16>
    %cst_39 = arith.constant dense<0.000000e+00> : vector<32x432xf32>
    %77 = tpu.matmul %76, %75, %cst_39 {dimension_numbers = #tpu.dot_dimension_numbers<[1], [0], [0], [1], [0, 0, 1, 1], [], []>} : vector<32x32xbf16>, vector<32x432xbf16>, vector<32x432xf32> -> vector<32x432xf32>
    %78 = arith.addf %74, %77 : vector<32x432xf32>
    %79 = vector.extract_strided_slice %61 {offsets = [0, 19], sizes = [32, 432], strides = [1, 1]} : vector<32x512xbf16> to vector<32x432xbf16>
    %c416 = arith.constant 416 : index
    %c0_40 = arith.constant 0 : index
    %80 = vector.load %arg3[%c416, %c0_40] : memref<2736x64xbf16, #tpu.memory_space<vmem>>, vector<32x32xbf16>
    %cst_41 = arith.constant dense<0.000000e+00> : vector<32x432xf32>
    %81 = tpu.matmul %80, %79, %cst_41 {dimension_numbers = #tpu.dot_dimension_numbers<[1], [0], [0], [1], [0, 0, 1, 1], [], []>} : vector<32x32xbf16>, vector<32x432xbf16>, vector<32x432xf32> -> vector<32x432xf32>
    %82 = arith.addf %78, %81 : vector<32x432xf32>
    %83 = vector.extract_strided_slice %61 {offsets = [0, 20], sizes = [32, 432], strides = [1, 1]} : vector<32x512xbf16> to vector<32x432xbf16>
    %c448 = arith.constant 448 : index
    %c0_42 = arith.constant 0 : index
    %84 = vector.load %arg3[%c448, %c0_42] : memref<2736x64xbf16, #tpu.memory_space<vmem>>, vector<32x32xbf16>
    %cst_43 = arith.constant dense<0.000000e+00> : vector<32x432xf32>
    %85 = tpu.matmul %84, %83, %cst_43 {dimension_numbers = #tpu.dot_dimension_numbers<[1], [0], [0], [1], [0, 0, 1, 1], [], []>} : vector<32x32xbf16>, vector<32x432xbf16>, vector<32x432xf32> -> vector<32x432xf32>
    %86 = arith.addf %82, %85 : vector<32x432xf32>
    %87 = vector.extract_strided_slice %61 {offsets = [0, 36], sizes = [32, 432], strides = [1, 1]} : vector<32x512xbf16> to vector<32x432xbf16>
    %c480 = arith.constant 480 : index
    %c0_44 = arith.constant 0 : index
    %88 = vector.load %arg3[%c480, %c0_44] : memref<2736x64xbf16, #tpu.memory_space<vmem>>, vector<32x32xbf16>
    %cst_45 = arith.constant dense<0.000000e+00> : vector<32x432xf32>
    %89 = tpu.matmul %88, %87, %cst_45 {dimension_numbers = #tpu.dot_dimension_numbers<[1], [0], [0], [1], [0, 0, 1, 1], [], []>} : vector<32x32xbf16>, vector<32x432xbf16>, vector<32x432xf32> -> vector<32x432xf32>
    %90 = arith.addf %86, %89 : vector<32x432xf32>
    %91 = vector.extract_strided_slice %61 {offsets = [0, 37], sizes = [32, 432], strides = [1, 1]} : vector<32x512xbf16> to vector<32x432xbf16>
    %c512 = arith.constant 512 : index
    %c0_46 = arith.constant 0 : index
    %92 = vector.load %arg3[%c512, %c0_46] : memref<2736x64xbf16, #tpu.memory_space<vmem>>, vector<32x32xbf16>
    %cst_47 = arith.constant dense<0.000000e+00> : vector<32x432xf32>
    %93 = tpu.matmul %92, %91, %cst_47 {dimension_numbers = #tpu.dot_dimension_numbers<[1], [0], [0], [1], [0, 0, 1, 1], [], []>} : vector<32x32xbf16>, vector<32x432xbf16>, vector<32x432xf32> -> vector<32x432xf32>
    %94 = arith.addf %90, %93 : vector<32x432xf32>
    %95 = vector.extract_strided_slice %61 {offsets = [0, 38], sizes = [32, 432], strides = [1, 1]} : vector<32x512xbf16> to vector<32x432xbf16>
    %c544 = arith.constant 544 : index
    %c0_48 = arith.constant 0 : index
    %96 = vector.load %arg3[%c544, %c0_48] : memref<2736x64xbf16, #tpu.memory_space<vmem>>, vector<32x32xbf16>
    %cst_49 = arith.constant dense<0.000000e+00> : vector<32x432xf32>
    %97 = tpu.matmul %96, %95, %cst_49 {dimension_numbers = #tpu.dot_dimension_numbers<[1], [0], [0], [1], [0, 0, 1, 1], [], []>} : vector<32x32xbf16>, vector<32x432xbf16>, vector<32x432xf32> -> vector<32x432xf32>
    %98 = arith.addf %94, %97 : vector<32x432xf32>
    %c0_50 = arith.constant 0 : index
    %c1 = arith.constant 1 : index
    %99 = vector.load %arg4[%c0_50, %c1] : memref<64x8xf32, #tpu.memory_space<vmem>>, vector<32x1xf32>
    %100 = vector.broadcast %99 : vector<32x1xf32> to vector<32x432xf32>
    %101 = arith.addf %98, %100 : vector<32x432xf32>
    %cst_51 = arith.constant 0.000000e+00 : f32
    %102 = vector.broadcast %cst_51 : f32 to vector<32x432xf32>
    %103 = arith.maximumf %101, %102 : vector<32x432xf32>
    %cst_52 = arith.constant 0.000000e+00 : f32
    %104 = vector.shape_cast %8 : vector<1x432xi1> to vector<1x432xi1>
    %105 = vector.broadcast %104 : vector<1x432xi1> to vector<32x432xi1>
    %106 = vector.broadcast %cst_52 : f32 to vector<32x432xf32>
    %107 = arith.select %105, %103, %106 : vector<32x432xi1>, vector<32x432xf32>
    %cst_53 = arith.constant 0.000000e+00 : f32
    %108 = vector.broadcast %cst_53 : f32 to vector<32x19xf32>
    %cst_54 = arith.constant 0.000000e+00 : f32
    %109 = vector.broadcast %cst_54 : f32 to vector<32x61xf32>
    %110 = tpu.concatenate %108, %107, %109 in 1 : vector<32x19xf32>, vector<32x432xf32>, vector<32x61xf32> -> vector<32x512xf32>
    %111 = arith.truncf %110 : vector<32x512xf32> to vector<32x512xbf16>
    %cst_55 = arith.constant 0.000000e+00 : f32
    %112 = vector.broadcast %cst_55 : f32 to vector<48x432xf32>
    %113 = vector.extract_strided_slice %111 {offsets = [0, 0], sizes = [32, 432], strides = [1, 1]} : vector<32x512xbf16> to vector<32x432xbf16>
    %c576 = arith.constant 576 : index
    %c0_56 = arith.constant 0 : index
    %114 = vector.load %arg3[%c576, %c0_56] : memref<2736x64xbf16, #tpu.memory_space<vmem>>, vector<48x32xbf16>
    %cst_57 = arith.constant dense<0.000000e+00> : vector<48x432xf32>
    %115 = tpu.matmul %114, %113, %cst_57 {dimension_numbers = #tpu.dot_dimension_numbers<[1], [0], [0], [1], [0, 0, 1, 1], [], []>} : vector<48x32xbf16>, vector<32x432xbf16>, vector<48x432xf32> -> vector<48x432xf32>
    %116 = arith.addf %112, %115 : vector<48x432xf32>
    %117 = vector.extract_strided_slice %111 {offsets = [0, 1], sizes = [32, 432], strides = [1, 1]} : vector<32x512xbf16> to vector<32x432xbf16>
    %c624 = arith.constant 624 : index
    %c0_58 = arith.constant 0 : index
    %118 = vector.load %arg3[%c624, %c0_58] : memref<2736x64xbf16, #tpu.memory_space<vmem>>, vector<48x32xbf16>
    %cst_59 = arith.constant dense<0.000000e+00> : vector<48x432xf32>
    %119 = tpu.matmul %118, %117, %cst_59 {dimension_numbers = #tpu.dot_dimension_numbers<[1], [0], [0], [1], [0, 0, 1, 1], [], []>} : vector<48x32xbf16>, vector<32x432xbf16>, vector<48x432xf32> -> vector<48x432xf32>
    %120 = arith.addf %116, %119 : vector<48x432xf32>
    %121 = vector.extract_strided_slice %111 {offsets = [0, 2], sizes = [32, 432], strides = [1, 1]} : vector<32x512xbf16> to vector<32x432xbf16>
    %c672 = arith.constant 672 : index
    %c0_60 = arith.constant 0 : index
    %122 = vector.load %arg3[%c672, %c0_60] : memref<2736x64xbf16, #tpu.memory_space<vmem>>, vector<48x32xbf16>
    %cst_61 = arith.constant dense<0.000000e+00> : vector<48x432xf32>
    %123 = tpu.matmul %122, %121, %cst_61 {dimension_numbers = #tpu.dot_dimension_numbers<[1], [0], [0], [1], [0, 0, 1, 1], [], []>} : vector<48x32xbf16>, vector<32x432xbf16>, vector<48x432xf32> -> vector<48x432xf32>
    %124 = arith.addf %120, %123 : vector<48x432xf32>
    %125 = vector.extract_strided_slice %111 {offsets = [0, 18], sizes = [32, 432], strides = [1, 1]} : vector<32x512xbf16> to vector<32x432xbf16>
    %c720 = arith.constant 720 : index
    %c0_62 = arith.constant 0 : index
    %126 = vector.load %arg3[%c720, %c0_62] : memref<2736x64xbf16, #tpu.memory_space<vmem>>, vector<48x32xbf16>
    %cst_63 = arith.constant dense<0.000000e+00> : vector<48x432xf32>
    %127 = tpu.matmul %126, %125, %cst_63 {dimension_numbers = #tpu.dot_dimension_numbers<[1], [0], [0], [1], [0, 0, 1, 1], [], []>} : vector<48x32xbf16>, vector<32x432xbf16>, vector<48x432xf32> -> vector<48x432xf32>
    %128 = arith.addf %124, %127 : vector<48x432xf32>
    %129 = vector.extract_strided_slice %111 {offsets = [0, 19], sizes = [32, 432], strides = [1, 1]} : vector<32x512xbf16> to vector<32x432xbf16>
    %c768 = arith.constant 768 : index
    %c0_64 = arith.constant 0 : index
    %130 = vector.load %arg3[%c768, %c0_64] : memref<2736x64xbf16, #tpu.memory_space<vmem>>, vector<48x32xbf16>
    %cst_65 = arith.constant dense<0.000000e+00> : vector<48x432xf32>
    %131 = tpu.matmul %130, %129, %cst_65 {dimension_numbers = #tpu.dot_dimension_numbers<[1], [0], [0], [1], [0, 0, 1, 1], [], []>} : vector<48x32xbf16>, vector<32x432xbf16>, vector<48x432xf32> -> vector<48x432xf32>
    %132 = arith.addf %128, %131 : vector<48x432xf32>
    %133 = vector.extract_strided_slice %111 {offsets = [0, 20], sizes = [32, 432], strides = [1, 1]} : vector<32x512xbf16> to vector<32x432xbf16>
    %c816 = arith.constant 816 : index
    %c0_66 = arith.constant 0 : index
    %134 = vector.load %arg3[%c816, %c0_66] : memref<2736x64xbf16, #tpu.memory_space<vmem>>, vector<48x32xbf16>
    %cst_67 = arith.constant dense<0.000000e+00> : vector<48x432xf32>
    %135 = tpu.matmul %134, %133, %cst_67 {dimension_numbers = #tpu.dot_dimension_numbers<[1], [0], [0], [1], [0, 0, 1, 1], [], []>} : vector<48x32xbf16>, vector<32x432xbf16>, vector<48x432xf32> -> vector<48x432xf32>
    %136 = arith.addf %132, %135 : vector<48x432xf32>
    %137 = vector.extract_strided_slice %111 {offsets = [0, 36], sizes = [32, 432], strides = [1, 1]} : vector<32x512xbf16> to vector<32x432xbf16>
    %c864 = arith.constant 864 : index
    %c0_68 = arith.constant 0 : index
    %138 = vector.load %arg3[%c864, %c0_68] : memref<2736x64xbf16, #tpu.memory_space<vmem>>, vector<48x32xbf16>
    %cst_69 = arith.constant dense<0.000000e+00> : vector<48x432xf32>
    %139 = tpu.matmul %138, %137, %cst_69 {dimension_numbers = #tpu.dot_dimension_numbers<[1], [0], [0], [1], [0, 0, 1, 1], [], []>} : vector<48x32xbf16>, vector<32x432xbf16>, vector<48x432xf32> -> vector<48x432xf32>
    %140 = arith.addf %136, %139 : vector<48x432xf32>
    %141 = vector.extract_strided_slice %111 {offsets = [0, 37], sizes = [32, 432], strides = [1, 1]} : vector<32x512xbf16> to vector<32x432xbf16>
    %c912 = arith.constant 912 : index
    %c0_70 = arith.constant 0 : index
    %142 = vector.load %arg3[%c912, %c0_70] : memref<2736x64xbf16, #tpu.memory_space<vmem>>, vector<48x32xbf16>
    %cst_71 = arith.constant dense<0.000000e+00> : vector<48x432xf32>
    %143 = tpu.matmul %142, %141, %cst_71 {dimension_numbers = #tpu.dot_dimension_numbers<[1], [0], [0], [1], [0, 0, 1, 1], [], []>} : vector<48x32xbf16>, vector<32x432xbf16>, vector<48x432xf32> -> vector<48x432xf32>
    %144 = arith.addf %140, %143 : vector<48x432xf32>
    %145 = vector.extract_strided_slice %111 {offsets = [0, 38], sizes = [32, 432], strides = [1, 1]} : vector<32x512xbf16> to vector<32x432xbf16>
    %c960 = arith.constant 960 : index
    %c0_72 = arith.constant 0 : index
    %146 = vector.load %arg3[%c960, %c0_72] : memref<2736x64xbf16, #tpu.memory_space<vmem>>, vector<48x32xbf16>
    %cst_73 = arith.constant dense<0.000000e+00> : vector<48x432xf32>
    %147 = tpu.matmul %146, %145, %cst_73 {dimension_numbers = #tpu.dot_dimension_numbers<[1], [0], [0], [1], [0, 0, 1, 1], [], []>} : vector<48x32xbf16>, vector<32x432xbf16>, vector<48x432xf32> -> vector<48x432xf32>
    %148 = arith.addf %144, %147 : vector<48x432xf32>
    %c0_74 = arith.constant 0 : index
    %c2 = arith.constant 2 : index
    %149 = vector.load %arg4[%c0_74, %c2] : memref<64x8xf32, #tpu.memory_space<vmem>>, vector<48x1xf32>
    %150 = vector.broadcast %149 : vector<48x1xf32> to vector<48x432xf32>
    %151 = arith.addf %148, %150 : vector<48x432xf32>
    %cst_75 = arith.constant 0.000000e+00 : f32
    %152 = vector.broadcast %cst_75 : f32 to vector<48x432xf32>
    %153 = arith.maximumf %151, %152 : vector<48x432xf32>
    %cst_76 = arith.constant 0.000000e+00 : f32
    %154 = vector.shape_cast %8 : vector<1x432xi1> to vector<1x432xi1>
    %155 = vector.broadcast %154 : vector<1x432xi1> to vector<48x432xi1>
    %156 = vector.broadcast %cst_76 : f32 to vector<48x432xf32>
    %157 = arith.select %155, %153, %156 : vector<48x432xi1>, vector<48x432xf32>
    %cst_77 = arith.constant 0.000000e+00 : f32
    %158 = vector.broadcast %cst_77 : f32 to vector<48x19xf32>
    %cst_78 = arith.constant 0.000000e+00 : f32
    %159 = vector.broadcast %cst_78 : f32 to vector<48x61xf32>
    %160 = tpu.concatenate %158, %157, %159 in 1 : vector<48x19xf32>, vector<48x432xf32>, vector<48x61xf32> -> vector<48x512xf32>
    %161 = arith.truncf %160 : vector<48x512xf32> to vector<48x512xbf16>
    %cst_79 = arith.constant 0.000000e+00 : f32
    %162 = vector.broadcast %cst_79 : f32 to vector<4x432xf32>
    %163 = vector.extract_strided_slice %161 {offsets = [0, 0], sizes = [48, 432], strides = [1, 1]} : vector<48x512xbf16> to vector<48x432xbf16>
    %c1008 = arith.constant 1008 : index
    %c0_80 = arith.constant 0 : index
    %164 = vector.load %arg3[%c1008, %c0_80] : memref<2736x64xbf16, #tpu.memory_space<vmem>>, vector<4x48xbf16>
    %cst_81 = arith.constant dense<0.000000e+00> : vector<4x432xf32>
    %165 = tpu.matmul %164, %163, %cst_81 {dimension_numbers = #tpu.dot_dimension_numbers<[1], [0], [0], [1], [0, 0, 1, 1], [], []>} : vector<4x48xbf16>, vector<48x432xbf16>, vector<4x432xf32> -> vector<4x432xf32>
    %166 = arith.addf %162, %165 : vector<4x432xf32>
    %167 = vector.extract_strided_slice %161 {offsets = [0, 1], sizes = [48, 432], strides = [1, 1]} : vector<48x512xbf16> to vector<48x432xbf16>
    %c1016 = arith.constant 1016 : index
    %c0_82 = arith.constant 0 : index
    %168 = vector.load %arg3[%c1016, %c0_82] : memref<2736x64xbf16, #tpu.memory_space<vmem>>, vector<4x48xbf16>
    %cst_83 = arith.constant dense<0.000000e+00> : vector<4x432xf32>
    %169 = tpu.matmul %168, %167, %cst_83 {dimension_numbers = #tpu.dot_dimension_numbers<[1], [0], [0], [1], [0, 0, 1, 1], [], []>} : vector<4x48xbf16>, vector<48x432xbf16>, vector<4x432xf32> -> vector<4x432xf32>
    %170 = arith.addf %166, %169 : vector<4x432xf32>
    %171 = vector.extract_strided_slice %161 {offsets = [0, 2], sizes = [48, 432], strides = [1, 1]} : vector<48x512xbf16> to vector<48x432xbf16>
    %c1024 = arith.constant 1024 : index
    %c0_84 = arith.constant 0 : index
    %172 = vector.load %arg3[%c1024, %c0_84] : memref<2736x64xbf16, #tpu.memory_space<vmem>>, vector<4x48xbf16>
    %cst_85 = arith.constant dense<0.000000e+00> : vector<4x432xf32>
    %173 = tpu.matmul %172, %171, %cst_85 {dimension_numbers = #tpu.dot_dimension_numbers<[1], [0], [0], [1], [0, 0, 1, 1], [], []>} : vector<4x48xbf16>, vector<48x432xbf16>, vector<4x432xf32> -> vector<4x432xf32>
    %174 = arith.addf %170, %173 : vector<4x432xf32>
    %175 = vector.extract_strided_slice %161 {offsets = [0, 18], sizes = [48, 432], strides = [1, 1]} : vector<48x512xbf16> to vector<48x432xbf16>
    %c1032 = arith.constant 1032 : index
    %c0_86 = arith.constant 0 : index
    %176 = vector.load %arg3[%c1032, %c0_86] : memref<2736x64xbf16, #tpu.memory_space<vmem>>, vector<4x48xbf16>
    %cst_87 = arith.constant dense<0.000000e+00> : vector<4x432xf32>
    %177 = tpu.matmul %176, %175, %cst_87 {dimension_numbers = #tpu.dot_dimension_numbers<[1], [0], [0], [1], [0, 0, 1, 1], [], []>} : vector<4x48xbf16>, vector<48x432xbf16>, vector<4x432xf32> -> vector<4x432xf32>
    %178 = arith.addf %174, %177 : vector<4x432xf32>
    %179 = vector.extract_strided_slice %161 {offsets = [0, 19], sizes = [48, 432], strides = [1, 1]} : vector<48x512xbf16> to vector<48x432xbf16>
    %c1040 = arith.constant 1040 : index
    %c0_88 = arith.constant 0 : index
    %180 = vector.load %arg3[%c1040, %c0_88] : memref<2736x64xbf16, #tpu.memory_space<vmem>>, vector<4x48xbf16>
    %cst_89 = arith.constant dense<0.000000e+00> : vector<4x432xf32>
    %181 = tpu.matmul %180, %179, %cst_89 {dimension_numbers = #tpu.dot_dimension_numbers<[1], [0], [0], [1], [0, 0, 1, 1], [], []>} : vector<4x48xbf16>, vector<48x432xbf16>, vector<4x432xf32> -> vector<4x432xf32>
    %182 = arith.addf %178, %181 : vector<4x432xf32>
    %183 = vector.extract_strided_slice %161 {offsets = [0, 20], sizes = [48, 432], strides = [1, 1]} : vector<48x512xbf16> to vector<48x432xbf16>
    %c1048 = arith.constant 1048 : index
    %c0_90 = arith.constant 0 : index
    %184 = vector.load %arg3[%c1048, %c0_90] : memref<2736x64xbf16, #tpu.memory_space<vmem>>, vector<4x48xbf16>
    %cst_91 = arith.constant dense<0.000000e+00> : vector<4x432xf32>
    %185 = tpu.matmul %184, %183, %cst_91 {dimension_numbers = #tpu.dot_dimension_numbers<[1], [0], [0], [1], [0, 0, 1, 1], [], []>} : vector<4x48xbf16>, vector<48x432xbf16>, vector<4x432xf32> -> vector<4x432xf32>
    %186 = arith.addf %182, %185 : vector<4x432xf32>
    %187 = vector.extract_strided_slice %161 {offsets = [0, 36], sizes = [48, 432], strides = [1, 1]} : vector<48x512xbf16> to vector<48x432xbf16>
    %c1056 = arith.constant 1056 : index
    %c0_92 = arith.constant 0 : index
    %188 = vector.load %arg3[%c1056, %c0_92] : memref<2736x64xbf16, #tpu.memory_space<vmem>>, vector<4x48xbf16>
    %cst_93 = arith.constant dense<0.000000e+00> : vector<4x432xf32>
    %189 = tpu.matmul %188, %187, %cst_93 {dimension_numbers = #tpu.dot_dimension_numbers<[1], [0], [0], [1], [0, 0, 1, 1], [], []>} : vector<4x48xbf16>, vector<48x432xbf16>, vector<4x432xf32> -> vector<4x432xf32>
    %190 = arith.addf %186, %189 : vector<4x432xf32>
    %191 = vector.extract_strided_slice %161 {offsets = [0, 37], sizes = [48, 432], strides = [1, 1]} : vector<48x512xbf16> to vector<48x432xbf16>
    %c1064 = arith.constant 1064 : index
    %c0_94 = arith.constant 0 : index
    %192 = vector.load %arg3[%c1064, %c0_94] : memref<2736x64xbf16, #tpu.memory_space<vmem>>, vector<4x48xbf16>
    %cst_95 = arith.constant dense<0.000000e+00> : vector<4x432xf32>
    %193 = tpu.matmul %192, %191, %cst_95 {dimension_numbers = #tpu.dot_dimension_numbers<[1], [0], [0], [1], [0, 0, 1, 1], [], []>} : vector<4x48xbf16>, vector<48x432xbf16>, vector<4x432xf32> -> vector<4x432xf32>
    %194 = arith.addf %190, %193 : vector<4x432xf32>
    %195 = vector.extract_strided_slice %161 {offsets = [0, 38], sizes = [48, 432], strides = [1, 1]} : vector<48x512xbf16> to vector<48x432xbf16>
    %c1072 = arith.constant 1072 : index
    %c0_96 = arith.constant 0 : index
    %196 = vector.load %arg3[%c1072, %c0_96] : memref<2736x64xbf16, #tpu.memory_space<vmem>>, vector<4x48xbf16>
    %cst_97 = arith.constant dense<0.000000e+00> : vector<4x432xf32>
    %197 = tpu.matmul %196, %195, %cst_97 {dimension_numbers = #tpu.dot_dimension_numbers<[1], [0], [0], [1], [0, 0, 1, 1], [], []>} : vector<4x48xbf16>, vector<48x432xbf16>, vector<4x432xf32> -> vector<4x432xf32>
    %198 = arith.addf %194, %197 : vector<4x432xf32>
    %c0_98 = arith.constant 0 : index
    %c3 = arith.constant 3 : index
    %199 = vector.load %arg4[%c0_98, %c3] : memref<64x8xf32, #tpu.memory_space<vmem>>, vector<4x1xf32>
    %200 = vector.broadcast %199 : vector<4x1xf32> to vector<4x432xf32>
    %201 = arith.addf %198, %200 : vector<4x432xf32>
    %202 = arith.negf %201 : vector<4x432xf32>
    %203 = math.exp %202 : vector<4x432xf32>
    %cst_99 = arith.constant 1.000000e+00 : f32
    %204 = vector.broadcast %cst_99 : f32 to vector<4x432xf32>
    %205 = arith.addf %204, %203 : vector<4x432xf32>
    %206 = arith.divf %204, %205 : vector<4x432xf32>
    %cst_100 = arith.constant 0.000000e+00 : f32
    %207 = vector.shape_cast %8 : vector<1x432xi1> to vector<1x432xi1>
    %208 = vector.broadcast %207 : vector<1x432xi1> to vector<4x432xi1>
    %209 = vector.broadcast %cst_100 : f32 to vector<4x432xf32>
    %210 = arith.select %208, %206, %209 : vector<4x432xi1>, vector<4x432xf32>
    %cst_101 = arith.constant 0.000000e+00 : f32
    %211 = vector.broadcast %cst_101 : f32 to vector<4x19xf32>
    %cst_102 = arith.constant 0.000000e+00 : f32
    %212 = vector.broadcast %cst_102 : f32 to vector<4x61xf32>
    %213 = tpu.concatenate %211, %210, %212 in 1 : vector<4x19xf32>, vector<4x432xf32>, vector<4x61xf32> -> vector<4x512xf32>
    %214 = arith.truncf %213 : vector<4x512xf32> to vector<4x512xbf16>
    %cst_103 = arith.constant 0.000000e+00 : f32
    %215 = vector.broadcast %cst_103 : f32 to vector<48x432xf32>
    %216 = vector.extract_strided_slice %214 {offsets = [0, 0], sizes = [4, 432], strides = [1, 1]} : vector<4x512xbf16> to vector<4x432xbf16>
    %c1080 = arith.constant 1080 : index
    %c0_104 = arith.constant 0 : index
    %217 = vector.load %arg3[%c1080, %c0_104] : memref<2736x64xbf16, #tpu.memory_space<vmem>>, vector<48x4xbf16>
    %cst_105 = arith.constant dense<0.000000e+00> : vector<48x432xf32>
    %218 = tpu.matmul %217, %216, %cst_105 {dimension_numbers = #tpu.dot_dimension_numbers<[1], [0], [0], [1], [0, 0, 1, 1], [], []>} : vector<48x4xbf16>, vector<4x432xbf16>, vector<48x432xf32> -> vector<48x432xf32>
    %219 = arith.addf %215, %218 : vector<48x432xf32>
    %220 = vector.extract_strided_slice %214 {offsets = [0, 1], sizes = [4, 432], strides = [1, 1]} : vector<4x512xbf16> to vector<4x432xbf16>
    %c1128 = arith.constant 1128 : index
    %c0_106 = arith.constant 0 : index
    %221 = vector.load %arg3[%c1128, %c0_106] : memref<2736x64xbf16, #tpu.memory_space<vmem>>, vector<48x4xbf16>
    %cst_107 = arith.constant dense<0.000000e+00> : vector<48x432xf32>
    %222 = tpu.matmul %221, %220, %cst_107 {dimension_numbers = #tpu.dot_dimension_numbers<[1], [0], [0], [1], [0, 0, 1, 1], [], []>} : vector<48x4xbf16>, vector<4x432xbf16>, vector<48x432xf32> -> vector<48x432xf32>
    %223 = arith.addf %219, %222 : vector<48x432xf32>
    %224 = vector.extract_strided_slice %214 {offsets = [0, 2], sizes = [4, 432], strides = [1, 1]} : vector<4x512xbf16> to vector<4x432xbf16>
    %c1176 = arith.constant 1176 : index
    %c0_108 = arith.constant 0 : index
    %225 = vector.load %arg3[%c1176, %c0_108] : memref<2736x64xbf16, #tpu.memory_space<vmem>>, vector<48x4xbf16>
    %cst_109 = arith.constant dense<0.000000e+00> : vector<48x432xf32>
    %226 = tpu.matmul %225, %224, %cst_109 {dimension_numbers = #tpu.dot_dimension_numbers<[1], [0], [0], [1], [0, 0, 1, 1], [], []>} : vector<48x4xbf16>, vector<4x432xbf16>, vector<48x432xf32> -> vector<48x432xf32>
    %227 = arith.addf %223, %226 : vector<48x432xf32>
    %228 = vector.extract_strided_slice %214 {offsets = [0, 18], sizes = [4, 432], strides = [1, 1]} : vector<4x512xbf16> to vector<4x432xbf16>
    %c1224 = arith.constant 1224 : index
    %c0_110 = arith.constant 0 : index
    %229 = vector.load %arg3[%c1224, %c0_110] : memref<2736x64xbf16, #tpu.memory_space<vmem>>, vector<48x4xbf16>
    %cst_111 = arith.constant dense<0.000000e+00> : vector<48x432xf32>
    %230 = tpu.matmul %229, %228, %cst_111 {dimension_numbers = #tpu.dot_dimension_numbers<[1], [0], [0], [1], [0, 0, 1, 1], [], []>} : vector<48x4xbf16>, vector<4x432xbf16>, vector<48x432xf32> -> vector<48x432xf32>
    %231 = arith.addf %227, %230 : vector<48x432xf32>
    %232 = vector.extract_strided_slice %214 {offsets = [0, 19], sizes = [4, 432], strides = [1, 1]} : vector<4x512xbf16> to vector<4x432xbf16>
    %c1272 = arith.constant 1272 : index
    %c0_112 = arith.constant 0 : index
    %233 = vector.load %arg3[%c1272, %c0_112] : memref<2736x64xbf16, #tpu.memory_space<vmem>>, vector<48x4xbf16>
    %cst_113 = arith.constant dense<0.000000e+00> : vector<48x432xf32>
    %234 = tpu.matmul %233, %232, %cst_113 {dimension_numbers = #tpu.dot_dimension_numbers<[1], [0], [0], [1], [0, 0, 1, 1], [], []>} : vector<48x4xbf16>, vector<4x432xbf16>, vector<48x432xf32> -> vector<48x432xf32>
    %235 = arith.addf %231, %234 : vector<48x432xf32>
    %236 = vector.extract_strided_slice %214 {offsets = [0, 20], sizes = [4, 432], strides = [1, 1]} : vector<4x512xbf16> to vector<4x432xbf16>
    %c1320 = arith.constant 1320 : index
    %c0_114 = arith.constant 0 : index
    %237 = vector.load %arg3[%c1320, %c0_114] : memref<2736x64xbf16, #tpu.memory_space<vmem>>, vector<48x4xbf16>
    %cst_115 = arith.constant dense<0.000000e+00> : vector<48x432xf32>
    %238 = tpu.matmul %237, %236, %cst_115 {dimension_numbers = #tpu.dot_dimension_numbers<[1], [0], [0], [1], [0, 0, 1, 1], [], []>} : vector<48x4xbf16>, vector<4x432xbf16>, vector<48x432xf32> -> vector<48x432xf32>
    %239 = arith.addf %235, %238 : vector<48x432xf32>
    %240 = vector.extract_strided_slice %214 {offsets = [0, 36], sizes = [4, 432], strides = [1, 1]} : vector<4x512xbf16> to vector<4x432xbf16>
    %c1368 = arith.constant 1368 : index
    %c0_116 = arith.constant 0 : index
    %241 = vector.load %arg3[%c1368, %c0_116] : memref<2736x64xbf16, #tpu.memory_space<vmem>>, vector<48x4xbf16>
    %cst_117 = arith.constant dense<0.000000e+00> : vector<48x432xf32>
    %242 = tpu.matmul %241, %240, %cst_117 {dimension_numbers = #tpu.dot_dimension_numbers<[1], [0], [0], [1], [0, 0, 1, 1], [], []>} : vector<48x4xbf16>, vector<4x432xbf16>, vector<48x432xf32> -> vector<48x432xf32>
    %243 = arith.addf %239, %242 : vector<48x432xf32>
    %244 = vector.extract_strided_slice %214 {offsets = [0, 37], sizes = [4, 432], strides = [1, 1]} : vector<4x512xbf16> to vector<4x432xbf16>
    %c1416 = arith.constant 1416 : index
    %c0_118 = arith.constant 0 : index
    %245 = vector.load %arg3[%c1416, %c0_118] : memref<2736x64xbf16, #tpu.memory_space<vmem>>, vector<48x4xbf16>
    %cst_119 = arith.constant dense<0.000000e+00> : vector<48x432xf32>
    %246 = tpu.matmul %245, %244, %cst_119 {dimension_numbers = #tpu.dot_dimension_numbers<[1], [0], [0], [1], [0, 0, 1, 1], [], []>} : vector<48x4xbf16>, vector<4x432xbf16>, vector<48x432xf32> -> vector<48x432xf32>
    %247 = arith.addf %243, %246 : vector<48x432xf32>
    %248 = vector.extract_strided_slice %214 {offsets = [0, 38], sizes = [4, 432], strides = [1, 1]} : vector<4x512xbf16> to vector<4x432xbf16>
    %c1464 = arith.constant 1464 : index
    %c0_120 = arith.constant 0 : index
    %249 = vector.load %arg3[%c1464, %c0_120] : memref<2736x64xbf16, #tpu.memory_space<vmem>>, vector<48x4xbf16>
    %cst_121 = arith.constant dense<0.000000e+00> : vector<48x432xf32>
    %250 = tpu.matmul %249, %248, %cst_121 {dimension_numbers = #tpu.dot_dimension_numbers<[1], [0], [0], [1], [0, 0, 1, 1], [], []>} : vector<48x4xbf16>, vector<4x432xbf16>, vector<48x432xf32> -> vector<48x432xf32>
    %251 = arith.addf %247, %250 : vector<48x432xf32>
    %c0_122 = arith.constant 0 : index
    %c4 = arith.constant 4 : index
    %252 = vector.load %arg4[%c0_122, %c4] : memref<64x8xf32, #tpu.memory_space<vmem>>, vector<48x1xf32>
    %253 = vector.broadcast %252 : vector<48x1xf32> to vector<48x432xf32>
    %254 = arith.addf %251, %253 : vector<48x432xf32>
    %cst_123 = arith.constant 0.000000e+00 : f32
    %255 = vector.broadcast %cst_123 : f32 to vector<48x432xf32>
    %256 = arith.maximumf %254, %255 : vector<48x432xf32>
    %cst_124 = arith.constant 0.000000e+00 : f32
    %257 = vector.shape_cast %8 : vector<1x432xi1> to vector<1x432xi1>
    %258 = vector.broadcast %257 : vector<1x432xi1> to vector<48x432xi1>
    %259 = vector.broadcast %cst_124 : f32 to vector<48x432xf32>
    %260 = arith.select %258, %256, %259 : vector<48x432xi1>, vector<48x432xf32>
    %cst_125 = arith.constant 0.000000e+00 : f32
    %261 = vector.broadcast %cst_125 : f32 to vector<48x19xf32>
    %cst_126 = arith.constant 0.000000e+00 : f32
    %262 = vector.broadcast %cst_126 : f32 to vector<48x61xf32>
    %263 = tpu.concatenate %261, %260, %262 in 1 : vector<48x19xf32>, vector<48x432xf32>, vector<48x61xf32> -> vector<48x512xf32>
    %264 = arith.truncf %263 : vector<48x512xf32> to vector<48x512xbf16>
    %cst_127 = arith.constant 0.000000e+00 : f32
    %265 = vector.broadcast %cst_127 : f32 to vector<64x432xf32>
    %266 = vector.extract_strided_slice %264 {offsets = [0, 0], sizes = [48, 432], strides = [1, 1]} : vector<48x512xbf16> to vector<48x432xbf16>
    %c1512 = arith.constant 1512 : index
    %c0_128 = arith.constant 0 : index
    %267 = vector.load %arg3[%c1512, %c0_128] : memref<2736x64xbf16, #tpu.memory_space<vmem>>, vector<64x48xbf16>
    %cst_129 = arith.constant dense<0.000000e+00> : vector<64x432xf32>
    %268 = tpu.matmul %267, %266, %cst_129 {dimension_numbers = #tpu.dot_dimension_numbers<[1], [0], [0], [1], [0, 0, 1, 1], [], []>} : vector<64x48xbf16>, vector<48x432xbf16>, vector<64x432xf32> -> vector<64x432xf32>
    %269 = arith.addf %265, %268 : vector<64x432xf32>
    %270 = vector.extract_strided_slice %264 {offsets = [0, 1], sizes = [48, 432], strides = [1, 1]} : vector<48x512xbf16> to vector<48x432xbf16>
    %c1576 = arith.constant 1576 : index
    %c0_130 = arith.constant 0 : index
    %271 = vector.load %arg3[%c1576, %c0_130] : memref<2736x64xbf16, #tpu.memory_space<vmem>>, vector<64x48xbf16>
    %cst_131 = arith.constant dense<0.000000e+00> : vector<64x432xf32>
    %272 = tpu.matmul %271, %270, %cst_131 {dimension_numbers = #tpu.dot_dimension_numbers<[1], [0], [0], [1], [0, 0, 1, 1], [], []>} : vector<64x48xbf16>, vector<48x432xbf16>, vector<64x432xf32> -> vector<64x432xf32>
    %273 = arith.addf %269, %272 : vector<64x432xf32>
    %274 = vector.extract_strided_slice %264 {offsets = [0, 2], sizes = [48, 432], strides = [1, 1]} : vector<48x512xbf16> to vector<48x432xbf16>
    %c1640 = arith.constant 1640 : index
    %c0_132 = arith.constant 0 : index
    %275 = vector.load %arg3[%c1640, %c0_132] : memref<2736x64xbf16, #tpu.memory_space<vmem>>, vector<64x48xbf16>
    %cst_133 = arith.constant dense<0.000000e+00> : vector<64x432xf32>
    %276 = tpu.matmul %275, %274, %cst_133 {dimension_numbers = #tpu.dot_dimension_numbers<[1], [0], [0], [1], [0, 0, 1, 1], [], []>} : vector<64x48xbf16>, vector<48x432xbf16>, vector<64x432xf32> -> vector<64x432xf32>
    %277 = arith.addf %273, %276 : vector<64x432xf32>
    %278 = vector.extract_strided_slice %264 {offsets = [0, 18], sizes = [48, 432], strides = [1, 1]} : vector<48x512xbf16> to vector<48x432xbf16>
    %c1704 = arith.constant 1704 : index
    %c0_134 = arith.constant 0 : index
    %279 = vector.load %arg3[%c1704, %c0_134] : memref<2736x64xbf16, #tpu.memory_space<vmem>>, vector<64x48xbf16>
    %cst_135 = arith.constant dense<0.000000e+00> : vector<64x432xf32>
    %280 = tpu.matmul %279, %278, %cst_135 {dimension_numbers = #tpu.dot_dimension_numbers<[1], [0], [0], [1], [0, 0, 1, 1], [], []>} : vector<64x48xbf16>, vector<48x432xbf16>, vector<64x432xf32> -> vector<64x432xf32>
    %281 = arith.addf %277, %280 : vector<64x432xf32>
    %282 = vector.extract_strided_slice %264 {offsets = [0, 19], sizes = [48, 432], strides = [1, 1]} : vector<48x512xbf16> to vector<48x432xbf16>
    %c1768 = arith.constant 1768 : index
    %c0_136 = arith.constant 0 : index
    %283 = vector.load %arg3[%c1768, %c0_136] : memref<2736x64xbf16, #tpu.memory_space<vmem>>, vector<64x48xbf16>
    %cst_137 = arith.constant dense<0.000000e+00> : vector<64x432xf32>
    %284 = tpu.matmul %283, %282, %cst_137 {dimension_numbers = #tpu.dot_dimension_numbers<[1], [0], [0], [1], [0, 0, 1, 1], [], []>} : vector<64x48xbf16>, vector<48x432xbf16>, vector<64x432xf32> -> vector<64x432xf32>
    %285 = arith.addf %281, %284 : vector<64x432xf32>
    %286 = vector.extract_strided_slice %264 {offsets = [0, 20], sizes = [48, 432], strides = [1, 1]} : vector<48x512xbf16> to vector<48x432xbf16>
    %c1832 = arith.constant 1832 : index
    %c0_138 = arith.constant 0 : index
    %287 = vector.load %arg3[%c1832, %c0_138] : memref<2736x64xbf16, #tpu.memory_space<vmem>>, vector<64x48xbf16>
    %cst_139 = arith.constant dense<0.000000e+00> : vector<64x432xf32>
    %288 = tpu.matmul %287, %286, %cst_139 {dimension_numbers = #tpu.dot_dimension_numbers<[1], [0], [0], [1], [0, 0, 1, 1], [], []>} : vector<64x48xbf16>, vector<48x432xbf16>, vector<64x432xf32> -> vector<64x432xf32>
    %289 = arith.addf %285, %288 : vector<64x432xf32>
    %290 = vector.extract_strided_slice %264 {offsets = [0, 36], sizes = [48, 432], strides = [1, 1]} : vector<48x512xbf16> to vector<48x432xbf16>
    %c1896 = arith.constant 1896 : index
    %c0_140 = arith.constant 0 : index
    %291 = vector.load %arg3[%c1896, %c0_140] : memref<2736x64xbf16, #tpu.memory_space<vmem>>, vector<64x48xbf16>
    %cst_141 = arith.constant dense<0.000000e+00> : vector<64x432xf32>
    %292 = tpu.matmul %291, %290, %cst_141 {dimension_numbers = #tpu.dot_dimension_numbers<[1], [0], [0], [1], [0, 0, 1, 1], [], []>} : vector<64x48xbf16>, vector<48x432xbf16>, vector<64x432xf32> -> vector<64x432xf32>
    %293 = arith.addf %289, %292 : vector<64x432xf32>
    %294 = vector.extract_strided_slice %264 {offsets = [0, 37], sizes = [48, 432], strides = [1, 1]} : vector<48x512xbf16> to vector<48x432xbf16>
    %c1960 = arith.constant 1960 : index
    %c0_142 = arith.constant 0 : index
    %295 = vector.load %arg3[%c1960, %c0_142] : memref<2736x64xbf16, #tpu.memory_space<vmem>>, vector<64x48xbf16>
    %cst_143 = arith.constant dense<0.000000e+00> : vector<64x432xf32>
    %296 = tpu.matmul %295, %294, %cst_143 {dimension_numbers = #tpu.dot_dimension_numbers<[1], [0], [0], [1], [0, 0, 1, 1], [], []>} : vector<64x48xbf16>, vector<48x432xbf16>, vector<64x432xf32> -> vector<64x432xf32>
    %297 = arith.addf %293, %296 : vector<64x432xf32>
    %298 = vector.extract_strided_slice %264 {offsets = [0, 38], sizes = [48, 432], strides = [1, 1]} : vector<48x512xbf16> to vector<48x432xbf16>
    %c2024 = arith.constant 2024 : index
    %c0_144 = arith.constant 0 : index
    %299 = vector.load %arg3[%c2024, %c0_144] : memref<2736x64xbf16, #tpu.memory_space<vmem>>, vector<64x48xbf16>
    %cst_145 = arith.constant dense<0.000000e+00> : vector<64x432xf32>
    %300 = tpu.matmul %299, %298, %cst_145 {dimension_numbers = #tpu.dot_dimension_numbers<[1], [0], [0], [1], [0, 0, 1, 1], [], []>} : vector<64x48xbf16>, vector<48x432xbf16>, vector<64x432xf32> -> vector<64x432xf32>
    %301 = arith.addf %297, %300 : vector<64x432xf32>
    %c0_146 = arith.constant 0 : index
    %c5 = arith.constant 5 : index
    %302 = vector.load %arg4[%c0_146, %c5] : memref<64x8xf32, #tpu.memory_space<vmem>>, vector<64x1xf32>
    %303 = vector.broadcast %302 : vector<64x1xf32> to vector<64x432xf32>
    %304 = arith.addf %301, %303 : vector<64x432xf32>
    %cst_147 = arith.constant 0.000000e+00 : f32
    %305 = vector.broadcast %cst_147 : f32 to vector<64x432xf32>
    %306 = arith.maximumf %304, %305 : vector<64x432xf32>
    %307 = vector.extract_strided_slice %306 {offsets = [0, 0], sizes = [32, 432], strides = [1, 1]} : vector<64x432xf32> to vector<32x432xf32>
    %308 = vector.extract_strided_slice %306 {offsets = [32, 0], sizes = [32, 432], strides = [1, 1]} : vector<64x432xf32> to vector<32x432xf32>
    %309 = arith.addf %307, %308 : vector<32x432xf32>
    %cst_148 = arith.constant 2.000000e+00 : f32
    %310 = vector.broadcast %cst_148 : f32 to vector<32x432xf32>
    %311 = arith.mulf %310, %103 : vector<32x432xf32>
    %312 = arith.addf %309, %311 : vector<32x432xf32>
    %cst_149 = arith.constant 0.000000e+00 : f32
    %313 = vector.shape_cast %8 : vector<1x432xi1> to vector<1x432xi1>
    %314 = vector.broadcast %313 : vector<1x432xi1> to vector<32x432xi1>
    %315 = vector.broadcast %cst_149 : f32 to vector<32x432xf32>
    %316 = arith.select %314, %312, %315 : vector<32x432xi1>, vector<32x432xf32>
    %cst_150 = arith.constant 0.000000e+00 : f32
    %317 = vector.broadcast %cst_150 : f32 to vector<32x19xf32>
    %cst_151 = arith.constant 0.000000e+00 : f32
    %318 = vector.broadcast %cst_151 : f32 to vector<32x61xf32>
    %319 = tpu.concatenate %317, %316, %318 in 1 : vector<32x19xf32>, vector<32x432xf32>, vector<32x61xf32> -> vector<32x512xf32>
    %320 = arith.truncf %319 : vector<32x512xf32> to vector<32x512xbf16>
    %cst_152 = arith.constant 0.000000e+00 : f32
    %321 = vector.broadcast %cst_152 : f32 to vector<64x432xf32>
    %322 = vector.extract_strided_slice %320 {offsets = [0, 0], sizes = [32, 432], strides = [1, 1]} : vector<32x512xbf16> to vector<32x432xbf16>
    %c2088 = arith.constant 2088 : index
    %c0_153 = arith.constant 0 : index
    %323 = vector.load %arg3[%c2088, %c0_153] : memref<2736x64xbf16, #tpu.memory_space<vmem>>, vector<64x32xbf16>
    %cst_154 = arith.constant dense<0.000000e+00> : vector<64x432xf32>
    %324 = tpu.matmul %323, %322, %cst_154 {dimension_numbers = #tpu.dot_dimension_numbers<[1], [0], [0], [1], [0, 0, 1, 1], [], []>} : vector<64x32xbf16>, vector<32x432xbf16>, vector<64x432xf32> -> vector<64x432xf32>
    %325 = arith.addf %321, %324 : vector<64x432xf32>
    %326 = vector.extract_strided_slice %320 {offsets = [0, 1], sizes = [32, 432], strides = [1, 1]} : vector<32x512xbf16> to vector<32x432xbf16>
    %c2152 = arith.constant 2152 : index
    %c0_155 = arith.constant 0 : index
    %327 = vector.load %arg3[%c2152, %c0_155] : memref<2736x64xbf16, #tpu.memory_space<vmem>>, vector<64x32xbf16>
    %cst_156 = arith.constant dense<0.000000e+00> : vector<64x432xf32>
    %328 = tpu.matmul %327, %326, %cst_156 {dimension_numbers = #tpu.dot_dimension_numbers<[1], [0], [0], [1], [0, 0, 1, 1], [], []>} : vector<64x32xbf16>, vector<32x432xbf16>, vector<64x432xf32> -> vector<64x432xf32>
    %329 = arith.addf %325, %328 : vector<64x432xf32>
    %330 = vector.extract_strided_slice %320 {offsets = [0, 2], sizes = [32, 432], strides = [1, 1]} : vector<32x512xbf16> to vector<32x432xbf16>
    %c2216 = arith.constant 2216 : index
    %c0_157 = arith.constant 0 : index
    %331 = vector.load %arg3[%c2216, %c0_157] : memref<2736x64xbf16, #tpu.memory_space<vmem>>, vector<64x32xbf16>
    %cst_158 = arith.constant dense<0.000000e+00> : vector<64x432xf32>
    %332 = tpu.matmul %331, %330, %cst_158 {dimension_numbers = #tpu.dot_dimension_numbers<[1], [0], [0], [1], [0, 0, 1, 1], [], []>} : vector<64x32xbf16>, vector<32x432xbf16>, vector<64x432xf32> -> vector<64x432xf32>
    %333 = arith.addf %329, %332 : vector<64x432xf32>
    %334 = vector.extract_strided_slice %320 {offsets = [0, 18], sizes = [32, 432], strides = [1, 1]} : vector<32x512xbf16> to vector<32x432xbf16>
    %c2280 = arith.constant 2280 : index
    %c0_159 = arith.constant 0 : index
    %335 = vector.load %arg3[%c2280, %c0_159] : memref<2736x64xbf16, #tpu.memory_space<vmem>>, vector<64x32xbf16>
    %cst_160 = arith.constant dense<0.000000e+00> : vector<64x432xf32>
    %336 = tpu.matmul %335, %334, %cst_160 {dimension_numbers = #tpu.dot_dimension_numbers<[1], [0], [0], [1], [0, 0, 1, 1], [], []>} : vector<64x32xbf16>, vector<32x432xbf16>, vector<64x432xf32> -> vector<64x432xf32>
    %337 = arith.addf %333, %336 : vector<64x432xf32>
    %338 = vector.extract_strided_slice %320 {offsets = [0, 19], sizes = [32, 432], strides = [1, 1]} : vector<32x512xbf16> to vector<32x432xbf16>
    %c2344 = arith.constant 2344 : index
    %c0_161 = arith.constant 0 : index
    %339 = vector.load %arg3[%c2344, %c0_161] : memref<2736x64xbf16, #tpu.memory_space<vmem>>, vector<64x32xbf16>
    %cst_162 = arith.constant dense<0.000000e+00> : vector<64x432xf32>
    %340 = tpu.matmul %339, %338, %cst_162 {dimension_numbers = #tpu.dot_dimension_numbers<[1], [0], [0], [1], [0, 0, 1, 1], [], []>} : vector<64x32xbf16>, vector<32x432xbf16>, vector<64x432xf32> -> vector<64x432xf32>
    %341 = arith.addf %337, %340 : vector<64x432xf32>
    %342 = vector.extract_strided_slice %320 {offsets = [0, 20], sizes = [32, 432], strides = [1, 1]} : vector<32x512xbf16> to vector<32x432xbf16>
    %c2408 = arith.constant 2408 : index
    %c0_163 = arith.constant 0 : index
    %343 = vector.load %arg3[%c2408, %c0_163] : memref<2736x64xbf16, #tpu.memory_space<vmem>>, vector<64x32xbf16>
    %cst_164 = arith.constant dense<0.000000e+00> : vector<64x432xf32>
    %344 = tpu.matmul %343, %342, %cst_164 {dimension_numbers = #tpu.dot_dimension_numbers<[1], [0], [0], [1], [0, 0, 1, 1], [], []>} : vector<64x32xbf16>, vector<32x432xbf16>, vector<64x432xf32> -> vector<64x432xf32>
    %345 = arith.addf %341, %344 : vector<64x432xf32>
    %346 = vector.extract_strided_slice %320 {offsets = [0, 36], sizes = [32, 432], strides = [1, 1]} : vector<32x512xbf16> to vector<32x432xbf16>
    %c2472 = arith.constant 2472 : index
    %c0_165 = arith.constant 0 : index
    %347 = vector.load %arg3[%c2472, %c0_165] : memref<2736x64xbf16, #tpu.memory_space<vmem>>, vector<64x32xbf16>
    %cst_166 = arith.constant dense<0.000000e+00> : vector<64x432xf32>
    %348 = tpu.matmul %347, %346, %cst_166 {dimension_numbers = #tpu.dot_dimension_numbers<[1], [0], [0], [1], [0, 0, 1, 1], [], []>} : vector<64x32xbf16>, vector<32x432xbf16>, vector<64x432xf32> -> vector<64x432xf32>
    %349 = arith.addf %345, %348 : vector<64x432xf32>
    %350 = vector.extract_strided_slice %320 {offsets = [0, 37], sizes = [32, 432], strides = [1, 1]} : vector<32x512xbf16> to vector<32x432xbf16>
    %c2536 = arith.constant 2536 : index
    %c0_167 = arith.constant 0 : index
    %351 = vector.load %arg3[%c2536, %c0_167] : memref<2736x64xbf16, #tpu.memory_space<vmem>>, vector<64x32xbf16>
    %cst_168 = arith.constant dense<0.000000e+00> : vector<64x432xf32>
    %352 = tpu.matmul %351, %350, %cst_168 {dimension_numbers = #tpu.dot_dimension_numbers<[1], [0], [0], [1], [0, 0, 1, 1], [], []>} : vector<64x32xbf16>, vector<32x432xbf16>, vector<64x432xf32> -> vector<64x432xf32>
    %353 = arith.addf %349, %352 : vector<64x432xf32>
    %354 = vector.extract_strided_slice %320 {offsets = [0, 38], sizes = [32, 432], strides = [1, 1]} : vector<32x512xbf16> to vector<32x432xbf16>
    %c2600 = arith.constant 2600 : index
    %c0_169 = arith.constant 0 : index
    %355 = vector.load %arg3[%c2600, %c0_169] : memref<2736x64xbf16, #tpu.memory_space<vmem>>, vector<64x32xbf16>
    %cst_170 = arith.constant dense<0.000000e+00> : vector<64x432xf32>
    %356 = tpu.matmul %355, %354, %cst_170 {dimension_numbers = #tpu.dot_dimension_numbers<[1], [0], [0], [1], [0, 0, 1, 1], [], []>} : vector<64x32xbf16>, vector<32x432xbf16>, vector<64x432xf32> -> vector<64x432xf32>
    %357 = arith.addf %353, %356 : vector<64x432xf32>
    %c0_171 = arith.constant 0 : index
    %c6 = arith.constant 6 : index
    %358 = vector.load %arg4[%c0_171, %c6] : memref<64x8xf32, #tpu.memory_space<vmem>>, vector<64x1xf32>
    %359 = vector.broadcast %358 : vector<64x1xf32> to vector<64x432xf32>
    %360 = arith.addf %357, %359 : vector<64x432xf32>
    %cst_172 = arith.constant 0.000000e+00 : f32
    %361 = vector.broadcast %cst_172 : f32 to vector<64x432xf32>
    %362 = arith.maximumf %360, %361 : vector<64x432xf32>
    %cst_173 = arith.constant 0.000000e+00 : f32
    %363 = vector.shape_cast %8 : vector<1x432xi1> to vector<1x432xi1>
    %364 = vector.broadcast %363 : vector<1x432xi1> to vector<64x432xi1>
    %365 = vector.broadcast %cst_173 : f32 to vector<64x432xf32>
    %366 = arith.select %364, %362, %365 : vector<64x432xi1>, vector<64x432xf32>
    %cst_174 = arith.constant 0.000000e+00 : f32
    %367 = vector.broadcast %cst_174 : f32 to vector<64x19xf32>
    %cst_175 = arith.constant 0.000000e+00 : f32
    %368 = vector.broadcast %cst_175 : f32 to vector<64x61xf32>
    %369 = tpu.concatenate %367, %366, %368 in 1 : vector<64x19xf32>, vector<64x432xf32>, vector<64x61xf32> -> vector<64x512xf32>
    %370 = arith.truncf %369 : vector<64x512xf32> to vector<64x512xbf16>
    %cst_176 = arith.constant 0.000000e+00 : f32
    %371 = vector.broadcast %cst_176 : f32 to vector<4x432xf32>
    %372 = vector.extract_strided_slice %370 {offsets = [0, 0], sizes = [64, 432], strides = [1, 1]} : vector<64x512xbf16> to vector<64x432xbf16>
    %c2664 = arith.constant 2664 : index
    %c0_177 = arith.constant 0 : index
    %373 = vector.load %arg3[%c2664, %c0_177] : memref<2736x64xbf16, #tpu.memory_space<vmem>>, vector<4x64xbf16>
    %cst_178 = arith.constant dense<0.000000e+00> : vector<4x432xf32>
    %374 = tpu.matmul %373, %372, %cst_178 {dimension_numbers = #tpu.dot_dimension_numbers<[1], [0], [0], [1], [0, 0, 1, 1], [], []>} : vector<4x64xbf16>, vector<64x432xbf16>, vector<4x432xf32> -> vector<4x432xf32>
    %375 = arith.addf %371, %374 : vector<4x432xf32>
    %376 = vector.extract_strided_slice %370 {offsets = [0, 1], sizes = [64, 432], strides = [1, 1]} : vector<64x512xbf16> to vector<64x432xbf16>
    %c2672 = arith.constant 2672 : index
    %c0_179 = arith.constant 0 : index
    %377 = vector.load %arg3[%c2672, %c0_179] : memref<2736x64xbf16, #tpu.memory_space<vmem>>, vector<4x64xbf16>
    %cst_180 = arith.constant dense<0.000000e+00> : vector<4x432xf32>
    %378 = tpu.matmul %377, %376, %cst_180 {dimension_numbers = #tpu.dot_dimension_numbers<[1], [0], [0], [1], [0, 0, 1, 1], [], []>} : vector<4x64xbf16>, vector<64x432xbf16>, vector<4x432xf32> -> vector<4x432xf32>
    %379 = arith.addf %375, %378 : vector<4x432xf32>
    %380 = vector.extract_strided_slice %370 {offsets = [0, 2], sizes = [64, 432], strides = [1, 1]} : vector<64x512xbf16> to vector<64x432xbf16>
    %c2680 = arith.constant 2680 : index
    %c0_181 = arith.constant 0 : index
    %381 = vector.load %arg3[%c2680, %c0_181] : memref<2736x64xbf16, #tpu.memory_space<vmem>>, vector<4x64xbf16>
    %cst_182 = arith.constant dense<0.000000e+00> : vector<4x432xf32>
    %382 = tpu.matmul %381, %380, %cst_182 {dimension_numbers = #tpu.dot_dimension_numbers<[1], [0], [0], [1], [0, 0, 1, 1], [], []>} : vector<4x64xbf16>, vector<64x432xbf16>, vector<4x432xf32> -> vector<4x432xf32>
    %383 = arith.addf %379, %382 : vector<4x432xf32>
    %384 = vector.extract_strided_slice %370 {offsets = [0, 18], sizes = [64, 432], strides = [1, 1]} : vector<64x512xbf16> to vector<64x432xbf16>
    %c2688 = arith.constant 2688 : index
    %c0_183 = arith.constant 0 : index
    %385 = vector.load %arg3[%c2688, %c0_183] : memref<2736x64xbf16, #tpu.memory_space<vmem>>, vector<4x64xbf16>
    %cst_184 = arith.constant dense<0.000000e+00> : vector<4x432xf32>
    %386 = tpu.matmul %385, %384, %cst_184 {dimension_numbers = #tpu.dot_dimension_numbers<[1], [0], [0], [1], [0, 0, 1, 1], [], []>} : vector<4x64xbf16>, vector<64x432xbf16>, vector<4x432xf32> -> vector<4x432xf32>
    %387 = arith.addf %383, %386 : vector<4x432xf32>
    %388 = vector.extract_strided_slice %370 {offsets = [0, 19], sizes = [64, 432], strides = [1, 1]} : vector<64x512xbf16> to vector<64x432xbf16>
    %c2696 = arith.constant 2696 : index
    %c0_185 = arith.constant 0 : index
    %389 = vector.load %arg3[%c2696, %c0_185] : memref<2736x64xbf16, #tpu.memory_space<vmem>>, vector<4x64xbf16>
    %cst_186 = arith.constant dense<0.000000e+00> : vector<4x432xf32>
    %390 = tpu.matmul %389, %388, %cst_186 {dimension_numbers = #tpu.dot_dimension_numbers<[1], [0], [0], [1], [0, 0, 1, 1], [], []>} : vector<4x64xbf16>, vector<64x432xbf16>, vector<4x432xf32> -> vector<4x432xf32>
    %391 = arith.addf %387, %390 : vector<4x432xf32>
    %392 = vector.extract_strided_slice %370 {offsets = [0, 20], sizes = [64, 432], strides = [1, 1]} : vector<64x512xbf16> to vector<64x432xbf16>
    %c2704 = arith.constant 2704 : index
    %c0_187 = arith.constant 0 : index
    %393 = vector.load %arg3[%c2704, %c0_187] : memref<2736x64xbf16, #tpu.memory_space<vmem>>, vector<4x64xbf16>
    %cst_188 = arith.constant dense<0.000000e+00> : vector<4x432xf32>
    %394 = tpu.matmul %393, %392, %cst_188 {dimension_numbers = #tpu.dot_dimension_numbers<[1], [0], [0], [1], [0, 0, 1, 1], [], []>} : vector<4x64xbf16>, vector<64x432xbf16>, vector<4x432xf32> -> vector<4x432xf32>
    %395 = arith.addf %391, %394 : vector<4x432xf32>
    %396 = vector.extract_strided_slice %370 {offsets = [0, 36], sizes = [64, 432], strides = [1, 1]} : vector<64x512xbf16> to vector<64x432xbf16>
    %c2712 = arith.constant 2712 : index
    %c0_189 = arith.constant 0 : index
    %397 = vector.load %arg3[%c2712, %c0_189] : memref<2736x64xbf16, #tpu.memory_space<vmem>>, vector<4x64xbf16>
    %cst_190 = arith.constant dense<0.000000e+00> : vector<4x432xf32>
    %398 = tpu.matmul %397, %396, %cst_190 {dimension_numbers = #tpu.dot_dimension_numbers<[1], [0], [0], [1], [0, 0, 1, 1], [], []>} : vector<4x64xbf16>, vector<64x432xbf16>, vector<4x432xf32> -> vector<4x432xf32>
    %399 = arith.addf %395, %398 : vector<4x432xf32>
    %400 = vector.extract_strided_slice %370 {offsets = [0, 37], sizes = [64, 432], strides = [1, 1]} : vector<64x512xbf16> to vector<64x432xbf16>
    %c2720 = arith.constant 2720 : index
    %c0_191 = arith.constant 0 : index
    %401 = vector.load %arg3[%c2720, %c0_191] : memref<2736x64xbf16, #tpu.memory_space<vmem>>, vector<4x64xbf16>
    %cst_192 = arith.constant dense<0.000000e+00> : vector<4x432xf32>
    %402 = tpu.matmul %401, %400, %cst_192 {dimension_numbers = #tpu.dot_dimension_numbers<[1], [0], [0], [1], [0, 0, 1, 1], [], []>} : vector<4x64xbf16>, vector<64x432xbf16>, vector<4x432xf32> -> vector<4x432xf32>
    %403 = arith.addf %399, %402 : vector<4x432xf32>
    %404 = vector.extract_strided_slice %370 {offsets = [0, 38], sizes = [64, 432], strides = [1, 1]} : vector<64x512xbf16> to vector<64x432xbf16>
    %c2728 = arith.constant 2728 : index
    %c0_193 = arith.constant 0 : index
    %405 = vector.load %arg3[%c2728, %c0_193] : memref<2736x64xbf16, #tpu.memory_space<vmem>>, vector<4x64xbf16>
    %cst_194 = arith.constant dense<0.000000e+00> : vector<4x432xf32>
    %406 = tpu.matmul %405, %404, %cst_194 {dimension_numbers = #tpu.dot_dimension_numbers<[1], [0], [0], [1], [0, 0, 1, 1], [], []>} : vector<4x64xbf16>, vector<64x432xbf16>, vector<4x432xf32> -> vector<4x432xf32>
    %407 = arith.addf %403, %406 : vector<4x432xf32>
    %c0_195 = arith.constant 0 : index
    %c7 = arith.constant 7 : index
    %408 = vector.load %arg4[%c0_195, %c7] : memref<64x8xf32, #tpu.memory_space<vmem>>, vector<4x1xf32>
    %409 = vector.broadcast %408 : vector<4x1xf32> to vector<4x432xf32>
    %410 = arith.addf %407, %409 : vector<4x432xf32>
    %411 = arith.negf %410 : vector<4x432xf32>
    %412 = math.exp %411 : vector<4x432xf32>
    %cst_196 = arith.constant 1.000000e+00 : f32
    %413 = vector.broadcast %cst_196 : f32 to vector<4x432xf32>
    %414 = arith.addf %413, %412 : vector<4x432xf32>
    %415 = arith.divf %413, %414 : vector<4x432xf32>
    %416 = vector.extract_strided_slice %415 {offsets = [0, 144], sizes = [3, 144], strides = [1, 1]} : vector<4x432xf32> to vector<3x144xf32>
    %c0_197 = arith.constant 0 : index
    %c0_198 = arith.constant 0 : index
    %c0_199 = arith.constant 0 : index
    %c0_200 = arith.constant 0 : index
    %417 = vector.load %arg7[%c0_197, %c0_198, %c0_199, %c0_200] : memref<1x1x3x144xf32, #tpu.memory_space<vmem>>, vector<1x1x3x144xf32>
    %418 = vector.shape_cast %417 : vector<1x1x3x144xf32> to vector<3x144xf32>
    %419 = vector.shape_cast %416 : vector<3x144xf32> to vector<1x1x3x144xf32>
    tpu.vector_store %arg7[%c0_197, %c0_198, %c0_199, %c0_200], %419 {strides = array<i32>} : memref<1x1x3x144xf32, #tpu.memory_space<vmem>>, vector<1x1x3x144xf32>,
    %420 = vector.extract_strided_slice %415 {offsets = [3, 144], sizes = [1, 144], strides = [1, 1]} : vector<4x432xf32> to vector<1x144xf32>
    %c0_201 = arith.constant 0 : index
    %c0_202 = arith.constant 0 : index
    %c0_203 = arith.constant 0 : index
    %c0_204 = arith.constant 0 : index
    %421 = vector.load %arg6[%c0_201, %c0_202, %c0_203, %c0_204] : memref<1x1x1x144xf32, #tpu.memory_space<vmem>>, vector<1x1x1x144xf32>
    %422 = vector.shape_cast %421 : vector<1x1x1x144xf32> to vector<1x144xf32>
    %423 = vector.shape_cast %420 : vector<1x144xf32> to vector<1x1x1x144xf32>
    tpu.vector_store %arg6[%c0_201, %c0_202, %c0_203, %c0_204], %423 {strides = array<i32>} : memref<1x1x1x144xf32, #tpu.memory_space<vmem>>, vector<1x1x1x144xf32>,
    %424 = vector.extract_strided_slice %206 {offsets = [3, 144], sizes = [1, 144], strides = [1, 1]} : vector<4x432xf32> to vector<1x144xf32>
    %425 = vector.extract_strided_slice %206 {offsets = [0, 144], sizes = [3, 144], strides = [1, 1]} : vector<4x432xf32> to vector<3x144xf32>
    %426 = vector.broadcast %424 : vector<1x144xf32> to vector<3x144xf32>
    %427 = arith.mulf %426, %425 : vector<3x144xf32>
    %c0_205 = arith.constant 0 : index
    %c0_206 = arith.constant 0 : index
    %c0_207 = arith.constant 0 : index
    %c0_208 = arith.constant 0 : index
    %428 = vector.load %arg8[%c0_205, %c0_206, %c0_207, %c0_208] : memref<1x1x3x144xf32, #tpu.memory_space<vmem>>, vector<1x1x3x144xf32>
    %429 = vector.shape_cast %428 : vector<1x1x3x144xf32> to vector<3x144xf32>
    %430 = vector.shape_cast %427 : vector<3x144xf32> to vector<1x1x3x144xf32>
    tpu.vector_store %arg8[%c0_205, %c0_206, %c0_207, %c0_208], %430 {strides = array<i32>} : memref<1x1x3x144xf32, #tpu.memory_space<vmem>>, vector<1x1x3x144xf32>,
    return
  }
  func.func @transform_0(%arg0: i32, %arg1: i32) -> (i32, i32, i32, i32) {
    %c0_i32 = arith.constant 0 : i32
    %c0_i32_0 = arith.constant 0 : i32
    %c0_i32_1 = arith.constant 0 : i32
    return %arg0, %arg1, %c0_i32, %c0_i32_0 : i32, i32, i32, i32
  }
  func.func @transform_1(%arg0: i32, %arg1: i32) -> (i32, i32) {
    %c0_i32 = arith.constant 0 : i32
    %c0_i32_0 = arith.constant 0 : i32
    %c0_i32_1 = arith.constant 0 : i32
    return %c0_i32, %c0_i32_0 : i32, i32
  }
  func.func @transform_2(%arg0: i32, %arg1: i32) -> (i32, i32) {
    %c0_i32 = arith.constant 0 : i32
    %c0_i32_0 = arith.constant 0 : i32
    %c0_i32_1 = arith.constant 0 : i32
    return %c0_i32, %c0_i32_0 : i32, i32
  }
  func.func @transform_3(%arg0: i32, %arg1: i32) -> (i32, i32) {
    %c0_i32 = arith.constant 0 : i32
    %c0_i32_0 = arith.constant 0 : i32
    %c0_i32_1 = arith.constant 0 : i32
    return %c0_i32, %c0_i32_0 : i32, i32
  }
  func.func @transform_4(%arg0: i32, %arg1: i32) -> (i32, i32, i32, i32) {
    %c0_i32 = arith.constant 0 : i32
    %c0_i32_0 = arith.constant 0 : i32
    %c0_i32_1 = arith.constant 0 : i32
    return %arg0, %arg1, %c0_i32, %c0_i32_0 : i32, i32, i32, i32
  }
  func.func @transform_5(%arg0: i32, %arg1: i32) -> (i32, i32, i32, i32) {
    %c0_i32 = arith.constant 0 : i32
    %c0_i32_0 = arith.constant 0 : i32
    %c0_i32_1 = arith.constant 0 : i32
    return %arg0, %arg1, %c0_i32, %c0_i32_0 : i32, i32, i32, i32
  }
  func.func @transform_6(%arg0: i32, %arg1: i32) -> (i32, i32, i32, i32) {
    %c0_i32 = arith.constant 0 : i32
    %c0_i32_0 = arith.constant 0 : i32
    %c0_i32_1 = arith.constant 0 : i32
    return %arg0, %arg1, %c0_i32, %c0_i32_0 : i32, i32, i32, i32
  }
}

</mosaic_0001>

<bundles_post_ra>
// kernel: dcretinex_forward.1
= control target key start
LH: loop header
LB: loop body
LE: loop exit
PB: predicated region body
PF: predicated region fallthrough
CT: control target
= control target key end

     0   :  { %s18043_s21 = smov 0   ;;  %s18045_s22 = smov 0   ;;  %s23187_s0 = inlined_call_operand.vmem [shape: f32[2,2,3,512], index: 0, kind: input, shape index: {}]   ;;  %s23188_s1 = inlined_call_operand.vmem [shape: bf16[2736,64], index: 1, kind: input, shape index: {}]   ;;  %s23189_s2 = inlined_call_operand.vmem [shape: f32[64,8], index: 2, kind: input, shape index: {}]   ;;  %s23190_s3 = inlined_call_operand.vmem [shape: s32[1,432], index: 3, kind: input, shape index: {}]   ;;  %s23191_s4 = inlined_call_operand.vmem [shape: f32[2,2,1,144], index: 4, kind: output, shape index: {0}]   ;;  %s23192_s5 = inlined_call_operand.vmem [shape: f32[2,2,3,144], index: 5, kind: output, shape index: {1}]   ;;  %s23193_s6 = inlined_call_operand.vmem [shape: f32[2,2,3,144], index: 6, kind: output, shape index: {2}]  }
   0x1   :  { %s18047_s23 = smov 0   ;;  %s18049_s24 = smov 0  }
   0x2   :  { %s18051_s25 = smov 0  }
   0x3 LB: > { %s26_s26 = sadd.s32 1, %s17978_s23  ;;  %s29_s27 = sadd.s32 1, %s17982_s24  ;;  %s17986_s25 = sphi %s18051_s25, %s17_s25   ;;  %s17982_s24 = sphi %s18049_s24, %s23869_s24   ;;  %s17978_s23 = sphi %s18047_s23, %s23868_s23   ;;  %s17974_s22 = sphi %s18045_s22, %s23867_s22   ;;  %s17970_s21 = sphi %s18043_s21, %s23866_s21  }
   0x4   : > { %p27_p0 = scmp.ge.s32.totalorder %s26_s26, 2  ;;  %p15499_p1 = scmp.ge.s32.totalorder %s17986_s25, 1 }
   0x5   : > { %p241_p2 = scmp.lt.s32.totalorder %s17986_s25, 5 }
   0x6   : > { %s23871_s26 = smov (%p27_p0, %s26_s26), 0  ;;  %s23873_s27 = smov (!%p27_p0, %s29_s27), %s17982_s24 }
   0x7   : > { %p242_p3 = pnand %p15499_p1, %p241_p2  ;;  %p31_p4 = scmp.ge.s32.totalorder %s23873_s27, 2 }
   0x9   : > { %s23875_s27 = smov (%p31_p4, %s23873_s27), 0  ;;  %245 = sbr.rel (%p242_p3) target bundleno = 5475 (0x1563), region = 36 }
  0x10   : > { %p296_p5 = scmp.lt.s32.totalorder %s17974_s22, 1  ;;  %p298_p6 = scmp.lt.s32.totalorder %s17970_s21, 1  ;;  %v23217_v5 = vmov 0   ;;  %vm394_vm0 = vcmask 1040384   ;;  %vm23194_vm1 = vcmask 1041408   ;;  %v17997_v10 = vmov 65535  }
  0x11   : > { %495 = vmatprep.mubr.bf16.mxu1 %v23217_v5  ;;  %442 = vmatprep.mubr.bf16.mxu0 %v23217_v5  ;;  %s17989_s12 = smov 127   ;;  %s17990_s13 = smov 126   ;;  %v396_v11 = vsel %vm394_vm0, 4294967295, %v17997_v10  ;;  %vm383_vm2 = vcmask 1039360   ;;  %vm672_vm3 = vcmask 1031168   ;;  %v17747_v26 = vld [vmem:[%s23188_s1 + $0x10] sm:$0xff]  }
  0x12   : > { %s23877_s22 = smov (!%p296_p5, %s17974_s22), 1  ;;  %17400 = vset.pattern.permute.xlu0 %v23217_v5  ;;  %17401 = vset.pattern.permute.xlu1 %v23217_v5  ;;  %s17991_s14 = smov 110   ;;  %v18163_v14 = vsel %vm23194_vm1, %v396_v11, 0  ;;  %vm387_vm4 = vcmask 23552   ;;  %v17748_v34 = vld [vmem:[%s23188_s1 + $0x18] sm:$0xff]   ;;  %vm838_vm5 = vcmask 900096  }
  0x13   : > { %s18079_s28 = scalar_select %p298_p6, %s17970_s21, 1  ;;  %v18199_v37 = vld [vmem:[%s23189_s2] sm:$0xff]  ;;  %v18204_v38 = vld [vmem:[%s23189_s2 + $0x8] sm:$0xff]  ;;  %v18213_v41 = vld [vmem:[%s23189_s2 + $0x18] sm:$0xff]  ;;  %vm23254_vm6 = vcmask 891904   ;;  %vm23247_vm7 = vcmask 883712  }
  0x14   : > { %s15501_s29 = sshll.u32 %s23877_s22, 3  ;;  %s17992_s15 = smov 109   ;;  %v17749_v42 = vld [vmem:[%s23188_s1] sm:$0xff]   ;;  %v18223_v45 = vld [vmem:[%s23189_s2 + $0x10] sm:$0xff]  ;;  %v17750_v51 = vld [vmem:[%s23188_s1 + $0x8] sm:$0xff]   ;;  %vm23206_vm8 = vcmask 752640  }
  0x15   : > { %s15500_s30 = sshll.u32 %s18079_s28, 2  ;;  %s17993_s16 = smov 108   ;;  %v17751_v56 = vld [vmem:[%s23188_s1 + $0x20] sm:$0xff]   ;;  %vm23205_vm9 = vcmask 744448   ;;  %vm23197_vm10 = vcmask 736256  }
  0x16   : > { %s302_s7 = sadd.s32 %s15501_s29, %s15500_s30  ;;  %s23256_s17 = smov 92  }
  0x17   : > { %s15502_s8 = sshll.u32 %s302_s7, 2  ;;  %s23252_s18 = smov 91  }
  0x18   : > { %s304_s11 = scalar_lea.vmem %s23187_s0, %s15502_s8  ;;  %s23250_s19 = smov 90  }
  0x19   : > { %v341_v0 = vld [vmem:[%s304_s11] sm:$0x77]  ;;  %v342_v1 = vld [vmem:[%s304_s11 + $0x8] sm:$0x77]  ;;  %s15511_s8 = sshll.u32 %s17970_s21, 3  ;;  %s17998_s21 = smov 19  }
  0x1a   : > { %v18086_v2 = vpack.c.bf16 %v341_v0, %v341_v0  ;;  %v345_v3 = vcombine.high %v341_v0, %v341_v0  ;;  %v346_v4 = vcombine.high %v342_v1, %v342_v1  ;;  %v18100_v8 = vpack.c.bf16 %v342_v1, %v342_v1  ;;  %v17752_v0 = vld [vmem:[%s23188_s1 + $0x28] sm:$0xff]   ;;  %s334_s9 = ssub.s32 8, %s15511_s8  ;;  %s337_s10 = ssub.s32 24, %s15511_s8 }
  0x1b   : > { %s23440_s11 = smov 91  }
  0x1c   : > { %375 = vrot.lane.b32.xlu1 %v18086_v2, %s17989_s12  ;;  %v18093_v6 = vpack.c.bf16 %v345_v3, %v345_v3  ;;  %v18095_v7 = vpack.c.bf16 %v346_v4, %v346_v4  ;;  %v539_v28 = vand.u32 %v18163_v14, %v18100_v8  ;;  %v533_v30 = vand.u32 %v18163_v14, %v18086_v2 }
  0x1e   : > { %377 = vrot.lane.b32.xlu0 %v18093_v6, %s17989_s12  ;;  %v542_v20 = vand.u32 %v18163_v14, %v18095_v7  ;;  %v536_v23 = vand.u32 %v18163_v14, %v18093_v6 }
  0x20   : > { %381 = vrot.lane.b32.xlu1 %v18095_v7, %s17989_s12 }
  0x22   : > { %379 = vrot.lane.b32.xlu0 %v18100_v8, %s17989_s12 }
  0x24   : > { %668 = vrot.lane.b32.xlu1 %v18100_v8, %s17990_s13 }
  0x26   : > { %666 = vrot.lane.b32.xlu0 %v18093_v6, %s17990_s13 }
  0x28   : > { %670 = vrot.lane.b32.xlu1 %v18095_v7, %s17990_s13 }
  0x2a   : > { %664 = vrot.lane.b32.xlu0 %v18086_v2, %s17990_s13 }
  0x2c   : > { %834 = vrot.lane.b32.xlu1 %v18100_v8, %s17991_s14 }
  0x2e   : > { %832 = vrot.lane.b32.xlu0 %v18093_v6, %s17991_s14 }
  0x30   : > { %836 = vrot.lane.b32.xlu1 %v18095_v7, %s17991_s14 }
  0x32   : > { %830 = vrot.lane.b32.xlu0 %v18086_v2, %s17991_s14 }
  0x34   : > { %1000 = vrot.lane.b32.xlu1 %v18100_v8, %s17992_s15 }
  0x36   : > { %998 = vrot.lane.b32.xlu0 %v18093_v6, %s17992_s15 }
  0x38   : > { %1002 = vrot.lane.b32.xlu1 %v18095_v7, %s17992_s15 }
  0x3a   : > { %996 = vrot.lane.b32.xlu0 %v18086_v2, %s17992_s15 }
  0x3c   : > { %1166 = vrot.lane.b32.xlu1 %v18100_v8, %s17993_s16 }
  0x3e   : > { %1164 = vrot.lane.b32.xlu0 %v18093_v6, %s17993_s16 }
  0x40   : > { %1168 = vrot.lane.b32.xlu1 %v18095_v7, %s17993_s16 }
  0x42   : > { %1162 = vrot.lane.b32.xlu0 %v18086_v2, %s17993_s16 }
  0x44   : > { %1332 = vrot.lane.b32.xlu1 %v18100_v8, %s23256_s17 }
  0x46   : > { %1330 = vrot.lane.b32.xlu0 %v18093_v6, %s23256_s17 }
  0x48   : > { %1334 = vrot.lane.b32.xlu1 %v18095_v7, %s23256_s17 }
  0x4a   : > { %1328 = vrot.lane.b32.xlu0 %v18086_v2, %s23256_s17 }
  0x4c   : > { %1498 = vrot.lane.b32.xlu1 %v18100_v8, %s23252_s18 }
  0x4e   : > { %1496 = vrot.lane.b32.xlu0 %v18093_v6, %s23252_s18 }
  0x50   : > { %1500 = vrot.lane.b32.xlu1 %v18095_v7, %s23252_s18 }
  0x52   : > { %1494 = vrot.lane.b32.xlu0 %v18086_v2, %s23252_s18 }
  0x54   : > { %1664 = vrot.lane.b32.xlu1 %v18100_v8, %s23250_s19 }
  0x56   : > { %1662 = vrot.lane.b32.xlu0 %v18093_v6, %s23250_s19  ;;  %v17753_v6 = vld [vmem:[%s23188_s1 + $0x30] sm:$0xff]  }
  0x58   : > { %1666 = vrot.lane.b32.xlu1 %v18095_v7, %s23250_s19 }
  0x5a   : > { %1660 = vrot.lane.b32.xlu0 %v18086_v2, %s23250_s19 }
  0x5c   : > { %1823 = vperm.xlu1 %17401, %v18204_v38  }
  0x5e   : > { %1818 = vperm.xlu0 %17400, %v18199_v37  }
  0x60   : > { %1828 = vperm.xlu1 %17401, %v18223_v45  }
  0x62   : > { %1833 = vperm.xlu0 %17400, %v18213_v41  }
  0x8e   : > { %v376_v9 = vpop.permute.xlu1 %375 }
  0x90   : > { %v378_v12 = vpop.permute.xlu0 %377 }
  0x91   : > { %v384_v17 = vsel %vm383_vm2, %v376_v9, %v378_v12 }
  0x92   : > { %v382_v13 = vpop.permute.xlu1 %381  ;;  %v399_v25 = vand.u32 %v18163_v14, %v384_v17 }
  0x93   : > { %v408_v15 = vand.u32 %v18163_v14, %v382_v13 }
  0x94   : > { %v380_v16 = vpop.permute.xlu0 %379 }
  0x95   : > { %463 = vmatprep.subr.bf16.mxu1 %v408_v15  ;;  %v385_v18 = vsel %vm383_vm2, %v378_v12, %v380_v16  ;;  %v386_v19 = vsel %vm383_vm2, %v380_v16, %v382_v13  ;;  %v17754_v15 = vld [vmem:[%s23188_s1 + $0x38] sm:$0xff]  }
  0x96   : > { %v402_v21 = vand.u32 %v18163_v14, %v385_v18  ;;  %v405_v22 = vand.u32 %v18163_v14, %v386_v19  ;;  %v669_v24 = vpop.permute.xlu1 %668 }
  0x98   : > { %410 = vmatprep.subr.bf16.mxu0 %v402_v21  ;;  %464 = vmatpush1.bf16.msra.mxu1 %v405_v22  ;;  %v667_v27 = vpop.permute.xlu0 %666 }
  0x99   : > { %411 = vmatpush1.bf16.msra.mxu0 %v399_v25  ;;  %597 = vmatprep.subr.bf16.mxu1 %v542_v20  ;;  %v674_v29 = vsel %vm672_vm3, %v667_v27, %v669_v24  ;;  %v17755_v20 = vld [vmem:[%s23188_s1 + $0x40] sm:$0xff]  }
  0x9a   : > { %544 = vmatprep.subr.bf16.mxu0 %v536_v23  ;;  %v671_v31 = vpop.permute.xlu1 %670  ;;  %v686_v33 = vand.u32 %v674_v29, %v18163_v14 }
  0x9b   : > { %15516 = vmatmul.mubr.msk.bf16.vlgmr.msra.gmra.mrb[0].mxu1 %vm387_vm4, %v17747_v26  ;;  %v692_v32 = vand.u32 %v671_v31, %v18163_v14  ;;  %v675_v43 = vsel %vm672_vm3, %v669_v24, %v671_v31 }
  0x9c   : > { %15514 = vmatmul.mubr.msk.bf16.vlgmr.msra.gmra.mrb[0].mxu0 %vm387_vm4, %v17747_v26  ;;  %505 = vmatprep.mubr.bf16.mxu1 %v23217_v5  ;;  %v665_v35 = vpop.permute.xlu0 %664  ;;  %v689_v48 = vand.u32 %v675_v43, %v18163_v14 }
  0x9d   : > { %452 = vmatprep.mubr.bf16.mxu0 %v23217_v5  ;;  %598 = vmatpush1.bf16.msra.mxu1 %v539_v28  ;;  %v673_v39 = vsel %vm672_vm3, %v665_v35, %v667_v27  ;;  %v17756_v28 = vld [vmem:[%s23188_s1 + $0x48] sm:$0xff]  }
  0x9e   : > { %545 = vmatpush1.bf16.msra.mxu0 %v533_v30  ;;  %747 = vmatprep.subr.bf16.mxu1 %v692_v32  ;;  %v835_v36 = vpop.permute.xlu1 %834  ;;  %v683_v47 = vand.u32 %v673_v39, %v18163_v14 }
  0x9f   : > { %694 = vmatprep.subr.bf16.mxu0 %v686_v33  ;;  %v17757_v33 = vld [vmem:[%s23188_s1 + $0x50] sm:$0xff]  }
  0xa0   : > { %v833_v40 = vpop.permute.xlu0 %832 }
  0xa1   : > { %v840_v44 = vsel %vm838_vm5, %v833_v40, %v835_v36 }
  0xa2   : > { %v837_v46 = vpop.permute.xlu1 %836  ;;  %v852_v49 = vand.u32 %v840_v44, %v18163_v14  ;;  %v17758_v44 = vld [vmem:[%s23188_s1 + $0x58] sm:$0xff]  }
  0xa3   : > { %15517 = vmatmul.mubr.msk.bf16.gmra.mrb[4].mxu1 %vm387_vm4, %v17748_v34  ;;  %v858_v50 = vand.u32 %v837_v46, %v18163_v14  ;;  %v841_v57 = vsel %vm838_vm5, %v835_v36, %v837_v46 }
  0xa4   : > { %15515 = vmatmul.mubr.msk.bf16.gmra.mrb[4].mxu0 %vm387_vm4, %v17748_v34  ;;  %629 = vmatprep.mubr.bf16.mxu1 %v23217_v5  ;;  %v831_v52 = vpop.permute.xlu0 %830  ;;  %v855_v61 = vand.u32 %v841_v57, %v18163_v14 }
  0xa5   : > { %576 = vmatprep.mubr.bf16.mxu0 %v23217_v5  ;;  %v839_v54 = vsel %vm838_vm5, %v831_v52, %v833_v40 }
  0xa6   : > { %v1001_v53 = vpop.permute.xlu1 %1000  ;;  %v849_v60 = vand.u32 %v839_v54, %v18163_v14 }
  0xa8   : > { %v999_v55 = vpop.permute.xlu0 %998 }
  0xa9   : > { %v1006_v58 = vsel %vm23254_vm6, %v999_v55, %v1001_v53 }
  0xaa   : > { %v1003_v59 = vpop.permute.xlu1 %1002  ;;  %v1018_v62 = vand.u32 %v1006_v58, %v18163_v14  ;;  %v17760_v58 = vld [vmem:[%s23188_s1 + $0x68] sm:$0xff]  }
  0xab   : > { %15522 = vmatmul.mubr.msk.bf16.vlgmr.msra.gmra.mrb[0].mxu1 %vm387_vm4, %v17749_v42  ;;  %v1024_v63 = vand.u32 %v1003_v59, %v18163_v14  ;;  %v1007_v7 = vsel %vm23254_vm6, %v1001_v53, %v1003_v59 }
  0xac   : > { %15520 = vmatmul.mubr.msk.bf16.vlgmr.msra.gmra.mrb[0].mxu0 %vm387_vm4, %v17749_v42  ;;  %639 = vmatprep.mubr.bf16.mxu1 %v23217_v5  ;;  %v997_v1 = vpop.permute.xlu0 %996  ;;  %v1021_v11 = vand.u32 %v1007_v7, %v18163_v14  ;;  %v23198_v7 = vlaneseq }
  0xad   : > { %586 = vmatprep.mubr.bf16.mxu0 %v23217_v5  ;;  %695 = vmatpush1.bf16.msra.mxu0 %v683_v47  ;;  %v1005_v3 = vsel %vm23254_vm6, %v997_v1, %v999_v55  ;;  %v17762_v1 = vld [vmem:[%s23188_s1 + $0x78] sm:$0xff]  }
  0xae   : > { %748 = vmatpush1.bf16.msra.mxu1 %v689_v48  ;;  %860 = vmatprep.subr.bf16.mxu0 %v852_v49  ;;  %v1167_v2 = vpop.permute.xlu1 %1166  ;;  %v1015_v10 = vand.u32 %v1005_v3, %v18163_v14  ;;  %v333_v3 = vld [vmem:[%s23190_s3] sm:$0xf] }
  0xaf   : > { %913 = vmatprep.subr.bf16.mxu1 %v858_v50  ;;  %v17759_v50 = vld [vmem:[%s23188_s1 + $0x60] sm:$0xff]  }
  0xb0   : > { %v1165_v4 = vpop.permute.xlu0 %1164 }
  0xb1   : > { %v1172_v8 = vsel %vm23247_vm7, %v1165_v4, %v1167_v2 }
  0xb2   : > { %v1169_v9 = vpop.permute.xlu1 %1168  ;;  %v1184_v12 = vand.u32 %v1172_v8, %v18163_v14  ;;  %v18384_v8 = vshrl.u32 %v23198_v7, 7 }
  0xb3   : > { %15523 = vmatmul.mubr.msk.bf16.gmra.mrb[4].mxu1 %vm387_vm4, %v17750_v51  ;;  %v1190_v13 = vand.u32 %v1169_v9, %v18163_v14  ;;  %v1173_v21 = vsel %vm23247_vm7, %v1167_v2, %v1169_v9  ;;  %v17764_v2 = vld [vmem:[%s23188_s1 + $0x88] sm:$0xff]  }
  0xb4   : > { %15521 = vmatmul.mubr.msk.bf16.gmra.mrb[4].mxu0 %vm387_vm4, %v17750_v51  ;;  %779 = vmatprep.mubr.bf16.mxu1 %v23217_v5  ;;  %v1163_v16 = vpop.permute.xlu0 %1162  ;;  %v1187_v25 = vand.u32 %v1173_v21, %v18163_v14  ;;  %23273 = vst [vmem:[#allocation2_spill] sm:$0xff] %v18384_v8  ;;  %v1879_v9 = vsub.s32 2, %v18384_v8 }
  0xb5   : > { %726 = vmatprep.mubr.bf16.mxu0 %v23217_v5  ;;  %v1171_v18 = vsel %vm23247_vm7, %v1163_v16, %v1165_v4  ;;  %v335_v4 = vstv %s334_s9 }
  0xb6   : > { %v1333_v17 = vpop.permute.xlu1 %1332  ;;  %v1181_v24 = vand.u32 %v1171_v18, %v18163_v14  ;;  %vm336_vm11 = vcmp.ge.s32.totalorder %v333_v3, %v335_v4 }
  0xb8   : > { %v1331_v19 = vpop.permute.xlu0 %1330 }
  0xb9   : > { %v1338_v22 = vsel %vm23206_vm8, %v1331_v19, %v1333_v17 }
  0xba   : > { %v1335_v23 = vpop.permute.xlu1 %1334  ;;  %v1350_v26 = vand.u32 %v1338_v22, %v18163_v14 }
  0xbb   : > { %15528 = vmatmul.mubr.msk.bf16.vlgmr.msra.gmra.mrb[0].mxu1 %vm387_vm4, %v17751_v56  ;;  %v1356_v27 = vand.u32 %v1335_v23, %v18163_v14  ;;  %v1339_v34 = vsel %vm23206_vm8, %v1333_v17, %v1335_v23 }
  0xbc   : > { %15526 = vmatmul.mubr.msk.bf16.vlgmr.msra.gmra.mrb[0].mxu0 %vm387_vm4, %v17751_v56  ;;  %789 = vmatprep.mubr.bf16.mxu1 %v23217_v5  ;;  %v1329_v29 = vpop.permute.xlu0 %1328  ;;  %v1353_v40 = vand.u32 %v1339_v34, %v18163_v14 }
  0xbd   : > { %736 = vmatprep.mubr.bf16.mxu0 %v23217_v5  ;;  %861 = vmatpush1.bf16.msra.mxu0 %v849_v60  ;;  %v1337_v31 = vsel %vm23206_vm8, %v1329_v29, %v1331_v19 }
  0xbe   : > { %914 = vmatpush1.bf16.msra.mxu1 %v855_v61  ;;  %1026 = vmatprep.subr.bf16.mxu0 %v1018_v62  ;;  %v1499_v30 = vpop.permute.xlu1 %1498  ;;  %v1347_v39 = vand.u32 %v1337_v31, %v18163_v14  ;;  %v17761_v61 = vld [vmem:[%s23188_s1 + $0x70] sm:$0xff]  }
  0xbf   : > { %1079 = vmatprep.subr.bf16.mxu1 %v1024_v63 }
  0xc0   : > { %v1497_v32 = vpop.permute.xlu0 %1496 }
  0xc1   : > { %v1504_v35 = vsel %vm23205_vm9, %v1497_v32, %v1499_v30 }
  0xc2   : > { %v1501_v36 = vpop.permute.xlu1 %1500  ;;  %v1516_v42 = vand.u32 %v1504_v35, %v18163_v14 }
  0xc3   : > { %15529 = vmatmul.mubr.msk.bf16.gmra.mrb[4].mxu1 %vm387_vm4, %v17752_v0  ;;  %v1522_v43 = vand.u32 %v1501_v36, %v18163_v14  ;;  %v1505_v51 = vsel %vm23205_vm9, %v1499_v30, %v1501_v36 }
  0xc4   : > { %15527 = vmatmul.mubr.msk.bf16.gmra.mrb[4].mxu0 %vm387_vm4, %v17752_v0  ;;  %945 = vmatprep.mubr.bf16.mxu1 %v23217_v5  ;;  %v1495_v46 = vpop.permute.xlu0 %1494  ;;  %v1519_v55 = vand.u32 %v1505_v51, %v18163_v14 }
  0xc5   : > { %892 = vmatprep.mubr.bf16.mxu0 %v23217_v5  ;;  %v1503_v48 = vsel %vm23205_vm9, %v1495_v46, %v1497_v32 }
  0xc6   : > { %v1665_v47 = vpop.permute.xlu1 %1664  ;;  %v1513_v54 = vand.u32 %v1503_v48, %v18163_v14 }
  0xc8   : > { %v1663_v49 = vpop.permute.xlu0 %1662 }
  0xc9   : > { %v1670_v52 = vsel %vm23197_vm10, %v1663_v49, %v1665_v47 }
  0xca   : > { %v1667_v53 = vpop.permute.xlu1 %1666  ;;  %v1682_v56 = vand.u32 %v1670_v52, %v18163_v14 }
  0xcb   : > { %15534 = vmatmul.mubr.msk.bf16.vlgmr.msra.gmra.mrb[0].mxu1 %vm387_vm4, %v17753_v6  ;;  %v1688_v57 = vand.u32 %v1667_v53, %v18163_v14  ;;  %v1671_v62 = vsel %vm23197_vm10, %v1665_v47, %v1667_v53 }
  0xcc   : > { %15532 = vmatmul.mubr.msk.bf16.vlgmr.msra.gmra.mrb[0].mxu0 %vm387_vm4, %v17753_v6  ;;  %955 = vmatprep.mubr.bf16.mxu1 %v23217_v5  ;;  %v1661_v59 = vpop.permute.xlu0 %1660  ;;  %v1685_v0 = vand.u32 %v1671_v62, %v18163_v14  ;;  %v338_v6 = vstv %s337_s10 }
  0xcd   : > { %902 = vmatprep.mubr.bf16.mxu0 %v23217_v5  ;;  %1027 = vmatpush1.bf16.msra.mxu0 %v1015_v10  ;;  %v1669_v60 = vsel %vm23197_vm10, %v1661_v59, %v1663_v49  ;;  %vm339_vm12 = vcmp.lt.s32.totalorder %v333_v3, %v338_v6 }
  0xce   : > { %1080 = vmatpush1.bf16.msra.mxu1 %v1021_v11  ;;  %1192 = vmatprep.subr.bf16.mxu0 %v1184_v12  ;;  %v1679_v63 = vand.u32 %v1669_v60, %v18163_v14  ;;  %v17763_v14 = vld [vmem:[%s23188_s1 + $0x80] sm:$0xff]   ;;  %vm340_vm13 = vmand %vm336_vm11, %vm339_vm12  ;;  %v1871_v11 = vsub.s32 0, %v18384_v8  ;;  %v18390_v12 = vsub.s32 3, %v18384_v8  ;;  %vm23249_vm11 = vcmask 154624  }
  0xcf   : > { %1245 = vmatprep.subr.bf16.mxu1 %v1190_v13  ;;  %v1868_v10 = vsel %vm340_vm13, 1, %v23217_v5  ;;  %v1875_v13 = vsub.s32 1, %v18384_v8  ;;  %vm23196_vm12 = vcmask 547840   ;;  %vm15574_vm1 = vmneg %vm23249_vm11 }
  0xd0   : > { %23274 = vst [vmem:[#allocation3_spill] sm:$0xff] %v18390_v12  ;;  %v18395_v16 = vrot.slane %v1868_v10, %v1871_v11  ;;  %v1884_v17 = vrot.slane %v1868_v10, %v18390_v12  ;;  %vm18653_vm13 = vmpackc.low %vm23196_vm12, %vm23196_vm12 }
  0xd1   : > { %v18398_v19 = vrot.slane %v1868_v10, %v1875_v13 }
  0xd2   : > { %23276 = vst [vmem:[#allocation5_spill] sm:$0xff] %v18395_v16  ;;  %vm1885_vm15 = vcmp.eq.s32.totalorder %v18395_v16, 1  ;;  %vm18402_vm0 = vcmp.eq.s32.totalorder %v1884_v17, 1 }
  0xd3   : > { %15535 = vmatmul.mubr.msk.bf16.gmra.mrb[4].mxu1 %vm387_vm4, %v17754_v15  ;;  %23277 = vst [vmem:[#allocation6_spill] sm:$0xff] %v18398_v19 }
  0xd4   : > { %15533 = vmatmul.mubr.msk.bf16.gmra.mrb[4].mxu0 %vm387_vm4, %v17754_v15  ;;  %1111 = vmatprep.mubr.bf16.mxu1 %v23217_v5  ;;  %v18393_v15 = vrot.slane %v1868_v10, %v1879_v9 }
  0xd5   : > { %1058 = vmatprep.mubr.bf16.mxu0 %v23217_v5 }
  0xd6   : > { %23275 = vst [vmem:[#allocation4_spill] sm:$0xff] %v18393_v15  ;;  %vm1887_vm14 = vcmp.eq.s32.totalorder %v18393_v15, 1 }
  0xdb   : > { %15540 = vmatmul.mubr.msk.bf16.vlgmr.msra.gmra.mrb[0].mxu1 %vm387_vm4, %v17755_v20  ;;  %v1824_v21 = vpop.permute.xlu1 %1823 }
  0xdc   : > { %15538 = vmatmul.mubr.msk.bf16.vlgmr.msra.gmra.mrb[0].mxu0 %vm387_vm4, %v17755_v20  ;;  %1121 = vmatprep.mubr.bf16.mxu1 %v23217_v5 }
  0xdd   : > { %1068 = vmatprep.mubr.bf16.mxu0 %v23217_v5  ;;  %1193 = vmatpush1.bf16.msra.mxu0 %v1181_v24  ;;  %v1819_v18 = vpop.permute.xlu0 %1818 }
  0xde   : > { %1246 = vmatpush1.bf16.msra.mxu1 %v1187_v25  ;;  %1358 = vmatprep.subr.bf16.mxu0 %v1350_v26 }
  0xdf   : > { %1411 = vmatprep.subr.bf16.mxu1 %v1356_v27  ;;  %v23278_v27 = vmov 0  ;;  %v1829_v59 = vpop.permute.xlu1 %1828 }
  0xe0   : > { %v23279_v27 = vsel %vm18402_vm0, 4294967295, %v23278_v27 }
  0xe1   : > { %23280 = vst [vmem:[#allocation7_spill] sm:$0xff] %v23279_v27  ;;  %v1834_v53 = vpop.permute.xlu0 %1833 }
  0xe3   : > { %15541 = vmatmul.mubr.msk.bf16.gmra.mrb[4].mxu1 %vm387_vm4, %v17756_v28 }
  0xe4   : > { %15539 = vmatmul.mubr.msk.bf16.gmra.mrb[4].mxu0 %vm387_vm4, %v17756_v28  ;;  %1277 = vmatprep.mubr.bf16.mxu1 %v23217_v5 }
  0xe5   : > { %1224 = vmatprep.mubr.bf16.mxu0 %v23217_v5 }
  0xeb   : > { %15546 = vmatmul.mubr.msk.bf16.vlgmr.msra.gmra.mrb[0].mxu1 %vm387_vm4, %v17757_v33 }
  0xec   : > { %15544 = vmatmul.mubr.msk.bf16.vlgmr.msra.gmra.mrb[0].mxu0 %vm387_vm4, %v17757_v33  ;;  %1287 = vmatprep.mubr.bf16.mxu1 %v23217_v5 }
  0xed   : > { %1234 = vmatprep.mubr.bf16.mxu0 %v23217_v5  ;;  %1359 = vmatpush1.bf16.msra.mxu0 %v1347_v39 }
  0xee   : > { %1412 = vmatpush1.bf16.msra.mxu1 %v1353_v40  ;;  %1524 = vmatprep.subr.bf16.mxu0 %v1516_v42 }
  0xef   : > { %1577 = vmatprep.subr.bf16.mxu1 %v1522_v43 }
  0xf3   : > { %15547 = vmatmul.mubr.msk.bf16.gmra.mrb[4].mxu1 %vm387_vm4, %v17758_v44 }
  0xf4   : > { %15545 = vmatmul.mubr.msk.bf16.gmra.mrb[4].mxu0 %vm387_vm4, %v17758_v44  ;;  %1443 = vmatprep.mubr.bf16.mxu1 %v23217_v5 }
  0xf5   : > { %1390 = vmatprep.mubr.bf16.mxu0 %v23217_v5 }
  0xfb   : > { %15552 = vmatmul.mubr.msk.bf16.vlgmr.msra.gmra.mrb[0].mxu1 %vm387_vm4, %v17759_v50 }
  0xfc   : > { %15550 = vmatmul.mubr.msk.bf16.vlgmr.msra.gmra.mrb[0].mxu0 %vm387_vm4, %v17759_v50  ;;  %1453 = vmatprep.mubr.bf16.mxu1 %v23217_v5 }
  0xfd   : > { %1400 = vmatprep.mubr.bf16.mxu0 %v23217_v5  ;;  %1525 = vmatpush1.bf16.msra.mxu0 %v1513_v54 }
  0xfe   : > { %1578 = vmatpush1.bf16.msra.mxu1 %v1519_v55  ;;  %1690 = vmatprep.subr.bf16.mxu0 %v1682_v56 }
  0xff   : > { %1743 = vmatprep.subr.bf16.mxu1 %v1688_v57 }
 0x103   : > { %15553 = vmatmul.mubr.msk.bf16.gmra.mrb[4].mxu1 %vm387_vm4, %v17760_v58 }
 0x104   : > { %15551 = vmatmul.mubr.msk.bf16.gmra.mrb[4].mxu0 %vm387_vm4, %v17760_v58  ;;  %1609 = vmatprep.mubr.bf16.mxu1 %v23217_v5 }
 0x105   : > { %1556 = vmatprep.mubr.bf16.mxu0 %v23217_v5 }
 0x10b   : > { %15558 = vmatmul.mubr.msk.bf16.vlgmr.msra.gmra.mrb[0].mxu1 %vm387_vm4, %v17761_v61 }
 0x10c   : > { %15556 = vmatmul.mubr.msk.bf16.vlgmr.msra.gmra.mrb[0].mxu0 %vm387_vm4, %v17761_v61  ;;  %1619 = vmatprep.mubr.bf16.mxu1 %v23217_v5 }
 0x10d   : > { %1566 = vmatprep.mubr.bf16.mxu0 %v23217_v5  ;;  %1691 = vmatpush1.bf16.msra.mxu0 %v1679_v63 }
 0x10e   : > { %1744 = vmatpush1.bf16.msra.mxu1 %v1685_v0 }
 0x113   : > { %15559 = vmatmul.mubr.msk.bf16.gmra.mrb[4].mxu1 %vm387_vm4, %v17762_v1 }
 0x114   : > { %15557 = vmatmul.mubr.msk.bf16.gmra.mrb[4].mxu0 %vm387_vm4, %v17762_v1  ;;  %1775 = vmatprep.mubr.bf16.mxu1 %v23217_v5 }
 0x115   : > { %1722 = vmatprep.mubr.bf16.mxu0 %v23217_v5 }
 0x11b   : > { %15564 = vmatmul.mubr.msk.bf16.vlgmr.msra.gmra.mrb[0].mxu1 %vm387_vm4, %v17763_v14 }
 0x11c   : > { %15562 = vmatmul.mubr.msk.bf16.vlgmr.msra.gmra.mrb[0].mxu0 %vm387_vm4, %v17763_v14  ;;  %1785 = vmatprep.mubr.bf16.mxu1 %v23217_v5 }
 0x11d   : > { %1732 = vmatprep.mubr.bf16.mxu0 %v23217_v5 }
 0x123   : > { %15565 = vmatmul.mubr.msk.bf16.gmra.mrb[4].mxu1 %vm387_vm4, %v17764_v2 }
 0x124   : > { %15563 = vmatmul.mubr.msk.bf16.gmra.mrb[4].mxu0 %vm387_vm4, %v17764_v2  ;;  %2147 = vmatprep.mubr.bf16.mxu1 %v23217_v5  ;;  %vm23195_vm4 = vcmp.eq.s32.totalorder %v18398_v19, 1 }
 0x125   : > { %2094 = vmatprep.mubr.bf16.mxu0 %v23217_v5 }
 0x1ee   : > { %v1777_v20 = vpop.f32.mrb[0].mxu1 }
 0x1ef   : > { %v1838_v22 = vadd.f32 %v1819_v18, %v1777_v20  ;;  %v1724_v23 = vpop.f32.mrb[0].mxu0  ;;  %v1779_v24 = vpop.f32.mrb[1].mxu1 }
 0x1f0   : > { %v1836_v25 = vadd.f32 %v1819_v18, %v1724_v23  ;;  %v1839_v26 = vadd.f32 %v1819_v18, %v1779_v24  ;;  %v1781_v28 = vpop.f32.mrb[2].mxu1  ;;  %v1726_v29 = vpop.f32.mrb[1].mxu0 }
 0x1f1   : > { %v1854_v30 = vmax.f32 %v1838_v22, 0.0  ;;  %v1842_v31 = vadd.f32 %v1824_v21, %v1781_v28  ;;  %v1837_v32 = vadd.f32 %v1819_v18, %v1726_v29  ;;  %v1728_v33 = vpop.f32.mrb[2].mxu0  ;;  %v1783_v34 = vpop.f32.mrb[3].mxu1 }
 0x1f2   : > { %v1852_v35 = vmax.f32 %v1836_v25, 0.0  ;;  %v1855_v36 = vmax.f32 %v1839_v26, 0.0  ;;  %v1840_v39 = vadd.f32 %v1824_v21, %v1728_v33  ;;  %v1843_v40 = vadd.f32 %v1824_v21, %v1783_v34  ;;  %v1730_v42 = vpop.f32.mrb[3].mxu0 }
 0x1f3   : > { %v1891_v43 = vsel %vm1887_vm14, %v1854_v30, 0.0  ;;  %v1858_v44 = vmax.f32 %v1842_v31, 0.0  ;;  %v1853_v46 = vmax.f32 %v1837_v32, 0.0  ;;  %v1841_v47 = vadd.f32 %v1824_v21, %v1730_v42 }
 0x1f4   : > { %v1889_v48 = vsel %vm1885_vm15, %v1852_v35, 0.0  ;;  %v1892_v49 = vsel %vm18402_vm0, %v1855_v36, 0.0  ;;  %v1856_v50 = vmax.f32 %v1840_v39, 0.0  ;;  %v1859_v51 = vmax.f32 %v1843_v40, 0.0 }
 0x1f5   : > { %v1895_v52 = vsel %vm1887_vm14, %v1858_v44, 0.0  ;;  %v1890_v54 = vsel %vm23195_vm4, %v1853_v46, 0.0  ;;  %v1857_v55 = vmax.f32 %v1841_v47, 0.0  ;;  %v17402_v56 = vpack.i.bf16 %v1892_v49, %v1891_v43 }
 0x1f6   : > { %v1893_v57 = vsel %vm1885_vm15, %v1856_v50, 0.0  ;;  %v1896_v58 = vsel %vm18402_vm0, %v1859_v51, 0.0  ;;  %v1787_v60 = vpop.f32.mrb[4].mxu1  ;;  %v17407_v61 = vpack.i.bf16 %v1890_v54, %v1889_v48 }
 0x1f7   : > { %v1894_v62 = vsel %vm23195_vm4, %v1857_v55, 0.0  ;;  %v1846_v63 = vadd.f32 %v1829_v59, %v1787_v60  ;;  %v1789_v0 = vpop.f32.mrb[5].mxu1  ;;  %17403 = vrot.lane.b32.xlu0 %v17402_v56, %s17998_s21  ;;  %v1734_v1 = vpop.f32.mrb[4].mxu0  ;;  %v17412_v14 = vpack.i.bf16 %v1896_v58, %v1895_v52 }
 0x1f8   : > { %v1847_v2 = vadd.f32 %v1829_v59, %v1789_v0  ;;  %v1844_v3 = vadd.f32 %v1829_v59, %v1734_v1  ;;  %v1791_v4 = vpop.f32.mrb[6].mxu1  ;;  %17408 = vrot.lane.b32.xlu1 %v17407_v61, %s17998_s21  ;;  %v1736_v6 = vpop.f32.mrb[5].mxu0  ;;  %v17417_v9 = vpack.i.bf16 %v1894_v62, %v1893_v57 }
 0x1f9   : > { %v1862_v10 = vmax.f32 %v1846_v63, 0.0  ;;  %v1850_v11 = vadd.f32 %v1834_v53, %v1791_v4  ;;  %v1845_v13 = vadd.f32 %v1829_v59, %v1736_v6  ;;  %v1738_v17 = vpop.f32.mrb[6].mxu0  ;;  %v1793_v18 = vpop.f32.mrb[7].mxu1 }
 0x1fa   : > { %v1863_v20 = vmax.f32 %v1847_v2, 0.0  ;;  %v1860_v21 = vmax.f32 %v1844_v3, 0.0  ;;  %v1848_v22 = vadd.f32 %v1834_v53, %v1738_v17  ;;  %v1851_v23 = vadd.f32 %v1834_v53, %v1793_v18  ;;  %v1740_v24 = vpop.f32.mrb[7].mxu0 }
 0x1fb   : > { %v1899_v25 = vsel %vm1887_vm14, %v1862_v10, 0.0  ;;  %v1866_v26 = vmax.f32 %v1850_v11, 0.0  ;;  %v1861_v28 = vmax.f32 %v1845_v13, 0.0  ;;  %v1849_v29 = vadd.f32 %v1834_v53, %v1740_v24  ;;  %17413 = vrot.lane.b32.xlu0 %v17412_v14, %s17998_s21 }
 0x1fc   : > { %v1900_v30 = vsel %vm18402_vm0, %v1863_v20, 0.0  ;;  %v1897_v31 = vsel %vm1885_vm15, %v1860_v21, 0.0  ;;  %v1864_v32 = vmax.f32 %v1848_v22, 0.0  ;;  %v1867_v33 = vmax.f32 %v1851_v23, 0.0  ;;  %17418 = vrot.lane.b32.xlu1 %v17417_v9, %s17998_s21 }
 0x1fd   : > { %v1903_v34 = vsel %vm1887_vm14, %v1866_v26, 0.0  ;;  %v1898_v35 = vsel %vm23195_vm4, %v1861_v28, 0.0  ;;  %v1865_v36 = vmax.f32 %v1849_v29, 0.0  ;;  %v17422_v39 = vpack.i.bf16 %v1900_v30, %v1899_v25 }
 0x1fe   : > { %v1901_v40 = vsel %vm1885_vm15, %v1864_v32, 0.0  ;;  %v1904_v42 = vsel %vm18402_vm0, %v1867_v33, 0.0  ;;  %v17427_v43 = vpack.i.bf16 %v1898_v35, %v1897_v31 }
 0x1ff   : > { %v1902_v44 = vsel %vm23195_vm4, %v1865_v36, 0.0  ;;  %17423 = vrot.lane.b32.xlu0 %v17422_v39, %s17998_s21  ;;  %v17437_v46 = vpack.i.bf16 %v1904_v42, %v1903_v34  ;;  %vm23246_vm4 = vcmask 261120  }
 0x200   : > { %17428 = vrot.lane.b32.xlu1 %v17427_v43, %s17998_s21  ;;  %v17432_v47 = vpack.i.bf16 %v1902_v44, %v1901_v40 }
 0x203   : > { %17438 = vrot.lane.b32.xlu0 %v17437_v46, %s17998_s21 }
 0x204   : > { %17433 = vrot.lane.b32.xlu1 %v17432_v47, %s17998_s21 }
 0x269   : > { %v17404_v48 = vpop.permute.xlu0 %17403 }
 0x26a   : > { %v17409_v49 = vpop.permute.xlu1 %17408  ;;  %v17405_v50 = vunpack.i.l.bf16 %v17404_v48  ;;  %v17406_v54 = vunpack.i.h.bf16 %v17404_v48 }
 0x26b   : > { %v17411_v51 = vunpack.i.h.bf16 %v17409_v49  ;;  %v18447_v52 = vunpack.i.l.bf16 %v17409_v49 }
 0x26c   : > { %v18461_v14 = vsel %vm23249_vm11, %v17405_v50, %v17406_v54 }
 0x26d   : > { %v17414_v53 = vpop.permute.xlu0 %17413  ;;  %v1955_v61 = vsel %vm23249_vm11, %v17411_v51, %v17405_v50  ;;  %v1982_v62 = vsel %vm23249_vm11, 0.0, %v18447_v52  ;;  %v1987_v18 = vsel %vm23196_vm12, %v18461_v14, 0.0  ;;  %v1954_v20 = vsel %vm23249_vm11, %v18447_v52, %v17411_v51 }
 0x26e   : > { %v17416_v55 = vunpack.i.h.bf16 %v17414_v53  ;;  %v17415_v56 = vunpack.i.l.bf16 %v17414_v53  ;;  %v17419_v57 = vpop.permute.xlu1 %17418 }
 0x26f   : > { %v17421_v58 = vunpack.i.h.bf16 %v17419_v57  ;;  %v18449_v59 = vunpack.i.l.bf16 %v17419_v57 }
 0x270   : > { %v18452_v60 = vsel %vm23249_vm11, %v17415_v56, %v17416_v55 }
 0x271   : > { %v1958_v63 = vsel %vm23249_vm11, %v17421_v58, %v17415_v56  ;;  %v1983_v0 = vsel %vm23249_vm11, 0.0, %v18449_v59  ;;  %v17424_v1 = vpop.permute.xlu0 %17423  ;;  %v1988_v6 = vsel %vm23196_vm12, %v18452_v60, 0.0  ;;  %v1957_v9 = vsel %vm23249_vm11, %v18449_v59, %v17421_v58 }
 0x272   : > { %v18463_v2 = vpack.c.bf16 %v1958_v63, %v1955_v61  ;;  %v18465_v3 = vpack.c.bf16 %v1983_v0, %v1982_v62  ;;  %v17429_v4 = vpop.permute.xlu1 %17428  ;;  %v15577_v10 = vpack.c.bf16 %v18449_v59, %v18447_v52  ;;  %v17425_v11 = vunpack.i.l.bf16 %v17424_v1  ;;  %v17766_v52 = vld [vmem:[%s23188_s1 + $0xa8] sm:$0xff]  }
 0x273   : > { %v17431_v13 = vunpack.i.h.bf16 %v17429_v4  ;;  %v15587_v17 = vpack.c.bf16 %v18452_v60, %v18461_v14  ;;  %v18483_v21 = vunpack.i.l.bf16 %v17429_v4  ;;  %v18485_v23 = vpack.c.bf16 %v1988_v6, %v1987_v18 }
 0x274   : > { %2029 = vrot.lane.b32.xlu0 %v18463_v2, %s17989_s12  ;;  %2025 = vrot.lane.b32.xlu1 %v18465_v3, %s17989_s12  ;;  %v18487_v24 = vpack.c.bf16 %v1957_v9, %v1954_v20  ;;  %v17426_v25 = vunpack.i.h.bf16 %v17424_v1  ;;  %v17947_v1 = vld [vmem:[%s23189_s2] sm:$0xf] }
 0x275   : > { %v17439_v22 = vpop.permute.xlu0 %17438  ;;  %v1961_v32 = vsel %vm23249_vm11, %v17431_v13, %v17425_v11  ;;  %v1960_v33 = vsel %vm23249_vm11, %v18483_v21, %v17431_v13  ;;  %v1984_v49 = vsel %vm23249_vm11, 0.0, %v18483_v21 }
 0x276   : > { %v17441_v26 = vunpack.i.h.bf16 %v17439_v22  ;;  %v17434_v28 = vpop.permute.xlu1 %17433  ;;  %v17440_v29 = vunpack.i.l.bf16 %v17439_v22  ;;  %v18505_v39 = vsel %vm23249_vm11, %v17425_v11, %v17426_v25  ;;  %v17765_v11 = vld [vmem:[%s23188_s1 + $0xa0] sm:$0xff]  }
 0x277   : > { %v17436_v30 = vunpack.i.h.bf16 %v17434_v28  ;;  %v18489_v31 = vunpack.i.l.bf16 %v17434_v28  ;;  %v1989_v48 = vsel %vm23196_vm12, %v18505_v39, 0.0 }
 0x278   : > { %2031 = vrot.lane.b32.xlu0 %v18485_v23, %s17989_s12  ;;  %2027 = vrot.lane.b32.xlu1 %v18487_v24, %s17989_s12  ;;  %v18499_v34 = vsel %vm23249_vm11, %v17440_v29, %v17441_v26 }
 0x279   : > { %v1964_v35 = vsel %vm23249_vm11, %v17436_v30, %v17440_v29  ;;  %v1963_v36 = vsel %vm23249_vm11, %v18489_v31, %v17436_v30  ;;  %v1990_v43 = vsel %vm23196_vm12, %v18499_v34, 0.0  ;;  %v1985_v44 = vsel %vm23249_vm11, 0.0, %v18489_v31  ;;  %vm18669_vm12 = vmpackc.low %vm15574_vm1, %vm15574_vm1 }
 0x27a   : > { %v18507_v40 = vpack.c.bf16 %v1964_v35, %v1961_v32  ;;  %v18509_v42 = vpack.c.bf16 %v1963_v36, %v1960_v33  ;;  %v15582_v46 = vpack.c.bf16 %v18489_v31, %v18483_v21  ;;  %v15590_v47 = vpack.c.bf16 %v18499_v34, %v18505_v39  ;;  %v17768_v31 = vld [vmem:[%s23188_s1 + $0x98] sm:$0xff]  }
 0x27b   : > { %v18527_v50 = vpack.c.bf16 %v1990_v43, %v1989_v48  ;;  %v18529_v51 = vpack.c.bf16 %v1985_v44, %v1984_v49  ;;  %vm23293_vm1 = vcmp.eq.s32.totalorder %v18398_v19, 1 }
 0x27c   : > { %2037 = vrot.lane.b32.xlu0 %v18507_v40, %s17989_s12  ;;  %2035 = vrot.lane.b32.xlu1 %v18509_v42, %s17989_s12 }
 0x280   : > { %2039 = vrot.lane.b32.xlu0 %v18527_v50, %s17989_s12  ;;  %2033 = vrot.lane.b32.xlu1 %v18529_v51, %s17989_s12 }
 0x284   : > { %2308 = vrot.lane.b32.xlu0 %v18463_v2, %s17990_s13  ;;  %2306 = vrot.lane.b32.xlu1 %v18487_v24, %s17990_s13 }
 0x288   : > { %2310 = vrot.lane.b32.xlu0 %v18485_v23, %s17990_s13  ;;  %2304 = vrot.lane.b32.xlu1 %v18465_v3, %s17990_s13 }
 0x28c   : > { %2316 = vrot.lane.b32.xlu0 %v18507_v40, %s17990_s13  ;;  %2314 = vrot.lane.b32.xlu1 %v18509_v42, %s17990_s13 }
 0x290   : > { %2318 = vrot.lane.b32.xlu0 %v18527_v50, %s17990_s13  ;;  %2312 = vrot.lane.b32.xlu1 %v18529_v51, %s17990_s13 }
 0x294   : > { %2480 = vrot.lane.b32.xlu0 %v18463_v2, %s17991_s14  ;;  %2478 = vrot.lane.b32.xlu1 %v18487_v24, %s17991_s14 }
 0x298   : > { %2482 = vrot.lane.b32.xlu0 %v18485_v23, %s17991_s14  ;;  %2476 = vrot.lane.b32.xlu1 %v18465_v3, %s17991_s14 }
 0x29c   : > { %2488 = vrot.lane.b32.xlu0 %v18507_v40, %s17991_s14  ;;  %2486 = vrot.lane.b32.xlu1 %v18509_v42, %s17991_s14 }
 0x2a0   : > { %2490 = vrot.lane.b32.xlu0 %v18527_v50, %s17991_s14  ;;  %2484 = vrot.lane.b32.xlu1 %v18529_v51, %s17991_s14 }
 0x2a4   : > { %2652 = vrot.lane.b32.xlu0 %v18463_v2, %s17992_s15  ;;  %2650 = vrot.lane.b32.xlu1 %v18487_v24, %s17992_s15 }
 0x2a8   : > { %2654 = vrot.lane.b32.xlu0 %v18485_v23, %s17992_s15  ;;  %2648 = vrot.lane.b32.xlu1 %v18465_v3, %s17992_s15 }
 0x2ac   : > { %2660 = vrot.lane.b32.xlu0 %v18507_v40, %s17992_s15  ;;  %2658 = vrot.lane.b32.xlu1 %v18509_v42, %s17992_s15 }
 0x2b0   : > { %2662 = vrot.lane.b32.xlu0 %v18527_v50, %s17992_s15  ;;  %2656 = vrot.lane.b32.xlu1 %v18529_v51, %s17992_s15 }
 0x2b4   : > { %2824 = vrot.lane.b32.xlu0 %v18463_v2, %s17993_s16  ;;  %2822 = vrot.lane.b32.xlu1 %v18487_v24, %s17993_s16 }
 0x2b8   : > { %2826 = vrot.lane.b32.xlu0 %v18485_v23, %s17993_s16  ;;  %2820 = vrot.lane.b32.xlu1 %v18465_v3, %s17993_s16 }
 0x2bc   : > { %2832 = vrot.lane.b32.xlu0 %v18507_v40, %s17993_s16  ;;  %2830 = vrot.lane.b32.xlu1 %v18509_v42, %s17993_s16 }
 0x2c0   : > { %2834 = vrot.lane.b32.xlu0 %v18527_v50, %s17993_s16  ;;  %2828 = vrot.lane.b32.xlu1 %v18529_v51, %s17993_s16 }
 0x2c4   : > { %2996 = vrot.lane.b32.xlu0 %v18463_v2, %s23256_s17  ;;  %2994 = vrot.lane.b32.xlu1 %v18487_v24, %s23256_s17 }
 0x2c8   : > { %2998 = vrot.lane.b32.xlu0 %v18485_v23, %s23256_s17  ;;  %2992 = vrot.lane.b32.xlu1 %v18465_v3, %s23256_s17 }
 0x2cc   : > { %3004 = vrot.lane.b32.xlu0 %v18507_v40, %s23256_s17  ;;  %3002 = vrot.lane.b32.xlu1 %v18509_v42, %s23256_s17 }
 0x2d0   : > { %3006 = vrot.lane.b32.xlu0 %v18527_v50, %s23256_s17  ;;  %3000 = vrot.lane.b32.xlu1 %v18529_v51, %s23256_s17 }
 0x2d4   : > { %3168 = vrot.lane.b32.xlu0 %v18463_v2, %s23252_s18  ;;  %3166 = vrot.lane.b32.xlu1 %v18487_v24, %s23252_s18 }
 0x2d8   : > { %3170 = vrot.lane.b32.xlu0 %v18485_v23, %s23252_s18  ;;  %3164 = vrot.lane.b32.xlu1 %v18465_v3, %s23252_s18 }
 0x2dc   : > { %3176 = vrot.lane.b32.xlu0 %v18507_v40, %s23252_s18  ;;  %3174 = vrot.lane.b32.xlu1 %v18509_v42, %s23252_s18 }
 0x2e0   : > { %3178 = vrot.lane.b32.xlu0 %v18527_v50, %s23252_s18  ;;  %3172 = vrot.lane.b32.xlu1 %v18529_v51, %s23252_s18 }
 0x2e4   : > { %3340 = vrot.lane.b32.xlu0 %v18463_v2, %s23250_s19  ;;  %3338 = vrot.lane.b32.xlu1 %v18487_v24, %s23250_s19 }
 0x2e6   : > { %v2030_v53 = vpop.permute.xlu0 %2029  ;;  %v2026_v54 = vpop.permute.xlu1 %2025 }
 0x2e8   : > { %3342 = vrot.lane.b32.xlu0 %v18485_v23, %s23250_s19  ;;  %3336 = vrot.lane.b32.xlu1 %v18465_v3, %s23250_s19  ;;  %v17767_v23 = vld [vmem:[%s23188_s1 + $0x90] sm:$0xff]  }
 0x2ea   : > { %v2032_v55 = vpop.permute.xlu0 %2031  ;;  %v2028_v56 = vpop.permute.xlu1 %2027 }
 0x2eb   : > { %2115 = vmatprep.subr.bf16.mxu1 %v2032_v55  ;;  %v2042_v57 = vsel %vm383_vm2, %v2028_v56, %v2030_v53  ;;  %v2043_v58 = vsel %vm383_vm2, %v2030_v53, %v2032_v55  ;;  %v2041_v61 = vsel %vm383_vm2, %v2026_v54, %v2028_v56 }
 0x2ec   : > { %2062 = vmatprep.subr.bf16.mxu0 %v2042_v57  ;;  %2116 = vmatpush1.bf16.msra.mxu1 %v2043_v58  ;;  %v17771_v57 = vld [vmem:[%s23188_s1 + $0xc0] sm:$0xff]  }
 0x2ed   : > { %3348 = vrot.lane.b32.xlu0 %v18507_v40, %s23250_s19  ;;  %3346 = vrot.lane.b32.xlu1 %v18509_v42, %s23250_s19 }
 0x2ee   : > { %2063 = vmatpush1.bf16.msra.mxu0 %v2041_v61  ;;  %v2038_v62 = vpop.permute.xlu0 %2037  ;;  %v2036_v63 = vpop.permute.xlu1 %2035 }
 0x2ef   : > { %v2045_v0 = vsel %vm383_vm2, %v2036_v63, %v2038_v62 }
 0x2f0   : > { %2064 = vmatprep.subr.bf16.mxu0 %v2045_v0 }
 0x2f1   : > { %3350 = vrot.lane.b32.xlu0 %v18527_v50, %s23250_s19  ;;  %3344 = vrot.lane.b32.xlu1 %v18529_v51, %s23250_s19  ;;  %v17770_v50 = vld [vmem:[%s23188_s1 + $0xb8] sm:$0xff]  }
 0x2f2   : > { %v2040_v3 = vpop.permute.xlu0 %2039  ;;  %v2034_v4 = vpop.permute.xlu1 %2033 }
 0x2f3   : > { %v2044_v6 = vsel %vm383_vm2, %v2034_v4, %v2036_v63  ;;  %2117 = vmatprep.subr.bf16.mxu1 %v2040_v3  ;;  %v2046_v9 = vsel %vm383_vm2, %v2038_v62, %v2040_v3 }
 0x2f4   : > { %2065 = vmatpush1.bf16.msra.mxu0 %v2044_v6  ;;  %2118 = vmatpush1.bf16.msra.mxu1 %v2046_v9 }
 0x2f5   : > { %2184 = vmatprep.subr.bf16.mxu0 %v18487_v24  ;;  %15588 = vmatprep.subr.msk.bf16.mxu1 %vm18653_vm13, %v15587_v17  ;;  %v17999_v17 = vmov 1  }
 0x2f6   : > { %v2309_v18 = vpop.permute.xlu0 %2308  ;;  %v2307_v20 = vpop.permute.xlu1 %2306  ;;  %17442 = vset.pattern.permute.xlu1 %v17999_v17  ;;  %17443 = vset.pattern.permute.xlu0 %v17999_v17 }
 0x2f7   : > { %15568 = vmatmul.mubr.msk.bf16.vlgmr.msra.gmra.mrb[8].mxu0 %vm23246_vm4, %v17765_v11  ;;  %15570 = vmatmul.mubr.msk.bf16.vlgmr.msra.gmra.mrb[8].mxu1 %vm23246_vm4, %v17765_v11  ;;  %v2321_v59 = vsel %vm672_vm3, %v2307_v20, %v2309_v18  ;;  %v17772_v11 = vld [vmem:[%s23188_s1 + $0xc8] sm:$0xff]  }
 0x2f8   : > { %15578 = vmatpush1.bf16.msk.msra.mxu0 %vm18669_vm12, %v15577_v10  ;;  %2238 = vmatpush1.bf16.msra.mxu1 %v18463_v2 }
 0x2f9   : > { %2186 = vmatprep.subr.bf16.mxu0 %v18509_v42  ;;  %15591 = vmatprep.subr.msk.bf16.mxu1 %vm18653_vm13, %v15590_v47 }
 0x2fa   : > { %v2311_v60 = vpop.permute.xlu0 %2310  ;;  %v2305_v14 = vpop.permute.xlu1 %2304  ;;  %2157 = vmatprep.mubr.bf16.mxu1 %v23217_v5  ;;  %2104 = vmatprep.mubr.bf16.mxu0 %v23217_v5 }
 0x2fb   : > { %3495 = vperm.xlu1 %17442, %v18199_v37   ;;  %3499 = vperm.xlu0 %17443, %v18204_v38   ;;  %v2320_v26 = vsel %vm672_vm3, %v2305_v14, %v2307_v20  ;;  %v2322_v28 = vsel %vm672_vm3, %v2309_v18, %v2311_v60 }
 0x2fc   : > { %15583 = vmatpush1.bf16.msk.msra.mxu0 %vm18669_vm12, %v15582_v46  ;;  %2240 = vmatpush1.bf16.msra.mxu1 %v18507_v40 }
 0x2fd   : > { %2340 = vmatprep.subr.bf16.mxu0 %v2321_v59  ;;  %2393 = vmatprep.subr.bf16.mxu1 %v2311_v60  ;;  %v17773_v59 = vld [vmem:[%s23188_s1 + $0xd0] sm:$0xff]  }
 0x2fe   : > { %v2317_v2 = vpop.permute.xlu0 %2316  ;;  %v2315_v10 = vpop.permute.xlu1 %2314 }
 0x2ff   : > { %15569 = vmatmul.mubr.msk.bf16.gmra.mrb[12].mxu0 %vm23246_vm4, %v17766_v52  ;;  %15571 = vmatmul.mubr.msk.bf16.gmra.mrb[12].mxu1 %vm23246_vm4, %v17766_v52  ;;  %v2324_v37 = vsel %vm672_vm3, %v2315_v10, %v2317_v2 }
 0x300   : > { %2269 = vmatprep.mubr.bf16.mxu1 %v23217_v5  ;;  %2216 = vmatprep.mubr.bf16.mxu0 %v23217_v5 }
 0x301   : > { %3503 = vperm.xlu1 %17442, %v18223_v45  }
 0x302   : > { %v2319_v21 = vpop.permute.xlu0 %2318  ;;  %v2313_v22 = vpop.permute.xlu1 %2312 }
 0x303   : > { %v2323_v45 = vsel %vm672_vm3, %v2313_v22, %v2315_v10  ;;  %v2325_v30 = vsel %vm672_vm3, %v2317_v2, %v2319_v21 }
 0x305   : > { %3507 = vperm.xlu1 %17442, %v18213_v41   ;;  %v17769_v41 = vld [vmem:[%s23188_s1 + $0xb0] sm:$0xff]  }
 0x306   : > { %v2481_v24 = vpop.permute.xlu0 %2480  ;;  %v2479_v25 = vpop.permute.xlu1 %2478 }
 0x307   : > { %15584 = vmatmul.mubr.msk.bf16.vlgmr.msra.gmra.mrb[8].mxu0 %vm23246_vm4, %v17767_v23  ;;  %15592 = vmatmul.mubr.msk.bf16.vlgmr.msra.gmra.mrb[8].mxu1 %vm23246_vm4, %v17767_v23  ;;  %v2493_v32 = vsel %vm838_vm5, %v2479_v25, %v2481_v24 }
 0x308   : > { %2341 = vmatpush1.bf16.msra.mxu0 %v2320_v26  ;;  %2394 = vmatpush1.bf16.msra.mxu1 %v2322_v28  ;;  %v17774_v28 = vld [vmem:[%s23188_s1 + $0xd8] sm:$0xff]  }
 0x309   : > { %2342 = vmatprep.subr.bf16.mxu0 %v2324_v37  ;;  %2395 = vmatprep.subr.bf16.mxu1 %v2319_v21 }
 0x30a   : > { %v2483_v38 = vpop.permute.xlu0 %2482  ;;  %v2477_v29 = vpop.permute.xlu1 %2476  ;;  %2279 = vmatprep.mubr.bf16.mxu1 %v23217_v5  ;;  %2226 = vmatprep.mubr.bf16.mxu0 %v23217_v5 }
 0x30b   : > { %v2492_v42 = vsel %vm838_vm5, %v2477_v29, %v2479_v25  ;;  %v2494_v43 = vsel %vm838_vm5, %v2481_v24, %v2483_v38 }
 0x30c   : > { %2343 = vmatpush1.bf16.msra.mxu0 %v2323_v45  ;;  %2396 = vmatpush1.bf16.msra.mxu1 %v2325_v30 }
 0x30d   : > { %2512 = vmatprep.subr.bf16.mxu0 %v2493_v32  ;;  %2565 = vmatprep.subr.bf16.mxu1 %v2483_v38 }
 0x30e   : > { %v2489_v33 = vpop.permute.xlu0 %2488  ;;  %v2487_v34 = vpop.permute.xlu1 %2486 }
 0x30f   : > { %15585 = vmatmul.mubr.msk.bf16.gmra.mrb[12].mxu0 %vm23246_vm4, %v17768_v31  ;;  %15593 = vmatmul.mubr.msk.bf16.gmra.mrb[12].mxu1 %vm23246_vm4, %v17768_v31  ;;  %v2496_v44 = vsel %vm838_vm5, %v2487_v34, %v2489_v33  ;;  %v17775_v31 = vld [vmem:[%s23188_s1 + $0xe0] sm:$0xff]  }
 0x310   : > { %2425 = vmatprep.mubr.bf16.mxu1 %v23217_v5  ;;  %2372 = vmatprep.mubr.bf16.mxu0 %v23217_v5 }
 0x312   : > { %v2491_v35 = vpop.permute.xlu0 %2490  ;;  %v2485_v36 = vpop.permute.xlu1 %2484 }
 0x313   : > { %v2495_v48 = vsel %vm838_vm5, %v2485_v36, %v2487_v34  ;;  %v2497_v49 = vsel %vm838_vm5, %v2489_v33, %v2491_v35 }
 0x316   : > { %v2653_v39 = vpop.permute.xlu0 %2652  ;;  %v2651_v40 = vpop.permute.xlu1 %2650 }
 0x317   : > { %15596 = vmatmul.mubr.msk.bf16.vlgmr.msra.gmra.mrb[8].mxu0 %vm23246_vm4, %v17769_v41  ;;  %15598 = vmatmul.mubr.msk.bf16.vlgmr.msra.gmra.mrb[8].mxu1 %vm23246_vm4, %v17769_v41  ;;  %v2665_v51 = vsel %vm23254_vm6, %v2651_v40, %v2653_v39 }
 0x318   : > { %2513 = vmatpush1.bf16.msra.mxu0 %v2492_v42  ;;  %2566 = vmatpush1.bf16.msra.mxu1 %v2494_v43  ;;  %v17776_v43 = vld [vmem:[%s23188_s1 + $0xe8] sm:$0xff]  }
 0x319   : > { %2514 = vmatprep.subr.bf16.mxu0 %v2496_v44  ;;  %2567 = vmatprep.subr.bf16.mxu1 %v2491_v35 }
 0x31a   : > { %v2655_v46 = vpop.permute.xlu0 %2654  ;;  %v2649_v47 = vpop.permute.xlu1 %2648  ;;  %2435 = vmatprep.mubr.bf16.mxu1 %v23217_v5  ;;  %2382 = vmatprep.mubr.bf16.mxu0 %v23217_v5 }
 0x31b   : > { %v2664_v62 = vsel %vm23254_vm6, %v2649_v47, %v2651_v40  ;;  %v2666_v63 = vsel %vm23254_vm6, %v2653_v39, %v2655_v46 }
 0x31c   : > { %2515 = vmatpush1.bf16.msra.mxu0 %v2495_v48  ;;  %2568 = vmatpush1.bf16.msra.mxu1 %v2497_v49 }
 0x31d   : > { %2684 = vmatprep.subr.bf16.mxu0 %v2665_v51  ;;  %2737 = vmatprep.subr.bf16.mxu1 %v2655_v46 }
 0x31e   : > { %v2661_v53 = vpop.permute.xlu0 %2660  ;;  %v2659_v54 = vpop.permute.xlu1 %2658 }
 0x31f   : > { %15597 = vmatmul.mubr.msk.bf16.gmra.mrb[12].mxu0 %vm23246_vm4, %v17770_v50  ;;  %15599 = vmatmul.mubr.msk.bf16.gmra.mrb[12].mxu1 %vm23246_vm4, %v17770_v50  ;;  %v2668_v0 = vsel %vm23254_vm6, %v2659_v54, %v2661_v53  ;;  %v17777_v50 = vld [vmem:[%s23188_s1 + $0xf0] sm:$0xff]  }
 0x320   : > { %2597 = vmatprep.mubr.bf16.mxu1 %v23217_v5  ;;  %2544 = vmatprep.mubr.bf16.mxu0 %v23217_v5 }
 0x322   : > { %v2663_v55 = vpop.permute.xlu0 %2662  ;;  %v2657_v56 = vpop.permute.xlu1 %2656 }
 0x323   : > { %v2667_v6 = vsel %vm23254_vm6, %v2657_v56, %v2659_v54  ;;  %v2669_v9 = vsel %vm23254_vm6, %v2661_v53, %v2663_v55 }
 0x326   : > { %v2825_v58 = vpop.permute.xlu0 %2824  ;;  %v2823_v61 = vpop.permute.xlu1 %2822 }
 0x327   : > { %15602 = vmatmul.mubr.msk.bf16.vlgmr.msra.gmra.mrb[8].mxu0 %vm23246_vm4, %v17771_v57  ;;  %15604 = vmatmul.mubr.msk.bf16.vlgmr.msra.gmra.mrb[8].mxu1 %vm23246_vm4, %v17771_v57  ;;  %v2837_v18 = vsel %vm23247_vm7, %v2823_v61, %v2825_v58 }
 0x328   : > { %2685 = vmatpush1.bf16.msra.mxu0 %v2664_v62  ;;  %2738 = vmatpush1.bf16.msra.mxu1 %v2666_v63  ;;  %v17778_v62 = vld [vmem:[%s23188_s1 + $0xf8] sm:$0xff]  }
 0x329   : > { %2686 = vmatprep.subr.bf16.mxu0 %v2668_v0  ;;  %2739 = vmatprep.subr.bf16.mxu1 %v2663_v55 }
 0x32a   : > { %v2827_v3 = vpop.permute.xlu0 %2826  ;;  %v2821_v4 = vpop.permute.xlu1 %2820  ;;  %2607 = vmatprep.mubr.bf16.mxu1 %v23217_v5  ;;  %2554 = vmatprep.mubr.bf16.mxu0 %v23217_v5 }
 0x32b   : > { %v2836_v17 = vsel %vm23247_vm7, %v2821_v4, %v2823_v61  ;;  %v2838_v21 = vsel %vm23247_vm7, %v2825_v58, %v2827_v3 }
 0x32c   : > { %2687 = vmatpush1.bf16.msra.mxu0 %v2667_v6  ;;  %2740 = vmatpush1.bf16.msra.mxu1 %v2669_v9  ;;  %v17779_v6 = vld [vmem:[%s23188_s1 + $0x100] sm:$0xff]  }
 0x32d   : > { %2856 = vmatprep.subr.bf16.mxu0 %v2837_v18  ;;  %2909 = vmatprep.subr.bf16.mxu1 %v2827_v3 }
 0x32e   : > { %v2833_v20 = vpop.permute.xlu0 %2832  ;;  %v2831_v60 = vpop.permute.xlu1 %2830 }
 0x32f   : > { %15603 = vmatmul.mubr.msk.bf16.gmra.mrb[12].mxu0 %vm23246_vm4, %v17772_v11  ;;  %15605 = vmatmul.mubr.msk.bf16.gmra.mrb[12].mxu1 %vm23246_vm4, %v17772_v11  ;;  %v2840_v22 = vsel %vm23247_vm7, %v2831_v60, %v2833_v20 }
 0x330   : > { %2769 = vmatprep.mubr.bf16.mxu1 %v23217_v5  ;;  %2716 = vmatprep.mubr.bf16.mxu0 %v23217_v5 }
 0x332   : > { %v2835_v14 = vpop.permute.xlu0 %2834  ;;  %v2829_v52 = vpop.permute.xlu1 %2828 }
 0x333   : > { %v2839_v25 = vsel %vm23247_vm7, %v2829_v52, %v2831_v60  ;;  %v2841_v26 = vsel %vm23247_vm7, %v2833_v20, %v2835_v14 }
 0x336   : > { %v2997_v2 = vpop.permute.xlu0 %2996  ;;  %v2995_v10 = vpop.permute.xlu1 %2994 }
 0x337   : > { %15608 = vmatmul.mubr.msk.bf16.vlgmr.msra.gmra.mrb[8].mxu0 %vm23246_vm4, %v17773_v59  ;;  %15610 = vmatmul.mubr.msk.bf16.vlgmr.msra.gmra.mrb[8].mxu1 %vm23246_vm4, %v17773_v59  ;;  %v3009_v37 = vsel %vm23206_vm8, %v2995_v10, %v2997_v2  ;;  %v17780_v59 = vld [vmem:[%s23188_s1 + $0x108] sm:$0xff]  }
 0x338   : > { %2857 = vmatpush1.bf16.msra.mxu0 %v2836_v17  ;;  %2910 = vmatpush1.bf16.msra.mxu1 %v2838_v21 }
 0x339   : > { %2858 = vmatprep.subr.bf16.mxu0 %v2840_v22  ;;  %2911 = vmatprep.subr.bf16.mxu1 %v2835_v14 }
 0x33a   : > { %v2999_v23 = vpop.permute.xlu0 %2998  ;;  %v2993_v24 = vpop.permute.xlu1 %2992  ;;  %2779 = vmatprep.mubr.bf16.mxu1 %v23217_v5  ;;  %2726 = vmatprep.mubr.bf16.mxu0 %v23217_v5 }
 0x33b   : > { %v3008_v34 = vsel %vm23206_vm8, %v2993_v24, %v2995_v10  ;;  %v3010_v35 = vsel %vm23206_vm8, %v2997_v2, %v2999_v23  ;;  %v17781_v2 = vld [vmem:[%s23188_s1 + $0x110] sm:$0xff]   ;;  %v17782_v10 = vld [vmem:[%s23188_s1 + $0x118] sm:$0xff]  }
 0x33c   : > { %2859 = vmatpush1.bf16.msra.mxu0 %v2839_v25  ;;  %2912 = vmatpush1.bf16.msra.mxu1 %v2841_v26 }
 0x33d   : > { %3028 = vmatprep.subr.bf16.mxu0 %v3009_v37  ;;  %3081 = vmatprep.subr.bf16.mxu1 %v2999_v23 }
 0x33e   : > { %v3005_v38 = vpop.permute.xlu0 %3004  ;;  %v3003_v29 = vpop.permute.xlu1 %3002 }
 0x33f   : > { %15609 = vmatmul.mubr.msk.bf16.gmra.mrb[12].mxu0 %vm23246_vm4, %v17774_v28  ;;  %15611 = vmatmul.mubr.msk.bf16.gmra.mrb[12].mxu1 %vm23246_vm4, %v17774_v28  ;;  %v3012_v36 = vsel %vm23206_vm8, %v3003_v29, %v3005_v38 }
 0x340   : > { %2941 = vmatprep.mubr.bf16.mxu1 %v23217_v5  ;;  %2888 = vmatprep.mubr.bf16.mxu0 %v23217_v5 }
 0x342   : > { %v3007_v45 = vpop.permute.xlu0 %3006  ;;  %v3001_v30 = vpop.permute.xlu1 %3000 }
 0x343   : > { %v3011_v40 = vsel %vm23206_vm8, %v3001_v30, %v3003_v29  ;;  %v3013_v42 = vsel %vm23206_vm8, %v3005_v38, %v3007_v45 }
 0x346   : > { %v3169_v32 = vpop.permute.xlu0 %3168  ;;  %v3167_v33 = vpop.permute.xlu1 %3166 }
 0x347   : > { %15614 = vmatmul.mubr.msk.bf16.vlgmr.msra.gmra.mrb[8].mxu0 %vm23246_vm4, %v17775_v31  ;;  %15616 = vmatmul.mubr.msk.bf16.vlgmr.msra.gmra.mrb[8].mxu1 %vm23246_vm4, %v17775_v31  ;;  %v3181_v44 = vsel %vm23205_vm9, %v3167_v33, %v3169_v32 }
 0x348   : > { %3029 = vmatpush1.bf16.msra.mxu0 %v3008_v34  ;;  %3082 = vmatpush1.bf16.msra.mxu1 %v3010_v35 }
 0x349   : > { %3030 = vmatprep.subr.bf16.mxu0 %v3012_v36  ;;  %3083 = vmatprep.subr.bf16.mxu1 %v3007_v45 }
 0x34a   : > { %v3171_v41 = vpop.permute.xlu0 %3170  ;;  %v3165_v39 = vpop.permute.xlu1 %3164  ;;  %2951 = vmatprep.mubr.bf16.mxu1 %v23217_v5  ;;  %2898 = vmatprep.mubr.bf16.mxu0 %v23217_v5 }
 0x34b   : > { %v3180_v54 = vsel %vm23205_vm9, %v3165_v39, %v3167_v33  ;;  %v3182_v55 = vsel %vm23205_vm9, %v3169_v32, %v3171_v41 }
 0x34c   : > { %3031 = vmatpush1.bf16.msra.mxu0 %v3011_v40  ;;  %3084 = vmatpush1.bf16.msra.mxu1 %v3013_v42 }
 0x34d   : > { %3200 = vmatprep.subr.bf16.mxu0 %v3181_v44  ;;  %3253 = vmatprep.subr.bf16.mxu1 %v3171_v41 }
 0x34e   : > { %v3177_v46 = vpop.permute.xlu0 %3176  ;;  %v3175_v47 = vpop.permute.xlu1 %3174 }
 0x34f   : > { %15615 = vmatmul.mubr.msk.bf16.gmra.mrb[12].mxu0 %vm23246_vm4, %v17776_v43  ;;  %15617 = vmatmul.mubr.msk.bf16.gmra.mrb[12].mxu1 %vm23246_vm4, %v17776_v43  ;;  %v3184_v56 = vsel %vm23205_vm9, %v3175_v47, %v3177_v46 }
 0x350   : > { %3113 = vmatprep.mubr.bf16.mxu1 %v23217_v5  ;;  %3060 = vmatprep.mubr.bf16.mxu0 %v23217_v5 }
 0x352   : > { %v3179_v48 = vpop.permute.xlu0 %3178  ;;  %v3173_v49 = vpop.permute.xlu1 %3172 }
 0x353   : > { %v3183_v58 = vsel %vm23205_vm9, %v3173_v49, %v3175_v47  ;;  %v3185_v61 = vsel %vm23205_vm9, %v3177_v46, %v3179_v48 }
 0x356   : > { %v3341_v51 = vpop.permute.xlu0 %3340  ;;  %v3339_v53 = vpop.permute.xlu1 %3338 }
 0x357   : > { %15620 = vmatmul.mubr.msk.bf16.vlgmr.msra.gmra.mrb[8].mxu0 %vm23246_vm4, %v17777_v50  ;;  %15622 = vmatmul.mubr.msk.bf16.vlgmr.msra.gmra.mrb[8].mxu1 %vm23246_vm4, %v17777_v50  ;;  %v3353_v0 = vsel %vm23197_vm10, %v3339_v53, %v3341_v51 }
 0x358   : > { %3201 = vmatpush1.bf16.msra.mxu0 %v3180_v54  ;;  %3254 = vmatpush1.bf16.msra.mxu1 %v3182_v55 }
 0x359   : > { %3202 = vmatprep.subr.bf16.mxu0 %v3184_v56  ;;  %3255 = vmatprep.subr.bf16.mxu1 %v3179_v48 }
 0x35a   : > { %v3343_v57 = vpop.permute.xlu0 %3342  ;;  %3123 = vmatprep.mubr.bf16.mxu1 %v23217_v5  ;;  %3070 = vmatprep.mubr.bf16.mxu0 %v23217_v5  ;;  %v3337_v63 = vpop.permute.xlu1 %3336 }
 0x35b   : > { %v3352_v9 = vsel %vm23197_vm10, %v3337_v63, %v3339_v53  ;;  %v3354_v11 = vsel %vm23197_vm10, %v3341_v51, %v3343_v57 }
 0x35c   : > { %3203 = vmatpush1.bf16.msra.mxu0 %v3183_v58  ;;  %3256 = vmatpush1.bf16.msra.mxu1 %v3185_v61 }
 0x35d   : > { %3372 = vmatprep.subr.bf16.mxu0 %v3353_v0  ;;  %3425 = vmatprep.subr.bf16.mxu1 %v3343_v57 }
 0x35f   : > { %15621 = vmatmul.mubr.msk.bf16.gmra.mrb[12].mxu0 %vm23246_vm4, %v17778_v62  ;;  %15623 = vmatmul.mubr.msk.bf16.gmra.mrb[12].mxu1 %vm23246_vm4, %v17778_v62  ;;  %v3349_v3 = vpop.permute.xlu0 %3348  ;;  %v3347_v4 = vpop.permute.xlu1 %3346 }
 0x360   : > { %3232 = vmatprep.mubr.bf16.mxu0 %v23217_v5  ;;  %3285 = vmatprep.mubr.bf16.mxu1 %v23217_v5  ;;  %v3356_v60 = vsel %vm23197_vm10, %v3347_v4, %v3349_v3 }
 0x363   : > { %v3351_v18 = vpop.permute.xlu0 %3350  ;;  %v3345_v20 = vpop.permute.xlu1 %3344 }
 0x364   : > { %v3355_v14 = vsel %vm23197_vm10, %v3345_v20, %v3347_v4  ;;  %v3357_v52 = vsel %vm23197_vm10, %v3349_v3, %v3351_v18  ;;  %vm23302_vm10 = vmmov %vm23293_vm1 }
 0x367   : > { %15626 = vmatmul.mubr.msk.bf16.vlgmr.msra.gmra.mrb[8].mxu0 %vm23246_vm4, %v17779_v6  ;;  %15628 = vmatmul.mubr.msk.bf16.vlgmr.msra.gmra.mrb[8].mxu1 %vm23246_vm4, %v17779_v6 }
 0x368   : > { %3373 = vmatpush1.bf16.msra.mxu0 %v3352_v9  ;;  %3426 = vmatpush1.bf16.msra.mxu1 %v3354_v11 }
 0x369   : > { %3374 = vmatprep.subr.bf16.mxu0 %v3356_v60  ;;  %3427 = vmatprep.subr.bf16.mxu1 %v3351_v18 }
 0x36a   : > { %3242 = vmatprep.mubr.bf16.mxu0 %v23217_v5  ;;  %3295 = vmatprep.mubr.bf16.mxu1 %v23217_v5 }
 0x36c   : > { %3375 = vmatpush1.bf16.msra.mxu0 %v3355_v14  ;;  %3428 = vmatpush1.bf16.msra.mxu1 %v3357_v52 }
 0x36f   : > { %15627 = vmatmul.mubr.msk.bf16.gmra.mrb[12].mxu0 %vm23246_vm4, %v17780_v59  ;;  %15629 = vmatmul.mubr.msk.bf16.gmra.mrb[12].mxu1 %vm23246_vm4, %v17780_v59 }
 0x370   : > { %3404 = vmatprep.mubr.bf16.mxu0 %v23217_v5  ;;  %3457 = vmatprep.mubr.bf16.mxu1 %v23217_v5 }
 0x377   : > { %15632 = vmatmul.mubr.msk.bf16.vlgmr.msra.gmra.mrb[8].mxu0 %vm23246_vm4, %v17781_v2  ;;  %15634 = vmatmul.mubr.msk.bf16.vlgmr.msra.gmra.mrb[8].mxu1 %vm23246_vm4, %v17781_v2 }
 0x378   : > { %3414 = vmatprep.mubr.bf16.mxu0 %v23217_v5  ;;  %3467 = vmatprep.mubr.bf16.mxu1 %v23217_v5 }
 0x37a   : > { %v3496_v17 = vpop.permute.xlu1 %3495  ;;  %v3500_v22 = vpop.permute.xlu0 %3499 }
 0x37f   : > { %15633 = vmatmul.mubr.msk.bf16.gmra.mrb[12].mxu0 %vm23246_vm4, %v17782_v10  ;;  %15635 = vmatmul.mubr.msk.bf16.gmra.mrb[12].mxu1 %vm23246_vm4, %v17782_v10 }
 0x380   : > { %3756 = vmatprep.mubr.bf16.mxu0 %v23217_v5  ;;  %3819 = vmatprep.mubr.bf16.mxu1 %v23217_v5  ;;  %v3504_v21 = vpop.permute.xlu1 %3503 }
 0x384   : > { %v3508_v50 = vpop.permute.xlu1 %3507 }
 0x44a   : > { %v3406_v23 = vpop.f32.mrb[8].mxu0  ;;  %v3459_v24 = vpop.f32.mrb[8].mxu1 }
 0x44b   : > { %v18860_v25 = vadd.f32 %v3496_v17, %v3406_v23  ;;  %v18862_v26 = vadd.f32 %v3496_v17, %v3459_v24  ;;  %v3408_v28 = vpop.f32.mrb[9].mxu0  ;;  %v3461_v37 = vpop.f32.mrb[9].mxu1 }
 0x44c   : > { %v18864_v38 = vadd.f32 %v3496_v17, %v3408_v28  ;;  %v18866_v29 = vadd.f32 %v3496_v17, %v3461_v37  ;;  %v3463_v45 = vpop.f32.mrb[10].mxu1  ;;  %v3410_v30 = vpop.f32.mrb[10].mxu0 }
 0x44d   : > { %23285 = vst [vmem:[#allocation8_spill] sm:$0xff] %v18860_v25  ;;  %23286 = vst [vmem:[#allocation9_spill] sm:$0xff] %v18862_v26  ;;  %v23216_v31 = vmax.f32 %v18860_v25, 0.0  ;;  %v23215_v32 = vmax.f32 %v18862_v26, 0.0  ;;  %v18870_v33 = vadd.f32 %v3500_v22, %v3410_v30  ;;  %v3412_v34 = vpop.f32.mrb[11].mxu0  ;;  %v3465_v35 = vpop.f32.mrb[11].mxu1  ;;  %v18872_v36 = vadd.f32 %v3500_v22, %v3463_v45 }
 0x44e   : > { %23287 = vst [vmem:[#allocation10_spill] sm:$0xff] %v18864_v38  ;;  %23288 = vst [vmem:[#allocation11_spill] sm:$0xff] %v18866_v29  ;;  %v23214_v41 = vmax.f32 %v18864_v38, 0.0  ;;  %v23213_v39 = vmax.f32 %v18866_v29, 0.0  ;;  %v18876_v40 = vadd.f32 %v3500_v22, %v3412_v34  ;;  %v18878_v42 = vadd.f32 %v3500_v22, %v3465_v35 }
 0x44f   : > { %23289 = vst [vmem:[#allocation12_spill] sm:$0xff] %v18870_v33  ;;  %23290 = vst [vmem:[#allocation13_spill] sm:$0xff] %v18872_v36  ;;  %v3542_v43 = vsel %vm1885_vm15, %v23216_v31, 0.0  ;;  %v3544_v44 = vsel %vm1887_vm14, %v23215_v32, 0.0  ;;  %v23212_v51 = vmax.f32 %v18870_v33, 0.0  ;;  %v23200_v54 = vmax.f32 %v18872_v36, 0.0 }
 0x450   : > { %23291 = vst [vmem:[#allocation14_spill] sm:$0xff] %v18876_v40  ;;  %23292 = vst [vmem:[#allocation15_spill] sm:$0xff] %v18878_v42  ;;  %v3543_v46 = vsel %vm23293_vm1, %v23214_v41, 0.0  ;;  %v3545_v47 = vsel %vm18402_vm0, %v23213_v39, 0.0  ;;  %v23211_v53 = vmax.f32 %v18876_v40, 0.0  ;;  %v23210_v55 = vmax.f32 %v18878_v42, 0.0 }
 0x451   : > { %v17449_v48 = vpack.i.bf16 %v3543_v46, %v3542_v43  ;;  %v17444_v49 = vpack.i.bf16 %v3545_v47, %v3544_v44  ;;  %v3546_v58 = vsel %vm1885_vm15, %v23212_v51, 0.0  ;;  %v3548_v3 = vsel %vm1887_vm14, %v23200_v54, 0.0 }
 0x452   : > { %v3416_v56 = vpop.f32.mrb[12].mxu0  ;;  %v3469_v57 = vpop.f32.mrb[12].mxu1  ;;  %v3547_v61 = vsel %vm23293_vm1, %v23211_v53, 0.0  ;;  %v3549_v4 = vsel %vm18402_vm0, %v23210_v55, 0.0 }
 0x453   : > { %v3418_v62 = vpop.f32.mrb[13].mxu0  ;;  %v3471_v63 = vpop.f32.mrb[13].mxu1  ;;  %17445 = vrot.lane.b32.xlu1 %v17444_v49, %s17998_s21  ;;  %17450 = vrot.lane.b32.xlu0 %v17449_v48, %s17998_s21  ;;  %v17459_v0 = vpack.i.bf16 %v3547_v61, %v3546_v58  ;;  %v17454_v11 = vpack.i.bf16 %v3549_v4, %v3548_v3  ;;  %v18918_v18 = vadd.f32 %v3504_v21, %v3416_v56 }
 0x454   : > { %v3420_v6 = vpop.f32.mrb[14].mxu0  ;;  %v3473_v9 = vpop.f32.mrb[14].mxu1  ;;  %v18920_v20 = vadd.f32 %v3504_v21, %v3469_v57  ;;  %v18922_v60 = vadd.f32 %v3504_v21, %v3418_v62  ;;  %v18924_v59 = vadd.f32 %v3504_v21, %v3471_v63 }
 0x455   : > { %23294 = vst [vmem:[#allocation16_spill] sm:$0xff] %v18918_v18  ;;  %v3422_v14 = vpop.f32.mrb[15].mxu0  ;;  %v3475_v52 = vpop.f32.mrb[15].mxu1  ;;  %v18926_v2 = vadd.f32 %v3508_v50, %v3420_v6  ;;  %v18928_v10 = vadd.f32 %v3508_v50, %v3473_v9  ;;  %v23209_v22 = vmax.f32 %v18918_v18, 0.0 }
 0x456   : > { %23295 = vst [vmem:[#allocation17_spill] sm:$0xff] %v18920_v20  ;;  %23296 = vst [vmem:[#allocation18_spill] sm:$0xff] %v18922_v60  ;;  %v18930_v17 = vadd.f32 %v3508_v50, %v3422_v14  ;;  %v23208_v23 = vmax.f32 %v18920_v20, 0.0  ;;  %v23207_v24 = vmax.f32 %v18922_v60, 0.0  ;;  %v23204_v28 = vmax.f32 %v18924_v59, 0.0 }
 0x457   : > { %23297 = vst [vmem:[#allocation19_spill] sm:$0xff] %v18924_v59  ;;  %23298 = vst [vmem:[#allocation20_spill] sm:$0xff] %v18926_v2  ;;  %17455 = vrot.lane.b32.xlu1 %v17454_v11, %s17998_s21  ;;  %17460 = vrot.lane.b32.xlu0 %v17459_v0, %s17998_s21  ;;  %v23203_v21 = vmax.f32 %v18926_v2, 0.0  ;;  %v3550_v45 = vsel %vm1885_vm15, %v23209_v22, 0.0  ;;  %v23202_v34 = vmax.f32 %v18928_v10, 0.0  ;;  %v18949_v35 = vadd.f32 %v3508_v50, %v3475_v52 }
 0x458   : > { %23299 = vst [vmem:[#allocation21_spill] sm:$0xff] %v18928_v10  ;;  %23300 = vst [vmem:[#allocation22_spill] sm:$0xff] %v18930_v17  ;;  %v23201_v37 = vmax.f32 %v18930_v17, 0.0  ;;  %v3552_v30 = vsel %vm1887_vm14, %v23208_v23, 0.0  ;;  %v3551_v43 = vsel %vm23293_vm1, %v23207_v24, 0.0  ;;  %v3553_v44 = vsel %vm18402_vm0, %v23204_v28, 0.0 }
 0x459   : > { %23301 = vst [vmem:[#allocation23_spill] sm:$0xff] %v18949_v35  ;;  %v17469_v46 = vpack.i.bf16 %v3551_v43, %v3550_v45  ;;  %v17464_v47 = vpack.i.bf16 %v3553_v44, %v3552_v30  ;;  %v3554_v48 = vsel %vm1885_vm15, %v23203_v21, 0.0  ;;  %v3556_v50 = vsel %vm1887_vm14, %v23202_v34, 0.0 }
 0x45a   : > { %v3555_v49 = vsel %vm23302_vm10, %v23201_v37, 0.0  ;;  %v23199_v57 = vmax.f32 %v18949_v35, 0.0  ;;  %vm23303_vm10 = vcmask 547840  }
 0x45b   : > { %v17474_v56 = vpack.i.bf16 %v3555_v49, %v3554_v48  ;;  %17465 = vrot.lane.b32.xlu1 %v17464_v47, %s17998_s21  ;;  %17470 = vrot.lane.b32.xlu0 %v17469_v46, %s17998_s21  ;;  %vm23304_vm1 = vmmov %vm23303_vm10 }
 0x45c   : > { %v3557_v58 = vsel %vm18402_vm0, %v23199_v57, 0.0 }
 0x45d   : > { %v17479_v61 = vpack.i.bf16 %v3557_v58, %v3556_v50 }
 0x45f   : > { %17475 = vrot.lane.b32.xlu0 %v17474_v56, %s17998_s21  ;;  %17480 = vrot.lane.b32.xlu1 %v17479_v61, %s17998_s21 }
 0x4c5   : > { %v17451_v62 = vpop.permute.xlu0 %17450  ;;  %v17446_v63 = vpop.permute.xlu1 %17445 }
 0x4c6   : > { %v18980_v0 = vunpack.i.l.bf16 %v17451_v62  ;;  %v17453_v3 = vunpack.i.h.bf16 %v17451_v62  ;;  %v17447_v4 = vunpack.i.l.bf16 %v17446_v63  ;;  %v17448_v6 = vunpack.i.h.bf16 %v17446_v63 }
 0x4c8   : > { %v3634_v43 = vsel %vm23249_vm11, 0.0, %v18980_v0  ;;  %v3607_v44 = vsel %vm23249_vm11, %v17453_v3, %v17447_v4  ;;  %v18993_v49 = vsel %vm23249_vm11, %v17447_v4, %v17448_v6  ;;  %v3606_v4 = vsel %vm23249_vm11, %v18980_v0, %v17453_v3 }
 0x4c9   : > { %v17461_v9 = vpop.permute.xlu0 %17460  ;;  %v17456_v11 = vpop.permute.xlu1 %17455  ;;  %v3638_v6 = vsel %vm23304_vm1, %v18993_v49, 0.0 }
 0x4ca   : > { %v17463_v14 = vunpack.i.h.bf16 %v17461_v9  ;;  %v18982_v52 = vunpack.i.l.bf16 %v17461_v9  ;;  %v17458_v45 = vunpack.i.h.bf16 %v17456_v11  ;;  %v17457_v30 = vunpack.i.l.bf16 %v17456_v11 }
 0x4cc   : > { %v3635_v46 = vsel %vm23249_vm11, 0.0, %v18982_v52  ;;  %v15651_v47 = vpack.c.bf16 %v18982_v52, %v18980_v0  ;;  %v3610_v48 = vsel %vm23249_vm11, %v17463_v14, %v17457_v30  ;;  %v18998_v56 = vsel %vm23249_vm11, %v17457_v30, %v17458_v45  ;;  %v17784_v0 = vld [vmem:[%s23188_s1 + $0x140] sm:$0xff]  }
 0x4cd   : > { %v18995_v50 = vpack.c.bf16 %v3635_v46, %v3634_v43  ;;  %v19000_v58 = vpack.c.bf16 %v3610_v48, %v3607_v44  ;;  %v3609_v61 = vsel %vm23249_vm11, %v18982_v52, %v17463_v14  ;;  %v3639_v62 = vsel %vm23303_vm10, %v18998_v56, 0.0  ;;  %v17471_v9 = vpop.permute.xlu0 %17470  ;;  %v17466_v11 = vpop.permute.xlu1 %17465  ;;  %vm23305_vm10 = vmmov %vm23304_vm1  ;;  %v17785_v52 = vld [vmem:[%s23188_s1 + $0x148] sm:$0xff]  }
 0x4ce   : > { %v15662_v63 = vpack.c.bf16 %v18998_v56, %v18993_v49  ;;  %v19016_v14 = vpack.c.bf16 %v3609_v61, %v3606_v4  ;;  %v19018_v45 = vpack.c.bf16 %v3639_v62, %v3638_v6  ;;  %v17473_v30 = vunpack.i.h.bf16 %v17471_v9 }
 0x4cf   : > { %3685 = vrot.lane.b32.xlu0 %v18995_v50, %s17989_s12  ;;  %3689 = vrot.lane.b32.xlu1 %v19000_v58, %s17989_s12  ;;  %v19020_v43 = vunpack.i.l.bf16 %v17471_v9  ;;  %v17467_v44 = vunpack.i.l.bf16 %v17466_v11  ;;  %v17468_v46 = vunpack.i.h.bf16 %v17466_v11 }
 0x4d1   : > { %v17476_v48 = vpop.permute.xlu0 %17475  ;;  %v17481_v57 = vpop.permute.xlu1 %17480  ;;  %v3612_v62 = vsel %vm23249_vm11, %v19020_v43, %v17473_v30  ;;  %v3613_v9 = vsel %vm23249_vm11, %v17473_v30, %v17467_v44  ;;  %v19036_v54 = vsel %vm23249_vm11, %v17467_v44, %v17468_v46  ;;  %v3636_v44 = vsel %vm23249_vm11, 0.0, %v19020_v43 }
 0x4d2   : > { %v17478_v3 = vunpack.i.h.bf16 %v17476_v48  ;;  %v19026_v7 = vunpack.i.l.bf16 %v17476_v48  ;;  %v17483_v61 = vunpack.i.h.bf16 %v17481_v57  ;;  %v17482_v4 = vunpack.i.l.bf16 %v17481_v57 }
 0x4d3   : > { %3687 = vrot.lane.b32.xlu0 %v19016_v14, %s17989_s12  ;;  %3691 = vrot.lane.b32.xlu1 %v19018_v45, %s17989_s12  ;;  %v3640_v46 = vsel %vm23304_vm1, %v19036_v54, 0.0 }
 0x4d4   : > { %v3615_v11 = vsel %vm23249_vm11, %v19026_v7, %v17478_v3  ;;  %v15656_v6 = vpack.c.bf16 %v19026_v7, %v19020_v43  ;;  %v3616_v48 = vsel %vm23249_vm11, %v17478_v3, %v17482_v4  ;;  %v19042_v57 = vsel %vm23249_vm11, %v17482_v4, %v17483_v61 }
 0x4d5   : > { %v19038_v37 = vpack.c.bf16 %v3615_v11, %v3612_v62  ;;  %v3637_v34 = vsel %vm23249_vm11, 0.0, %v19026_v7  ;;  %v19046_v30 = vpack.c.bf16 %v3616_v48, %v3613_v9  ;;  %v15665_v21 = vpack.c.bf16 %v19042_v57, %v19036_v54 }
 0x4d6   : > { %v3641_v28 = vsel %vm23305_vm10, %v19042_v57, 0.0  ;;  %v19060_v3 = vpack.c.bf16 %v3637_v34, %v3636_v44  ;;  %vm23306_vm10 = vcmask 736256  }
 0x4d7   : > { %3695 = vrot.lane.b32.xlu0 %v19038_v37, %s17989_s12  ;;  %3697 = vrot.lane.b32.xlu1 %v19046_v30, %s17989_s12  ;;  %v19062_v61 = vpack.c.bf16 %v3641_v28, %v3640_v46  ;;  %vm23307_vm1 = vmmov %vm23306_vm10 }
 0x4db   : > { %3693 = vrot.lane.b32.xlu0 %v19060_v3, %s17989_s12  ;;  %3699 = vrot.lane.b32.xlu1 %v19062_v61, %s17989_s12 }
 0x4df   : > { %4023 = vrot.lane.b32.xlu0 %v19016_v14, %s17990_s13  ;;  %4025 = vrot.lane.b32.xlu1 %v19000_v58, %s17990_s13 }
 0x4e3   : > { %4021 = vrot.lane.b32.xlu0 %v18995_v50, %s17990_s13  ;;  %4027 = vrot.lane.b32.xlu1 %v19018_v45, %s17990_s13 }
 0x4e7   : > { %4031 = vrot.lane.b32.xlu0 %v19038_v37, %s17990_s13  ;;  %4033 = vrot.lane.b32.xlu1 %v19046_v30, %s17990_s13 }
 0x4eb   : > { %4029 = vrot.lane.b32.xlu0 %v19060_v3, %s17990_s13  ;;  %4035 = vrot.lane.b32.xlu1 %v19062_v61, %s17990_s13 }
 0x4ef   : > { %4233 = vrot.lane.b32.xlu0 %v19016_v14, %s17991_s14  ;;  %4235 = vrot.lane.b32.xlu1 %v19000_v58, %s17991_s14 }
 0x4f3   : > { %4231 = vrot.lane.b32.xlu0 %v18995_v50, %s17991_s14  ;;  %4237 = vrot.lane.b32.xlu1 %v19018_v45, %s17991_s14 }
 0x4f7   : > { %4241 = vrot.lane.b32.xlu0 %v19038_v37, %s17991_s14  ;;  %4243 = vrot.lane.b32.xlu1 %v19046_v30, %s17991_s14 }
 0x4fb   : > { %4239 = vrot.lane.b32.xlu0 %v19060_v3, %s17991_s14  ;;  %4245 = vrot.lane.b32.xlu1 %v19062_v61, %s17991_s14 }
 0x4ff   : > { %4443 = vrot.lane.b32.xlu0 %v19016_v14, %s17992_s15  ;;  %4445 = vrot.lane.b32.xlu1 %v19000_v58, %s17992_s15 }
 0x503   : > { %4441 = vrot.lane.b32.xlu0 %v18995_v50, %s17992_s15  ;;  %4447 = vrot.lane.b32.xlu1 %v19018_v45, %s17992_s15 }
 0x507   : > { %4451 = vrot.lane.b32.xlu0 %v19038_v37, %s17992_s15  ;;  %4453 = vrot.lane.b32.xlu1 %v19046_v30, %s17992_s15 }
 0x50b   : > { %4449 = vrot.lane.b32.xlu0 %v19060_v3, %s17992_s15  ;;  %4455 = vrot.lane.b32.xlu1 %v19062_v61, %s17992_s15 }
 0x50f   : > { %4653 = vrot.lane.b32.xlu0 %v19016_v14, %s17993_s16  ;;  %4655 = vrot.lane.b32.xlu1 %v19000_v58, %s17993_s16 }
 0x513   : > { %4651 = vrot.lane.b32.xlu0 %v18995_v50, %s17993_s16  ;;  %4657 = vrot.lane.b32.xlu1 %v19018_v45, %s17993_s16 }
 0x517   : > { %4661 = vrot.lane.b32.xlu0 %v19038_v37, %s17993_s16  ;;  %4663 = vrot.lane.b32.xlu1 %v19046_v30, %s17993_s16 }
 0x51b   : > { %4659 = vrot.lane.b32.xlu0 %v19060_v3, %s17993_s16  ;;  %4665 = vrot.lane.b32.xlu1 %v19062_v61, %s17993_s16 }
 0x51f   : > { %4863 = vrot.lane.b32.xlu0 %v19016_v14, %s23256_s17  ;;  %4865 = vrot.lane.b32.xlu1 %v19000_v58, %s23256_s17 }
 0x523   : > { %4861 = vrot.lane.b32.xlu0 %v18995_v50, %s23256_s17  ;;  %4867 = vrot.lane.b32.xlu1 %v19018_v45, %s23256_s17 }
 0x527   : > { %4871 = vrot.lane.b32.xlu0 %v19038_v37, %s23256_s17  ;;  %4873 = vrot.lane.b32.xlu1 %v19046_v30, %s23256_s17 }
 0x52b   : > { %4869 = vrot.lane.b32.xlu0 %v19060_v3, %s23256_s17  ;;  %4875 = vrot.lane.b32.xlu1 %v19062_v61, %s23256_s17 }
 0x52f   : > { %5073 = vrot.lane.b32.xlu0 %v19016_v14, %s23252_s18  ;;  %5075 = vrot.lane.b32.xlu1 %v19000_v58, %s23252_s18 }
 0x533   : > { %5071 = vrot.lane.b32.xlu0 %v18995_v50, %s23252_s18  ;;  %5077 = vrot.lane.b32.xlu1 %v19018_v45, %s23252_s18 }
 0x537   : > { %5081 = vrot.lane.b32.xlu0 %v19038_v37, %s23252_s18  ;;  %5083 = vrot.lane.b32.xlu1 %v19046_v30, %s23252_s18 }
 0x53b   : > { %5079 = vrot.lane.b32.xlu0 %v19060_v3, %s23252_s18  ;;  %5085 = vrot.lane.b32.xlu1 %v19062_v61, %s23252_s18 }
 0x53f   : > { %5283 = vrot.lane.b32.xlu0 %v19016_v14, %s23250_s19  ;;  %5285 = vrot.lane.b32.xlu1 %v19000_v58, %s23250_s19 }
 0x541   : > { %v3686_v28 = vpop.permute.xlu0 %3685  ;;  %v3690_v34 = vpop.permute.xlu1 %3689 }
 0x543   : > { %5281 = vrot.lane.b32.xlu0 %v18995_v50, %s23250_s19  ;;  %5287 = vrot.lane.b32.xlu1 %v19018_v45, %s23250_s19 }
 0x545   : > { %v3688_v4 = vpop.permute.xlu0 %3687  ;;  %v3692_v62 = vpop.permute.xlu1 %3691 }
 0x546   : > { %3787 = vmatprep.subr.bf16.mxu1 %v3692_v62  ;;  %v3702_v9 = vsel %vm383_vm2, %v3688_v4, %v3690_v34  ;;  %v3703_v11 = vsel %vm383_vm2, %v3690_v34, %v3692_v62  ;;  %v3701_v48 = vsel %vm383_vm2, %v3686_v28, %v3688_v4  ;;  %v17783_v4 = vld [vmem:[%s23188_s1 + $0x138] sm:$0xff]  }
 0x547   : > { %3724 = vmatprep.subr.bf16.mxu0 %v3702_v9  ;;  %3788 = vmatpush1.bf16.msra.mxu1 %v3703_v11  ;;  %v17787_v9 = vld [vmem:[%s23188_s1 + $0x128] sm:$0xff]  }
 0x548   : > { %3725 = vmatpush1.bf16.msra.mxu0 %v3701_v48  ;;  %5291 = vrot.lane.b32.xlu0 %v19038_v37, %s23250_s19 }
 0x549   : > { %5293 = vrot.lane.b32.xlu1 %v19046_v30, %s23250_s19  ;;  %v3696_v50 = vpop.permute.xlu0 %3695  ;;  %v3698_v44 = vpop.permute.xlu1 %3697 }
 0x54a   : > { %v3705_v45 = vsel %vm383_vm2, %v3696_v50, %v3698_v44 }
 0x54b   : > { %3726 = vmatprep.subr.bf16.mxu0 %v3705_v45 }
 0x54c   : > { %5289 = vrot.lane.b32.xlu0 %v19060_v3, %s23250_s19 }
 0x54d   : > { %5295 = vrot.lane.b32.xlu1 %v19062_v61, %s23250_s19  ;;  %v3694_v46 = vpop.permute.xlu0 %3693  ;;  %v3700_v34 = vpop.permute.xlu1 %3699 }
 0x54e   : > { %v3704_v28 = vsel %vm383_vm2, %v3694_v46, %v3696_v50  ;;  %3789 = vmatprep.subr.bf16.mxu1 %v3700_v34  ;;  %v3706_v62 = vsel %vm383_vm2, %v3698_v44, %v3700_v34  ;;  %v17788_v46 = vld [vmem:[%s23188_s1 + $0x130] sm:$0xff]  }
 0x54f   : > { %3727 = vmatpush1.bf16.msra.mxu0 %v3704_v28  ;;  %3790 = vmatpush1.bf16.msra.mxu1 %v3706_v62  ;;  %v17789_v62 = vld [vmem:[%s23188_s1 + $0x150] sm:$0xff]  }
 0x550   : > { %3874 = vmatprep.subr.bf16.mxu0 %v19016_v14  ;;  %15663 = vmatprep.subr.msk.bf16.mxu1 %vm18653_vm13, %v15662_v63 }
 0x551   : > { %v4026_v3 = vpop.permute.xlu1 %4025  ;;  %v4024_v61 = vpop.permute.xlu0 %4023 }
 0x552   : > { %15639 = vmatmul.mubr.msk.bf16.vlgmr.msra.gmra.mrb[16].mxu0 %vm23246_vm4, %v17783_v4  ;;  %15642 = vmatmul.mubr.msk.bf16.vlgmr.msra.gmra.mrb[16].mxu1 %vm23246_vm4, %v17783_v4 }
 0x553   : > { %15652 = vmatpush1.bf16.msk.msra.mxu0 %vm18669_vm12, %v15651_v47  ;;  %3938 = vmatpush1.bf16.msra.mxu1 %v19000_v58  ;;  %v17786_v58 = vld [vmem:[%s23188_s1 + $0x120] sm:$0xff]  }
 0x554   : > { %3876 = vmatprep.subr.bf16.mxu0 %v19038_v37  ;;  %15666 = vmatprep.subr.msk.bf16.mxu1 %vm18653_vm13, %v15665_v21  ;;  %v4038_v37 = vsel %vm672_vm3, %v4024_v61, %v4026_v3 }
 0x555   : > { %3766 = vmatprep.mubr.bf16.mxu0 %v23217_v5  ;;  %3829 = vmatprep.mubr.bf16.mxu1 %v23217_v5  ;;  %v4028_v54 = vpop.permute.xlu1 %4027  ;;  %v4022_v21 = vpop.permute.xlu0 %4021 }
 0x556   : > { %v4037_v63 = vsel %vm672_vm3, %v4022_v21, %v4024_v61  ;;  %v4039_v43 = vsel %vm672_vm3, %v4026_v3, %v4028_v54 }
 0x557   : > { %15657 = vmatpush1.bf16.msk.msra.mxu0 %vm18669_vm12, %v15656_v6  ;;  %3940 = vmatpush1.bf16.msra.mxu1 %v19046_v30 }
 0x558   : > { %4060 = vmatprep.subr.bf16.mxu0 %v4038_v37  ;;  %4123 = vmatprep.subr.bf16.mxu1 %v4028_v54 }
 0x559   : > { %v4034_v7 = vpop.permute.xlu1 %4033  ;;  %v4032_v47 = vpop.permute.xlu0 %4031 }
 0x55a   : > { %15640 = vmatmul.mubr.msk.bf16.gmra.mrb[20].mxu0 %vm23246_vm4, %v17784_v0  ;;  %15643 = vmatmul.mubr.msk.bf16.gmra.mrb[20].mxu1 %vm23246_vm4, %v17784_v0  ;;  %v4041_v6 = vsel %vm672_vm3, %v4032_v47, %v4034_v7 }
 0x55b   : > { %3776 = vmatprep.mubr.bf16.mxu0 %v23217_v5  ;;  %3839 = vmatprep.mubr.bf16.mxu1 %v23217_v5 }
 0x55d   : > { %v4036_v49 = vpop.permute.xlu1 %4035  ;;  %v4030_v56 = vpop.permute.xlu0 %4029 }
 0x55e   : > { %v4040_v30 = vsel %vm672_vm3, %v4030_v56, %v4032_v47  ;;  %v4042_v11 = vsel %vm672_vm3, %v4034_v7, %v4036_v49  ;;  %v17790_v7 = vld [vmem:[%s23188_s1 + $0x158] sm:$0xff]  }
 0x561   : > { %v4236_v14 = vpop.permute.xlu1 %4235  ;;  %v4234_v57 = vpop.permute.xlu0 %4233 }
 0x562   : > { %15641 = vmatmul.mubr.msk.bf16.gmra.mrb[24].mxu0 %vm23246_vm4, %v17785_v52  ;;  %15644 = vmatmul.mubr.msk.bf16.gmra.mrb[24].mxu1 %vm23246_vm4, %v17785_v52  ;;  %v4248_v48 = vsel %vm838_vm5, %v4234_v57, %v4236_v14 }
 0x563   : > { %3906 = vmatprep.mubr.bf16.mxu0 %v23217_v5  ;;  %3969 = vmatprep.mubr.bf16.mxu1 %v23217_v5 }
 0x565   : > { %v4238_v50 = vpop.permute.xlu1 %4237  ;;  %v4232_v44 = vpop.permute.xlu0 %4231 }
 0x566   : > { %v4247_v3 = vsel %vm838_vm5, %v4232_v44, %v4234_v57  ;;  %v4249_v0 = vsel %vm838_vm5, %v4236_v14, %v4238_v50  ;;  %v17792_v57 = vld [vmem:[%s23188_s1 + $0x168] sm:$0xff]  }
 0x569   : > { %v4244_v45 = vpop.permute.xlu1 %4243  ;;  %v4242_v28 = vpop.permute.xlu0 %4241 }
 0x56a   : > { %15658 = vmatmul.mubr.msk.bf16.vlgmr.msra.gmra.mrb[16].mxu0 %vm23246_vm4, %v17786_v58  ;;  %15667 = vmatmul.mubr.msk.bf16.vlgmr.msra.gmra.mrb[16].mxu1 %vm23246_vm4, %v17786_v58  ;;  %v4251_v37 = vsel %vm838_vm5, %v4242_v28, %v4244_v45 }
 0x56b   : > { %4061 = vmatpush1.bf16.msra.mxu0 %v4037_v63  ;;  %4124 = vmatpush1.bf16.msra.mxu1 %v4039_v43  ;;  %v17791_v63 = vld [vmem:[%s23188_s1 + $0x160] sm:$0xff]  }
 0x56c   : > { %4062 = vmatprep.subr.bf16.mxu0 %v4041_v6  ;;  %4125 = vmatprep.subr.bf16.mxu1 %v4036_v49 }
 0x56d   : > { %3916 = vmatprep.mubr.bf16.mxu0 %v23217_v5  ;;  %3979 = vmatprep.mubr.bf16.mxu1 %v23217_v5  ;;  %v4246_v34 = vpop.permute.xlu1 %4245  ;;  %v4240_v4 = vpop.permute.xlu0 %4239 }
 0x56e   : > { %v4250_v21 = vsel %vm838_vm5, %v4240_v4, %v4242_v28  ;;  %v4252_v52 = vsel %vm838_vm5, %v4244_v45, %v4246_v34  ;;  %v17793_v45 = vld [vmem:[%s23188_s1 + $0x170] sm:$0xff]  }
 0x56f   : > { %4063 = vmatpush1.bf16.msra.mxu0 %v4040_v30  ;;  %4126 = vmatpush1.bf16.msra.mxu1 %v4042_v11 }
 0x570   : > { %4270 = vmatprep.subr.bf16.mxu0 %v4248_v48  ;;  %4333 = vmatprep.subr.bf16.mxu1 %v4238_v50 }
 0x571   : > { %v4446_v61 = vpop.permute.xlu1 %4445  ;;  %v4444_v54 = vpop.permute.xlu0 %4443 }
 0x572   : > { %15659 = vmatmul.mubr.msk.bf16.gmra.mrb[20].mxu0 %vm23246_vm4, %v17787_v9  ;;  %15668 = vmatmul.mubr.msk.bf16.gmra.mrb[20].mxu1 %vm23246_vm4, %v17787_v9  ;;  %v4458_v47 = vsel %vm23254_vm6, %v4444_v54, %v4446_v61 }
 0x573   : > { %3926 = vmatprep.mubr.bf16.mxu0 %v23217_v5  ;;  %3989 = vmatprep.mubr.bf16.mxu1 %v23217_v5 }
 0x575   : > { %v4448_v49 = vpop.permute.xlu1 %4447  ;;  %v4442_v56 = vpop.permute.xlu0 %4441 }
 0x576   : > { %v4457_v30 = vsel %vm23254_vm6, %v4442_v56, %v4444_v54  ;;  %v4459_v11 = vsel %vm23254_vm6, %v4446_v61, %v4448_v49  ;;  %v18000_v61 = vmov 2   ;;  %v5473_v54 = vld [vmem:[%s23189_s2 + $0x18] sm:$0xff] }
 0x577   : > { %17484 = vset.pattern.permute.xlu0 %v18000_v61  ;;  %17485 = vset.pattern.permute.xlu1 %v18000_v61 }
 0x579   : > { %v4454_v58 = vpop.permute.xlu1 %4453  ;;  %v4452_v14 = vpop.permute.xlu0 %4451 }
 0x57a   : > { %15660 = vmatmul.mubr.msk.bf16.gmra.mrb[24].mxu0 %vm23246_vm4, %v17788_v46  ;;  %15669 = vmatmul.mubr.msk.bf16.gmra.mrb[24].mxu1 %vm23246_vm4, %v17788_v46  ;;  %v4461_v48 = vsel %vm23254_vm6, %v4452_v14, %v4454_v58 }
 0x57b   : > { %4092 = vmatprep.mubr.bf16.mxu0 %v23217_v5  ;;  %4155 = vmatprep.mubr.bf16.mxu1 %v23217_v5 }
 0x57d   : > { %v4456_v43 = vpop.permute.xlu1 %4455  ;;  %v4450_v6 = vpop.permute.xlu0 %4449 }
 0x57e   : > { %v4460_v44 = vsel %vm23254_vm6, %v4450_v6, %v4452_v14  ;;  %v4462_v46 = vsel %vm23254_vm6, %v4454_v58, %v4456_v43  ;;  %v17795_v58 = vld [vmem:[%s23188_s1 + $0x180] sm:$0xff]  }
 0x581   : > { %v4656_v9 = vpop.permute.xlu1 %4655  ;;  %v4654_v50 = vpop.permute.xlu0 %4653 }
 0x582   : > { %15673 = vmatmul.mubr.msk.bf16.vlgmr.msra.gmra.mrb[16].mxu0 %vm23246_vm4, %v17789_v62  ;;  %15676 = vmatmul.mubr.msk.bf16.vlgmr.msra.gmra.mrb[16].mxu1 %vm23246_vm4, %v17789_v62  ;;  %v4668_v28 = vsel %vm23247_vm7, %v4654_v50, %v4656_v9  ;;  %v5470_v62 = vld [vmem:[%s23189_s2] sm:$0xff] }
 0x583   : > { %4271 = vmatpush1.bf16.msra.mxu0 %v4247_v3  ;;  %4334 = vmatpush1.bf16.msra.mxu1 %v4249_v0  ;;  %v5471_v3 = vld [vmem:[%s23189_s2 + $0x8] sm:$0xff] }
 0x584   : > { %4272 = vmatprep.subr.bf16.mxu0 %v4251_v37  ;;  %4335 = vmatprep.subr.bf16.mxu1 %v4246_v34  ;;  %v17794_v37 = vld [vmem:[%s23188_s1 + $0x178] sm:$0xff]  }
 0x585   : > { %4102 = vmatprep.mubr.bf16.mxu0 %v23217_v5  ;;  %4165 = vmatprep.mubr.bf16.mxu1 %v23217_v5  ;;  %v4658_v34 = vpop.permute.xlu1 %4657  ;;  %v4652_v4 = vpop.permute.xlu0 %4651 }
 0x586   : > { %5478 = vperm.xlu0 %17484, %v5470_v62   ;;  %5483 = vperm.xlu1 %17485, %v5471_v3   ;;  %v17798_v62 = vld [vmem:[%s23188_s1 + $0x198] sm:$0xff]  }
 0x587   : > { %4273 = vmatpush1.bf16.msra.mxu0 %v4250_v21  ;;  %4336 = vmatpush1.bf16.msra.mxu1 %v4252_v52  ;;  %v5472_v21 = vld [vmem:[%s23189_s2 + $0x10] sm:$0xff]  ;;  %v5475_v52 = vld [vmem:[%s23189_s2 + $0x28] sm:$0xff] }
 0x588   : > { %4480 = vmatprep.subr.bf16.mxu0 %v4458_v47  ;;  %4543 = vmatprep.subr.bf16.mxu1 %v4448_v49  ;;  %v5474_v47 = vld [vmem:[%s23189_s2 + $0x20] sm:$0xff] }
 0x589   : > { %v4664_v0 = vpop.permute.xlu1 %4663 }
 0x58a   : > { %15674 = vmatmul.mubr.msk.bf16.gmra.mrb[20].mxu0 %vm23246_vm4, %v17790_v7  ;;  %15677 = vmatmul.mubr.msk.bf16.gmra.mrb[20].mxu1 %vm23246_vm4, %v17790_v7  ;;  %v4662_v7 = vpop.permute.xlu0 %4661 }
 0x58b   : > { %4112 = vmatprep.mubr.bf16.mxu0 %v23217_v5  ;;  %4175 = vmatprep.mubr.bf16.mxu1 %v23217_v5  ;;  %v4671_v6 = vsel %vm23247_vm7, %v4662_v7, %v4664_v0 }
 0x58c   : > { %5493 = vperm.xlu0 %17484, %v5473_v54   ;;  %5488 = vperm.xlu1 %17485, %v5472_v21  }
 0x58d   : > { %v4666_v49 = vpop.permute.xlu1 %4665 }
 0x58e   : > { %v4660_v56 = vpop.permute.xlu0 %4659 }
 0x590   : > { %5503 = vperm.xlu0 %17484, %v5475_v52   ;;  %5498 = vperm.xlu1 %17485, %v5474_v47  }
 0x591   : > { %v4866_v14 = vpop.permute.xlu1 %4865 }
 0x592   : > { %15675 = vmatmul.mubr.msk.bf16.gmra.mrb[24].mxu0 %vm23246_vm4, %v17791_v63  ;;  %15678 = vmatmul.mubr.msk.bf16.gmra.mrb[24].mxu1 %vm23246_vm4, %v17791_v63  ;;  %v4667_v63 = vsel %vm23247_vm7, %v4652_v4, %v4654_v50 }
 0x593   : > { %4302 = vmatprep.mubr.bf16.mxu0 %v23217_v5  ;;  %4365 = vmatprep.mubr.bf16.mxu1 %v23217_v5 }
 0x595   : > { %v4868_v50 = vpop.permute.xlu1 %4867 }
 0x59a   : > { %15682 = vmatmul.mubr.msk.bf16.vlgmr.msra.gmra.mrb[16].mxu0 %vm23246_vm4, %v17792_v57  ;;  %15685 = vmatmul.mubr.msk.bf16.vlgmr.msra.gmra.mrb[16].mxu1 %vm23246_vm4, %v17792_v57  ;;  %v4864_v57 = vpop.permute.xlu0 %4863 }
 0x59b   : > { %4481 = vmatpush1.bf16.msra.mxu0 %v4457_v30  ;;  %4544 = vmatpush1.bf16.msra.mxu1 %v4459_v11  ;;  %v4670_v30 = vsel %vm23247_vm7, %v4660_v56, %v4662_v7  ;;  %v17796_v11 = vld [vmem:[%s23188_s1 + $0x188] sm:$0xff]   ;;  %v17799_v7 = vld [vmem:[%s23188_s1 + $0x1a0] sm:$0xff]  }
 0x59c   : > { %4482 = vmatprep.subr.bf16.mxu0 %v4461_v48  ;;  %4545 = vmatprep.subr.bf16.mxu1 %v4456_v43  ;;  %v4669_v43 = vsel %vm23247_vm7, %v4656_v9, %v4658_v34  ;;  %v4672_v48 = vsel %vm23247_vm7, %v4664_v0, %v4666_v49  ;;  %v4878_v9 = vsel %vm23206_vm8, %v4864_v57, %v4866_v14 }
 0x59d   : > { %4312 = vmatprep.mubr.bf16.mxu0 %v23217_v5  ;;  %4375 = vmatprep.mubr.bf16.mxu1 %v23217_v5  ;;  %v4879_v0 = vsel %vm23206_vm8, %v4866_v14, %v4868_v50 }
 0x59f   : > { %4483 = vmatpush1.bf16.msra.mxu0 %v4460_v44  ;;  %4546 = vmatpush1.bf16.msra.mxu1 %v4462_v46  ;;  %v4862_v44 = vpop.permute.xlu0 %4861  ;;  %v17797_v46 = vld [vmem:[%s23188_s1 + $0x190] sm:$0xff]  }
 0x5a0   : > { %4690 = vmatprep.subr.bf16.mxu0 %v4668_v28  ;;  %4753 = vmatprep.subr.bf16.mxu1 %v4658_v34  ;;  %v4877_v3 = vsel %vm23206_vm8, %v4862_v44, %v4864_v57  ;;  %v17801_v57 = vld [vmem:[%s23188_s1 + $0x1b0] sm:$0xff]  }
 0x5a2   : > { %15683 = vmatmul.mubr.msk.bf16.gmra.mrb[20].mxu0 %vm23246_vm4, %v17793_v45  ;;  %15686 = vmatmul.mubr.msk.bf16.gmra.mrb[20].mxu1 %vm23246_vm4, %v17793_v45  ;;  %v4874_v45 = vpop.permute.xlu1 %4873 }
 0x5a3   : > { %4322 = vmatprep.mubr.bf16.mxu0 %v23217_v5  ;;  %4385 = vmatprep.mubr.bf16.mxu1 %v23217_v5  ;;  %v4872_v28 = vpop.permute.xlu0 %4871 }
 0x5a6   : > { %v4876_v34 = vpop.permute.xlu1 %4875 }
 0x5a7   : > { %v4870_v4 = vpop.permute.xlu0 %4869  ;;  %v4882_v52 = vsel %vm23206_vm8, %v4874_v45, %v4876_v34 }
 0x5a8   : > { %v4880_v21 = vsel %vm23206_vm8, %v4870_v4, %v4872_v28  ;;  %v17803_v4 = vld [vmem:[%s23188_s1 + $0x1c0] sm:$0xff]  }
 0x5aa   : > { %15684 = vmatmul.mubr.msk.bf16.gmra.mrb[24].mxu0 %vm23246_vm4, %v17794_v37  ;;  %15687 = vmatmul.mubr.msk.bf16.gmra.mrb[24].mxu1 %vm23246_vm4, %v17794_v37  ;;  %v5076_v61 = vpop.permute.xlu1 %5075  ;;  %v4881_v37 = vsel %vm23206_vm8, %v4872_v28, %v4874_v45  ;;  %v17802_v45 = vld [vmem:[%s23188_s1 + $0x1b8] sm:$0xff]   ;;  %vm23310_vm8 = vmmov %vm23307_vm1 }
 0x5ab   : > { %4512 = vmatprep.mubr.bf16.mxu0 %v23217_v5  ;;  %4575 = vmatprep.mubr.bf16.mxu1 %v23217_v5  ;;  %v5074_v54 = vpop.permute.xlu0 %5073 }
 0x5ac   : > { %v5088_v47 = vsel %vm23205_vm9, %v5074_v54, %v5076_v61 }
 0x5af   : > { %v5072_v56 = vpop.permute.xlu0 %5071 }
 0x5b2   : > { %15691 = vmatmul.mubr.msk.bf16.vlgmr.msra.gmra.mrb[16].mxu0 %vm23246_vm4, %v17795_v58  ;;  %15694 = vmatmul.mubr.msk.bf16.vlgmr.msra.gmra.mrb[16].mxu1 %vm23246_vm4, %v17795_v58 }
 0x5b3   : > { %4691 = vmatpush1.bf16.msra.mxu0 %v4667_v63  ;;  %4754 = vmatpush1.bf16.msra.mxu1 %v4669_v43  ;;  %v17800_v63 = vld [vmem:[%s23188_s1 + $0x1a8] sm:$0xff]   ;;  %v5082_v14 = vpop.permute.xlu0 %5081 }
 0x5b4   : > { %4692 = vmatprep.subr.bf16.mxu0 %v4671_v6  ;;  %4755 = vmatprep.subr.bf16.mxu1 %v4666_v49  ;;  %v5078_v49 = vpop.permute.xlu1 %5077 }
 0x5b5   : > { %4522 = vmatprep.mubr.bf16.mxu0 %v23217_v5  ;;  %4585 = vmatprep.mubr.bf16.mxu1 %v23217_v5 }
 0x5b7   : > { %4693 = vmatpush1.bf16.msra.mxu0 %v4670_v30  ;;  %4756 = vmatpush1.bf16.msra.mxu1 %v4672_v48  ;;  %v5080_v6 = vpop.permute.xlu0 %5079  ;;  %v5087_v30 = vsel %vm23205_vm9, %v5072_v56, %v5074_v54  ;;  %v5089_v48 = vsel %vm23205_vm9, %v5076_v61, %v5078_v49 }
 0x5b8   : > { %4900 = vmatprep.subr.bf16.mxu0 %v4878_v9  ;;  %4963 = vmatprep.subr.bf16.mxu1 %v4868_v50  ;;  %v5084_v58 = vpop.permute.xlu1 %5083  ;;  %v5090_v44 = vsel %vm23205_vm9, %v5080_v6, %v5082_v14 }
 0x5b9   : > { %v5091_v9 = vsel %vm23205_vm9, %v5082_v14, %v5084_v58  ;;  %v17808_v14 = vld [vmem:[%s23188_s1 + $0x1e8] sm:$0xff]  }
 0x5ba   : > { %15692 = vmatmul.mubr.msk.bf16.gmra.mrb[20].mxu0 %vm23246_vm4, %v17796_v11  ;;  %15695 = vmatmul.mubr.msk.bf16.gmra.mrb[20].mxu1 %vm23246_vm4, %v17796_v11 }
 0x5bb   : > { %4532 = vmatprep.mubr.bf16.mxu0 %v23217_v5  ;;  %4595 = vmatprep.mubr.bf16.mxu1 %v23217_v5  ;;  %v5284_v50 = vpop.permute.xlu0 %5283 }
 0x5bc   : > { %v5086_v43 = vpop.permute.xlu1 %5085 }
 0x5c0   : > { %v5286_v11 = vpop.permute.xlu1 %5285 }
 0x5c1   : > { %v5298_v28 = vsel %vm23306_vm10, %v5284_v50, %v5286_v11  ;;  %vm23308_vm10 = vmmov %vm23307_vm1 }
 0x5c2   : > { %15693 = vmatmul.mubr.msk.bf16.gmra.mrb[24].mxu0 %vm23246_vm4, %v17797_v46  ;;  %15696 = vmatmul.mubr.msk.bf16.gmra.mrb[24].mxu1 %vm23246_vm4, %v17797_v46  ;;  %v5092_v46 = vsel %vm23205_vm9, %v5084_v58, %v5086_v43  ;;  %vm23309_vm9 = vmmov %vm23307_vm1  ;;  %v17806_v58 = vld [vmem:[%s23188_s1 + $0x1d8] sm:$0xff]  }
 0x5c3   : > { %4722 = vmatprep.mubr.bf16.mxu0 %v23217_v5  ;;  %4785 = vmatprep.mubr.bf16.mxu1 %v23217_v5 }
 0x5ca   : > { %15700 = vmatmul.mubr.msk.bf16.vlgmr.msra.gmra.mrb[16].mxu0 %vm23246_vm4, %v17798_v62  ;;  %15703 = vmatmul.mubr.msk.bf16.vlgmr.msra.gmra.mrb[16].mxu1 %vm23246_vm4, %v17798_v62  ;;  %v5282_v62 = vpop.permute.xlu0 %5281 }
 0x5cb   : > { %4901 = vmatpush1.bf16.msra.mxu0 %v4877_v3  ;;  %4964 = vmatpush1.bf16.msra.mxu1 %v4879_v0  ;;  %v17804_v0 = vld [vmem:[%s23188_s1 + $0x1c8] sm:$0xff]  }
 0x5cc   : > { %4902 = vmatprep.subr.bf16.mxu0 %v4881_v37  ;;  %4965 = vmatprep.subr.bf16.mxu1 %v4876_v34  ;;  %v5288_v34 = vpop.permute.xlu1 %5287  ;;  %v5297_v37 = vsel %vm23307_vm1, %v5282_v62, %v5284_v50 }
 0x5cd   : > { %4732 = vmatprep.mubr.bf16.mxu0 %v23217_v5  ;;  %4795 = vmatprep.mubr.bf16.mxu1 %v23217_v5 }
 0x5ce   : > { %v5292_v3 = vpop.permute.xlu0 %5291 }
 0x5cf   : > { %4903 = vmatpush1.bf16.msra.mxu0 %v4880_v21  ;;  %4966 = vmatpush1.bf16.msra.mxu1 %v4882_v52  ;;  %v5299_v21 = vsel %vm23308_vm10, %v5286_v11, %v5288_v34 }
 0x5d0   : > { %5110 = vmatprep.subr.bf16.mxu0 %v5088_v47  ;;  %5173 = vmatprep.subr.bf16.mxu1 %v5078_v49  ;;  %v5294_v61 = vpop.permute.xlu1 %5293  ;;  %v17805_v49 = vld [vmem:[%s23188_s1 + $0x1d0] sm:$0xff]  }
 0x5d2   : > { %15701 = vmatmul.mubr.msk.bf16.gmra.mrb[20].mxu0 %vm23246_vm4, %v17799_v7  ;;  %15704 = vmatmul.mubr.msk.bf16.gmra.mrb[20].mxu1 %vm23246_vm4, %v17799_v7  ;;  %v5290_v54 = vpop.permute.xlu0 %5289  ;;  %v5301_v7 = vsel %vm23309_vm9, %v5292_v3, %v5294_v61 }
 0x5d3   : > { %4742 = vmatprep.mubr.bf16.mxu0 %v23217_v5  ;;  %4805 = vmatprep.mubr.bf16.mxu1 %v23217_v5  ;;  %v5300_v47 = vsel %vm23310_vm8, %v5290_v54, %v5292_v3  ;;  %vm23311_vm8 = vcmp.eq.s32.totalorder %v18398_v19, 1 }
 0x5d4   : > { %v5296_v52 = vpop.permute.xlu1 %5295  ;;  %vm23312_vm9 = vmmov %vm23311_vm8 }
 0x5d5   : > { %v5302_v56 = vsel %vm23307_vm1, %v5294_v61, %v5296_v52  ;;  %vm23313_vm10 = vmmov %vm23311_vm8 }
 0x5d6   : > { %vm23314_vm1 = vmmov %vm23311_vm8 }
 0x5da   : > { %15702 = vmatmul.mubr.msk.bf16.gmra.mrb[24].mxu0 %vm23246_vm4, %v17800_v63  ;;  %15705 = vmatmul.mubr.msk.bf16.gmra.mrb[24].mxu1 %vm23246_vm4, %v17800_v63  ;;  %v17807_v63 = vld [vmem:[%s23188_s1 + $0x1e0] sm:$0xff]  }
 0x5db   : > { %4932 = vmatprep.mubr.bf16.mxu0 %v23217_v5  ;;  %4995 = vmatprep.mubr.bf16.mxu1 %v23217_v5 }
 0x5e2   : > { %15709 = vmatmul.mubr.msk.bf16.vlgmr.msra.gmra.mrb[16].mxu0 %vm23246_vm4, %v17801_v57  ;;  %15712 = vmatmul.mubr.msk.bf16.vlgmr.msra.gmra.mrb[16].mxu1 %vm23246_vm4, %v17801_v57 }
 0x5e3   : > { %5111 = vmatpush1.bf16.msra.mxu0 %v5087_v30  ;;  %5174 = vmatpush1.bf16.msra.mxu1 %v5089_v48 }
 0x5e4   : > { %5112 = vmatprep.subr.bf16.mxu0 %v5091_v9  ;;  %5175 = vmatprep.subr.bf16.mxu1 %v5086_v43  ;;  %v17809_v43 = vld [vmem:[%s23188_s1 + $0x1f0] sm:$0xff]  }
 0x5e5   : > { %4942 = vmatprep.mubr.bf16.mxu0 %v23217_v5  ;;  %5005 = vmatprep.mubr.bf16.mxu1 %v23217_v5 }
 0x5e7   : > { %5113 = vmatpush1.bf16.msra.mxu0 %v5090_v44  ;;  %5176 = vmatpush1.bf16.msra.mxu1 %v5092_v46 }
 0x5e8   : > { %5320 = vmatprep.subr.bf16.mxu0 %v5298_v28  ;;  %5383 = vmatprep.subr.bf16.mxu1 %v5288_v34 }
 0x5ea   : > { %15710 = vmatmul.mubr.msk.bf16.gmra.mrb[20].mxu0 %vm23246_vm4, %v17802_v45  ;;  %15713 = vmatmul.mubr.msk.bf16.gmra.mrb[20].mxu1 %vm23246_vm4, %v17802_v45 }
 0x5eb   : > { %4952 = vmatprep.mubr.bf16.mxu0 %v23217_v5  ;;  %5015 = vmatprep.mubr.bf16.mxu1 %v23217_v5 }
 0x5f2   : > { %15711 = vmatmul.mubr.msk.bf16.gmra.mrb[24].mxu0 %vm23246_vm4, %v17803_v4  ;;  %15714 = vmatmul.mubr.msk.bf16.gmra.mrb[24].mxu1 %vm23246_vm4, %v17803_v4 }
 0x5f3   : > { %5142 = vmatprep.mubr.bf16.mxu0 %v23217_v5  ;;  %5205 = vmatprep.mubr.bf16.mxu1 %v23217_v5 }
 0x5fa   : > { %15718 = vmatmul.mubr.msk.bf16.vlgmr.msra.gmra.mrb[16].mxu0 %vm23246_vm4, %v17804_v0  ;;  %15721 = vmatmul.mubr.msk.bf16.vlgmr.msra.gmra.mrb[16].mxu1 %vm23246_vm4, %v17804_v0 }
 0x5fb   : > { %5321 = vmatpush1.bf16.msra.mxu0 %v5297_v37  ;;  %5384 = vmatpush1.bf16.msra.mxu1 %v5299_v21 }
 0x5fc   : > { %5322 = vmatprep.subr.bf16.mxu0 %v5301_v7  ;;  %5385 = vmatprep.subr.bf16.mxu1 %v5296_v52 }
 0x5fd   : > { %5152 = vmatprep.mubr.bf16.mxu0 %v23217_v5  ;;  %5215 = vmatprep.mubr.bf16.mxu1 %v23217_v5 }
 0x5ff   : > { %5323 = vmatpush1.bf16.msra.mxu0 %v5300_v47  ;;  %5386 = vmatpush1.bf16.msra.mxu1 %v5302_v56 }
 0x602   : > { %15719 = vmatmul.mubr.msk.bf16.gmra.mrb[20].mxu0 %vm23246_vm4, %v17805_v49  ;;  %15722 = vmatmul.mubr.msk.bf16.gmra.mrb[20].mxu1 %vm23246_vm4, %v17805_v49 }
 0x603   : > { %5162 = vmatprep.mubr.bf16.mxu0 %v23217_v5  ;;  %5225 = vmatprep.mubr.bf16.mxu1 %v23217_v5 }
 0x605   : > { %v5479_v6 = vpop.permute.xlu0 %5478  ;;  %v5484_v57 = vpop.permute.xlu1 %5483 }
 0x60a   : > { %15720 = vmatmul.mubr.msk.bf16.gmra.mrb[24].mxu0 %vm23246_vm4, %v17806_v58  ;;  %15723 = vmatmul.mubr.msk.bf16.gmra.mrb[24].mxu1 %vm23246_vm4, %v17806_v58 }
 0x60b   : > { %5352 = vmatprep.mubr.bf16.mxu0 %v23217_v5  ;;  %5415 = vmatprep.mubr.bf16.mxu1 %v23217_v5 }
 0x612   : > { %15727 = vmatmul.mubr.msk.bf16.vlgmr.msra.gmra.mrb[16].mxu0 %vm23246_vm4, %v17807_v63  ;;  %15730 = vmatmul.mubr.msk.bf16.vlgmr.msra.gmra.mrb[16].mxu1 %vm23246_vm4, %v17807_v63 }
 0x613   : > { %5362 = vmatprep.mubr.bf16.mxu0 %v23217_v5  ;;  %5425 = vmatprep.mubr.bf16.mxu1 %v23217_v5 }
 0x61a   : > { %15728 = vmatmul.mubr.msk.bf16.gmra.mrb[20].mxu0 %vm23246_vm4, %v17808_v14  ;;  %15731 = vmatmul.mubr.msk.bf16.gmra.mrb[20].mxu1 %vm23246_vm4, %v17808_v14 }
 0x61b   : > { %5372 = vmatprep.mubr.bf16.mxu0 %v23217_v5  ;;  %5435 = vmatprep.mubr.bf16.mxu1 %v23217_v5 }
 0x622   : > { %15729 = vmatmul.mubr.msk.bf16.gmra.mrb[24].mxu0 %vm23246_vm4, %v17809_v43  ;;  %15732 = vmatmul.mubr.msk.bf16.gmra.mrb[24].mxu1 %vm23246_vm4, %v17809_v43  ;;  %v5494_v43 = vpop.permute.xlu0 %5493 }
 0x623   : > { %5811 = vmatprep.mubr.bf16.mxu0 %v23217_v5  ;;  %5852 = vmatprep.mubr.bf16.mxu1 %v23217_v5 }
 0x6e5   : > { %v5354_v30 = vpop.f32.mrb[16].mxu0  ;;  %v5417_v48 = vpop.f32.mrb[16].mxu1 }
 0x6e6   : > { %v5506_v11 = vadd.f32 %v5479_v6, %v5354_v30  ;;  %v5356_v9 = vpop.f32.mrb[17].mxu0  ;;  %v5508_v50 = vadd.f32 %v5479_v6, %v5417_v48  ;;  %v5419_v45 = vpop.f32.mrb[17].mxu1 }
 0x6e7   : > { %v5507_v44 = vadd.f32 %v5479_v6, %v5356_v9  ;;  %v5358_v46 = vpop.f32.mrb[18].mxu0  ;;  %v5509_v34 = vadd.f32 %v5479_v6, %v5419_v45  ;;  %v5421_v62 = vpop.f32.mrb[18].mxu1 }
 0x6e8   : > { %v5530_v28 = vmax.f32 %v5506_v11, 0.0  ;;  %v5510_v4 = vadd.f32 %v5484_v57, %v5358_v46  ;;  %v5360_v3 = vpop.f32.mrb[19].mxu0  ;;  %v5532_v61 = vmax.f32 %v5508_v50, 0.0  ;;  %v5512_v37 = vadd.f32 %v5484_v57, %v5421_v62  ;;  %v5423_v21 = vpop.f32.mrb[19].mxu1 }
 0x6e9   : > { %v5531_v0 = vmax.f32 %v5507_v44, 0.0  ;;  %v5511_v54 = vadd.f32 %v5484_v57, %v5360_v3  ;;  %v5533_v52 = vmax.f32 %v5509_v34, 0.0  ;;  %v5513_v49 = vadd.f32 %v5484_v57, %v5423_v21  ;;  %v5489_v50 = vpop.permute.xlu1 %5488 }
 0x6ea   : > { %v5554_v7 = vsel %vm1885_vm15, %v5530_v28, 0.0  ;;  %v5534_v47 = vmax.f32 %v5510_v4, 0.0  ;;  %v5556_v56 = vsel %vm1887_vm14, %v5532_v61, 0.0  ;;  %v5536_v63 = vmax.f32 %v5512_v37, 0.0 }
 0x6eb   : > { %v5555_v58 = vsel %vm23311_vm8, %v5531_v0, 0.0  ;;  %v5535_v14 = vmax.f32 %v5511_v54, 0.0  ;;  %v5557_v30 = vsel %vm18402_vm0, %v5533_v52, 0.0  ;;  %v5537_v48 = vmax.f32 %v5513_v49, 0.0  ;;  %vm23315_vm8 = vmmov %vm23314_vm1 }
 0x6ec   : > { %v17491_v6 = vpack.i.bf16 %v5555_v58, %v5554_v7  ;;  %v5558_v11 = vsel %vm1885_vm15, %v5534_v47, 0.0  ;;  %v17486_v9 = vpack.i.bf16 %v5557_v30, %v5556_v56  ;;  %v5560_v57 = vsel %vm1887_vm14, %v5536_v63, 0.0 }
 0x6ed   : > { %v5559_v44 = vsel %vm23312_vm9, %v5535_v14, 0.0  ;;  %v5364_v45 = vpop.f32.mrb[20].mxu0  ;;  %v5561_v28 = vsel %vm18402_vm0, %v5537_v48, 0.0  ;;  %v5427_v4 = vpop.f32.mrb[20].mxu1  ;;  %vm23316_vm9 = vmmov %vm23314_vm1 }
 0x6ee   : > { %v17501_v46 = vpack.i.bf16 %v5559_v44, %v5558_v11  ;;  %v5514_v34 = vadd.f32 %v5489_v50, %v5364_v45  ;;  %17492 = vrot.lane.b32.xlu1 %v17491_v6, %s17998_s21  ;;  %v5366_v62 = vpop.f32.mrb[21].mxu0  ;;  %v17496_v3 = vpack.i.bf16 %v5561_v28, %v5560_v57  ;;  %v5516_v61 = vadd.f32 %v5489_v50, %v5427_v4  ;;  %v5429_v37 = vpop.f32.mrb[21].mxu1 }
 0x6ef   : > { %v5515_v0 = vadd.f32 %v5489_v50, %v5366_v62  ;;  %17487 = vrot.lane.b32.xlu0 %v17486_v9, %s17998_s21  ;;  %v5368_v54 = vpop.f32.mrb[22].mxu0  ;;  %v5517_v7 = vadd.f32 %v5489_v50, %v5429_v37  ;;  %v5431_v47 = vpop.f32.mrb[22].mxu1 }
 0x6f0   : > { %v5538_v21 = vmax.f32 %v5514_v34, 0.0  ;;  %v5518_v52 = vadd.f32 %v5494_v43, %v5368_v54  ;;  %v5370_v49 = vpop.f32.mrb[23].mxu0  ;;  %v5540_v56 = vmax.f32 %v5516_v61, 0.0  ;;  %v5520_v63 = vadd.f32 %v5494_v43, %v5431_v47  ;;  %v5433_v30 = vpop.f32.mrb[23].mxu1 }
 0x6f1   : > { %v5539_v58 = vmax.f32 %v5515_v0, 0.0  ;;  %v5519_v14 = vadd.f32 %v5494_v43, %v5370_v49  ;;  %v5541_v11 = vmax.f32 %v5517_v7, 0.0  ;;  %v5521_v57 = vadd.f32 %v5494_v43, %v5433_v30  ;;  %v5504_v28 = vpop.permute.xlu0 %5503 }
 0x6f2   : > { %v5562_v6 = vsel %vm1885_vm15, %v5538_v21, 0.0  ;;  %v5542_v48 = vmax.f32 %v5518_v52, 0.0  ;;  %17502 = vrot.lane.b32.xlu1 %v17501_v46, %s17998_s21  ;;  %v5564_v9 = vsel %vm1887_vm14, %v5540_v56, 0.0  ;;  %v5544_v44 = vmax.f32 %v5520_v63, 0.0  ;;  %v5499_v46 = vpop.permute.xlu1 %5498 }
 0x6f3   : > { %v5563_v50 = vsel %vm23313_vm10, %v5539_v58, 0.0  ;;  %v5543_v45 = vmax.f32 %v5519_v14, 0.0  ;;  %17497 = vrot.lane.b32.xlu0 %v17496_v3, %s17998_s21  ;;  %v5565_v4 = vsel %vm18402_vm0, %v5541_v11, 0.0  ;;  %v5545_v62 = vmax.f32 %v5521_v57, 0.0 }
 0x6f4   : > { %v17511_v34 = vpack.i.bf16 %v5563_v50, %v5562_v6  ;;  %v5566_v43 = vsel %vm1885_vm15, %v5542_v48, 0.0  ;;  %v17506_v61 = vpack.i.bf16 %v5565_v4, %v5564_v9  ;;  %v5568_v0 = vsel %vm1887_vm14, %v5544_v44, 0.0 }
 0x6f5   : > { %v5567_v37 = vsel %vm23314_vm1, %v5543_v45, 0.0  ;;  %v5374_v54 = vpop.f32.mrb[24].mxu0  ;;  %v5569_v3 = vsel %vm18402_vm0, %v5545_v62, 0.0  ;;  %v5437_v52 = vpop.f32.mrb[24].mxu1  ;;  %vm23317_vm10 = vcmask 547840  }
 0x6f6   : > { %v17521_v21 = vpack.i.bf16 %v5567_v37, %v5566_v43  ;;  %v5522_v7 = vadd.f32 %v5499_v46, %v5374_v54  ;;  %v5376_v47 = vpop.f32.mrb[25].mxu0  ;;  %17512 = vrot.lane.b32.xlu1 %v17511_v34, %s17998_s21  ;;  %v17516_v49 = vpack.i.bf16 %v5569_v3, %v5568_v0  ;;  %v5524_v56 = vadd.f32 %v5499_v46, %v5437_v52  ;;  %v5439_v63 = vpop.f32.mrb[25].mxu1  ;;  %vm23318_vm1 = vmmov %vm23317_vm10 }
 0x6f7   : > { %v5523_v58 = vadd.f32 %v5499_v46, %v5376_v47  ;;  %17507 = vrot.lane.b32.xlu0 %v17506_v61, %s17998_s21  ;;  %v5378_v14 = vpop.f32.mrb[26].mxu0  ;;  %v5525_v6 = vadd.f32 %v5499_v46, %v5439_v63  ;;  %v5441_v48 = vpop.f32.mrb[26].mxu1 }
 0x6f8   : > { %v5546_v30 = vmax.f32 %v5522_v7, 0.0  ;;  %v5526_v11 = vadd.f32 %v5504_v28, %v5378_v14  ;;  %v5380_v57 = vpop.f32.mrb[27].mxu0  ;;  %v5548_v9 = vmax.f32 %v5524_v56, 0.0  ;;  %v5528_v44 = vadd.f32 %v5504_v28, %v5441_v48  ;;  %v5443_v4 = vpop.f32.mrb[27].mxu1 }
 0x6f9   : > { %v5547_v50 = vmax.f32 %v5523_v58, 0.0  ;;  %v5527_v45 = vadd.f32 %v5504_v28, %v5380_v57  ;;  %v5549_v43 = vmax.f32 %v5525_v6, 0.0  ;;  %v5529_v0 = vadd.f32 %v5504_v28, %v5443_v4 }
 0x6fa   : > { %v5570_v34 = vsel %vm1885_vm15, %v5546_v30, 0.0  ;;  %v5550_v62 = vmax.f32 %v5526_v11, 0.0  ;;  %17522 = vrot.lane.b32.xlu1 %v17521_v21, %s17998_s21  ;;  %v5572_v61 = vsel %vm1887_vm14, %v5548_v9, 0.0  ;;  %v5552_v37 = vmax.f32 %v5528_v44, 0.0 }
 0x6fb   : > { %v5571_v46 = vsel %vm23315_vm8, %v5547_v50, 0.0  ;;  %v5551_v54 = vmax.f32 %v5527_v45, 0.0  ;;  %17517 = vrot.lane.b32.xlu0 %v17516_v49, %s17998_s21  ;;  %v5573_v7 = vsel %vm18402_vm0, %v5549_v43, 0.0  ;;  %v5553_v28 = vmax.f32 %v5529_v0, 0.0  ;;  %vm23319_vm8 = vmmov %vm23318_vm1 }
 0x6fc   : > { %v17531_v3 = vpack.i.bf16 %v5571_v46, %v5570_v34  ;;  %v5574_v52 = vsel %vm1885_vm15, %v5550_v62, 0.0  ;;  %v17526_v47 = vpack.i.bf16 %v5573_v7, %v5572_v61  ;;  %v5576_v21 = vsel %vm1887_vm14, %v5552_v37, 0.0 }
 0x6fd   : > { %v5575_v56 = vsel %vm23316_vm9, %v5551_v54, 0.0  ;;  %v5577_v63 = vsel %vm18402_vm0, %v5553_v28, 0.0  ;;  %vm23320_vm9 = vmmov %vm23318_vm1 }
 0x6fe   : > { %v17541_v58 = vpack.i.bf16 %v5575_v56, %v5574_v52  ;;  %17532 = vrot.lane.b32.xlu1 %v17531_v3, %s17998_s21  ;;  %v17536_v49 = vpack.i.bf16 %v5577_v63, %v5576_v21 }
 0x6ff   : > { %17527 = vrot.lane.b32.xlu0 %v17526_v47, %s17998_s21 }
 0x702   : > { %17542 = vrot.lane.b32.xlu1 %v17541_v58, %s17998_s21 }
 0x703   : > { %17537 = vrot.lane.b32.xlu0 %v17536_v49, %s17998_s21 }
 0x760   : > { %v19519_v14 = vpop.permute.xlu1 %17492 }
 0x761   : > { %v17488_v30 = vpop.permute.xlu0 %17487  ;;  %v19522_v6 = vunpack.i.l.bf16 %v19519_v14  ;;  %v17495_v48 = vunpack.i.h.bf16 %v19519_v14 }
 0x762   : > { %v17489_v11 = vunpack.i.l.bf16 %v17488_v30  ;;  %v17490_v9 = vunpack.i.h.bf16 %v17488_v30 }
 0x763   : > { %v5692_v43 = vsel %vm23249_vm11, 0.0, %v19522_v6  ;;  %v5650_v41 = vsel %vm23249_vm11, %v19522_v6, %v17495_v48 }
 0x764   : > { %v17503_v57 = vpop.permute.xlu1 %17502  ;;  %v5651_v61 = vsel %vm23249_vm11, %v17495_v48, %v17489_v11  ;;  %v19543_v7 = vsel %vm23249_vm11, %v17489_v11, %v17490_v9 }
 0x765   : > { %v17498_v50 = vpop.permute.xlu0 %17497  ;;  %v17505_v44 = vunpack.i.h.bf16 %v17503_v57  ;;  %v19525_v45 = vunpack.i.l.bf16 %v17503_v57  ;;  %v5698_v56 = vsel %vm23318_vm1, %v19543_v7, 0.0 }
 0x766   : > { %v17500_v4 = vunpack.i.h.bf16 %v17498_v50  ;;  %v17499_v34 = vunpack.i.l.bf16 %v17498_v50 }
 0x767   : > { %v5693_v62 = vsel %vm23249_vm11, 0.0, %v19525_v45  ;;  %v5653_v51 = vsel %vm23249_vm11, %v19525_v45, %v17505_v44 }
 0x768   : > { %v19535_v46 = vsel %vm23249_vm11, %v17499_v34, %v17500_v4  ;;  %v5654_v37 = vsel %vm23249_vm11, %v17505_v44, %v17499_v34  ;;  %v19538_v54 = vpack.c.bf16 %v5693_v62, %v5692_v43  ;;  %v19540_v3 = vpop.permute.xlu1 %17512 }
 0x769   : > { %v19545_v52 = vpack.c.bf16 %v5654_v37, %v5651_v61  ;;  %v17508_v28 = vpop.permute.xlu0 %17507  ;;  %v5699_v47 = vsel %vm23317_vm10, %v19535_v46, 0.0  ;;  %v19558_v58 = vunpack.i.l.bf16 %v19540_v3  ;;  %vm23321_vm10 = vmmov %vm23318_vm1 }
 0x76a   : > { %5730 = vrot.lane.b32.xlu1 %v19538_v54, %s17989_s12  ;;  %v19562_v49 = vpack.c.bf16 %v5699_v47, %v5698_v56  ;;  %v17510_v14 = vunpack.i.h.bf16 %v17508_v28  ;;  %v17509_v30 = vunpack.i.l.bf16 %v17508_v28 }
 0x76b   : > { %5734 = vrot.lane.b32.xlu0 %v19545_v52, %s17989_s12  ;;  %v5694_v44 = vsel %vm23249_vm11, 0.0, %v19558_v58 }
 0x76c   : > { %v19560_v63 = vpop.permute.xlu1 %17522  ;;  %v19579_v62 = vsel %vm23249_vm11, %v17509_v30, %v17510_v14 }
 0x76d   : > { %v17518_v11 = vpop.permute.xlu0 %17517  ;;  %v19565_v57 = vunpack.i.l.bf16 %v19560_v63 }
 0x76e   : > { %v17520_v9 = vunpack.i.h.bf16 %v17518_v11  ;;  %v17519_v50 = vunpack.i.l.bf16 %v17518_v11  ;;  %5947 = vrot.lane.b32.xlu1 %v19538_v54, %s17990_s13 }
 0x76f   : > { %5736 = vrot.lane.b32.xlu0 %v19562_v49, %s17989_s12 }
 0x770   : > { %v19574_v34 = vsel %vm23249_vm11, %v17519_v50, %v17520_v9  ;;  %v19576_v43 = vpop.permute.xlu1 %17532 }
 0x771   : > { %v19581_v61 = vpop.permute.xlu0 %17527  ;;  %v19594_v14 = vunpack.i.l.bf16 %v19576_v43 }
 0x772   : > { %6082 = vrot.lane.b32.xlu1 %v19538_v54, %s17991_s14  ;;  %v17530_v28 = vunpack.i.h.bf16 %v19581_v61  ;;  %v17529_v47 = vunpack.i.l.bf16 %v19581_v61 }
 0x773   : > { %5951 = vrot.lane.b32.xlu0 %v19545_v52, %s17990_s13 }
 0x774   : > { %v19591_v56 = vpop.permute.xlu1 %17542  ;;  %v19612_v55 = vsel %vm23249_vm11, %v17529_v47, %v17530_v28  ;;  %v19629_v28 = vpack.c.bf16 %v5653_v51, %v5650_v41  ;;  %v17525_v41 = vunpack.i.h.bf16 %v19560_v63  ;;  %v17515_v51 = vunpack.i.h.bf16 %v19540_v3 }
 0x775   : > { %v19596_v11 = vpop.permute.xlu0 %17537  ;;  %v19599_v9 = vunpack.i.l.bf16 %v19591_v56  ;;  %v5701_v3 = vsel %vm23319_vm8, %v19574_v34, 0.0  ;;  %vm23248_vm8 = vcmask 392192  }
 0x776   : > { %v17540_v24 = vunpack.i.h.bf16 %v19596_v11  ;;  %v17539_v23 = vunpack.i.l.bf16 %v19596_v11  ;;  %6217 = vrot.lane.b32.xlu1 %v19538_v54, %s17992_s15  ;;  %v5660_v48 = vsel %vm23249_vm11, %v17525_v41, %v17519_v50  ;;  %v5657_v63 = vsel %vm23249_vm11, %v17515_v51, %v17509_v30 }
 0x777   : > { %5953 = vrot.lane.b32.xlu0 %v19562_v49, %s17990_s13  ;;  %v19661_v31 = vpack.c.bf16 %v5660_v48, %v5657_v63  ;;  %v5700_v50 = vsel %vm23320_vm9, %v19579_v62, 0.0  ;;  %v5659_v30 = vsel %vm23249_vm11, %v19565_v57, %v17525_v41  ;;  %v5697_v41 = vsel %vm23249_vm11, 0.0, %v19599_v9 }
 0x778   : > { %v19617_v53 = vsel %vm23249_vm11, %v17539_v23, %v17540_v24  ;;  %v5695_v24 = vsel %vm23249_vm11, 0.0, %v19565_v57  ;;  %v19671_v39 = vpack.c.bf16 %v5701_v3, %v5700_v50  ;;  %v17545_v63 = vunpack.i.h.bf16 %v19591_v56 }
 0x779   : > { %v19659_v32 = vpack.c.bf16 %v5695_v24, %v5694_v44  ;;  %v5656_v24 = vsel %vm23249_vm11, %v19558_v58, %v17515_v51  ;;  %v5696_v51 = vsel %vm23249_vm11, 0.0, %v19594_v14  ;;  %v17535_v3 = vunpack.i.h.bf16 %v19576_v43 }
 0x77a   : > { %6352 = vrot.lane.b32.xlu1 %v19538_v54, %s17993_s16  ;;  %v19689_v48 = vpack.c.bf16 %v5659_v30, %v5656_v24  ;;  %v19711_v44 = vpack.c.bf16 %v5697_v41, %v5696_v51  ;;  %v5665_v50 = vsel %vm23249_vm11, %v19599_v9, %v17545_v63  ;;  %v5666_v30 = vsel %vm23249_vm11, %v17545_v63, %v17539_v23 }
 0x77b   : > { %6086 = vrot.lane.b32.xlu0 %v19545_v52, %s17991_s14  ;;  %v5662_v56 = vsel %vm23249_vm11, %v19594_v14, %v17535_v3  ;;  %v5663_v43 = vsel %vm23249_vm11, %v17535_v3, %v17529_v47  ;;  %v5703_v23 = vsel %vm23321_vm10, %v19617_v53, 0.0  ;;  %v5702_v11 = vsel %vm23318_vm1, %v19612_v55, 0.0 }
 0x77c   : > { %v19741_v24 = vpack.c.bf16 %v5665_v50, %v5662_v56  ;;  %v19743_v41 = vpack.c.bf16 %v5666_v30, %v5663_v43  ;;  %v19753_v51 = vpack.c.bf16 %v5703_v23, %v5702_v11  ;;  %vm23329_vm9 = vcmask 752640  }
 0x77d   : > { %vm23330_vm10 = vmmov %vm23329_vm9 }
 0x77e   : > { %5732 = vrot.lane.b32.xlu1 %v19629_v28, %s17989_s12  ;;  %vm23331_vm1 = vmmov %vm23329_vm9 }
 0x77f   : > { %6088 = vrot.lane.b32.xlu0 %v19562_v49, %s17991_s14  ;;  %vm23334_vm4 = vmmov %vm23331_vm1 }
 0x782   : > { %5949 = vrot.lane.b32.xlu1 %v19629_v28, %s17990_s13 }
 0x783   : > { %6221 = vrot.lane.b32.xlu0 %v19545_v52, %s17992_s15 }
 0x786   : > { %6084 = vrot.lane.b32.xlu1 %v19629_v28, %s17991_s14 }
 0x787   : > { %6223 = vrot.lane.b32.xlu0 %v19562_v49, %s17992_s15 }
 0x78a   : > { %6219 = vrot.lane.b32.xlu1 %v19629_v28, %s17992_s15 }
 0x78b   : > { %6356 = vrot.lane.b32.xlu0 %v19545_v52, %s17993_s16 }
 0x78e   : > { %6354 = vrot.lane.b32.xlu1 %v19629_v28, %s17993_s16 }
 0x78f   : > { %6358 = vrot.lane.b32.xlu0 %v19562_v49, %s17993_s16 }
 0x792   : > { %5738 = vrot.lane.b32.xlu1 %v19659_v32, %s17989_s12 }
 0x793   : > { %5742 = vrot.lane.b32.xlu0 %v19661_v31, %s17989_s12 }
 0x796   : > { %5955 = vrot.lane.b32.xlu1 %v19659_v32, %s17990_s13 }
 0x797   : > { %5744 = vrot.lane.b32.xlu0 %v19671_v39, %s17989_s12 }
 0x79a   : > { %6090 = vrot.lane.b32.xlu1 %v19659_v32, %s17991_s14 }
 0x79b   : > { %5959 = vrot.lane.b32.xlu0 %v19661_v31, %s17990_s13 }
 0x79e   : > { %6225 = vrot.lane.b32.xlu1 %v19659_v32, %s17992_s15 }
 0x79f   : > { %5961 = vrot.lane.b32.xlu0 %v19671_v39, %s17990_s13 }
 0x7a2   : > { %5740 = vrot.lane.b32.xlu1 %v19689_v48, %s17989_s12 }
 0x7a3   : > { %6094 = vrot.lane.b32.xlu0 %v19661_v31, %s17991_s14 }
 0x7a6   : > { %5957 = vrot.lane.b32.xlu1 %v19689_v48, %s17990_s13 }
 0x7a7   : > { %6096 = vrot.lane.b32.xlu0 %v19671_v39, %s17991_s14 }
 0x7aa   : > { %6092 = vrot.lane.b32.xlu1 %v19689_v48, %s17991_s14 }
 0x7ab   : > { %6229 = vrot.lane.b32.xlu0 %v19661_v31, %s17992_s15 }
 0x7ae   : > { %6227 = vrot.lane.b32.xlu1 %v19689_v48, %s17992_s15 }
 0x7af   : > { %6231 = vrot.lane.b32.xlu0 %v19671_v39, %s17992_s15 }
 0x7b2   : > { %5746 = vrot.lane.b32.xlu1 %v19711_v44, %s17989_s12 }
 0x7b3   : > { %6364 = vrot.lane.b32.xlu0 %v19661_v31, %s17993_s16 }
 0x7b6   : > { %5963 = vrot.lane.b32.xlu1 %v19711_v44, %s17990_s13 }
 0x7b7   : > { %6366 = vrot.lane.b32.xlu0 %v19671_v39, %s17993_s16 }
 0x7ba   : > { %6098 = vrot.lane.b32.xlu1 %v19711_v44, %s17991_s14 }
 0x7bb   : > { %6491 = vrot.lane.b32.xlu0 %v19545_v52, %s23256_s17 }
 0x7be   : > { %6233 = vrot.lane.b32.xlu1 %v19711_v44, %s17992_s15 }
 0x7bf   : > { %6493 = vrot.lane.b32.xlu0 %v19562_v49, %s23256_s17 }
 0x7c2   : > { %5748 = vrot.lane.b32.xlu1 %v19741_v24, %s17989_s12 }
 0x7c3   : > { %5750 = vrot.lane.b32.xlu0 %v19743_v41, %s17989_s12 }
 0x7c6   : > { %6362 = vrot.lane.b32.xlu1 %v19689_v48, %s17993_s16 }
 0x7c7   : > { %5752 = vrot.lane.b32.xlu0 %v19753_v51, %s17989_s12 }
 0x7ca   : > { %6360 = vrot.lane.b32.xlu1 %v19659_v32, %s17993_s16 }
 0x7cb   : > { %6499 = vrot.lane.b32.xlu0 %v19661_v31, %s23256_s17 }
 0x7ce   : > { %6368 = vrot.lane.b32.xlu1 %v19711_v44, %s17993_s16 }
 0x7cf   : > { %6501 = vrot.lane.b32.xlu0 %v19671_v39, %s23256_s17 }
 0x7d2   : > { %6489 = vrot.lane.b32.xlu1 %v19629_v28, %s23256_s17 }
 0x7d3   : > { %5967 = vrot.lane.b32.xlu0 %v19743_v41, %s17990_s13 }
 0x7d6   : > { %6487 = vrot.lane.b32.xlu1 %v19538_v54, %s23256_s17 }
 0x7d7   : > { %5969 = vrot.lane.b32.xlu0 %v19753_v51, %s17990_s13 }
 0x7da   : > { %5965 = vrot.lane.b32.xlu1 %v19741_v24, %s17990_s13 }
 0x7db   : > { %6626 = vrot.lane.b32.xlu0 %v19545_v52, %s23252_s18 }
 0x7dc   : > { %v5731_v61 = vpop.permute.xlu1 %5730 }
 0x7dd   : > { %v5735_v47 = vpop.permute.xlu0 %5734 }
 0x7de   : > { %6497 = vrot.lane.b32.xlu1 %v19689_v48, %s23256_s17 }
 0x7df   : > { %6102 = vrot.lane.b32.xlu0 %v19743_v41, %s17991_s14 }
 0x7e0   : > { %v19783_v63 = vpop.permute.xlu1 %5947 }
 0x7e1   : > { %v5737_v3 = vpop.permute.xlu0 %5736 }
 0x7e2   : > { %5820 = vmatprep.subr.bf16.mxu1 %v5737_v3  ;;  %v5756_v50 = vsel %vm383_vm2, %v5735_v47, %v5737_v3  ;;  %6495 = vrot.lane.b32.xlu1 %v19659_v32, %s23256_s17 }
 0x7e3   : > { %6104 = vrot.lane.b32.xlu0 %v19753_v51, %s17991_s14  ;;  %5821 = vmatpush1.bf16.msra.mxu1 %v5756_v50 }
 0x7e4   : > { %v19790_v30 = vpop.permute.xlu1 %6082 }
 0x7e5   : > { %v19792_v56 = vpop.permute.xlu0 %5951 }
 0x7e6   : > { %6100 = vrot.lane.b32.xlu1 %v19741_v24, %s17991_s14 }
 0x7e7   : > { %6628 = vrot.lane.b32.xlu0 %v19562_v49, %s23252_s18 }
 0x7e8   : > { %v19798_v43 = vpop.permute.xlu1 %6217 }
 0x7e9   : > { %v19800_v23 = vpop.permute.xlu0 %5953 }
 0x7ea   : > { %6503 = vrot.lane.b32.xlu1 %v19711_v44, %s23256_s17 }
 0x7eb   : > { %6634 = vrot.lane.b32.xlu0 %v19661_v31, %s23252_s18 }
 0x7ec   : > { %v19806_v11 = vpop.permute.xlu1 %6352 }
 0x7ed   : > { %v19808_v3 = vpop.permute.xlu0 %6086 }
 0x7ee   : > { %6624 = vrot.lane.b32.xlu1 %v19629_v28, %s23252_s18 }
 0x7ef   : > { %6237 = vrot.lane.b32.xlu0 %v19743_v41, %s17992_s15 }
 0x7f0   : > { %v5733_v50 = vpop.permute.xlu1 %5732 }
 0x7f1   : > { %v19814_v22 = vpop.permute.xlu0 %6088  ;;  %v5755_v37 = vsel %vm383_vm2, %v5733_v50, %v5735_v47  ;;  %v5754_v4 = vsel %vm383_vm2, %v5731_v61, %v5733_v50 }
 0x7f2   : > { %6235 = vrot.lane.b32.xlu1 %v19741_v24, %s17992_s15  ;;  %5779 = vmatprep.subr.bf16.mxu0 %v5755_v37 }
 0x7f3   : > { %6239 = vrot.lane.b32.xlu0 %v19753_v51, %s17992_s15  ;;  %5780 = vmatpush1.bf16.msra.mxu0 %v5754_v4 }
 0x7f4   : > { %v19822_v5 = vpop.permute.xlu1 %5949 }
 0x7f5   : > { %v19824_v21 = vpop.permute.xlu0 %6221 }
 0x7f6   : > { %6622 = vrot.lane.b32.xlu1 %v19538_v54, %s23252_s18 }
 0x7f7   : > { %6636 = vrot.lane.b32.xlu0 %v19671_v39, %s23252_s18 }
 0x7f8   : > { %v19830_v47 = vpop.permute.xlu1 %6084 }
 0x7f9   : > { %v19832_v61 = vpop.permute.xlu0 %6223 }
 0x7fa   : > { %6632 = vrot.lane.b32.xlu1 %v19689_v48, %s23252_s18 }
 0x7fb   : > { %6372 = vrot.lane.b32.xlu0 %v19743_v41, %s17993_s16 }
 0x7fc   : > { %v19838_v4 = vpop.permute.xlu1 %6219 }
 0x7fd   : > { %v19840_v37 = vpop.permute.xlu0 %6356 }
 0x7fe   : > { %6370 = vrot.lane.b32.xlu1 %v19741_v24, %s17993_s16 }
 0x7ff   : > { %6374 = vrot.lane.b32.xlu0 %v19753_v51, %s17993_s16 }
 0x800   : > { %v19846_v50 = vpop.permute.xlu1 %6354 }
 0x801   : > { %v19848_v0 = vpop.permute.xlu0 %6358 }
 0x802   : > { %6630 = vrot.lane.b32.xlu1 %v19659_v32, %s23252_s18 }
 0x803   : > { %6761 = vrot.lane.b32.xlu0 %v19545_v52, %s23250_s19 }
 0x804   : > { %v5739_v8 = vpop.permute.xlu1 %5738 }
 0x805   : > { %v5743_v35 = vpop.permute.xlu0 %5742 }
 0x806   : > { %6638 = vrot.lane.b32.xlu1 %v19711_v44, %s23252_s18 }
 0x807   : > { %6763 = vrot.lane.b32.xlu0 %v19562_v49, %s23250_s19 }
 0x808   : > { %v19858_v36 = vpop.permute.xlu1 %5955 }
 0x809   : > { %v5745_v17 = vpop.permute.xlu0 %5744 }
 0x80a   : > { %5822 = vmatprep.subr.bf16.mxu1 %v5745_v17  ;;  %v5759_v10 = vsel %vm383_vm2, %v5743_v35, %v5745_v17  ;;  %6505 = vrot.lane.b32.xlu1 %v19741_v24, %s23256_s17 }
 0x80b   : > { %6507 = vrot.lane.b32.xlu0 %v19743_v41, %s23256_s17  ;;  %5823 = vmatpush1.bf16.msra.mxu1 %v5759_v10 }
 0x80c   : > { %v19865_v2 = vpop.permute.xlu1 %6090 }
 0x80d   : > { %v19867_v59 = vpop.permute.xlu0 %5959 }
 0x80e   : > { %6759 = vrot.lane.b32.xlu1 %v19629_v28, %s23250_s19 }
 0x80f   : > { %6509 = vrot.lane.b32.xlu0 %v19753_v51, %s23256_s17 }
 0x810   : > { %v19873_v49 = vpop.permute.xlu1 %6225 }
 0x811   : > { %v19875_v17 = vpop.permute.xlu0 %5961 }
 0x812   : > { %6757 = vrot.lane.b32.xlu1 %v19538_v54, %s23250_s19 }
 0x813   : > { %6769 = vrot.lane.b32.xlu0 %v19661_v31, %s23250_s19 }
 0x814   : > { %v5741_v10 = vpop.permute.xlu1 %5740 }
 0x815   : > { %v19881_v60 = vpop.permute.xlu0 %6094  ;;  %v5758_v20 = vsel %vm383_vm2, %v5741_v10, %v5743_v35  ;;  %v5757_v18 = vsel %vm383_vm2, %v5739_v8, %v5741_v10 }
 0x816   : > { %6640 = vrot.lane.b32.xlu1 %v19741_v24, %s23252_s18  ;;  %5781 = vmatprep.subr.bf16.mxu0 %v5758_v20 }
 0x817   : > { %6642 = vrot.lane.b32.xlu0 %v19743_v41, %s23252_s18  ;;  %5782 = vmatpush1.bf16.msra.mxu0 %v5757_v18  ;;  %v18001_v18 = vmov 3  }
 0x818   : > { %v19889_v42 = vpop.permute.xlu1 %5957  ;;  %17546 = vset.pattern.permute.xlu1 %v18001_v18 }
 0x819   : > { %v19891_v54 = vpop.permute.xlu0 %6096 }
 0x81a   : > { %6767 = vrot.lane.b32.xlu1 %v19689_v48, %s23250_s19 }
 0x81b   : > { %6644 = vrot.lane.b32.xlu0 %v19753_v51, %s23252_s18 }
 0x81c   : > { %v19897_v35 = vpop.permute.xlu1 %6092 }
 0x81d   : > { %v19899_v8 = vpop.permute.xlu0 %6229 }
 0x81e   : > { %6765 = vrot.lane.b32.xlu1 %v19659_v32, %s23250_s19  ;;  %v6891_v32 = vld [vmem:[%s23189_s2] sm:$0xf] }
 0x81f   : > { %6771 = vrot.lane.b32.xlu0 %v19671_v39, %s23250_s19 }
 0x820   : > { %v19905_v20 = vpop.permute.xlu1 %6227 }
 0x821   : > { %v19907_v10 = vpop.permute.xlu0 %6231 }
 0x822   : > { %6775 = vrot.lane.b32.xlu1 %v19741_v24, %s23250_s19 }
 0x823   : > { %6777 = vrot.lane.b32.xlu0 %v19743_v41, %s23250_s19 }
 0x824   : > { %v5747_v40 = vpop.permute.xlu1 %5746 }
 0x825   : > { %v19913_v33 = vpop.permute.xlu0 %6364 }
 0x826   : > { %6773 = vrot.lane.b32.xlu1 %v19711_v44, %s23250_s19 }
 0x827   : > { %6779 = vrot.lane.b32.xlu0 %v19753_v51, %s23250_s19 }
 0x828   : > { %v19922_v39 = vpop.permute.xlu1 %5963 }
 0x829   : > { %v19924_v18 = vpop.permute.xlu0 %6366 }
 0x82a   : > { %6894 = vperm.xlu1 %17546, %v6891_v32   ;;  %v5717_v32 = vld [vmem:[%s23188_s1 + $0x1fc] sm:$0x3] }
 0x82c   : > { %v19926_v29 = vpop.permute.xlu1 %6098 }
 0x82d   : > { %v19928_v38 = vpop.permute.xlu0 %6491 }
 0x830   : > { %v19930_v26 = vpop.permute.xlu1 %6233 }
 0x831   : > { %v19932_v25 = vpop.permute.xlu0 %6493 }
 0x834   : > { %v5749_v44 = vpop.permute.xlu1 %5748 }
 0x835   : > { %v5751_v27 = vpop.permute.xlu0 %5750  ;;  %v5760_v51 = vsel %vm383_vm2, %v5747_v40, %v5749_v44  ;;  %v23323_v40 = vpack.c.bf16 %v19535_v46, %v19543_v7  ;;  %v23327_v46 = vpack.c.bf16 %v19599_v9, %v19594_v14  ;;  %v23328_v7 = vpack.c.bf16 %v19617_v53, %v19612_v55 }
 0x836   : > { %v5761_v15 = vsel %vm383_vm2, %v5749_v44, %v5751_v27  ;;  %v5971_v53 = vsel %vm672_vm3, %v19783_v63, %v19822_v5  ;;  %v5975_v55 = vsel %vm672_vm3, %v19889_v42, %v19867_v59  ;;  %v5973_v14 = vsel %vm672_vm3, %v19792_v56, %v19800_v23 }
 0x837   : > { %5783 = vmatprep.subr.bf16.mxu0 %v5761_v15  ;;  %v23322_v15 = vpack.c.bf16 %v19525_v45, %v19522_v6  ;;  %v5976_v63 = vsel %vm672_vm3, %v19867_v59, %v19875_v17  ;;  %v6106_v59 = vsel %vm838_vm5, %v19790_v30, %v19830_v47  ;;  %v6109_v30 = vsel %vm838_vm5, %v19865_v2, %v19897_v35 }
 0x838   : > { %5784 = vmatpush1.bf16.msra.mxu0 %v5760_v51  ;;  %v19936_v12 = vpop.permute.xlu1 %6362  ;;  %v6242_v2 = vsel %vm23254_vm6, %v19838_v4, %v19824_v21 }
 0x839   : > { %v5753_v19 = vpop.permute.xlu0 %5752  ;;  %5864 = vmatprep.subr.bf16.mxu0 %v19629_v28 }
 0x83a   : > { %5824 = vmatprep.subr.bf16.mxu1 %v5753_v19  ;;  %v5762_v16 = vsel %vm383_vm2, %v5751_v27, %v5753_v19  ;;  %v23325_v19 = vpack.c.bf16 %v19565_v57, %v19558_v58  ;;  %v23326_v27 = vpack.c.bf16 %v19574_v34, %v19579_v62 }
 0x83b   : > { %5825 = vmatpush1.bf16.msra.mxu1 %v5762_v16  ;;  %15733 = vmatmul.mubr.msk.bf16.vlgmr.msra.gmra.mrb[28].mxu0 %vm23248_vm8, %v5717_v32  ;;  %v23324_v16 = vmov 0  }
 0x83c   : > { %15739 = vmatpush1.bf16.msk.msra.mxu0 %vm18669_vm12, %v23322_v15  ;;  %15753 = vmatprep.subr.msk.bf16.mxu1 %vm18653_vm13, %v23323_v40  ;;  %v19954_v44 = vpop.permute.xlu1 %6360  ;;  %v6108_v15 = vsel %vm838_vm5, %v19808_v3, %v19814_v22 }
 0x83d   : > { %v19956_v28 = vpop.permute.xlu0 %6499  ;;  %5866 = vmatprep.subr.bf16.mxu0 %v19689_v48  ;;  %5896 = vmatprep.mubr.bf16.mxu0 %v23324_v16 }
 0x83e   : > { %15734 = vmatmul.mubr.msk.bf16.vlgmr.msra.gmra.mrb[28].mxu1 %vm23248_vm8, %v5717_v32 }
 0x83f   : > { %5906 = vmatpush1.bf16.msra.mxu1 %v19545_v52  ;;  %5937 = vmatprep.mubr.bf16.mxu1 %v23324_v16  ;;  %v5972_v52 = vsel %vm672_vm3, %v19822_v5, %v19792_v56  ;;  %v5974_v5 = vsel %vm672_vm3, %v19858_v36, %v19889_v42  ;;  %v6107_v36 = vsel %vm838_vm5, %v19830_v47, %v19808_v3  ;;  %v5946_v56 = vld [vmem:[%s23188_s1 + $0x200] sm:$0x3] }
 0x840   : > { %15744 = vmatpush1.bf16.msk.msra.mxu0 %vm18669_vm12, %v23325_v19  ;;  %15756 = vmatprep.subr.msk.bf16.mxu1 %vm18653_vm13, %v23326_v27  ;;  %v19973_v6 = vpop.permute.xlu1 %6368 }
 0x841   : > { %v19975_v45 = vpop.permute.xlu0 %6501  ;;  %5868 = vmatprep.subr.bf16.mxu0 %v19741_v24 }
 0x843   : > { %5908 = vmatpush1.bf16.msra.mxu1 %v19661_v31  ;;  %v5716_v31 = vld [vmem:[%s23188_s1 + $0x1f8] sm:$0x3] }
 0x844   : > { %15749 = vmatpush1.bf16.msk.msra.mxu0 %vm18669_vm12, %v23327_v46  ;;  %15759 = vmatprep.subr.msk.bf16.mxu1 %vm18653_vm13, %v23328_v7  ;;  %v19992_v58 = vpop.permute.xlu1 %6489 }
 0x845   : > { %v5968_v57 = vpop.permute.xlu0 %5967  ;;  %5995 = vmatprep.subr.bf16.mxu0 %v5972_v52 }
 0x847   : > { %15750 = vmatmul.mubr.msk.bf16.vlgmr.msra.gmra.mrb[32].mxu0 %vm23248_vm8, %v5716_v31  ;;  %5910 = vmatpush1.bf16.msra.mxu1 %v19743_v41 }
 0x848   : > { %5996 = vmatpush1.bf16.msra.mxu0 %v5971_v53  ;;  %6036 = vmatprep.subr.bf16.mxu1 %v19800_v23  ;;  %v20006_v34 = vpop.permute.xlu1 %6487 }
 0x849   : > { %v5970_v62 = vpop.permute.xlu0 %5969  ;;  %5997 = vmatprep.subr.bf16.mxu0 %v5975_v55  ;;  %6027 = vmatprep.mubr.bf16.mxu0 %v23324_v16 }
 0x84a   : > { %15760 = vmatmul.mubr.msk.bf16.vlgmr.msra.gmra.mrb[32].mxu1 %vm23248_vm8, %v5716_v31  ;;  %v6243_v31 = vsel %vm23254_vm6, %v19824_v21, %v19832_v61  ;;  %v6246_v21 = vsel %vm23254_vm6, %v19899_v8, %v19907_v10 }
 0x84b   : > { %6037 = vmatpush1.bf16.msra.mxu1 %v5973_v14  ;;  %6068 = vmatprep.mubr.bf16.mxu1 %v23324_v16 }
 0x84c   : > { %5998 = vmatpush1.bf16.msra.mxu0 %v5974_v5  ;;  %6038 = vmatprep.subr.bf16.mxu1 %v19875_v17  ;;  %v5966_v9 = vpop.permute.xlu1 %5965  ;;  %v6110_v17 = vsel %vm838_vm5, %v19897_v35, %v19881_v60  ;;  %v6081_v35 = vld [vmem:[%s23188_s1 + $0x204] sm:$0x3] }
 0x84d   : > { %v20018_v48 = vpop.permute.xlu0 %6626  ;;  %v5978_v24 = vsel %vm672_vm3, %v5966_v9, %v5968_v57  ;;  %v5977_v41 = vsel %vm672_vm3, %v19922_v39, %v5966_v9  ;;  %v5979_v39 = vsel %vm672_vm3, %v5968_v57, %v5970_v62  ;;  %v6378_v9 = vsel %vm23247_vm7, %v19840_v37, %v19848_v0 }
 0x84e   : > { %5999 = vmatprep.subr.bf16.mxu0 %v5978_v24 }
 0x84f   : > { %6039 = vmatpush1.bf16.msra.mxu1 %v5976_v63 }
 0x850   : > { %6000 = vmatpush1.bf16.msra.mxu0 %v5977_v41  ;;  %6040 = vmatprep.subr.bf16.mxu1 %v5970_v62  ;;  %v20029_v42 = vpop.permute.xlu1 %6497 }
 0x851   : > { %v6103_v23 = vpop.permute.xlu0 %6102  ;;  %6130 = vmatprep.subr.bf16.mxu0 %v6107_v36 }
 0x853   : > { %15761 = vmatmul.mubr.msk.bf16.vlgmr.msra.gmra.mrb[36].mxu0 %vm23248_vm8, %v5946_v56  ;;  %6041 = vmatpush1.bf16.msra.mxu1 %v5979_v39 }
 0x854   : > { %6131 = vmatpush1.bf16.msra.mxu0 %v6106_v59  ;;  %6171 = vmatprep.subr.bf16.mxu1 %v19814_v22  ;;  %v20043_v51 = vpop.permute.xlu1 %6495  ;;  %v6111_v22 = vsel %vm838_vm5, %v19881_v60, %v19891_v54  ;;  %v6241_v60 = vsel %vm23254_vm6, %v19798_v43, %v19838_v4  ;;  %v6244_v43 = vsel %vm23254_vm6, %v19873_v49, %v19905_v20 }
 0x855   : > { %v6105_v32 = vpop.permute.xlu0 %6104  ;;  %6132 = vmatprep.subr.bf16.mxu0 %v6110_v17  ;;  %6162 = vmatprep.mubr.bf16.mxu0 %v23324_v16 }
 0x856   : > { %15762 = vmatmul.mubr.msk.bf16.vlgmr.msra.gmra.mrb[36].mxu1 %vm23248_vm8, %v5946_v56 }
 0x857   : > { %6172 = vmatpush1.bf16.msra.mxu1 %v6108_v15  ;;  %6203 = vmatprep.mubr.bf16.mxu1 %v23324_v16 }
 0x858   : > { %6133 = vmatpush1.bf16.msra.mxu0 %v6109_v30  ;;  %6173 = vmatprep.subr.bf16.mxu1 %v19891_v54  ;;  %v6101_v47 = vpop.permute.xlu1 %6100  ;;  %v6245_v54 = vsel %vm23254_vm6, %v19905_v20, %v19899_v8  ;;  %v6216_v20 = vld [vmem:[%s23188_s1 + $0x208] sm:$0x3]  ;;  %v6376_v8 = vsel %vm23247_vm7, %v19806_v11, %v19846_v50  ;;  %v6379_v11 = vsel %vm23247_vm7, %v19954_v44, %v19936_v12  ;;  %v6351_v44 = vld [vmem:[%s23188_s1 + $0x20c] sm:$0x3] }
 0x859   : > { %v20055_v40 = vpop.permute.xlu0 %6628  ;;  %v6113_v19 = vsel %vm838_vm5, %v6101_v47, %v6103_v23  ;;  %v6112_v27 = vsel %vm838_vm5, %v19926_v29, %v6101_v47  ;;  %v6114_v29 = vsel %vm838_vm5, %v6103_v23, %v6105_v32 }
 0x85a   : > { %6134 = vmatprep.subr.bf16.mxu0 %v6113_v19 }
 0x85b   : > { %6174 = vmatpush1.bf16.msra.mxu1 %v6111_v22 }
 0x85c   : > { %6135 = vmatpush1.bf16.msra.mxu0 %v6112_v27  ;;  %6175 = vmatprep.subr.bf16.mxu1 %v6105_v32  ;;  %v20066_v3 = vpop.permute.xlu1 %6503 }
 0x85d   : > { %v20071_v46 = vpop.permute.xlu0 %6634  ;;  %6265 = vmatprep.subr.bf16.mxu0 %v6242_v2 }
 0x85f   : > { %15763 = vmatmul.mubr.msk.bf16.vlgmr.msra.gmra.mrb[40].mxu0 %vm23248_vm8, %v6081_v35  ;;  %6176 = vmatpush1.bf16.msra.mxu1 %v6114_v29 }
 0x860   : > { %6266 = vmatpush1.bf16.msra.mxu0 %v6241_v60  ;;  %6306 = vmatprep.subr.bf16.mxu1 %v19832_v61  ;;  %v20082_v7 = vpop.permute.xlu1 %6624  ;;  %v6377_v61 = vsel %vm23247_vm7, %v19846_v50, %v19840_v37 }
 0x861   : > { %v6238_v52 = vpop.permute.xlu0 %6237  ;;  %6267 = vmatprep.subr.bf16.mxu0 %v6245_v54  ;;  %6297 = vmatprep.mubr.bf16.mxu0 %v23324_v16  ;;  %v6621_v54 = vld [vmem:[%s23188_s1 + $0x214] sm:$0x3] }
 0x862   : > { %15764 = vmatmul.mubr.msk.bf16.vlgmr.msra.gmra.mrb[40].mxu1 %vm23248_vm8, %v6081_v35 }
 0x863   : > { %6307 = vmatpush1.bf16.msra.mxu1 %v6243_v31  ;;  %6338 = vmatprep.mubr.bf16.mxu1 %v23324_v16 }
 0x864   : > { %6268 = vmatpush1.bf16.msra.mxu0 %v6244_v43  ;;  %6308 = vmatprep.subr.bf16.mxu1 %v19907_v10  ;;  %v6236_v4 = vpop.permute.xlu1 %6235  ;;  %v6380_v10 = vsel %vm23247_vm7, %v19936_v12, %v19913_v33  ;;  %v6512_v12 = vsel %vm23329_vm9, %v19992_v58, %v19928_v38  ;;  %vm23332_vm9 = vmmov %vm23331_vm1 }
 0x865   : > { %v6240_v57 = vpop.permute.xlu0 %6239  ;;  %v6248_v53 = vsel %vm23254_vm6, %v6236_v4, %v6238_v52  ;;  %v6247_v55 = vsel %vm23254_vm6, %v19930_v26, %v6236_v4 }
 0x866   : > { %6269 = vmatprep.subr.bf16.mxu0 %v6248_v53  ;;  %v6249_v26 = vsel %vm23254_vm6, %v6238_v52, %v6240_v57 }
 0x867   : > { %6309 = vmatpush1.bf16.msra.mxu1 %v6246_v21 }
 0x868   : > { %6270 = vmatpush1.bf16.msra.mxu0 %v6247_v55  ;;  %6310 = vmatprep.subr.bf16.mxu1 %v6240_v57  ;;  %v20103_v49 = vpop.permute.xlu1 %6622 }
 0x869   : > { %v20108_v62 = vpop.permute.xlu0 %6636  ;;  %6400 = vmatprep.subr.bf16.mxu0 %v6377_v61 }
 0x86b   : > { %15765 = vmatmul.mubr.msk.bf16.vlgmr.msra.gmra.mrb[44].mxu0 %vm23248_vm8, %v6216_v20  ;;  %6311 = vmatpush1.bf16.msra.mxu1 %v6249_v26 }
 0x86c   : > { %6401 = vmatpush1.bf16.msra.mxu0 %v6376_v8  ;;  %6441 = vmatprep.subr.bf16.mxu1 %v19848_v0  ;;  %v20119_v14 = vpop.permute.xlu1 %6632  ;;  %v6381_v0 = vsel %vm23247_vm7, %v19913_v33, %v19924_v18  ;;  %v6511_v33 = vsel %vm23330_vm10, %v20006_v34, %v19992_v58  ;;  %v6513_v58 = vsel %vm23332_vm9, %v19928_v38, %v19932_v25  ;;  %vm23333_vm10 = vmmov %vm23331_vm1 }
 0x86d   : > { %v6373_v5 = vpop.permute.xlu0 %6372  ;;  %6402 = vmatprep.subr.bf16.mxu0 %v6380_v10  ;;  %6432 = vmatprep.mubr.bf16.mxu0 %v23324_v16  ;;  %v6514_v34 = vsel %vm23333_vm10, %v20043_v51, %v20029_v42  ;;  %vm23335_vm9 = vmmov %vm23331_vm1  ;;  %vm23336_vm10 = vcmask 744448   ;;  %v6486_v51 = vld [vmem:[%s23188_s1 + $0x210] sm:$0x3]  ;;  %v6756_v10 = vld [vmem:[%s23188_s1 + $0x218] sm:$0x3] }
 0x86e   : > { %15766 = vmatmul.mubr.msk.bf16.vlgmr.msra.gmra.mrb[44].mxu1 %vm23248_vm8, %v6216_v20  ;;  %v6647_v38 = vsel %vm23336_vm10, %v20082_v7, %v20018_v48 }
 0x86f   : > { %6442 = vmatpush1.bf16.msra.mxu1 %v6378_v9  ;;  %6473 = vmatprep.mubr.bf16.mxu1 %v23324_v16 }
 0x870   : > { %6403 = vmatpush1.bf16.msra.mxu0 %v6379_v11  ;;  %6443 = vmatprep.subr.bf16.mxu1 %v19924_v18  ;;  %v6371_v50 = vpop.permute.xlu1 %6370  ;;  %v6515_v18 = vsel %vm23331_vm1, %v20029_v42, %v19956_v28 }
 0x871   : > { %v6375_v24 = vpop.permute.xlu0 %6374  ;;  %v6383_v41 = vsel %vm23247_vm7, %v6371_v50, %v6373_v5  ;;  %v6382_v63 = vsel %vm23247_vm7, %v19973_v6, %v6371_v50 }
 0x872   : > { %6404 = vmatprep.subr.bf16.mxu0 %v6383_v41  ;;  %v6384_v6 = vsel %vm23247_vm7, %v6373_v5, %v6375_v24 }
 0x873   : > { %6444 = vmatpush1.bf16.msra.mxu1 %v6381_v0 }
 0x874   : > { %6405 = vmatpush1.bf16.msra.mxu0 %v6382_v63  ;;  %6445 = vmatprep.subr.bf16.mxu1 %v6375_v24  ;;  %v6631_v37 = vpop.permute.xlu1 %6630 }
 0x875   : > { %v20143_v36 = vpop.permute.xlu0 %6761  ;;  %6535 = vmatprep.subr.bf16.mxu0 %v6512_v12 }
 0x877   : > { %15767 = vmatmul.mubr.msk.bf16.vlgmr.msra.gmra.mrb[48].mxu0 %vm23248_vm8, %v6351_v44  ;;  %6446 = vmatpush1.bf16.msra.mxu1 %v6384_v6 }
 0x878   : > { %6536 = vmatpush1.bf16.msra.mxu0 %v6511_v33  ;;  %6576 = vmatprep.subr.bf16.mxu1 %v19932_v25  ;;  %v6639_v56 = vpop.permute.xlu1 %6638  ;;  %v6516_v25 = vsel %vm23335_vm9, %v19956_v28, %v19975_v45 }
 0x879   : > { %v20154_v23 = vpop.permute.xlu0 %6763  ;;  %6537 = vmatprep.subr.bf16.mxu0 %v6515_v18  ;;  %6567 = vmatprep.mubr.bf16.mxu0 %v23324_v16 }
 0x87a   : > { %15768 = vmatmul.mubr.msk.bf16.vlgmr.msra.gmra.mrb[48].mxu1 %vm23248_vm8, %v6351_v44 }
 0x87b   : > { %6577 = vmatpush1.bf16.msra.mxu1 %v6513_v58  ;;  %6608 = vmatprep.mubr.bf16.mxu1 %v23324_v16 }
 0x87c   : > { %6538 = vmatpush1.bf16.msra.mxu0 %v6514_v34  ;;  %6578 = vmatprep.subr.bf16.mxu1 %v19975_v45  ;;  %v6506_v39 = vpop.permute.xlu1 %6505 }
 0x87d   : > { %v6508_v59 = vpop.permute.xlu0 %6507  ;;  %v6517_v17 = vsel %vm23331_vm1, %v20066_v3, %v6506_v39 }
 0x87e   : > { %v6518_v32 = vsel %vm23334_vm4, %v6506_v39, %v6508_v59  ;;  %vm23337_vm4 = vmmov %vm23331_vm1 }
 0x87f   : > { %6539 = vmatprep.subr.bf16.mxu0 %v6518_v32  ;;  %6579 = vmatpush1.bf16.msra.mxu1 %v6516_v25  ;;  %vm23338_vm1 = vmmov %vm23336_vm10 }
 0x880   : > { %6540 = vmatpush1.bf16.msra.mxu0 %v6517_v17  ;;  %v6760_v42 = vpop.permute.xlu1 %6759  ;;  %v6646_v28 = vsel %vm23338_vm1, %v20103_v49, %v20082_v7  ;;  %vm23339_vm9 = vmmov %vm23338_vm1 }
 0x881   : > { %v6510_v15 = vpop.permute.xlu0 %6509  ;;  %6670 = vmatprep.subr.bf16.mxu0 %v6647_v38  ;;  %v6650_v45 = vsel %vm23339_vm9, %v20119_v14, %v20071_v46  ;;  %vm23340_vm10 = vmmov %vm23338_vm1 }
 0x882   : > { %6580 = vmatprep.subr.bf16.mxu1 %v6510_v15  ;;  %v6519_v30 = vsel %vm23337_vm4, %v6508_v59, %v6510_v15  ;;  %v6648_v27 = vsel %vm23340_vm10, %v20018_v48, %v20055_v40  ;;  %vm23341_vm4 = vmmov %vm23338_vm1  ;;  %vm23344_vm10 = vcmask 736256  }
 0x883   : > { %15769 = vmatmul.mubr.msk.bf16.vlgmr.msra.gmra.mrb[52].mxu0 %vm23248_vm8, %v6486_v51  ;;  %6581 = vmatpush1.bf16.msra.mxu1 %v6519_v30  ;;  %v6649_v22 = vsel %vm23341_vm4, %v6631_v37, %v20119_v14  ;;  %vm23342_vm9 = vmmov %vm23338_vm1  ;;  %v6782_v48 = vsel %vm23344_vm10, %v6760_v42, %v20143_v36 }
 0x884   : > { %6671 = vmatpush1.bf16.msra.mxu0 %v6646_v28  ;;  %6711 = vmatprep.subr.bf16.mxu1 %v20055_v40  ;;  %v6758_v47 = vpop.permute.xlu1 %6757  ;;  %vm23343_vm7 = vmmov %vm23338_vm1 }
 0x885   : > { %v6770_v19 = vpop.permute.xlu0 %6769  ;;  %6672 = vmatprep.subr.bf16.mxu0 %v6650_v45  ;;  %6702 = vmatprep.mubr.bf16.mxu0 %v23324_v16  ;;  %v6651_v60 = vsel %vm23343_vm7, %v20071_v46, %v20108_v62  ;;  %vm23345_vm4 = vmmov %vm23338_vm1 }
 0x886   : > { %15770 = vmatmul.mubr.msk.bf16.vlgmr.msra.gmra.mrb[52].mxu1 %vm23248_vm8, %v6486_v51 }
 0x887   : > { %6712 = vmatpush1.bf16.msra.mxu1 %v6648_v27  ;;  %6743 = vmatprep.mubr.bf16.mxu1 %v23324_v16 }
 0x888   : > { %6673 = vmatpush1.bf16.msra.mxu0 %v6649_v22  ;;  %6713 = vmatprep.subr.bf16.mxu1 %v20108_v62  ;;  %v6641_v2 = vpop.permute.xlu1 %6640 }
 0x889   : > { %v6643_v3 = vpop.permute.xlu0 %6642  ;;  %v6652_v35 = vsel %vm23338_vm1, %v6639_v56, %v6641_v2  ;;  %vm23346_vm1 = vmmov %vm23344_vm10 }
 0x88a   : > { %v6653_v29 = vsel %vm23342_vm9, %v6641_v2, %v6643_v3  ;;  %v6781_v31 = vsel %vm23346_vm1, %v6758_v47, %v6760_v42  ;;  %vm23347_vm7 = vmmov %vm23346_vm1 }
 0x88b   : > { %6674 = vmatprep.subr.bf16.mxu0 %v6653_v29  ;;  %6714 = vmatpush1.bf16.msra.mxu1 %v6651_v60  ;;  %vm23348_vm9 = vmmov %vm23346_vm1 }
 0x88c   : > { %6675 = vmatpush1.bf16.msra.mxu0 %v6652_v35  ;;  %v6768_v40 = vpop.permute.xlu1 %6767  ;;  %vm23349_vm10 = vmmov %vm23346_vm1 }
 0x88d   : > { %v6645_v7 = vpop.permute.xlu0 %6644  ;;  %6805 = vmatprep.subr.bf16.mxu0 %v6782_v48  ;;  %v6785_v46 = vsel %vm23347_vm7, %v6768_v40, %v6770_v19  ;;  %v6783_v53 = vsel %vm23349_vm10, %v20143_v36, %v20154_v23  ;;  %vm23351_vm7 = vmmov %vm23346_vm1 }
 0x88e   : > { %6715 = vmatprep.subr.bf16.mxu1 %v6645_v7  ;;  %v6654_v52 = vsel %vm23345_vm4, %v6643_v3, %v6645_v7  ;;  %vm23350_vm4 = vmmov %vm23346_vm1 }
 0x88f   : > { %15771 = vmatmul.mubr.msk.bf16.vlgmr.msra.gmra.mrb[56].mxu0 %vm23248_vm8, %v6621_v54  ;;  %6716 = vmatpush1.bf16.msra.mxu1 %v6654_v52 }
 0x890   : > { %6806 = vmatpush1.bf16.msra.mxu0 %v6781_v31  ;;  %6846 = vmatprep.subr.bf16.mxu1 %v20154_v23  ;;  %v6766_v43 = vpop.permute.xlu1 %6765 }
 0x891   : > { %v6772_v4 = vpop.permute.xlu0 %6771  ;;  %6807 = vmatprep.subr.bf16.mxu0 %v6785_v46  ;;  %v6784_v57 = vsel %vm23348_vm9, %v6766_v43, %v6768_v40  ;;  %6837 = vmatprep.mubr.bf16.mxu0 %v23324_v16  ;;  %vm23352_vm9 = vmmov %vm23346_vm1 }
 0x892   : > { %15772 = vmatmul.mubr.msk.bf16.vlgmr.msra.gmra.mrb[56].mxu1 %vm23248_vm8, %v6621_v54  ;;  %v6786_v49 = vsel %vm23346_vm1, %v6770_v19, %v6772_v4  ;;  %vm23362_vm1 = vcmask 1041408  }
 0x893   : > { %6847 = vmatpush1.bf16.msra.mxu1 %v6783_v53  ;;  %6878 = vmatprep.mubr.bf16.mxu1 %v23324_v16 }
 0x894   : > { %6808 = vmatpush1.bf16.msra.mxu0 %v6784_v57  ;;  %6848 = vmatprep.subr.bf16.mxu1 %v6772_v4  ;;  %v6776_v55 = vpop.permute.xlu1 %6775 }
 0x895   : > { %v6778_v21 = vpop.permute.xlu0 %6777 }
 0x896   : > { %v6788_v61 = vsel %vm23350_vm4, %v6776_v55, %v6778_v21  ;;  %vm23361_vm4 = vcmask 547840  }
 0x897   : > { %6809 = vmatprep.subr.bf16.mxu0 %v6788_v61  ;;  %6849 = vmatpush1.bf16.msra.mxu1 %v6786_v49 }
 0x898   : > { %v6774_v20 = vpop.permute.xlu1 %6773 }
 0x899   : > { %v6780_v62 = vpop.permute.xlu0 %6779  ;;  %v6787_v26 = vsel %vm23351_vm7, %v6774_v20, %v6776_v55  ;;  %vm23363_vm7 = vmmov %vm23362_vm1 }
 0x89a   : > { %6850 = vmatprep.subr.bf16.mxu1 %v6780_v62  ;;  %6810 = vmatpush1.bf16.msra.mxu0 %v6787_v26  ;;  %v6789_v8 = vsel %vm23352_vm9, %v6778_v21, %v6780_v62  ;;  %vm23364_vm9 = vmmov %vm23362_vm1 }
 0x89b   : > { %6851 = vmatpush1.bf16.msra.mxu1 %v6789_v8 }
 0x89d   : > { %15773 = vmatmul.mubr.msk.bf16.vlgmr.msra.gmra.mrb[60].mxu0 %vm23248_vm8, %v6756_v10 }
 0x89e   : > { %15774 = vmatmul.mubr.msk.bf16.vlgmr.msra.gmra.mrb[60].mxu1 %vm23248_vm8, %v6756_v10  ;;  %7050 = vmatprep.mubr.bf16.mxu0 %v23324_v16  ;;  %vm23366_vm8 = vmmov %vm23362_vm1 }
 0x89f   : > { %7113 = vmatprep.mubr.bf16.mxu1 %v23324_v16 }
 0x90e   : > { %v5813_v14 = vpop.f32.mrb[28].mxu0 }
 0x90f   : > { %v5815_v5 = vpop.f32.mrb[29].mxu0 }
 0x910   : > { %v5817_v9 = vpop.f32.mrb[30].mxu0 }
 0x911   : > { %v5818_v11 = vpop.f32.mrb[31].mxu0  ;;  %v5854_v50 = vpop.f32.mrb[28].mxu1 }
 0x912   : > { %v5856_v24 = vpop.f32.mrb[29].mxu1 }
 0x913   : > { %v5858_v41 = vpop.f32.mrb[30].mxu1 }
 0x914   : > { %v5859_v63 = vpop.f32.mrb[31].mxu1 }
 0x91a   : > { %v5898_v0 = vpop.f32.mrb[32].mxu0 }
 0x91b   : > { %v5899_v12 = vadd.f32 %v5898_v0, %v5813_v14  ;;  %v5900_v37 = vpop.f32.mrb[33].mxu0 }
 0x91c   : > { %v5901_v44 = vadd.f32 %v5900_v37, %v5815_v5  ;;  %v5902_v36 = vpop.f32.mrb[34].mxu0 }
 0x91d   : > { %v5939_v6 = vpop.f32.mrb[32].mxu1  ;;  %v5903_v33 = vpop.f32.mrb[35].mxu0 }
 0x91e   : > { %v5940_v18 = vadd.f32 %v5939_v6, %v5854_v50  ;;  %v5941_v56 = vpop.f32.mrb[33].mxu1 }
 0x91f   : > { %v5942_v23 = vadd.f32 %v5941_v56, %v5856_v24  ;;  %v5943_v58 = vpop.f32.mrb[34].mxu1 }
 0x920   : > { %v5944_v34 = vpop.f32.mrb[35].mxu1 }
 0x926   : > { %v6029_v39 = vpop.f32.mrb[36].mxu0 }
 0x927   : > { %v6077_v59 = vadd.f32 %v6029_v39, %v5899_v12  ;;  %v6031_v17 = vpop.f32.mrb[37].mxu0 }
 0x928   : > { %v6078_v32 = vadd.f32 %v6031_v17, %v5901_v44  ;;  %v6033_v25 = vpop.f32.mrb[38].mxu0 }
 0x929   : > { %v6070_v38 = vpop.f32.mrb[36].mxu1  ;;  %v6034_v42 = vpop.f32.mrb[39].mxu0 }
 0x92a   : > { %v6079_v51 = vadd.f32 %v6070_v38, %v5940_v18  ;;  %v6072_v15 = vpop.f32.mrb[37].mxu1 }
 0x92b   : > { %v6080_v30 = vadd.f32 %v6072_v15, %v5942_v23  ;;  %v6074_v28 = vpop.f32.mrb[38].mxu1 }
 0x92c   : > { %v6075_v45 = vpop.f32.mrb[39].mxu1 }
 0x932   : > { %v6164_v47 = vpop.f32.mrb[40].mxu0 }
 0x933   : > { %v6212_v19 = vadd.f32 %v6164_v47, %v6077_v59  ;;  %v6166_v27 = vpop.f32.mrb[41].mxu0  ;;  %v6895_v47 = vpop.permute.xlu1 %6894 }
 0x934   : > { %v6213_v22 = vadd.f32 %v6166_v27, %v6078_v32  ;;  %v6168_v2 = vpop.f32.mrb[42].mxu0 }
 0x935   : > { %v6205_v3 = vpop.f32.mrb[40].mxu1  ;;  %v6169_v35 = vpop.f32.mrb[43].mxu0 }
 0x936   : > { %v6214_v29 = vadd.f32 %v6205_v3, %v6079_v51  ;;  %v6207_v60 = vpop.f32.mrb[41].mxu1 }
 0x937   : > { %v6215_v48 = vadd.f32 %v6207_v60, %v6080_v30  ;;  %v6209_v40 = vpop.f32.mrb[42].mxu1 }
 0x938   : > { %v6210_v54 = vpop.f32.mrb[43].mxu1 }
 0x93e   : > { %v6299_v7 = vpop.f32.mrb[44].mxu0 }
 0x93f   : > { %v6347_v52 = vadd.f32 %v6299_v7, %v6212_v19  ;;  %v6301_v31 = vpop.f32.mrb[45].mxu0 }
 0x940   : > { %v6348_v46 = vadd.f32 %v6301_v31, %v6213_v22  ;;  %v6303_v43 = vpop.f32.mrb[46].mxu0 }
 0x941   : > { %v6340_v4 = vpop.f32.mrb[44].mxu1  ;;  %v6304_v57 = vpop.f32.mrb[47].mxu0 }
 0x942   : > { %v6349_v53 = vadd.f32 %v6340_v4, %v6214_v29  ;;  %v6342_v55 = vpop.f32.mrb[45].mxu1 }
 0x943   : > { %v6350_v21 = vadd.f32 %v6342_v55, %v6215_v48  ;;  %v6344_v61 = vpop.f32.mrb[46].mxu1 }
 0x944   : > { %v6345_v49 = vpop.f32.mrb[47].mxu1 }
 0x94a   : > { %v6434_v20 = vpop.f32.mrb[48].mxu0 }
 0x94b   : > { %v6482_v62 = vadd.f32 %v6434_v20, %v6347_v52  ;;  %v6436_v26 = vpop.f32.mrb[49].mxu0 }
 0x94c   : > { %v6483_v8 = vadd.f32 %v6436_v26, %v6348_v46  ;;  %v6438_v10 = vpop.f32.mrb[50].mxu0 }
 0x94d   : > { %v6475_v14 = vpop.f32.mrb[48].mxu1  ;;  %v6439_v5 = vpop.f32.mrb[51].mxu0 }
 0x94e   : > { %v6484_v9 = vadd.f32 %v6475_v14, %v6349_v53  ;;  %v6477_v11 = vpop.f32.mrb[49].mxu1 }
 0x94f   : > { %v6485_v50 = vadd.f32 %v6477_v11, %v6350_v21  ;;  %v6479_v24 = vpop.f32.mrb[50].mxu1 }
 0x950   : > { %v6480_v41 = vpop.f32.mrb[51].mxu1 }
 0x951   : > { %v23356_v41 = vld [vmem:[#allocation3_spill] sm:$0xff] }
 0x956   : > { %v6569_v63 = vpop.f32.mrb[52].mxu0 }
 0x957   : > { %v6617_v0 = vadd.f32 %v6569_v63, %v6482_v62  ;;  %v6571_v12 = vpop.f32.mrb[53].mxu0 }
 0x958   : > { %v6618_v37 = vadd.f32 %v6571_v12, %v6483_v8  ;;  %v6573_v44 = vpop.f32.mrb[54].mxu0 }
 0x959   : > { %v6610_v36 = vpop.f32.mrb[52].mxu1  ;;  %v6574_v6 = vpop.f32.mrb[55].mxu0 }
 0x95a   : > { %v6619_v33 = vadd.f32 %v6610_v36, %v6484_v9  ;;  %v6612_v18 = vpop.f32.mrb[53].mxu1 }
 0x95b   : > { %v6620_v56 = vadd.f32 %v6612_v18, %v6485_v50  ;;  %v6614_v23 = vpop.f32.mrb[54].mxu1  ;;  %v23354_v50 = vld [vmem:[#allocation6_spill] sm:$0xff] }
 0x95c   : > { %v6615_v58 = vpop.f32.mrb[55].mxu1  ;;  %vm23355_vm10 = vcmp.eq.s32.totalorder %v23354_v50, 1 }
 0x962   : > { %v6704_v34 = vpop.f32.mrb[56].mxu0 }
 0x963   : > { %v6752_v39 = vadd.f32 %v6704_v34, %v6617_v0  ;;  %v6706_v59 = vpop.f32.mrb[57].mxu0 }
 0x964   : > { %v6753_v17 = vadd.f32 %v6706_v59, %v6618_v37  ;;  %v6708_v32 = vpop.f32.mrb[58].mxu0 }
 0x965   : > { %v6745_v25 = vpop.f32.mrb[56].mxu1  ;;  %v6709_v38 = vpop.f32.mrb[59].mxu0 }
 0x966   : > { %v6754_v42 = vadd.f32 %v6745_v25, %v6619_v33  ;;  %v6747_v51 = vpop.f32.mrb[57].mxu1 }
 0x967   : > { %v6755_v15 = vadd.f32 %v6747_v51, %v6620_v56  ;;  %v6749_v30 = vpop.f32.mrb[58].mxu1 }
 0x968   : > { %v6750_v28 = vpop.f32.mrb[59].mxu1 }
 0x970   : > { %v6839_v45 = vpop.f32.mrb[60].mxu0 }
 0x971   : > { %v6887_v19 = vadd.f32 %v6839_v45, %v6752_v39  ;;  %v6880_v27 = vpop.f32.mrb[60].mxu1  ;;  %v6841_v22 = vpop.f32.mrb[61].mxu0 }
 0x972   : > { %v6889_v2 = vadd.f32 %v6880_v27, %v6754_v42  ;;  %v6888_v3 = vadd.f32 %v6841_v22, %v6753_v17  ;;  %v6882_v35 = vpop.f32.mrb[61].mxu1  ;;  %v6843_v29 = vpop.f32.mrb[62].mxu0 }
 0x973   : > { %v6890_v60 = vadd.f32 %v6882_v35, %v6755_v15  ;;  %v6897_v48 = vadd.f32 %v6895_v47, %v6887_v19  ;;  %v6844_v40 = vpop.f32.mrb[63].mxu0  ;;  %v6884_v54 = vpop.f32.mrb[62].mxu1 }
 0x974   : > { %v6898_v7 = vadd.f32 %v6895_v47, %v6888_v3  ;;  %v6899_v52 = vadd.f32 %v6895_v47, %v6889_v2  ;;  %v6885_v31 = vpop.f32.mrb[63].mxu1  ;;  %v17810_v54 = vld [vmem:[%s23188_s1 + $0x234] sm:$0xff]  }
 0x975   : > { %v6900_v46 = vadd.f32 %v6895_v47, %v6890_v60  ;;  %v15775_v43 = vmul.f32 -1.442695, %v6897_v48 }
 0x976   : > { %v15776_v4 = vmul.f32 -1.442695, %v6898_v7  ;;  %v15777_v57 = vmul.f32 -1.442695, %v6899_v52 }
 0x977   : > { %17909 = vpow2.f32 %v15775_v43  ;;  %v15778_v53 = vmul.f32 -1.442695, %v6900_v46 }
 0x978   : > { %17911 = vpow2.f32 %v15776_v4 }
 0x979   : > { %17913 = vpow2.f32 %v15777_v57 }
 0x97a   : > { %17915 = vpow2.f32 %v15778_v53  ;;  %v17811_v53 = vld [vmem:[%s23188_s1 + $0x23c] sm:$0xff]  }
 0x981   : > { %v17910_v55 = vpop.eup %17909 }
 0x982   : > { %v17912_v21 = vpop.eup %17911  ;;  %v6913_v61 = vadd.f32 1.0, %v17910_v55  ;;  %v17812_v55 = vld [vmem:[%s23188_s1 + $0x244] sm:$0xff]  }
 0x983   : > { %v17914_v49 = vpop.eup %17913  ;;  %v6914_v20 = vadd.f32 1.0, %v17912_v21 }
 0x984   : > { %v17916_v62 = vpop.eup %17915  ;;  %v6915_v26 = vadd.f32 1.0, %v17914_v49  ;;  %17917 = vrcp.f32 %v6913_v61  ;;  %v17813_v49 = vld [vmem:[%s23188_s1 + $0x21c] sm:$0xff]  }
 0x985   : > { %v6916_v8 = vadd.f32 1.0, %v17916_v62  ;;  %17919 = vrcp.f32 %v6914_v20 }
 0x986   : > { %17921 = vrcp.f32 %v6915_v26 }
 0x987   : > { %17923 = vrcp.f32 %v6916_v8 }
 0x98e   : > { %v17918_v10 = vpop.eup %17917 }
 0x98f   : > { %v17920_v14 = vpop.eup %17919  ;;  %v6925_v9 = vsel %vm1885_vm15, %v17918_v10, 0.0 }
 0x990   : > { %v17922_v11 = vpop.eup %17921  ;;  %v6926_v24 = vsel %vm23355_vm10, %v17920_v14, 0.0  ;;  %v15284_v63 = vrot.slane %v17920_v14, %v23356_v41  ;;  %vm23365_vm10 = vmmov %vm23362_vm1 }
 0x991   : > { %v17924_v0 = vpop.eup %17923  ;;  %v6927_v37 = vsel %vm1887_vm14, %v17922_v11, 0.0  ;;  %v17547_v44 = vpack.i.bf16 %v6926_v24, %v6925_v9  ;;  %v15288_v36 = vrot.slane %v17922_v11, %v23356_v41  ;;  %v17815_v24 = vld [vmem:[%s23188_s1 + $0x22c] sm:$0xff]  }
 0x992   : > { %v6928_v33 = vsel %vm18402_vm0, %v17924_v0, 0.0  ;;  %v20239_v18 = vmul.f32 %v17920_v14, %v15284_v63  ;;  %v17816_v0 = vld [vmem:[%s23188_s1 + $0x24c] sm:$0xff]  }
 0x993   : > { %v17552_v56 = vpack.i.bf16 %v6928_v33, %v6927_v37  ;;  %17548 = vrot.lane.b32.xlu0 %v17547_v44, %s17998_s21  ;;  %v20242_v23 = vmul.f32 %v17922_v11, %v15288_v36  ;;  %v17814_v11 = vld [vmem:[%s23188_s1 + $0x224] sm:$0xff]  }
 0x994   : > { %23359 = vst [vmem:[#allocation5_spill] sm:$0xff] %v20239_v18 }
 0x995   : > { %23360 = vst [vmem:[#allocation6_spill] sm:$0xff] %v20242_v23  ;;  %17553 = vrot.lane.b32.xlu1 %v17552_v56, %s17998_s21 }
 0xa05   : > { %v17549_v34 = vpop.permute.xlu0 %17548 }
 0xa06   : > { %v17551_v39 = vunpack.i.h.bf16 %v17549_v34  ;;  %v17550_v59 = vunpack.i.l.bf16 %v17549_v34 }
 0xa07   : > { %v17554_v17 = vpop.permute.xlu1 %17553 }
 0xa08   : > { %v17556_v32 = vunpack.i.h.bf16 %v17554_v17  ;;  %v17555_v25 = vunpack.i.l.bf16 %v17554_v17  ;;  %v6941_v38 = vsel %vm23249_vm11, %v17550_v59, %v17551_v39  ;;  %v6948_v42 = vsel %vm23249_vm11, 0.0, %v17550_v59  ;;  %v17817_v59 = vld [vmem:[%s23188_s1 + $0x254] sm:$0xff]   ;;  %v17818_v17 = vld [vmem:[%s23188_s1 + $0x25c] sm:$0xff]  }
 0xa09   : > { %v6950_v51 = vpack.c.bf16 %v6948_v42, %v6948_v42  ;;  %v6951_v15 = vpack.c.bf16 %v6941_v38, %v6941_v38  ;;  %v17819_v38 = vld [vmem:[%s23188_s1 + $0x264] sm:$0xff]  }
 0xa0a   : > { %v6943_v30 = vsel %vm23249_vm11, %v17555_v25, %v17556_v32  ;;  %v6942_v28 = vsel %vm23249_vm11, %v17551_v39, %v17555_v25  ;;  %vm23367_vm11 = vmmov %vm23362_vm1 }
 0xa0b   : > { %v6949_v45 = vsel %vm23361_vm4, %v6943_v30, 0.0  ;;  %6985 = vrot.lane.b32.xlu0 %v6950_v51, %s17989_s12  ;;  %6987 = vrot.lane.b32.xlu1 %v6951_v15, %s17989_s12  ;;  %v6952_v19 = vpack.c.bf16 %v6942_v28, %v6942_v28  ;;  %vm6996_vm4 = vcmask 31744   ;;  %v7169_v31 = vsel %vm23362_vm1, %v6950_v51, 0 }
 0xa0c   : > { %v6953_v47 = vpack.c.bf16 %v6949_v45, %v6949_v45 }
 0xa0f   : > { %6989 = vrot.lane.b32.xlu0 %v6952_v19, %s17989_s12  ;;  %6991 = vrot.lane.b32.xlu1 %v6953_v47, %s17989_s12 }
 0xa13   : > { %7327 = vrot.lane.b32.xlu0 %v6950_v51, %s17990_s13  ;;  %7329 = vrot.lane.b32.xlu1 %v6951_v15, %s17990_s13 }
 0xa17   : > { %7331 = vrot.lane.b32.xlu0 %v6952_v19, %s17990_s13  ;;  %7333 = vrot.lane.b32.xlu1 %v6953_v47, %s17990_s13 }
 0xa1b   : > { %7530 = vrot.lane.b32.xlu0 %v6950_v51, %s17991_s14  ;;  %7532 = vrot.lane.b32.xlu1 %v6951_v15, %s17991_s14 }
 0xa1f   : > { %7534 = vrot.lane.b32.xlu0 %v6952_v19, %s17991_s14  ;;  %7536 = vrot.lane.b32.xlu1 %v6953_v47, %s17991_s14 }
 0xa23   : > { %7733 = vrot.lane.b32.xlu0 %v6950_v51, %s17992_s15  ;;  %7735 = vrot.lane.b32.xlu1 %v6951_v15, %s17992_s15 }
 0xa27   : > { %7737 = vrot.lane.b32.xlu0 %v6952_v19, %s17992_s15  ;;  %7739 = vrot.lane.b32.xlu1 %v6953_v47, %s17992_s15 }
 0xa2b   : > { %7936 = vrot.lane.b32.xlu0 %v6950_v51, %s17993_s16  ;;  %7938 = vrot.lane.b32.xlu1 %v6951_v15, %s17993_s16 }
 0xa2f   : > { %7940 = vrot.lane.b32.xlu0 %v6952_v19, %s17993_s16  ;;  %7942 = vrot.lane.b32.xlu1 %v6953_v47, %s17993_s16 }
 0xa33   : > { %8139 = vrot.lane.b32.xlu0 %v6950_v51, %s23256_s17  ;;  %8141 = vrot.lane.b32.xlu1 %v6951_v15, %s23256_s17 }
 0xa37   : > { %8143 = vrot.lane.b32.xlu0 %v6952_v19, %s23256_s17  ;;  %8145 = vrot.lane.b32.xlu1 %v6953_v47, %s23256_s17 }
 0xa3b   : > { %8342 = vrot.lane.b32.xlu0 %v6950_v51, %s23252_s18  ;;  %8344 = vrot.lane.b32.xlu1 %v6951_v15, %s23252_s18 }
 0xa3f   : > { %8346 = vrot.lane.b32.xlu0 %v6952_v19, %s23252_s18  ;;  %8348 = vrot.lane.b32.xlu1 %v6953_v47, %s23252_s18 }
 0xa43   : > { %8545 = vrot.lane.b32.xlu0 %v6950_v51, %s23250_s19  ;;  %8547 = vrot.lane.b32.xlu1 %v6951_v15, %s23250_s19 }
 0xa47   : > { %8549 = vrot.lane.b32.xlu0 %v6952_v19, %s23250_s19  ;;  %8551 = vrot.lane.b32.xlu1 %v6953_v47, %s23250_s19  ;;  %s23447_s19 = smov 90  }
 0xa7d   : > { %v6986_v27 = vpop.permute.xlu0 %6985  ;;  %v6988_v22 = vpop.permute.xlu1 %6987 }
 0xa7e   : > { %v6993_v2 = vsel %vm383_vm2, %v6986_v27, %v6988_v22  ;;  %v18002_v27 = vmov 4  }
 0xa7f   : > { %v7007_v48 = vsel %vm23364_vm9, %v6993_v2, 0  ;;  %vm23371_vm9 = vmmov %vm23362_vm1  ;;  %17557 = vset.pattern.permute.xlu0 %v18002_v27  ;;  %17558 = vset.pattern.permute.xlu1 %v18002_v27  ;;  %v17934_v2 = vld [vmem:[%s23189_s2 + $0x8] sm:$0xff] }
 0xa80   : > { %8732 = vperm.xlu1 %17558, %v17934_v2  }
 0xa81   : > { %v6990_v3 = vpop.permute.xlu0 %6989  ;;  %v6992_v35 = vpop.permute.xlu1 %6991 }
 0xa82   : > { %v6995_v29 = vsel %vm383_vm2, %v6990_v3, %v6992_v35  ;;  %15786 = vmatprep.subr.msk.bf16.mxu1 %vm23362_vm1, %v6992_v35  ;;  %v6994_v60 = vsel %vm383_vm2, %v6988_v22, %v6990_v3  ;;  %v17933_v22 = vld [vmem:[%s23189_s2] sm:$0xff]  ;;  %v17821_v3 = vld [vmem:[%s23188_s1 + $0x274] sm:$0xff]  }
 0xa83   : > { %15782 = vmatprep.subr.msk.bf16.mxu0 %vm23363_vm7, %v6994_v60  ;;  %v7013_v40 = vsel %vm23365_vm10, %v6995_v29, 0  ;;  %vm23368_vm7 = vmmov %vm23362_vm1  ;;  %8728 = vperm.xlu0 %17557, %v17933_v22   ;;  %v17935_v35 = vld [vmem:[%s23189_s2 + $0x18] sm:$0xff]  ;;  %v17936_v29 = vld [vmem:[%s23189_s2 + $0x10] sm:$0xff] }
 0xa84   : > { %7019 = vmatpush1.bf16.msra.mxu0 %v7007_v48  ;;  %7082 = vmatpush1.bf16.msra.mxu1 %v7013_v40  ;;  %v7175_v46 = vsel %vm23368_vm7, %v6952_v19, 0  ;;  %vm23372_vm10 = vmmov %vm23362_vm1  ;;  %v17820_v19 = vld [vmem:[%s23188_s1 + $0x26c] sm:$0xff]  }
 0xa85   : > { %v7328_v7 = vpop.permute.xlu0 %7327  ;;  %15793 = vmatprep.subr.msk.bf16.mxu0 %vm23366_vm8, %v6951_v15  ;;  %15797 = vmatprep.subr.msk.bf16.mxu1 %vm23367_vm11, %v6953_v47  ;;  %v7330_v52 = vpop.permute.xlu1 %7329  ;;  %vm23369_vm8 = vmmov %vm23362_vm1  ;;  %v17937_v40 = vld [vmem:[%s23189_s2 + $0x28] sm:$0xff] }
 0xa86   : > { %vm23370_vm11 = vmmov %vm23362_vm1  ;;  %v7335_v20 = vsel %vm672_vm3, %v7328_v7, %v7330_v52  ;;  %8736 = vperm.xlu1 %17558, %v17936_v29   ;;  %v17822_v7 = vld [vmem:[%s23188_s1 + $0x27c] sm:$0xff]  }
 0xa87   : > { %15783 = vmatmul.mubr.msk.bf16.vlgmr.msra.gmra.mrb[64].mxu0 %vm6996_vm4, %v17810_v54  ;;  %15787 = vmatmul.mubr.msk.bf16.vlgmr.msra.gmra.mrb[64].mxu1 %vm6996_vm4, %v17810_v54  ;;  %v7348_v8 = vsel %vm23371_vm9, %v7335_v20, 0  ;;  %vm23373_vm7 = vmmov %vm23362_vm1  ;;  %v17938_v54 = vld [vmem:[%s23189_s2 + $0x20] sm:$0xff]  ;;  %v17825_v20 = vld [vmem:[%s23188_s1 + $0x294] sm:$0xff]  }
 0xa88   : > { %7181 = vmatpush1.bf16.msra.mxu0 %v7169_v31  ;;  %7244 = vmatpush1.bf16.msra.mxu1 %v7175_v46  ;;  %vm23376_vm9 = vmmov %vm23362_vm1 }
 0xa89   : > { %v7332_v43 = vpop.permute.xlu0 %7331  ;;  %v7334_v4 = vpop.permute.xlu1 %7333  ;;  %7060 = vmatprep.mubr.bf16.mxu0 %v23324_v16  ;;  %7123 = vmatprep.mubr.bf16.mxu1 %v23324_v16 }
 0xa8a   : > { %15808 = vmatprep.subr.msk.bf16.mxu1 %vm23369_vm8, %v7334_v4  ;;  %v7336_v57 = vsel %vm672_vm3, %v7330_v52, %v7332_v43  ;;  %v7337_v62 = vsel %vm672_vm3, %v7332_v43, %v7334_v4  ;;  %vm23374_vm8 = vmmov %vm23362_vm1  ;;  %8740 = vperm.xlu0 %17557, %v17935_v35  }
 0xa8b   : > { %15804 = vmatprep.subr.msk.bf16.mxu0 %vm23370_vm11, %v7336_v57  ;;  %v7354_v10 = vsel %vm23372_vm10, %v7337_v62, 0  ;;  %vm23375_vm11 = vmmov %vm23362_vm1  ;;  %8744 = vperm.xlu1 %17558, %v17938_v54  }
 0xa8c   : > { %vm23377_vm10 = vmmov %vm23362_vm1 }
 0xa8d   : > { %v7531_v21 = vpop.permute.xlu0 %7530  ;;  %v7533_v61 = vpop.permute.xlu1 %7532 }
 0xa8e   : > { %v7538_v37 = vsel %vm838_vm5, %v7531_v21, %v7533_v61  ;;  %8748 = vperm.xlu0 %17557, %v17937_v40   ;;  %v17824_v21 = vld [vmem:[%s23188_s1 + $0x28c] sm:$0xff]  }
 0xa8f   : > { %15784 = vmatmul.mubr.msk.bf16.gmra.mrb[68].mxu0 %vm6996_vm4, %v17811_v53  ;;  %15788 = vmatmul.mubr.msk.bf16.gmra.mrb[68].mxu1 %vm6996_vm4, %v17811_v53  ;;  %v7551_v33 = vsel %vm23374_vm8, %v7538_v37, 0  ;;  %vm23379_vm8 = vcmask 883712   ;;  %v17828_v37 = vld [vmem:[%s23188_s1 + $0x2ac] sm:$0xff]  }
 0xa90   : > { %7070 = vmatprep.mubr.bf16.mxu0 %v23324_v16  ;;  %7133 = vmatprep.mubr.bf16.mxu1 %v23324_v16 }
 0xa91   : > { %v7535_v26 = vpop.permute.xlu0 %7534  ;;  %v7537_v14 = vpop.permute.xlu1 %7536 }
 0xa92   : > { %v7539_v9 = vsel %vm838_vm5, %v7533_v61, %v7535_v26  ;;  %v7540_v44 = vsel %vm838_vm5, %v7535_v26, %v7537_v14 }
 0xa93   : > { %v7557_v56 = vsel %vm23375_vm11, %v7540_v44, 0  ;;  %vm23380_vm11 = vmmov %vm23362_vm1 }
 0xa95   : > { %v7734_v41 = vpop.permute.xlu0 %7733  ;;  %v7736_v63 = vpop.permute.xlu1 %7735 }
 0xa96   : > { %v7741_v42 = vsel %vm23254_vm6, %v7734_v41, %v7736_v63  ;;  %v17827_v41 = vld [vmem:[%s23188_s1 + $0x2a4] sm:$0xff]  }
 0xa97   : > { %15785 = vmatmul.mubr.msk.bf16.gmra.mrb[72].mxu0 %vm6996_vm4, %v17812_v55  ;;  %15789 = vmatmul.mubr.msk.bf16.gmra.mrb[72].mxu1 %vm6996_vm4, %v17812_v55  ;;  %v7754_v30 = vsel %vm23362_vm1, %v7741_v42, 0  ;;  %v17823_v55 = vld [vmem:[%s23188_s1 + $0x284] sm:$0xff]  }
 0xa98   : > { %7212 = vmatprep.mubr.bf16.mxu0 %v23324_v16  ;;  %7275 = vmatprep.mubr.bf16.mxu1 %v23324_v16 }
 0xa99   : > { %v7738_v36 = vpop.permute.xlu0 %7737  ;;  %v7740_v34 = vpop.permute.xlu1 %7739 }
 0xa9a   : > { %v7742_v39 = vsel %vm23254_vm6, %v7736_v63, %v7738_v36  ;;  %v7743_v51 = vsel %vm23254_vm6, %v7738_v36, %v7740_v34 }
 0xa9d   : > { %v7937_v32 = vpop.permute.xlu0 %7936  ;;  %v7939_v25 = vpop.permute.xlu1 %7938 }
 0xa9f   : > { %15794 = vmatmul.mubr.msk.bf16.vlgmr.msra.gmra.mrb[64].mxu0 %vm6996_vm4, %v17813_v49  ;;  %15798 = vmatmul.mubr.msk.bf16.vlgmr.msra.gmra.mrb[64].mxu1 %vm6996_vm4, %v17813_v49 }
 0xaa0   : > { %7360 = vmatpush1.bf16.msra.mxu0 %v7348_v8  ;;  %7423 = vmatpush1.bf16.msra.mxu1 %v7354_v10 }
 0xaa1   : > { %15815 = vmatprep.subr.msk.bf16.mxu0 %vm23362_vm1, %v7539_v9  ;;  %15819 = vmatprep.subr.msk.bf16.mxu1 %vm23373_vm7, %v7537_v14  ;;  %v7941_v15 = vpop.permute.xlu0 %7940  ;;  %vm23378_vm7 = vmmov %vm23362_vm1  ;;  %v7943_v45 = vpop.permute.xlu1 %7942 }
 0xaa2   : > { %7222 = vmatprep.mubr.bf16.mxu0 %v23324_v16  ;;  %7285 = vmatprep.mubr.bf16.mxu1 %v23324_v16  ;;  %v7760_v28 = vsel %vm23378_vm7, %v7743_v51, 0  ;;  %v7945_v47 = vsel %vm23379_vm8, %v7939_v25, %v7941_v15  ;;  %vm23387_vm6 = vmmov %vm23378_vm7 }
 0xaa5   : > { %v8140_v60 = vpop.permute.xlu0 %8139  ;;  %v8142_v48 = vpop.permute.xlu1 %8141 }
 0xaa7   : > { %15795 = vmatmul.mubr.msk.bf16.gmra.mrb[68].mxu0 %vm6996_vm4, %v17814_v11  ;;  %15799 = vmatmul.mubr.msk.bf16.gmra.mrb[68].mxu1 %vm6996_vm4, %v17814_v11 }
 0xaa8   : > { %7232 = vmatprep.mubr.bf16.mxu0 %v23324_v16  ;;  %7295 = vmatprep.mubr.bf16.mxu1 %v23324_v16 }
 0xaa9   : > { %v8144_v46 = vpop.permute.xlu0 %8143  ;;  %v8146_v57 = vpop.permute.xlu1 %8145 }
 0xaad   : > { %v8343_v61 = vpop.permute.xlu0 %8342  ;;  %v8345_v49 = vpop.permute.xlu1 %8344 }
 0xaaf   : > { %15796 = vmatmul.mubr.msk.bf16.gmra.mrb[72].mxu0 %vm6996_vm4, %v17815_v24  ;;  %15800 = vmatmul.mubr.msk.bf16.gmra.mrb[72].mxu1 %vm6996_vm4, %v17815_v24  ;;  %v17826_v24 = vld [vmem:[%s23188_s1 + $0x29c] sm:$0xff]  }
 0xab0   : > { %7391 = vmatprep.mubr.bf16.mxu0 %v23324_v16  ;;  %7454 = vmatprep.mubr.bf16.mxu1 %v23324_v16 }
 0xab1   : > { %v8347_v8 = vpop.permute.xlu0 %8346  ;;  %v8349_v9 = vpop.permute.xlu1 %8348 }
 0xab5   : > { %v8546_v63 = vpop.permute.xlu0 %8545 }
 0xab7   : > { %15805 = vmatmul.mubr.msk.bf16.vlgmr.msra.gmra.mrb[64].mxu0 %vm6996_vm4, %v17816_v0  ;;  %15809 = vmatmul.mubr.msk.bf16.vlgmr.msra.gmra.mrb[64].mxu1 %vm6996_vm4, %v17816_v0  ;;  %v8548_v0 = vpop.permute.xlu1 %8547 }
 0xab8   : > { %7563 = vmatpush1.bf16.msra.mxu0 %v7551_v33  ;;  %7626 = vmatpush1.bf16.msra.mxu1 %v7557_v56 }
 0xab9   : > { %15826 = vmatprep.subr.msk.bf16.mxu0 %vm23376_vm9, %v7742_v39  ;;  %15830 = vmatprep.subr.msk.bf16.mxu1 %vm23377_vm10, %v7740_v34  ;;  %vm23381_vm9 = vmmov %vm23362_vm1  ;;  %v8550_v33 = vpop.permute.xlu0 %8549 }
 0xaba   : > { %7401 = vmatprep.mubr.bf16.mxu0 %v23324_v16  ;;  %7464 = vmatprep.mubr.bf16.mxu1 %v23324_v16  ;;  %vm23382_vm10 = vmmov %vm23379_vm8 }
 0xabb   : > { %v7944_v52 = vsel %vm23382_vm10, %v7937_v32, %v7939_v25  ;;  %vm23383_vm1 = vmmov %vm23379_vm8  ;;  %v8552_v39 = vpop.permute.xlu1 %8551  ;;  %v17830_v32 = vld [vmem:[%s23188_s1 + $0x2bc] sm:$0xff]   ;;  %v17831_v25 = vld [vmem:[%s23188_s1 + $0x2c4] sm:$0xff]  }
 0xabc   : > { %v7946_v31 = vsel %vm23383_vm1, %v7941_v15, %v7943_v45  ;;  %v7957_v43 = vsel %vm23378_vm7, %v7944_v52, 0  ;;  %vm23384_vm8 = vmmov %vm23378_vm7 }
 0xabd   : > { %v7963_v4 = vsel %vm23384_vm8, %v7946_v31, 0  ;;  %vm23390_vm1 = vmmov %vm23378_vm7  ;;  %vm23392_vm8 = vcmask 744448  }
 0xabe   : > { %v8351_v11 = vsel %vm23392_vm8, %v8345_v49, %v8347_v8 }
 0xabf   : > { %15806 = vmatmul.mubr.msk.bf16.gmra.mrb[68].mxu0 %vm6996_vm4, %v17817_v59  ;;  %15810 = vmatmul.mubr.msk.bf16.gmra.mrb[68].mxu1 %vm6996_vm4, %v17817_v59 }
 0xac0   : > { %7411 = vmatprep.mubr.bf16.mxu0 %v23324_v16  ;;  %7474 = vmatprep.mubr.bf16.mxu1 %v23324_v16 }
 0xac7   : > { %15807 = vmatmul.mubr.msk.bf16.gmra.mrb[72].mxu0 %vm6996_vm4, %v17818_v17  ;;  %15811 = vmatmul.mubr.msk.bf16.gmra.mrb[72].mxu1 %vm6996_vm4, %v17818_v17  ;;  %v17829_v17 = vld [vmem:[%s23188_s1 + $0x2b4] sm:$0xff]  }
 0xac8   : > { %7594 = vmatprep.mubr.bf16.mxu0 %v23324_v16  ;;  %7657 = vmatprep.mubr.bf16.mxu1 %v23324_v16 }
 0xacf   : > { %15816 = vmatmul.mubr.msk.bf16.vlgmr.msra.gmra.mrb[64].mxu0 %vm6996_vm4, %v17819_v38  ;;  %15820 = vmatmul.mubr.msk.bf16.vlgmr.msra.gmra.mrb[64].mxu1 %vm6996_vm4, %v17819_v38 }
 0xad0   : > { %7766 = vmatpush1.bf16.msra.mxu0 %v7754_v30  ;;  %7829 = vmatpush1.bf16.msra.mxu1 %v7760_v28  ;;  %v17832_v30 = vld [vmem:[%s23188_s1 + $0x2cc] sm:$0xff]   ;;  %v17833_v28 = vld [vmem:[%s23188_s1 + $0x2d4] sm:$0xff]  }
 0xad1   : > { %15837 = vmatprep.subr.msk.bf16.mxu0 %vm23380_vm11, %v7945_v47  ;;  %15841 = vmatprep.subr.msk.bf16.mxu1 %vm23381_vm9, %v7943_v45  ;;  %vm23385_vm11 = vcmask 752640   ;;  %vm23386_vm9 = vmmov %vm23378_vm7  ;;  %v17834_v45 = vld [vmem:[%s23188_s1 + $0x2dc] sm:$0xff]   ;;  %v17835_v47 = vld [vmem:[%s23188_s1 + $0x2e4] sm:$0xff]  }
 0xad2   : > { %7604 = vmatprep.mubr.bf16.mxu0 %v23324_v16  ;;  %7667 = vmatprep.mubr.bf16.mxu1 %v23324_v16  ;;  %v8148_v53 = vsel %vm23385_vm11, %v8142_v48, %v8144_v46  ;;  %vm23391_vm7 = vmmov %vm23390_vm1 }
 0xad7   : > { %15817 = vmatmul.mubr.msk.bf16.gmra.mrb[68].mxu0 %vm6996_vm4, %v17820_v19  ;;  %15821 = vmatmul.mubr.msk.bf16.gmra.mrb[68].mxu1 %vm6996_vm4, %v17820_v19  ;;  %v17836_v19 = vld [vmem:[%s23188_s1 + $0x2ec] sm:$0xff]  }
 0xad8   : > { %7614 = vmatprep.mubr.bf16.mxu0 %v23324_v16  ;;  %7677 = vmatprep.mubr.bf16.mxu1 %v23324_v16 }
 0xadf   : > { %15818 = vmatmul.mubr.msk.bf16.gmra.mrb[72].mxu0 %vm6996_vm4, %v17821_v3  ;;  %15822 = vmatmul.mubr.msk.bf16.gmra.mrb[72].mxu1 %vm6996_vm4, %v17821_v3 }
 0xae0   : > { %7797 = vmatprep.mubr.bf16.mxu0 %v23324_v16  ;;  %7860 = vmatprep.mubr.bf16.mxu1 %v23324_v16 }
 0xae7   : > { %15827 = vmatmul.mubr.msk.bf16.vlgmr.msra.gmra.mrb[64].mxu0 %vm6996_vm4, %v17822_v7  ;;  %15831 = vmatmul.mubr.msk.bf16.vlgmr.msra.gmra.mrb[64].mxu1 %vm6996_vm4, %v17822_v7 }
 0xae8   : > { %7969 = vmatpush1.bf16.msra.mxu0 %v7957_v43  ;;  %8032 = vmatpush1.bf16.msra.mxu1 %v7963_v4 }
 0xae9   : > { %15848 = vmatprep.subr.msk.bf16.mxu0 %vm23386_vm9, %v8148_v53  ;;  %15852 = vmatprep.subr.msk.bf16.mxu1 %vm23387_vm6, %v8146_v57  ;;  %vm23388_vm6 = vmmov %vm23385_vm11 }
 0xaea   : > { %7807 = vmatprep.mubr.bf16.mxu0 %v23324_v16  ;;  %7870 = vmatprep.mubr.bf16.mxu1 %v23324_v16  ;;  %v8147_v62 = vsel %vm23388_vm6, %v8140_v60, %v8142_v48  ;;  %vm23389_vm10 = vmmov %vm23388_vm6 }
 0xaeb   : > { %v8149_v26 = vsel %vm23389_vm10, %v8144_v46, %v8146_v57  ;;  %v8160_v10 = vsel %vm23390_vm1, %v8147_v62, 0  ;;  %vm23393_vm11 = vmmov %vm23390_vm1 }
 0xaec   : > { %v8166_v14 = vsel %vm23391_vm7, %v8149_v26, 0  ;;  %vm23394_vm9 = vmmov %vm23390_vm1 }
 0xaed   : > { %vm23395_vm6 = vmmov %vm23392_vm8  ;;  %vm23398_vm8 = vcmask 736256  }
 0xaee   : > { %v8350_v44 = vsel %vm23395_vm6, %v8343_v61, %v8345_v49  ;;  %vm23396_vm10 = vmmov %vm23395_vm6  ;;  %v8554_v59 = vsel %vm23398_vm8, %v8548_v0, %v8550_v33 }
 0xaef   : > { %15828 = vmatmul.mubr.msk.bf16.gmra.mrb[68].mxu0 %vm6996_vm4, %v17823_v55  ;;  %15832 = vmatmul.mubr.msk.bf16.gmra.mrb[68].mxu1 %vm6996_vm4, %v17823_v55  ;;  %v8352_v36 = vsel %vm23396_vm10, %v8347_v8, %v8349_v9  ;;  %v8363_v56 = vsel %vm23390_vm1, %v8350_v44, 0  ;;  %vm23397_vm7 = vmmov %vm23390_vm1 }
 0xaf0   : > { %7817 = vmatprep.mubr.bf16.mxu0 %v23324_v16  ;;  %7880 = vmatprep.mubr.bf16.mxu1 %v23324_v16  ;;  %v8369_v34 = vsel %vm23397_vm7, %v8352_v36, 0  ;;  %vm23401_vm6 = vmmov %vm23398_vm8 }
 0xaf1   : > { %v8553_v38 = vsel %vm23401_vm6, %v8546_v63, %v8548_v0  ;;  %vm23402_vm10 = vmmov %vm23401_vm6 }
 0xaf2   : > { %v8555_v42 = vsel %vm23402_vm10, %v8550_v33, %v8552_v39  ;;  %v8566_v51 = vsel %vm23390_vm1, %v8553_v38, 0  ;;  %vm23403_vm7 = vmmov %vm23390_vm1 }
 0xaf3   : > { %v8572_v15 = vsel %vm23403_vm7, %v8555_v42, 0 }
 0xaf7   : > { %15829 = vmatmul.mubr.msk.bf16.gmra.mrb[72].mxu0 %vm6996_vm4, %v17824_v21  ;;  %15833 = vmatmul.mubr.msk.bf16.gmra.mrb[72].mxu1 %vm6996_vm4, %v17824_v21 }
 0xaf8   : > { %8000 = vmatprep.mubr.bf16.mxu0 %v23324_v16  ;;  %8063 = vmatprep.mubr.bf16.mxu1 %v23324_v16 }
 0xaff   : > { %15838 = vmatmul.mubr.msk.bf16.vlgmr.msra.gmra.mrb[64].mxu0 %vm6996_vm4, %v17825_v20  ;;  %15842 = vmatmul.mubr.msk.bf16.vlgmr.msra.gmra.mrb[64].mxu1 %vm6996_vm4, %v17825_v20  ;;  %v8733_v22 = vpop.permute.xlu1 %8732 }
 0xb00   : > { %8172 = vmatpush1.bf16.msra.mxu0 %v8160_v10  ;;  %8235 = vmatpush1.bf16.msra.mxu1 %v8166_v14 }
 0xb01   : > { %15859 = vmatprep.subr.msk.bf16.mxu0 %vm23393_vm11, %v8351_v11  ;;  %15863 = vmatprep.subr.msk.bf16.mxu1 %vm23394_vm9, %v8349_v9  ;;  %vm23399_vm11 = vmmov %vm23390_vm1 }
 0xb02   : > { %8010 = vmatprep.mubr.bf16.mxu0 %v23324_v16  ;;  %8073 = vmatprep.mubr.bf16.mxu1 %v23324_v16  ;;  %vm23400_vm9 = vmmov %vm23390_vm1  ;;  %v8729_v27 = vpop.permute.xlu0 %8728  ;;  %vm23410_vm1 = vcmask 154624  }
 0xb03   : > { %vm23411_vm7 = vmmov %vm23410_vm1 }
 0xb07   : > { %15839 = vmatmul.mubr.msk.bf16.gmra.mrb[68].mxu0 %vm6996_vm4, %v17826_v24  ;;  %15843 = vmatmul.mubr.msk.bf16.gmra.mrb[68].mxu1 %vm6996_vm4, %v17826_v24 }
 0xb08   : > { %8020 = vmatprep.mubr.bf16.mxu0 %v23324_v16  ;;  %8083 = vmatprep.mubr.bf16.mxu1 %v23324_v16 }
 0xb09   : > { %v8741_v9 = vpop.permute.xlu0 %8740 }
 0xb0f   : > { %15840 = vmatmul.mubr.msk.bf16.gmra.mrb[72].mxu0 %vm6996_vm4, %v17827_v41  ;;  %15844 = vmatmul.mubr.msk.bf16.gmra.mrb[72].mxu1 %vm6996_vm4, %v17827_v41  ;;  %v8737_v41 = vpop.permute.xlu1 %8736 }
 0xb10   : > { %8203 = vmatprep.mubr.bf16.mxu0 %v23324_v16  ;;  %8266 = vmatprep.mubr.bf16.mxu1 %v23324_v16 }
 0xb17   : > { %15849 = vmatmul.mubr.msk.bf16.vlgmr.msra.gmra.mrb[64].mxu0 %vm6996_vm4, %v17828_v37  ;;  %15853 = vmatmul.mubr.msk.bf16.vlgmr.msra.gmra.mrb[64].mxu1 %vm6996_vm4, %v17828_v37 }
 0xb18   : > { %8375 = vmatpush1.bf16.msra.mxu0 %v8363_v56  ;;  %8438 = vmatpush1.bf16.msra.mxu1 %v8369_v34 }
 0xb19   : > { %15870 = vmatprep.subr.msk.bf16.mxu0 %vm23399_vm11, %v8554_v59  ;;  %15874 = vmatprep.subr.msk.bf16.mxu1 %vm23400_vm9, %v8552_v39 }
 0xb1a   : > { %8213 = vmatprep.mubr.bf16.mxu0 %v23324_v16  ;;  %8276 = vmatprep.mubr.bf16.mxu1 %v23324_v16 }
 0xb1f   : > { %15850 = vmatmul.mubr.msk.bf16.gmra.mrb[68].mxu0 %vm6996_vm4, %v17829_v17  ;;  %15854 = vmatmul.mubr.msk.bf16.gmra.mrb[68].mxu1 %vm6996_vm4, %v17829_v17 }
 0xb20   : > { %8223 = vmatprep.mubr.bf16.mxu0 %v23324_v16  ;;  %8286 = vmatprep.mubr.bf16.mxu1 %v23324_v16 }
 0xb27   : > { %15851 = vmatmul.mubr.msk.bf16.gmra.mrb[72].mxu0 %vm6996_vm4, %v17830_v32  ;;  %15855 = vmatmul.mubr.msk.bf16.gmra.mrb[72].mxu1 %vm6996_vm4, %v17830_v32 }
 0xb28   : > { %8406 = vmatprep.mubr.bf16.mxu0 %v23324_v16  ;;  %8469 = vmatprep.mubr.bf16.mxu1 %v23324_v16 }
 0xb2f   : > { %15860 = vmatmul.mubr.msk.bf16.vlgmr.msra.gmra.mrb[64].mxu0 %vm6996_vm4, %v17831_v25  ;;  %15864 = vmatmul.mubr.msk.bf16.vlgmr.msra.gmra.mrb[64].mxu1 %vm6996_vm4, %v17831_v25 }
 0xb30   : > { %8578 = vmatpush1.bf16.msra.mxu0 %v8566_v51  ;;  %8641 = vmatpush1.bf16.msra.mxu1 %v8572_v15 }
 0xb31   : > { %8416 = vmatprep.mubr.bf16.mxu0 %v23324_v16  ;;  %8479 = vmatprep.mubr.bf16.mxu1 %v23324_v16 }
 0xb37   : > { %15861 = vmatmul.mubr.msk.bf16.gmra.mrb[68].mxu0 %vm6996_vm4, %v17832_v30  ;;  %15865 = vmatmul.mubr.msk.bf16.gmra.mrb[68].mxu1 %vm6996_vm4, %v17832_v30 }
 0xb38   : > { %8426 = vmatprep.mubr.bf16.mxu0 %v23324_v16  ;;  %8489 = vmatprep.mubr.bf16.mxu1 %v23324_v16 }
 0xb3f   : > { %15862 = vmatmul.mubr.msk.bf16.gmra.mrb[72].mxu0 %vm6996_vm4, %v17833_v28  ;;  %15866 = vmatmul.mubr.msk.bf16.gmra.mrb[72].mxu1 %vm6996_vm4, %v17833_v28 }
 0xb40   : > { %8609 = vmatprep.mubr.bf16.mxu0 %v23324_v16  ;;  %8672 = vmatprep.mubr.bf16.mxu1 %v23324_v16 }
 0xb47   : > { %15871 = vmatmul.mubr.msk.bf16.vlgmr.msra.gmra.mrb[64].mxu0 %vm6996_vm4, %v17834_v45  ;;  %15875 = vmatmul.mubr.msk.bf16.vlgmr.msra.gmra.mrb[64].mxu1 %vm6996_vm4, %v17834_v45 }
 0xb48   : > { %8619 = vmatprep.mubr.bf16.mxu0 %v23324_v16  ;;  %8682 = vmatprep.mubr.bf16.mxu1 %v23324_v16 }
 0xb4f   : > { %15872 = vmatmul.mubr.msk.bf16.gmra.mrb[68].mxu0 %vm6996_vm4, %v17835_v47  ;;  %15876 = vmatmul.mubr.msk.bf16.gmra.mrb[68].mxu1 %vm6996_vm4, %v17835_v47 }
 0xb50   : > { %8629 = vmatprep.mubr.bf16.mxu0 %v23324_v16  ;;  %8692 = vmatprep.mubr.bf16.mxu1 %v23324_v16 }
 0xb57   : > { %15873 = vmatmul.mubr.msk.bf16.gmra.mrb[72].mxu0 %vm6996_vm4, %v17836_v19  ;;  %15877 = vmatmul.mubr.msk.bf16.gmra.mrb[72].mxu1 %vm6996_vm4, %v17836_v19  ;;  %vm23404_vm4 = vcmp.eq.s32.totalorder %v23354_v50, 1 }
 0xb58   : > { %9098 = vmatprep.mubr.bf16.mxu0 %v23324_v16  ;;  %9171 = vmatprep.mubr.bf16.mxu1 %v23324_v16  ;;  %vm23405_vm8 = vmmov %vm23404_vm4 }
 0xb59   : > { %vm23406_vm11 = vmmov %vm23404_vm4 }
 0xb5a   : > { %vm23407_vm9 = vmmov %vm23404_vm4 }
 0xb5b   : > { %vm23408_vm6 = vmmov %vm23404_vm4 }
 0xb5c   : > { %vm23409_vm10 = vmmov %vm23404_vm4 }
 0xc1a   : > { %v8611_v2 = vpop.f32.mrb[64].mxu0  ;;  %v8674_v3 = vpop.f32.mrb[64].mxu1 }
 0xc1b   : > { %v8751_v35 = vadd.f32 %v8729_v27, %v8611_v2  ;;  %v8753_v29 = vadd.f32 %v8729_v27, %v8674_v3  ;;  %v8613_v60 = vpop.f32.mrb[65].mxu0  ;;  %v8676_v48 = vpop.f32.mrb[65].mxu1 }
 0xc1c   : > { %v8752_v40 = vadd.f32 %v8729_v27, %v8613_v60  ;;  %v8754_v54 = vadd.f32 %v8729_v27, %v8676_v48  ;;  %v8615_v7 = vpop.f32.mrb[66].mxu0  ;;  %v8678_v52 = vpop.f32.mrb[66].mxu1 }
 0xc1d   : > { %v8775_v31 = vmax.f32 %v8751_v35, 0.0  ;;  %v8777_v46 = vmax.f32 %v8753_v29, 0.0  ;;  %v8755_v43 = vadd.f32 %v8733_v22, %v8615_v7  ;;  %v8757_v4 = vadd.f32 %v8733_v22, %v8678_v52  ;;  %v8617_v57 = vpop.f32.mrb[67].mxu0  ;;  %v8680_v53 = vpop.f32.mrb[67].mxu1 }
 0xc1e   : > { %v8776_v55 = vmax.f32 %v8752_v40, 0.0  ;;  %v8778_v21 = vmax.f32 %v8754_v54, 0.0  ;;  %v8756_v61 = vadd.f32 %v8733_v22, %v8617_v57  ;;  %v8758_v49 = vadd.f32 %v8733_v22, %v8680_v53 }
 0xc1f   : > { %v8799_v20 = vsel %vm1885_vm15, %v8775_v31, 0.0  ;;  %v8779_v62 = vmax.f32 %v8755_v43, 0.0  ;;  %v8781_v26 = vmax.f32 %v8757_v4, 0.0  ;;  %v8801_v11 = vsel %vm1887_vm14, %v8777_v46, 0.0  ;;  %v8749_v31 = vpop.permute.xlu0 %8748  ;;  %v8745_v46 = vpop.permute.xlu1 %8744 }
 0xc20   : > { %v8800_v8 = vsel %vm23404_vm4, %v8776_v55, 0.0  ;;  %v8780_v10 = vmax.f32 %v8756_v61, 0.0  ;;  %v8782_v14 = vmax.f32 %v8758_v49, 0.0  ;;  %v8802_v37 = vsel %vm18402_vm0, %v8778_v21, 0.0  ;;  %vm23412_vm4 = vmmov %vm23410_vm1 }
 0xc21   : > { %v17559_v24 = vpack.i.bf16 %v8800_v8, %v8799_v20  ;;  %v8803_v63 = vsel %vm1885_vm15, %v8779_v62, 0.0  ;;  %v8805_v0 = vsel %vm1887_vm14, %v8781_v26, 0.0 }
 0xc22   : > { %v17564_v44 = vpack.i.bf16 %v8803_v63, %v8801_v11  ;;  %v8804_v36 = vsel %vm23405_vm8, %v8780_v10, 0.0  ;;  %v8806_v33 = vsel %vm18402_vm0, %v8782_v14, 0.0  ;;  %v8621_v56 = vpop.f32.mrb[68].mxu0  ;;  %v8684_v34 = vpop.f32.mrb[68].mxu1  ;;  %vm23413_vm8 = vmmov %vm23410_vm1 }
 0xc23   : > { %v17569_v39 = vpack.i.bf16 %v8805_v0, %v8804_v36  ;;  %v17574_v59 = vpack.i.bf16 %v8806_v33, %v8802_v37  ;;  %v8759_v17 = vadd.f32 %v8737_v41, %v8621_v56  ;;  %v8761_v32 = vadd.f32 %v8737_v41, %v8684_v34  ;;  %17560 = vrot.lane.b32.xlu1 %v17559_v24, %s17998_s21  ;;  %v8623_v25 = vpop.f32.mrb[69].mxu0  ;;  %v8686_v38 = vpop.f32.mrb[69].mxu1 }
 0xc24   : > { %v8760_v42 = vadd.f32 %v8737_v41, %v8623_v25  ;;  %v8762_v51 = vadd.f32 %v8737_v41, %v8686_v38  ;;  %v8625_v15 = vpop.f32.mrb[70].mxu0  ;;  %v8688_v30 = vpop.f32.mrb[70].mxu1  ;;  %17565 = vrot.lane.b32.xlu0 %v17564_v44, %s17998_s21 }
 0xc25   : > { %v8783_v28 = vmax.f32 %v8759_v17, 0.0  ;;  %v8785_v45 = vmax.f32 %v8761_v32, 0.0  ;;  %v8763_v47 = vadd.f32 %v8741_v9, %v8625_v15  ;;  %v8765_v19 = vadd.f32 %v8741_v9, %v8688_v30  ;;  %v8627_v27 = vpop.f32.mrb[71].mxu0  ;;  %v8690_v22 = vpop.f32.mrb[71].mxu1 }
 0xc26   : > { %v8784_v2 = vmax.f32 %v8760_v42, 0.0  ;;  %v8786_v3 = vmax.f32 %v8762_v51, 0.0  ;;  %v8764_v35 = vadd.f32 %v8741_v9, %v8627_v27  ;;  %v8766_v29 = vadd.f32 %v8741_v9, %v8690_v22 }
 0xc27   : > { %v8807_v60 = vsel %vm1885_vm15, %v8783_v28, 0.0  ;;  %v8787_v48 = vmax.f32 %v8763_v47, 0.0  ;;  %v8789_v40 = vmax.f32 %v8765_v19, 0.0  ;;  %17570 = vrot.lane.b32.xlu1 %v17569_v39, %s17998_s21  ;;  %v8809_v43 = vsel %vm1887_vm14, %v8785_v45, 0.0 }
 0xc28   : > { %v8808_v54 = vsel %vm23406_vm11, %v8784_v2, 0.0  ;;  %v8788_v7 = vmax.f32 %v8764_v35, 0.0  ;;  %v8790_v52 = vmax.f32 %v8766_v29, 0.0  ;;  %17575 = vrot.lane.b32.xlu0 %v17574_v59, %s17998_s21  ;;  %v8810_v55 = vsel %vm18402_vm0, %v8786_v3, 0.0  ;;  %vm23414_vm11 = vmmov %vm23410_vm1 }
 0xc29   : > { %v17579_v4 = vpack.i.bf16 %v8808_v54, %v8807_v60  ;;  %v8811_v57 = vsel %vm1885_vm15, %v8787_v48, 0.0  ;;  %v8813_v53 = vsel %vm1887_vm14, %v8789_v40, 0.0 }
 0xc2a   : > { %v17584_v21 = vpack.i.bf16 %v8811_v57, %v8809_v43  ;;  %v8812_v61 = vsel %vm23407_vm9, %v8788_v7, 0.0  ;;  %v8814_v49 = vsel %vm18402_vm0, %v8790_v52, 0.0  ;;  %v8631_v20 = vpop.f32.mrb[72].mxu0  ;;  %v8694_v62 = vpop.f32.mrb[72].mxu1  ;;  %vm23415_vm9 = vmmov %vm23410_vm1 }
 0xc2b   : > { %v17589_v26 = vpack.i.bf16 %v8813_v53, %v8812_v61  ;;  %v17594_v8 = vpack.i.bf16 %v8814_v49, %v8810_v55  ;;  %v8767_v10 = vadd.f32 %v8745_v46, %v8631_v20  ;;  %v8769_v14 = vadd.f32 %v8745_v46, %v8694_v62  ;;  %v8633_v9 = vpop.f32.mrb[73].mxu0  ;;  %v8696_v11 = vpop.f32.mrb[73].mxu1  ;;  %17580 = vrot.lane.b32.xlu1 %v17579_v4, %s17998_s21 }
 0xc2c   : > { %v8768_v24 = vadd.f32 %v8745_v46, %v8633_v9  ;;  %v8770_v41 = vadd.f32 %v8745_v46, %v8696_v11  ;;  %v8635_v63 = vpop.f32.mrb[74].mxu0  ;;  %v8698_v0 = vpop.f32.mrb[74].mxu1  ;;  %17585 = vrot.lane.b32.xlu0 %v17584_v21, %s17998_s21 }
 0xc2d   : > { %v8791_v37 = vmax.f32 %v8767_v10, 0.0  ;;  %v8793_v44 = vmax.f32 %v8769_v14, 0.0  ;;  %v8771_v36 = vadd.f32 %v8749_v31, %v8635_v63  ;;  %v8773_v33 = vadd.f32 %v8749_v31, %v8698_v0  ;;  %v8637_v56 = vpop.f32.mrb[75].mxu0  ;;  %v8700_v34 = vpop.f32.mrb[75].mxu1 }
 0xc2e   : > { %v8792_v39 = vmax.f32 %v8768_v24, 0.0  ;;  %v8794_v59 = vmax.f32 %v8770_v41, 0.0  ;;  %v8772_v17 = vadd.f32 %v8749_v31, %v8637_v56  ;;  %v8774_v32 = vadd.f32 %v8749_v31, %v8700_v34 }
 0xc2f   : > { %v8815_v25 = vsel %vm1885_vm15, %v8791_v37, 0.0  ;;  %v8795_v38 = vmax.f32 %v8771_v36, 0.0  ;;  %v8797_v42 = vmax.f32 %v8773_v33, 0.0  ;;  %17590 = vrot.lane.b32.xlu1 %v17589_v26, %s17998_s21  ;;  %v8817_v28 = vsel %vm1887_vm14, %v8793_v44, 0.0 }
 0xc30   : > { %v8816_v51 = vsel %vm23408_vm6, %v8792_v39, 0.0  ;;  %v8796_v15 = vmax.f32 %v8772_v17, 0.0  ;;  %v8798_v30 = vmax.f32 %v8774_v32, 0.0  ;;  %17595 = vrot.lane.b32.xlu0 %v17594_v8, %s17998_s21  ;;  %v8818_v27 = vsel %vm18402_vm0, %v8794_v59, 0.0  ;;  %vm23416_vm6 = vmmov %vm23410_vm1 }
 0xc31   : > { %v17599_v45 = vpack.i.bf16 %v8816_v51, %v8815_v25  ;;  %v8819_v47 = vsel %vm1885_vm15, %v8795_v38, 0.0  ;;  %v8821_v19 = vsel %vm1887_vm14, %v8797_v42, 0.0 }
 0xc32   : > { %v17604_v22 = vpack.i.bf16 %v8819_v47, %v8817_v28  ;;  %v8820_v2 = vsel %vm23409_vm10, %v8796_v15, 0.0  ;;  %v8822_v3 = vsel %vm18402_vm0, %v8798_v30, 0.0  ;;  %vm23417_vm10 = vmmov %vm23410_vm1 }
 0xc33   : > { %v17609_v35 = vpack.i.bf16 %v8821_v19, %v8820_v2  ;;  %v17614_v29 = vpack.i.bf16 %v8822_v3, %v8818_v27  ;;  %17600 = vrot.lane.b32.xlu1 %v17599_v45, %s17998_s21 }
 0xc34   : > { %17605 = vrot.lane.b32.xlu0 %v17604_v22, %s17998_s21 }
 0xc37   : > { %17610 = vrot.lane.b32.xlu1 %v17609_v35, %s17998_s21 }
 0xc38   : > { %17615 = vrot.lane.b32.xlu0 %v17614_v29, %s17998_s21 }
 0xc95   : > { %v17561_v60 = vpop.permute.xlu1 %17560 }
 0xc96   : > { %v20611_v48 = vunpack.i.l.bf16 %v17561_v60  ;;  %v17566_v40 = vpop.permute.xlu0 %17565  ;;  %v17563_v7 = vunpack.i.h.bf16 %v17561_v60 }
 0xc97   : > { %v20613_v54 = vunpack.i.h.bf16 %v17566_v40  ;;  %v17567_v31 = vunpack.i.l.bf16 %v17566_v40 }
 0xc98   : > { %v8937_v52 = vsel %vm23410_vm1, 0.0, %v20611_v48  ;;  %v8895_v20 = vsel %vm23412_vm4, %v20611_v48, %v17563_v7  ;;  %vm23418_vm1 = vcmask 547840  }
 0xc99   : > { %v8938_v46 = vsel %vm23411_vm7, 0.0, %v20613_v54  ;;  %v15897_v43 = vpack.c.bf16 %v20613_v54, %v20611_v48  ;;  %v17571_v4 = vpop.permute.xlu1 %17570  ;;  %v8896_v62 = vsel %vm23413_vm8, %v17563_v7, %v17567_v31  ;;  %vm23419_vm7 = vmmov %vm23418_vm1 }
 0xc9a   : > { %v20621_v57 = vpack.c.bf16 %v8938_v46, %v8937_v52  ;;  %v17573_v53 = vunpack.i.h.bf16 %v17571_v4  ;;  %v17572_v55 = vunpack.i.l.bf16 %v17571_v4  ;;  %v17576_v21 = vpop.permute.xlu0 %17575  ;;  %vm23420_vm8 = vmmov %vm23412_vm4 }
 0xc9b   : > { %v17578_v61 = vunpack.i.h.bf16 %v17576_v21  ;;  %v17577_v49 = vunpack.i.l.bf16 %v17576_v21 }
 0xc9c   : > { %v8898_v26 = vsel %vm23414_vm11, %v20613_v54, %v17572_v55  ;;  %v8899_v8 = vsel %vm23415_vm9, %v17572_v55, %v17573_v53  ;;  %9009 = vrot.lane.b32.xlu1 %v20621_v57, %s17989_s12  ;;  %vm23421_vm11 = vmmov %vm23412_vm4 }
 0xc9d   : > { %v20631_v10 = vpack.c.bf16 %v8898_v26, %v8895_v20  ;;  %v20633_v14 = vpack.c.bf16 %v8899_v8, %v8896_v62  ;;  %v20636_v9 = vsel %vm23416_vm6, %v17567_v31, %v17577_v49  ;;  %v20639_v11 = vsel %vm23417_vm10, %v17573_v53, %v17578_v61  ;;  %v17581_v24 = vpop.permute.xlu1 %17580  ;;  %vm23422_vm9 = vmmov %vm23412_vm4 }
 0xc9e   : > { %v8943_v41 = vsel %vm23418_vm1, %v20636_v9, 0.0  ;;  %v8944_v63 = vsel %vm23419_vm7, %v20639_v11, 0.0  ;;  %v20645_v0 = vunpack.i.l.bf16 %v17581_v24  ;;  %v17586_v37 = vpop.permute.xlu0 %17585  ;;  %v15914_v36 = vpack.c.bf16 %v20639_v11, %v20636_v9  ;;  %vm23423_vm6 = vmmov %vm23412_vm4 }
 0xc9f   : > { %v20647_v44 = vunpack.i.h.bf16 %v17586_v37  ;;  %9013 = vrot.lane.b32.xlu0 %v20633_v14, %s17989_s12  ;;  %v17583_v33 = vunpack.i.h.bf16 %v17581_v24  ;;  %v17587_v34 = vunpack.i.l.bf16 %v17586_v37  ;;  %v20657_v39 = vpack.c.bf16 %v8944_v63, %v8943_v41  ;;  %vm23424_vm10 = vmmov %vm23412_vm4 }
 0xca0   : > { %v8939_v56 = vsel %vm23412_vm4, 0.0, %v20645_v0  ;;  %9011 = vrot.lane.b32.xlu1 %v20631_v10, %s17989_s12  ;;  %vm23425_vm1 = vmmov %vm23412_vm4  ;;  %vm23427_vm4 = vcmask 547840  }
 0xca1   : > { %v8940_v59 = vsel %vm23420_vm8, 0.0, %v20647_v44  ;;  %v15902_v17 = vpack.c.bf16 %v20647_v44, %v20645_v0  ;;  %v17591_v32 = vpop.permute.xlu1 %17590  ;;  %v8901_v28 = vsel %vm23421_vm11, %v20645_v0, %v17583_v33  ;;  %v8902_v45 = vsel %vm23422_vm9, %v17583_v33, %v17587_v34  ;;  %vm23426_vm7 = vmmov %vm23425_vm1 }
 0xca2   : > { %v20663_v25 = vpack.c.bf16 %v8940_v59, %v8939_v56  ;;  %v17593_v38 = vunpack.i.h.bf16 %v17591_v32  ;;  %v17592_v42 = vunpack.i.l.bf16 %v17591_v32  ;;  %v17596_v51 = vpop.permute.xlu0 %17595  ;;  %vm23428_vm8 = vmmov %vm23427_vm4 }
 0xca3   : > { %v17598_v15 = vunpack.i.h.bf16 %v17596_v51  ;;  %v17597_v30 = vunpack.i.l.bf16 %v17596_v51  ;;  %9015 = vrot.lane.b32.xlu0 %v20657_v39, %s17989_s12  ;;  %vm23429_vm11 = vmmov %vm23425_vm1 }
 0xca4   : > { %v8904_v47 = vsel %vm23423_vm6, %v20647_v44, %v17592_v42  ;;  %v8905_v19 = vsel %vm23424_vm10, %v17592_v42, %v17593_v38  ;;  %9017 = vrot.lane.b32.xlu1 %v20663_v25, %s17989_s12  ;;  %vm23430_vm9 = vmmov %vm23425_vm1 }
 0xca5   : > { %v20675_v27 = vpack.c.bf16 %v8904_v47, %v8901_v28  ;;  %v20677_v22 = vpack.c.bf16 %v8905_v19, %v8902_v45  ;;  %v20680_v2 = vsel %vm23425_vm1, %v17587_v34, %v17597_v30  ;;  %v20683_v3 = vsel %vm23426_vm7, %v17593_v38, %v17598_v15  ;;  %v17601_v35 = vpop.permute.xlu1 %17600  ;;  %vm23431_vm6 = vmmov %vm23425_vm1 }
 0xca6   : > { %v8945_v29 = vsel %vm23427_vm4, %v20680_v2, 0.0  ;;  %v8946_v60 = vsel %vm23428_vm8, %v20683_v3, 0.0  ;;  %v20689_v40 = vunpack.i.l.bf16 %v17601_v35  ;;  %v17606_v7 = vpop.permute.xlu0 %17605  ;;  %v17603_v52 = vunpack.i.h.bf16 %v17601_v35  ;;  %vm23432_vm10 = vmmov %vm23425_vm1 }
 0xca7   : > { %v20691_v31 = vunpack.i.h.bf16 %v17606_v7  ;;  %9021 = vrot.lane.b32.xlu0 %v20677_v22, %s17989_s12  ;;  %v15917_v46 = vpack.c.bf16 %v20683_v3, %v20680_v2  ;;  %v17607_v4 = vunpack.i.l.bf16 %v17606_v7  ;;  %v20699_v53 = vpack.c.bf16 %v8946_v60, %v8945_v29  ;;  %vm23433_vm7 = vmmov %vm23425_vm1 }
 0xca8   : > { %9019 = vrot.lane.b32.xlu1 %v20675_v27, %s17989_s12  ;;  %v8907_v62 = vsel %vm23429_vm11, %v20689_v40, %v17603_v52  ;;  %v8941_v24 = vsel %vm23430_vm9, 0.0, %v20689_v40  ;;  %vm23434_vm4 = vmmov %vm23425_vm1  ;;  %vm23436_vm11 = vcmask 547840  }
 0xca9   : > { %v15907_v55 = vpack.c.bf16 %v20691_v31, %v20689_v40  ;;  %v17611_v21 = vpop.permute.xlu1 %17610  ;;  %v8908_v41 = vsel %vm23431_vm6, %v17603_v52, %v17607_v4  ;;  %vm23435_vm8 = vmmov %vm23425_vm1  ;;  %vm23438_vm6 = vcmask 392192  }
 0xcaa   : > { %v17613_v61 = vunpack.i.h.bf16 %v17611_v21  ;;  %v17612_v49 = vunpack.i.l.bf16 %v17611_v21  ;;  %v17616_v20 = vpop.permute.xlu0 %17615  ;;  %v8942_v32 = vsel %vm23435_vm8, 0.0, %v20691_v31  ;;  %vm23437_vm9 = vmmov %vm23436_vm11 }
 0xcab   : > { %v17618_v26 = vunpack.i.h.bf16 %v17616_v20  ;;  %v17617_v8 = vunpack.i.l.bf16 %v17616_v20  ;;  %9023 = vrot.lane.b32.xlu0 %v20699_v53, %s17989_s12  ;;  %v20735_v15 = vpack.c.bf16 %v8942_v32, %v8941_v24  ;;  %v17837_v32 = vld [vmem:[%s23188_s1 + $0x314] sm:$0xff]  }
 0xcac   : > { %v8910_v63 = vsel %vm23432_vm10, %v20691_v31, %v17612_v49  ;;  %v8911_v37 = vsel %vm23425_vm1, %v17612_v49, %v17613_v61  ;;  %vm23439_vm10 = vmmov %vm23438_vm6 }
 0xcad   : > { %v20713_v33 = vpack.c.bf16 %v8910_v63, %v8907_v62  ;;  %v20715_v56 = vpack.c.bf16 %v8911_v37, %v8908_v41  ;;  %v20718_v34 = vsel %vm23433_vm7, %v17607_v4, %v17617_v8  ;;  %v20721_v59 = vsel %vm23434_vm4, %v17613_v61, %v17618_v26  ;;  %vm23441_vm1 = vmmov %vm23438_vm6 }
 0xcae   : > { %v8947_v38 = vsel %vm23436_vm11, %v20718_v34, 0.0  ;;  %v8948_v42 = vsel %vm23437_vm9, %v20721_v59, 0.0  ;;  %v15920_v51 = vpack.c.bf16 %v20721_v59, %v20718_v34  ;;  %vm23442_vm7 = vmmov %vm23441_vm1 }
 0xcaf   : > { %9029 = vrot.lane.b32.xlu0 %v20715_v56, %s17989_s12  ;;  %9027 = vrot.lane.b32.xlu1 %v20713_v33, %s17989_s12  ;;  %v20737_v30 = vpack.c.bf16 %v8948_v42, %v8947_v38  ;;  %vm23443_vm4 = vmmov %vm23441_vm1 }
 0xcb0   : > { %vm23444_vm8 = vmmov %vm23441_vm1 }
 0xcb1   : > { %vm23445_vm11 = vmmov %vm23441_vm1 }
 0xcb2   : > { %vm23446_vm9 = vmmov %vm23441_vm1 }
 0xcb3   : > { %9031 = vrot.lane.b32.xlu0 %v20737_v30, %s17989_s12  ;;  %9025 = vrot.lane.b32.xlu1 %v20735_v15, %s17989_s12 }
 0xcb7   : > { %9422 = vrot.lane.b32.xlu0 %v20633_v14, %s17990_s13  ;;  %9420 = vrot.lane.b32.xlu1 %v20631_v10, %s17990_s13 }
 0xcbb   : > { %9424 = vrot.lane.b32.xlu0 %v20657_v39, %s17990_s13  ;;  %9418 = vrot.lane.b32.xlu1 %v20621_v57, %s17990_s13 }
 0xcbf   : > { %9430 = vrot.lane.b32.xlu0 %v20677_v22, %s17990_s13  ;;  %9428 = vrot.lane.b32.xlu1 %v20675_v27, %s17990_s13 }
 0xcc3   : > { %9432 = vrot.lane.b32.xlu0 %v20699_v53, %s17990_s13  ;;  %9426 = vrot.lane.b32.xlu1 %v20663_v25, %s17990_s13 }
 0xcc7   : > { %9438 = vrot.lane.b32.xlu0 %v20715_v56, %s17990_s13  ;;  %9436 = vrot.lane.b32.xlu1 %v20713_v33, %s17990_s13 }
 0xccb   : > { %9440 = vrot.lane.b32.xlu0 %v20737_v30, %s17990_s13  ;;  %9434 = vrot.lane.b32.xlu1 %v20735_v15, %s17990_s13 }
 0xccf   : > { %9685 = vrot.lane.b32.xlu0 %v20633_v14, %s17991_s14  ;;  %9683 = vrot.lane.b32.xlu1 %v20631_v10, %s17991_s14 }
 0xcd3   : > { %9687 = vrot.lane.b32.xlu0 %v20657_v39, %s17991_s14  ;;  %9681 = vrot.lane.b32.xlu1 %v20621_v57, %s17991_s14 }
 0xcd7   : > { %9693 = vrot.lane.b32.xlu0 %v20677_v22, %s17991_s14  ;;  %9691 = vrot.lane.b32.xlu1 %v20675_v27, %s17991_s14 }
 0xcdb   : > { %9695 = vrot.lane.b32.xlu0 %v20699_v53, %s17991_s14  ;;  %9689 = vrot.lane.b32.xlu1 %v20663_v25, %s17991_s14 }
 0xcdf   : > { %9701 = vrot.lane.b32.xlu0 %v20715_v56, %s17991_s14  ;;  %9699 = vrot.lane.b32.xlu1 %v20713_v33, %s17991_s14 }
 0xce3   : > { %9703 = vrot.lane.b32.xlu0 %v20737_v30, %s17991_s14  ;;  %9697 = vrot.lane.b32.xlu1 %v20735_v15, %s17991_s14 }
 0xce7   : > { %9948 = vrot.lane.b32.xlu0 %v20633_v14, %s17992_s15  ;;  %9946 = vrot.lane.b32.xlu1 %v20631_v10, %s17992_s15 }
 0xceb   : > { %9950 = vrot.lane.b32.xlu0 %v20657_v39, %s17992_s15  ;;  %9944 = vrot.lane.b32.xlu1 %v20621_v57, %s17992_s15 }
 0xcef   : > { %9956 = vrot.lane.b32.xlu0 %v20677_v22, %s17992_s15  ;;  %9954 = vrot.lane.b32.xlu1 %v20675_v27, %s17992_s15 }
 0xcf3   : > { %9958 = vrot.lane.b32.xlu0 %v20699_v53, %s17992_s15  ;;  %9952 = vrot.lane.b32.xlu1 %v20663_v25, %s17992_s15 }
 0xcf7   : > { %9964 = vrot.lane.b32.xlu0 %v20715_v56, %s17992_s15  ;;  %9962 = vrot.lane.b32.xlu1 %v20713_v33, %s17992_s15 }
 0xcfb   : > { %9966 = vrot.lane.b32.xlu0 %v20737_v30, %s17992_s15  ;;  %9960 = vrot.lane.b32.xlu1 %v20735_v15, %s17992_s15 }
 0xcff   : > { %10211 = vrot.lane.b32.xlu0 %v20633_v14, %s17993_s16  ;;  %10209 = vrot.lane.b32.xlu1 %v20631_v10, %s17993_s16 }
 0xd03   : > { %10213 = vrot.lane.b32.xlu0 %v20657_v39, %s17993_s16  ;;  %10207 = vrot.lane.b32.xlu1 %v20621_v57, %s17993_s16 }
 0xd07   : > { %10219 = vrot.lane.b32.xlu0 %v20677_v22, %s17993_s16  ;;  %10217 = vrot.lane.b32.xlu1 %v20675_v27, %s17993_s16 }
 0xd0b   : > { %10221 = vrot.lane.b32.xlu0 %v20699_v53, %s17993_s16  ;;  %10215 = vrot.lane.b32.xlu1 %v20663_v25, %s17993_s16 }
 0xd0e   : > { %v9010_v28 = vpop.permute.xlu1 %9009 }
 0xd0f   : > { %10227 = vrot.lane.b32.xlu0 %v20715_v56, %s17993_s16  ;;  %10225 = vrot.lane.b32.xlu1 %v20713_v33, %s17993_s16 }
 0xd11   : > { %v9014_v45 = vpop.permute.xlu0 %9013 }
 0xd12   : > { %v9012_v47 = vpop.permute.xlu1 %9011 }
 0xd13   : > { %10229 = vrot.lane.b32.xlu0 %v20737_v30, %s17993_s16  ;;  %10223 = vrot.lane.b32.xlu1 %v20735_v15, %s17993_s16  ;;  %v9034_v19 = vsel %vm383_vm2, %v9012_v47, %v9014_v45  ;;  %v9033_v35 = vsel %vm383_vm2, %v9010_v28, %v9012_v47  ;;  %v17841_v28 = vld [vmem:[%s23188_s1 + $0x2f4] sm:$0xff]  }
 0xd14   : > { %9066 = vmatprep.subr.bf16.mxu0 %v9034_v19 }
 0xd15   : > { %v9016_v29 = vpop.permute.xlu0 %9015  ;;  %9067 = vmatpush1.bf16.msra.mxu0 %v9033_v35 }
 0xd16   : > { %9139 = vmatprep.subr.bf16.mxu1 %v9016_v29  ;;  %v9018_v60 = vpop.permute.xlu1 %9017  ;;  %v9035_v7 = vsel %vm383_vm2, %v9014_v45, %v9016_v29 }
 0xd17   : > { %10474 = vrot.lane.b32.xlu0 %v20633_v14, %s23256_s17  ;;  %9140 = vmatpush1.bf16.msra.mxu1 %v9035_v7 }
 0xd18   : > { %10472 = vrot.lane.b32.xlu1 %v20631_v10, %s23256_s17 }
 0xd19   : > { %v9022_v52 = vpop.permute.xlu0 %9021 }
 0xd1a   : > { %v9020_v4 = vpop.permute.xlu1 %9019 }
 0xd1b   : > { %10476 = vrot.lane.b32.xlu0 %v20657_v39, %s23256_s17  ;;  %v9037_v21 = vsel %vm383_vm2, %v9020_v4, %v9022_v52  ;;  %v9036_v61 = vsel %vm383_vm2, %v9018_v60, %v9020_v4  ;;  %v17842_v60 = vld [vmem:[%s23188_s1 + $0x2fc] sm:$0xff]  }
 0xd1c   : > { %10470 = vrot.lane.b32.xlu1 %v20621_v57, %s23256_s17  ;;  %9068 = vmatprep.subr.bf16.mxu0 %v9037_v21 }
 0xd1d   : > { %v9024_v49 = vpop.permute.xlu0 %9023  ;;  %9069 = vmatpush1.bf16.msra.mxu0 %v9036_v61  ;;  %v17843_v61 = vld [vmem:[%s23188_s1 + $0x304] sm:$0xff]  }
 0xd1e   : > { %9141 = vmatprep.subr.bf16.mxu1 %v9024_v49  ;;  %v9038_v20 = vsel %vm383_vm2, %v9022_v52, %v9024_v49 }
 0xd1f   : > { %10482 = vrot.lane.b32.xlu0 %v20677_v22, %s23256_s17  ;;  %9142 = vmatpush1.bf16.msra.mxu1 %v9038_v20 }
 0xd20   : > { %10480 = vrot.lane.b32.xlu1 %v20675_v27, %s23256_s17 }
 0xd21   : > { %v9030_v62 = vpop.permute.xlu0 %9029  ;;  %v9028_v26 = vpop.permute.xlu1 %9027 }
 0xd22   : > { %v9040_v8 = vsel %vm383_vm2, %v9028_v26, %v9030_v62 }
 0xd23   : > { %10484 = vrot.lane.b32.xlu0 %v20699_v53, %s23256_s17  ;;  %9070 = vmatprep.subr.bf16.mxu0 %v9040_v8 }
 0xd24   : > { %10478 = vrot.lane.b32.xlu1 %v20663_v25, %s23256_s17 }
 0xd25   : > { %v9032_v24 = vpop.permute.xlu0 %9031  ;;  %v9026_v41 = vpop.permute.xlu1 %9025 }
 0xd26   : > { %v9039_v63 = vsel %vm383_vm2, %v9026_v41, %v9028_v26  ;;  %9143 = vmatprep.subr.bf16.mxu1 %v9032_v24  ;;  %v9041_v37 = vsel %vm383_vm2, %v9030_v62, %v9032_v24 }
 0xd27   : > { %10490 = vrot.lane.b32.xlu0 %v20715_v56, %s23256_s17  ;;  %9144 = vmatpush1.bf16.msra.mxu1 %v9041_v37  ;;  %v17846_v37 = vld [vmem:[%s23188_s1 + $0x33c] sm:$0xff]  }
 0xd28   : > { %10488 = vrot.lane.b32.xlu1 %v20713_v33, %s23256_s17  ;;  %9071 = vmatpush1.bf16.msra.mxu0 %v9039_v63 }
 0xd29   : > { %9244 = vmatprep.subr.bf16.mxu0 %v20631_v10  ;;  %15915 = vmatprep.subr.msk.bf16.mxu1 %vm18653_vm13, %v15914_v36  ;;  %v20877_v38 = vpop.permute.xlu0 %9422  ;;  %v20879_v42 = vpop.permute.xlu1 %9420  ;;  %v17838_v36 = vld [vmem:[%s23188_s1 + $0x31c] sm:$0xff]  }
 0xd2a   : > { %15886 = vmatmul.mubr.msk.bf16.vlgmr.msra.gmra.mrb[76].mxu1 %vm23438_vm6, %v17837_v32  ;;  %vm23448_vm6 = vmmov %vm23441_vm1 }
 0xd2b   : > { %15882 = vmatmul.mubr.msk.bf16.vlgmr.msra.gmra.mrb[76].mxu0 %vm23439_vm10, %v17837_v32  ;;  %10492 = vrot.lane.b32.xlu0 %v20737_v30, %s23256_s17  ;;  %vm23449_vm10 = vmmov %vm23441_vm1 }
 0xd2c   : > { %9318 = vmatpush1.bf16.msra.mxu1 %v20633_v14  ;;  %10486 = vrot.lane.b32.xlu1 %v20735_v15, %s23256_s17 }
 0xd2d   : > { %15898 = vmatpush1.bf16.msk.msra.mxu0 %vm18669_vm12, %v15897_v43  ;;  %15918 = vmatprep.subr.msk.bf16.mxu1 %vm18653_vm13, %v15917_v46  ;;  %v9425_v9 = vpop.permute.xlu0 %9424  ;;  %v9419_v11 = vpop.permute.xlu1 %9418  ;;  %v9443_v43 = vsel %vm672_vm3, %v20879_v42, %v20877_v38  ;;  %v17840_v46 = vld [vmem:[%s23188_s1 + $0x32c] sm:$0xff]  }
 0xd2e   : > { %9246 = vmatprep.subr.bf16.mxu0 %v20675_v27  ;;  %9181 = vmatprep.mubr.bf16.mxu1 %v23324_v16  ;;  %v9444_v19 = vsel %vm672_vm3, %v20877_v38, %v9425_v9  ;;  %v9442_v35 = vsel %vm672_vm3, %v9419_v11, %v20879_v42 }
 0xd2f   : > { %10737 = vrot.lane.b32.xlu0 %v20633_v14, %s23440_s11  ;;  %9108 = vmatprep.mubr.bf16.mxu0 %v23324_v16 }
 0xd30   : > { %9320 = vmatpush1.bf16.msra.mxu1 %v20677_v22  ;;  %10735 = vrot.lane.b32.xlu1 %v20631_v10, %s23440_s11 }
 0xd31   : > { %15903 = vmatpush1.bf16.msk.msra.mxu0 %vm18669_vm12, %v15902_v17  ;;  %15921 = vmatprep.subr.msk.bf16.mxu1 %vm18653_vm13, %v15920_v51  ;;  %v9431_v48 = vpop.permute.xlu0 %9430  ;;  %v9429_v54 = vpop.permute.xlu1 %9428  ;;  %v17839_v17 = vld [vmem:[%s23188_s1 + $0x324] sm:$0xff]  }
 0xd32   : > { %9248 = vmatprep.subr.bf16.mxu0 %v20713_v33  ;;  %15887 = vmatmul.mubr.msk.bf16.gmra.mrb[80].mxu1 %vm23441_vm1, %v17838_v36 }
 0xd33   : > { %15883 = vmatmul.mubr.msk.bf16.gmra.mrb[80].mxu0 %vm23442_vm7, %v17838_v36  ;;  %10739 = vrot.lane.b32.xlu0 %v20657_v39, %s23440_s11  ;;  %vm23450_vm7 = vmmov %vm23441_vm1 }
 0xd34   : > { %9322 = vmatpush1.bf16.msra.mxu1 %v20715_v56  ;;  %10733 = vrot.lane.b32.xlu1 %v20621_v57, %s23440_s11 }
 0xd35   : > { %15908 = vmatpush1.bf16.msk.msra.mxu0 %vm18669_vm12, %v15907_v55  ;;  %9548 = vmatprep.subr.bf16.mxu1 %v9425_v9  ;;  %v9433_v0 = vpop.permute.xlu0 %9432  ;;  %v9427_v44 = vpop.permute.xlu1 %9426 }
 0xd36   : > { %9475 = vmatprep.subr.bf16.mxu0 %v9443_v43  ;;  %9191 = vmatprep.mubr.bf16.mxu1 %v23324_v16  ;;  %v9447_v29 = vsel %vm672_vm3, %v9431_v48, %v9433_v0  ;;  %v9445_v7 = vsel %vm672_vm3, %v9427_v44, %v9429_v54  ;;  %v17847_v43 = vld [vmem:[%s23188_s1 + $0x344] sm:$0xff]  }
 0xd37   : > { %10745 = vrot.lane.b32.xlu0 %v20677_v22, %s23440_s11  ;;  %9118 = vmatprep.mubr.bf16.mxu0 %v23324_v16 }
 0xd38   : > { %10743 = vrot.lane.b32.xlu1 %v20675_v27, %s23440_s11 }
 0xd39   : > { %v9439_v2 = vpop.permute.xlu0 %9438  ;;  %v9437_v3 = vpop.permute.xlu1 %9436 }
 0xd3a   : > { %15888 = vmatmul.mubr.msk.bf16.gmra.mrb[84].mxu1 %vm23443_vm4, %v17839_v17  ;;  %vm23451_vm4 = vmmov %vm23441_vm1 }
 0xd3b   : > { %15884 = vmatmul.mubr.msk.bf16.gmra.mrb[84].mxu0 %vm23444_vm8, %v17839_v17  ;;  %10747 = vrot.lane.b32.xlu0 %v20699_v53, %s23440_s11  ;;  %vm23452_vm8 = vmmov %vm23441_vm1  ;;  %v17848_v17 = vld [vmem:[%s23188_s1 + $0x34c] sm:$0xff]  }
 0xd3c   : > { %10741 = vrot.lane.b32.xlu1 %v20663_v25, %s23440_s11  ;;  %9201 = vmatprep.mubr.bf16.mxu1 %v23324_v16 }
 0xd3d   : > { %v9441_v40 = vpop.permute.xlu0 %9440  ;;  %v9435_v31 = vpop.permute.xlu1 %9434  ;;  %9128 = vmatprep.mubr.bf16.mxu0 %v23324_v16 }
 0xd3e   : > { %v9450_v4 = vsel %vm672_vm3, %v9439_v2, %v9441_v40  ;;  %v9448_v21 = vsel %vm672_vm3, %v9435_v31, %v9437_v3  ;;  %v17849_v31 = vld [vmem:[%s23188_s1 + $0x354] sm:$0xff]  }
 0xd3f   : > { %10753 = vrot.lane.b32.xlu0 %v20715_v56, %s23440_s11 }
 0xd40   : > { %10751 = vrot.lane.b32.xlu1 %v20713_v33, %s23440_s11 }
 0xd41   : > { %v20959_v55 = vpop.permute.xlu0 %9685  ;;  %v20961_v34 = vpop.permute.xlu1 %9683 }
 0xd42   : > { %15889 = vmatmul.mubr.msk.bf16.gmra.mrb[88].mxu1 %vm23445_vm11, %v17840_v46  ;;  %vm23453_vm11 = vmmov %vm23441_vm1 }
 0xd43   : > { %15885 = vmatmul.mubr.msk.bf16.gmra.mrb[88].mxu0 %vm23446_vm9, %v17840_v46  ;;  %10755 = vrot.lane.b32.xlu0 %v20737_v30, %s23440_s11  ;;  %vm23454_vm9 = vmmov %vm23441_vm1 }
 0xd44   : > { %10749 = vrot.lane.b32.xlu1 %v20735_v15, %s23440_s11  ;;  %9349 = vmatprep.mubr.bf16.mxu1 %v23324_v16 }
 0xd45   : > { %v20970_v59 = vpop.permute.xlu0 %9687  ;;  %v20972_v51 = vpop.permute.xlu1 %9681  ;;  %9276 = vmatprep.mubr.bf16.mxu0 %v23324_v16 }
 0xd46   : > { %v9707_v26 = vsel %vm838_vm5, %v20959_v55, %v20970_v59  ;;  %v9705_v8 = vsel %vm838_vm5, %v20972_v51, %v20961_v34 }
 0xd47   : > { %11000 = vrot.lane.b32.xlu0 %v20633_v14, %s23447_s19 }
 0xd48   : > { %10998 = vrot.lane.b32.xlu1 %v20631_v10, %s23447_s19  ;;  %v9446_v10 = vsel %vm672_vm3, %v9429_v54, %v9431_v48 }
 0xd49   : > { %v20982_v45 = vpop.permute.xlu0 %9693  ;;  %v20984_v47 = vpop.permute.xlu1 %9691 }
 0xd4a   : > { %15922 = vmatmul.mubr.msk.bf16.vlgmr.msra.gmra.mrb[76].mxu1 %vm23448_vm6, %v17841_v28  ;;  %vm23455_vm6 = vmmov %vm23441_vm1  ;;  %v9709_v24 = vsel %vm838_vm5, %v20984_v47, %v20982_v45 }
 0xd4b   : > { %15909 = vmatmul.mubr.msk.bf16.vlgmr.msra.gmra.mrb[76].mxu0 %vm23449_vm10, %v17841_v28  ;;  %9549 = vmatpush1.bf16.msra.mxu1 %v9444_v19  ;;  %vm23456_vm10 = vmmov %vm23441_vm1 }
 0xd4c   : > { %9476 = vmatpush1.bf16.msra.mxu0 %v9442_v35  ;;  %11002 = vrot.lane.b32.xlu0 %v20657_v39, %s23447_s19 }
 0xd4d   : > { %9550 = vmatprep.subr.bf16.mxu1 %v9433_v0  ;;  %10996 = vrot.lane.b32.xlu1 %v20621_v57, %s23447_s19  ;;  %v20997_v14 = vpop.permute.xlu0 %9695  ;;  %v9690_v39 = vpop.permute.xlu1 %9689  ;;  %v9449_v57 = vsel %vm672_vm3, %v9437_v3, %v9439_v2 }
 0xd4e   : > { %9477 = vmatprep.subr.bf16.mxu0 %v9446_v10  ;;  %9359 = vmatprep.mubr.bf16.mxu1 %v23324_v16  ;;  %v9710_v63 = vsel %vm838_vm5, %v20982_v45, %v20997_v14  ;;  %v9708_v32 = vsel %vm838_vm5, %v9690_v39, %v20984_v47  ;;  %v17850_v47 = vld [vmem:[%s23188_s1 + $0x35c] sm:$0xff]   ;;  %v17851_v39 = vld [vmem:[%s23188_s1 + $0x364] sm:$0xff]  }
 0xd4f   : > { %9551 = vmatpush1.bf16.msra.mxu1 %v9447_v29  ;;  %9286 = vmatprep.mubr.bf16.mxu0 %v23324_v16 }
 0xd50   : > { %9478 = vmatpush1.bf16.msra.mxu0 %v9445_v7  ;;  %11008 = vrot.lane.b32.xlu0 %v20677_v22, %s23447_s19 }
 0xd51   : > { %9552 = vmatprep.subr.bf16.mxu1 %v9441_v40  ;;  %11006 = vrot.lane.b32.xlu1 %v20675_v27, %s23447_s19  ;;  %v9702_v52 = vpop.permute.xlu0 %9701  ;;  %v9700_v22 = vpop.permute.xlu1 %9699  ;;  %v9706_v27 = vsel %vm838_vm5, %v20961_v34, %v20959_v55 }
 0xd52   : > { %9479 = vmatprep.subr.bf16.mxu0 %v9449_v57  ;;  %15923 = vmatmul.mubr.msk.bf16.gmra.mrb[80].mxu1 %vm23441_vm1, %v17842_v60  ;;  %v9712_v42 = vsel %vm838_vm5, %v9700_v22, %v9702_v52 }
 0xd53   : > { %15910 = vmatmul.mubr.msk.bf16.gmra.mrb[80].mxu0 %vm23450_vm7, %v17842_v60  ;;  %9553 = vmatpush1.bf16.msra.mxu1 %v9450_v4  ;;  %vm23457_vm7 = vmmov %vm23441_vm1 }
 0xd54   : > { %9480 = vmatpush1.bf16.msra.mxu0 %v9448_v21  ;;  %11010 = vrot.lane.b32.xlu0 %v20699_v53, %s23447_s19  ;;  %v17852_v21 = vld [vmem:[%s23188_s1 + $0x36c] sm:$0xff]  }
 0xd55   : > { %9811 = vmatprep.subr.bf16.mxu1 %v20970_v59  ;;  %11004 = vrot.lane.b32.xlu1 %v20663_v25, %s23447_s19  ;;  %v9704_v49 = vpop.permute.xlu0 %9703  ;;  %v9698_v25 = vpop.permute.xlu1 %9697 }
 0xd56   : > { %9738 = vmatprep.subr.bf16.mxu0 %v9706_v27  ;;  %9369 = vmatprep.mubr.bf16.mxu1 %v23324_v16  ;;  %v9713_v9 = vsel %vm838_vm5, %v9702_v52, %v9704_v49  ;;  %v9711_v11 = vsel %vm838_vm5, %v9698_v25, %v9700_v22 }
 0xd57   : > { %9296 = vmatprep.mubr.bf16.mxu0 %v23324_v16 }
 0xd58   : > { %11016 = vrot.lane.b32.xlu0 %v20715_v56, %s23447_s19 }
 0xd59   : > { %11014 = vrot.lane.b32.xlu1 %v20713_v33, %s23447_s19  ;;  %v21038_v53 = vpop.permute.xlu0 %9948  ;;  %v17844_v33 = vld [vmem:[%s23188_s1 + $0x30c] sm:$0xff]   ;;  %v21045_v56 = vpop.permute.xlu1 %9946 }
 0xd5a   : > { %15924 = vmatmul.mubr.msk.bf16.gmra.mrb[84].mxu1 %vm23451_vm4, %v17843_v61  ;;  %vm23458_vm4 = vcmask 891904  }
 0xd5b   : > { %15911 = vmatmul.mubr.msk.bf16.gmra.mrb[84].mxu0 %vm23452_vm8, %v17843_v61  ;;  %9379 = vmatprep.mubr.bf16.mxu1 %v23324_v16  ;;  %v9969_v48 = vsel %vm23458_vm4, %v21045_v56, %v21038_v53  ;;  %vm23459_vm8 = vmmov %vm23441_vm1 }
 0xd5c   : > { %11018 = vrot.lane.b32.xlu0 %v20737_v30, %s23447_s19  ;;  %9306 = vmatprep.mubr.bf16.mxu0 %v23324_v16  ;;  %v17845_v30 = vld [vmem:[%s23188_s1 + $0x334] sm:$0xff]  }
 0xd5d   : > { %11012 = vrot.lane.b32.xlu1 %v20735_v15, %s23447_s19  ;;  %v9951_v20 = vpop.permute.xlu0 %9950  ;;  %v9945_v15 = vpop.permute.xlu1 %9944 }
 0xd61   : > { %v21054_v62 = vpop.permute.xlu0 %9956  ;;  %v9955_v41 = vpop.permute.xlu1 %9954 }
 0xd62   : > { %15925 = vmatmul.mubr.msk.bf16.gmra.mrb[88].mxu1 %vm23453_vm11, %v17844_v33  ;;  %vm23460_vm11 = vmmov %vm23441_vm1 }
 0xd63   : > { %15912 = vmatmul.mubr.msk.bf16.gmra.mrb[88].mxu0 %vm23454_vm9, %v17844_v33  ;;  %9580 = vmatprep.mubr.bf16.mxu1 %v23324_v16  ;;  %vm23461_vm9 = vmmov %vm23441_vm1 }
 0xd64   : > { %9507 = vmatprep.mubr.bf16.mxu0 %v23324_v16 }
 0xd65   : > { %v9959_v38 = vpop.permute.xlu0 %9958  ;;  %v9953_v36 = vpop.permute.xlu1 %9952 }
 0xd69   : > { %v9965_v54 = vpop.permute.xlu0 %9964  ;;  %v9963_v0 = vpop.permute.xlu1 %9962 }
 0xd6a   : > { %15934 = vmatmul.mubr.msk.bf16.vlgmr.msra.gmra.mrb[76].mxu1 %vm23455_vm6, %v17845_v30  ;;  %vm23462_vm6 = vmmov %vm23441_vm1 }
 0xd6b   : > { %15930 = vmatmul.mubr.msk.bf16.vlgmr.msra.gmra.mrb[76].mxu0 %vm23456_vm10, %v17845_v30  ;;  %9812 = vmatpush1.bf16.msra.mxu1 %v9707_v26  ;;  %vm23463_vm10 = vmmov %vm23441_vm1 }
 0xd6c   : > { %9739 = vmatpush1.bf16.msra.mxu0 %v9705_v8  ;;  %9813 = vmatprep.subr.bf16.mxu1 %v20997_v14 }
 0xd6d   : > { %9740 = vmatprep.subr.bf16.mxu0 %v9709_v24  ;;  %9590 = vmatprep.mubr.bf16.mxu1 %v23324_v16  ;;  %v9967_v44 = vpop.permute.xlu0 %9966  ;;  %v9961_v2 = vpop.permute.xlu1 %9960 }
 0xd6e   : > { %9517 = vmatprep.mubr.bf16.mxu0 %v23324_v16 }
 0xd6f   : > { %9814 = vmatpush1.bf16.msra.mxu1 %v9710_v63 }
 0xd70   : > { %9741 = vmatpush1.bf16.msra.mxu0 %v9708_v32  ;;  %9815 = vmatprep.subr.bf16.mxu1 %v9704_v49  ;;  %v17853_v49 = vld [vmem:[%s23188_s1 + $0x374] sm:$0xff]  }
 0xd71   : > { %9742 = vmatprep.subr.bf16.mxu0 %v9712_v42  ;;  %v10212_v3 = vpop.permute.xlu0 %10211  ;;  %v10210_v40 = vpop.permute.xlu1 %10209 }
 0xd72   : > { %15935 = vmatmul.mubr.msk.bf16.gmra.mrb[80].mxu1 %vm23441_vm1, %v17846_v37  ;;  %vm23464_vm1 = vmmov %vm23458_vm4 }
 0xd73   : > { %15931 = vmatmul.mubr.msk.bf16.gmra.mrb[80].mxu0 %vm23457_vm7, %v17846_v37  ;;  %9816 = vmatpush1.bf16.msra.mxu1 %v9713_v9  ;;  %v9970_v55 = vsel %vm23464_vm1, %v21038_v53, %v9951_v20  ;;  %vm23465_vm7 = vmmov %vm23464_vm1  ;;  %v9976_v14 = vsel %vm23464_vm1, %v9965_v54, %v9967_v44 }
 0xd74   : > { %9743 = vmatpush1.bf16.msra.mxu0 %v9711_v11  ;;  %10074 = vmatprep.subr.bf16.mxu1 %v9951_v20  ;;  %v9968_v34 = vsel %vm23465_vm7, %v9945_v15, %v21045_v56  ;;  %vm23466_vm4 = vmmov %vm23462_vm6  ;;  %v17854_v15 = vld [vmem:[%s23188_s1 + $0x37c] sm:$0xff]  }
 0xd75   : > { %10001 = vmatprep.subr.bf16.mxu0 %v9969_v48  ;;  %9600 = vmatprep.mubr.bf16.mxu1 %v23324_v16  ;;  %v10214_v46 = vpop.permute.xlu0 %10213  ;;  %v10208_v59 = vpop.permute.xlu1 %10207  ;;  %vm23472_vm7 = vmmov %vm23464_vm1 }
 0xd76   : > { %9527 = vmatprep.mubr.bf16.mxu0 %v23324_v16  ;;  %v9974_v29 = vsel %vm23472_vm7, %v9961_v2, %v9963_v0  ;;  %v11235_v2 = vld [vmem:[%s23189_s2 + $0x20] sm:$0xff] }
 0xd79   : > { %v10220_v28 = vpop.permute.xlu0 %10219  ;;  %v10218_v10 = vpop.permute.xlu1 %10217 }
 0xd7a   : > { %15936 = vmatmul.mubr.msk.bf16.gmra.mrb[84].mxu1 %vm23459_vm8, %v17847_v43  ;;  %vm23467_vm8 = vmmov %vm23464_vm1 }
 0xd7b   : > { %15932 = vmatmul.mubr.msk.bf16.gmra.mrb[84].mxu0 %vm23460_vm11, %v17847_v43  ;;  %9610 = vmatprep.mubr.bf16.mxu1 %v23324_v16  ;;  %v9972_v51 = vsel %vm23467_vm8, %v9955_v41, %v21054_v62  ;;  %vm23468_vm11 = vmmov %vm23464_vm1  ;;  %vm23473_vm8 = vcmask 883712   ;;  %v11231_v43 = vld [vmem:[%s23189_s2] sm:$0xff] }
 0xd7c   : > { %9537 = vmatprep.mubr.bf16.mxu0 %v23324_v16  ;;  %v9973_v45 = vsel %vm23468_vm11, %v21054_v62, %v9959_v38  ;;  %v10232_v7 = vsel %vm23473_vm8, %v10210_v40, %v10212_v3  ;;  %vm23474_vm11 = vmmov %vm23466_vm4 }
 0xd7d   : > { %v10222_v60 = vpop.permute.xlu0 %10221  ;;  %v10216_v57 = vpop.permute.xlu1 %10215  ;;  %vm23479_vm7 = vmmov %vm23473_vm8 }
 0xd7e   : > { %v10233_v53 = vsel %vm23479_vm7, %v10212_v3, %v10214_v46 }
 0xd81   : > { %v10228_v52 = vpop.permute.xlu0 %10227  ;;  %v10226_v4 = vpop.permute.xlu1 %10225 }
 0xd82   : > { %15937 = vmatmul.mubr.msk.bf16.gmra.mrb[88].mxu1 %vm23461_vm9, %v17848_v17  ;;  %vm23469_vm9 = vmmov %vm23464_vm1 }
 0xd83   : > { %15933 = vmatmul.mubr.msk.bf16.gmra.mrb[88].mxu0 %vm23462_vm6, %v17848_v17  ;;  %9843 = vmatprep.mubr.bf16.mxu1 %v23324_v16  ;;  %v9971_v19 = vsel %vm23469_vm9, %v9953_v36, %v9955_v41  ;;  %vm23470_vm6 = vmmov %vm23464_vm1  ;;  %v17856_v36 = vld [vmem:[%s23188_s1 + $0x38c] sm:$0xff]   ;;  %v17857_v17 = vld [vmem:[%s23188_s1 + $0x394] sm:$0xff]  }
 0xd84   : > { %9770 = vmatprep.mubr.bf16.mxu0 %v23324_v16  ;;  %v9975_v35 = vsel %vm23470_vm6, %v9963_v0, %v9965_v54  ;;  %vm23475_vm9 = vmmov %vm23466_vm4  ;;  %v11232_v0 = vld [vmem:[%s23189_s2 + $0x8] sm:$0xff] }
 0xd85   : > { %v10230_v22 = vpop.permute.xlu0 %10229  ;;  %vm23476_vm6 = vmmov %vm23466_vm4  ;;  %v10224_v27 = vpop.permute.xlu1 %10223 }
 0xd86   : > { %vm23478_vm1 = vmmov %vm23466_vm4 }
 0xd87   : > { %vm23481_vm8 = vmmov %vm23478_vm1 }
 0xd89   : > { %v21143_v61 = vpop.permute.xlu0 %10474 }
 0xd8a   : > { %15946 = vmatmul.mubr.msk.bf16.vlgmr.msra.gmra.mrb[76].mxu1 %vm23463_vm10, %v17849_v31  ;;  %vm23471_vm10 = vmmov %vm23466_vm4  ;;  %v21148_v25 = vpop.permute.xlu1 %10472 }
 0xd8b   : > { %15942 = vmatmul.mubr.msk.bf16.vlgmr.msra.gmra.mrb[76].mxu0 %vm23466_vm4, %v17849_v31  ;;  %10075 = vmatpush1.bf16.msra.mxu1 %v9970_v55 }
 0xd8c   : > { %10002 = vmatpush1.bf16.msra.mxu0 %v9968_v34  ;;  %10076 = vmatprep.subr.bf16.mxu1 %v9959_v38  ;;  %v17855_v38 = vld [vmem:[%s23188_s1 + $0x384] sm:$0xff]  }
 0xd8d   : > { %10003 = vmatprep.subr.bf16.mxu0 %v9972_v51  ;;  %9853 = vmatprep.mubr.bf16.mxu1 %v23324_v16  ;;  %v10477_v56 = vpop.permute.xlu0 %10476  ;;  %v11236_v34 = vld [vmem:[%s23189_s2 + $0x28] sm:$0xff]  ;;  %v11237_v51 = vld [vmem:[%s23189_s2 + $0x30] sm:$0xff] }
 0xd8e   : > { %9780 = vmatprep.mubr.bf16.mxu0 %v23324_v16  ;;  %v10471_v26 = vpop.permute.xlu1 %10470 }
 0xd8f   : > { %10077 = vmatpush1.bf16.msra.mxu1 %v9973_v45 }
 0xd90   : > { %10004 = vmatpush1.bf16.msra.mxu0 %v9971_v19  ;;  %10078 = vmatprep.subr.bf16.mxu1 %v9967_v44  ;;  %v18003_v44 = vmov 5  }
 0xd91   : > { %10005 = vmatprep.subr.bf16.mxu0 %v9975_v35  ;;  %v10483_v24 = vpop.permute.xlu0 %10482  ;;  %17619 = vset.pattern.permute.xlu1 %v18003_v44 }
 0xd92   : > { %15947 = vmatmul.mubr.msk.bf16.gmra.mrb[80].mxu1 %vm23471_vm10, %v17850_v47  ;;  %vm23477_vm10 = vmmov %vm23466_vm4  ;;  %v10481_v32 = vpop.permute.xlu1 %10480  ;;  %11241 = vperm.xlu1 %17619, %v11231_v43  }
 0xd93   : > { %15943 = vmatmul.mubr.msk.bf16.gmra.mrb[80].mxu0 %vm23466_vm4, %v17850_v47  ;;  %10079 = vmatpush1.bf16.msra.mxu1 %v9976_v14  ;;  %vm23480_vm4 = vmmov %vm23479_vm7  ;;  %v17858_v47 = vld [vmem:[%s23188_s1 + $0x39c] sm:$0xff]  }
 0xd94   : > { %10006 = vmatpush1.bf16.msra.mxu0 %v9974_v29  ;;  %10337 = vmatprep.subr.bf16.mxu1 %v10214_v46  ;;  %v10231_v33 = vsel %vm23480_vm4, %v10208_v59, %v10210_v40  ;;  %vm23486_vm7 = vmmov %vm23480_vm4  ;;  %v10237_v63 = vsel %vm23480_vm4, %v10224_v27, %v10226_v4  ;;  %v11233_v40 = vld [vmem:[%s23189_s2 + $0x10] sm:$0xff] }
 0xd95   : > { %10264 = vmatprep.subr.bf16.mxu0 %v10232_v7  ;;  %9863 = vmatprep.mubr.bf16.mxu1 %v23324_v16  ;;  %v10239_v41 = vsel %vm23486_vm7, %v10228_v52, %v10230_v22  ;;  %v10485_v42 = vpop.permute.xlu0 %10484  ;;  %vm23492_vm7 = vmmov %vm23478_vm1  ;;  %v17860_v27 = vld [vmem:[%s23188_s1 + $0x3ac] sm:$0xff]  }
 0xd96   : > { %9790 = vmatprep.mubr.bf16.mxu0 %v23324_v16  ;;  %v10479_v9 = vpop.permute.xlu1 %10478  ;;  %17620 = vset.pattern.permute.xlu0 %v18003_v44  ;;  %v17865_v44 = vld [vmem:[%s23188_s1 + $0x3d4] sm:$0xff]  }
 0xd97   : > { %11246 = vperm.xlu0 %17620, %v11232_v0   ;;  %11261 = vperm.xlu1 %17619, %v11235_v2  }
 0xd99   : > { %v10491_v11 = vpop.permute.xlu0 %10490 }
 0xd9a   : > { %15948 = vmatmul.mubr.msk.bf16.gmra.mrb[84].mxu1 %vm23474_vm11, %v17851_v39  ;;  %vm23482_vm11 = vmmov %vm23480_vm4  ;;  %v10489_v48 = vpop.permute.xlu1 %10488 }
 0xd9b   : > { %15944 = vmatmul.mubr.msk.bf16.gmra.mrb[84].mxu0 %vm23475_vm9, %v17851_v39  ;;  %9873 = vmatprep.mubr.bf16.mxu1 %v23324_v16  ;;  %v10235_v20 = vsel %vm23482_vm11, %v10218_v10, %v10220_v28  ;;  %vm23483_vm9 = vmmov %vm23480_vm4  ;;  %vm23488_vm11 = vcmask 752640   ;;  %v11238_v39 = vld [vmem:[%s23189_s2 + $0x38] sm:$0xff] }
 0xd9c   : > { %9800 = vmatprep.mubr.bf16.mxu0 %v23324_v16  ;;  %v10236_v30 = vsel %vm23483_vm9, %v10220_v28, %v10222_v60  ;;  %v10495_v37 = vsel %vm23488_vm11, %v21148_v25, %v21143_v61  ;;  %vm23489_vm9 = vmmov %vm23478_vm1  ;;  %11251 = vperm.xlu0 %17620, %v11233_v40  }
 0xd9d   : > { %v10493_v54 = vpop.permute.xlu0 %10492  ;;  %11266 = vperm.xlu1 %17619, %v11236_v34  }
 0xd9e   : > { %v10487_v3 = vpop.permute.xlu1 %10486 }
 0xda0   : > { %11271 = vperm.xlu0 %17620, %v11237_v51  }
 0xda1   : > { %v21201_v31 = vpop.permute.xlu0 %10737 }
 0xda2   : > { %15949 = vmatmul.mubr.msk.bf16.gmra.mrb[88].mxu1 %vm23476_vm6, %v17852_v21  ;;  %vm23484_vm6 = vmmov %vm23480_vm4  ;;  %v10736_v28 = vpop.permute.xlu1 %10735 }
 0xda3   : > { %15945 = vmatmul.mubr.msk.bf16.gmra.mrb[88].mxu0 %vm23477_vm10, %v17852_v21  ;;  %10106 = vmatprep.mubr.bf16.mxu1 %v23324_v16  ;;  %v10234_v62 = vsel %vm23484_vm6, %v10216_v57, %v10218_v10  ;;  %vm23485_vm10 = vmmov %vm23480_vm4  ;;  %v11234_v10 = vld [vmem:[%s23189_s2 + $0x18] sm:$0xff] }
 0xda4   : > { %10033 = vmatprep.mubr.bf16.mxu0 %v23324_v16  ;;  %v10238_v8 = vsel %vm23485_vm10, %v10226_v4, %v10228_v52  ;;  %vm23490_vm6 = vmmov %vm23478_vm1  ;;  %11256 = vperm.xlu1 %17619, %v11234_v10   ;;  %v17859_v4 = vld [vmem:[%s23188_s1 + $0x3a4] sm:$0xff]   ;;  %v17869_v10 = vld [vmem:[%s23188_s1 + $0x3f4] sm:$0xff]  }
 0xda5   : > { %vm23491_vm10 = vmmov %vm23478_vm1  ;;  %v10740_v35 = vpop.permute.xlu0 %10739 }
 0xda6   : > { %vm23493_vm4 = vmmov %vm23488_vm11  ;;  %v10734_v7 = vpop.permute.xlu1 %10733 }
 0xda7   : > { %v10496_v46 = vsel %vm23493_vm4, %v21143_v61, %v10477_v56  ;;  %vm23495_vm11 = vmmov %vm23478_vm1 }
 0xda8   : > { %11276 = vperm.xlu1 %17619, %v11238_v39  }
 0xda9   : > { %v10746_v52 = vpop.permute.xlu0 %10745 }
 0xdaa   : > { %15958 = vmatmul.mubr.msk.bf16.vlgmr.msra.gmra.mrb[76].mxu1 %vm23478_vm1, %v17853_v49  ;;  %v10744_v21 = vpop.permute.xlu1 %10743 }
 0xdab   : > { %15954 = vmatmul.mubr.msk.bf16.vlgmr.msra.gmra.mrb[76].mxu0 %vm23481_vm8, %v17853_v49  ;;  %10338 = vmatpush1.bf16.msra.mxu1 %v10233_v53  ;;  %vm23487_vm8 = vmmov %vm23478_vm1  ;;  %v17861_v53 = vld [vmem:[%s23188_s1 + $0x3b4] sm:$0xff]  }
 0xdac   : > { %10265 = vmatpush1.bf16.msra.mxu0 %v10231_v33  ;;  %10339 = vmatprep.subr.bf16.mxu1 %v10222_v60 }
 0xdad   : > { %10266 = vmatprep.subr.bf16.mxu0 %v10235_v20  ;;  %10116 = vmatprep.mubr.bf16.mxu1 %v23324_v16 }
 0xdae   : > { %10043 = vmatprep.mubr.bf16.mxu0 %v23324_v16  ;;  %v10742_v61 = vpop.permute.xlu1 %10741 }
 0xdaf   : > { %10340 = vmatpush1.bf16.msra.mxu1 %v10236_v30 }
 0xdb0   : > { %10267 = vmatpush1.bf16.msra.mxu0 %v10234_v62  ;;  %10341 = vmatprep.subr.bf16.mxu1 %v10230_v22  ;;  %v10748_v22 = vpop.permute.xlu0 %10747 }
 0xdb1   : > { %10268 = vmatprep.subr.bf16.mxu0 %v10238_v8  ;;  %v17862_v8 = vld [vmem:[%s23188_s1 + $0x3bc] sm:$0xff]  }
 0xdb2   : > { %15959 = vmatmul.mubr.msk.bf16.gmra.mrb[80].mxu1 %vm23478_vm1, %v17854_v15 }
 0xdb3   : > { %15955 = vmatmul.mubr.msk.bf16.gmra.mrb[80].mxu0 %vm23487_vm8, %v17854_v15  ;;  %10342 = vmatpush1.bf16.msra.mxu1 %v10239_v41  ;;  %vm23494_vm8 = vmmov %vm23493_vm4 }
 0xdb4   : > { %10269 = vmatpush1.bf16.msra.mxu0 %v10237_v63  ;;  %10600 = vmatprep.subr.bf16.mxu1 %v10477_v56  ;;  %v10494_v55 = vsel %vm23494_vm8, %v10471_v26, %v21148_v25  ;;  %v10754_v49 = vpop.permute.xlu0 %10753  ;;  %v10752_v25 = vpop.permute.xlu1 %10751 }
 0xdb5   : > { %10527 = vmatprep.subr.bf16.mxu0 %v10495_v37  ;;  %10126 = vmatprep.mubr.bf16.mxu1 %v23324_v16 }
 0xdb6   : > { %10053 = vmatprep.mubr.bf16.mxu0 %v23324_v16 }
 0xdb8   : > { %v10756_v33 = vpop.permute.xlu0 %10755  ;;  %v10750_v30 = vpop.permute.xlu1 %10749 }
 0xdba   : > { %15960 = vmatmul.mubr.msk.bf16.gmra.mrb[84].mxu1 %vm23489_vm9, %v17855_v38  ;;  %vm23496_vm9 = vmmov %vm23493_vm4 }
 0xdbb   : > { %15956 = vmatmul.mubr.msk.bf16.gmra.mrb[84].mxu0 %vm23490_vm6, %v17855_v38  ;;  %10136 = vmatprep.mubr.bf16.mxu1 %v23324_v16  ;;  %v10498_v59 = vsel %vm23496_vm9, %v10481_v32, %v10483_v24  ;;  %vm23497_vm6 = vmmov %vm23493_vm4  ;;  %vm23503_vm9 = vcmask 744448  }
 0xdbc   : > { %10063 = vmatprep.mubr.bf16.mxu0 %v23324_v16  ;;  %v10499_v45 = vsel %vm23497_vm6, %v10483_v24, %v10485_v42  ;;  %v10758_v57 = vsel %vm23503_vm9, %v10736_v28, %v21201_v31  ;;  %vm23504_vm6 = vmmov %vm23492_vm7  ;;  %v11001_v62 = vpop.permute.xlu0 %11000  ;;  %v10999_v63 = vpop.permute.xlu1 %10998 }
 0xdc0   : > { %v11003_v38 = vpop.permute.xlu0 %11002 }
 0xdc2   : > { %15961 = vmatmul.mubr.msk.bf16.gmra.mrb[88].mxu1 %vm23491_vm10, %v17856_v36  ;;  %vm23498_vm10 = vmmov %vm23493_vm4 }
 0xdc3   : > { %15957 = vmatmul.mubr.msk.bf16.gmra.mrb[88].mxu0 %vm23478_vm1, %v17856_v36  ;;  %10369 = vmatprep.mubr.bf16.mxu1 %v23324_v16  ;;  %v10497_v19 = vsel %vm23498_vm10, %v10479_v9, %v10481_v32  ;;  %vm23499_vm1 = vmmov %vm23493_vm4  ;;  %v17863_v9 = vld [vmem:[%s23188_s1 + $0x3c4] sm:$0xff]  }
 0xdc4   : > { %10296 = vmatprep.mubr.bf16.mxu0 %v23324_v16  ;;  %v10501_v14 = vsel %vm23499_vm1, %v10489_v48, %v10491_v11  ;;  %vm23500_vm4 = vmmov %vm23499_vm1  ;;  %v11009_v36 = vpop.permute.xlu0 %11008 }
 0xdc5   : > { %v10502_v29 = vsel %vm23500_vm4, %v10491_v11, %v10493_v54  ;;  %vm23501_vm8 = vmmov %vm23499_vm1  ;;  %v10997_v11 = vpop.permute.xlu1 %10996 }
 0xdc6   : > { %v10500_v60 = vsel %vm23501_vm8, %v10487_v3, %v10489_v48  ;;  %vm23505_vm10 = vmmov %vm23504_vm6 }
 0xdc7   : > { %vm23506_vm1 = vmmov %vm23504_vm6 }
 0xdc8   : > { %vm23508_vm4 = vmmov %vm23506_vm1  ;;  %v11011_v43 = vpop.permute.xlu0 %11010 }
 0xdc9   : > { %vm23509_vm8 = vmmov %vm23503_vm9  ;;  %v11007_v48 = vpop.permute.xlu1 %11006 }
 0xdca   : > { %15970 = vmatmul.mubr.msk.bf16.vlgmr.msra.gmra.mrb[76].mxu1 %vm23492_vm7, %v17857_v17  ;;  %v10759_v56 = vsel %vm23509_vm8, %v21201_v31, %v10740_v35  ;;  %vm23511_vm9 = vmmov %vm23506_vm1 }
 0xdcb   : > { %15966 = vmatmul.mubr.msk.bf16.vlgmr.msra.gmra.mrb[76].mxu0 %vm23495_vm11, %v17857_v17  ;;  %10601 = vmatpush1.bf16.msra.mxu1 %v10496_v46  ;;  %vm23502_vm11 = vmmov %vm23492_vm7 }
 0xdcc   : > { %10528 = vmatpush1.bf16.msra.mxu0 %v10494_v55  ;;  %10602 = vmatprep.subr.bf16.mxu1 %v10485_v42  ;;  %v11017_v17 = vpop.permute.xlu0 %11016  ;;  %v17866_v55 = vld [vmem:[%s23188_s1 + $0x3dc] sm:$0xff]  }
 0xdcd   : > { %10529 = vmatprep.subr.bf16.mxu0 %v10498_v59  ;;  %10306 = vmatprep.mubr.bf16.mxu0 %v23324_v16  ;;  %v11005_v0 = vpop.permute.xlu1 %11004 }
 0xdce   : > { %10379 = vmatprep.mubr.bf16.mxu1 %v23324_v16 }
 0xdcf   : > { %10603 = vmatpush1.bf16.msra.mxu1 %v10499_v45 }
 0xdd0   : > { %10530 = vmatpush1.bf16.msra.mxu0 %v10497_v19  ;;  %10604 = vmatprep.subr.bf16.mxu1 %v10493_v54  ;;  %v17864_v54 = vld [vmem:[%s23188_s1 + $0x3cc] sm:$0xff]   ;;  %v11019_v59 = vpop.permute.xlu0 %11018  ;;  %v17867_v19 = vld [vmem:[%s23188_s1 + $0x3e4] sm:$0xff]  }
 0xdd1   : > { %10531 = vmatprep.subr.bf16.mxu0 %v10501_v14  ;;  %v11015_v2 = vpop.permute.xlu1 %11014  ;;  %v17870_v14 = vld [vmem:[%s23188_s1 + $0x3fc] sm:$0xff]  }
 0xdd2   : > { %15971 = vmatmul.mubr.msk.bf16.gmra.mrb[80].mxu1 %vm23492_vm7, %v17858_v47  ;;  %vm23507_vm7 = vmmov %vm23506_vm1 }
 0xdd3   : > { %15967 = vmatmul.mubr.msk.bf16.gmra.mrb[80].mxu0 %vm23502_vm11, %v17858_v47  ;;  %10605 = vmatpush1.bf16.msra.mxu1 %v10502_v29  ;;  %vm23510_vm11 = vmmov %vm23509_vm8  ;;  %v17871_v29 = vld [vmem:[%s23188_s1 + $0x404] sm:$0xff]  }
 0xdd4   : > { %10532 = vmatpush1.bf16.msra.mxu0 %v10500_v60  ;;  %10863 = vmatprep.subr.bf16.mxu1 %v10740_v35  ;;  %v10757_v20 = vsel %vm23510_vm11, %v10734_v7, %v10736_v28  ;;  %v17868_v35 = vld [vmem:[%s23188_s1 + $0x3ec] sm:$0xff]  }
 0xdd5   : > { %10790 = vmatprep.subr.bf16.mxu0 %v10758_v57  ;;  %10316 = vmatprep.mubr.bf16.mxu0 %v23324_v16  ;;  %v11013_v51 = vpop.permute.xlu1 %11012  ;;  %v17872_v60 = vld [vmem:[%s23188_s1 + $0x40c] sm:$0xff]  }
 0xdd6   : > { %10389 = vmatprep.mubr.bf16.mxu1 %v23324_v16 }
 0xdda   : > { %15972 = vmatmul.mubr.msk.bf16.gmra.mrb[84].mxu1 %vm23504_vm6, %v17859_v4  ;;  %vm23512_vm6 = vmmov %vm23509_vm8 }
 0xddb   : > { %15968 = vmatmul.mubr.msk.bf16.gmra.mrb[84].mxu0 %vm23505_vm10, %v17859_v4  ;;  %10399 = vmatprep.mubr.bf16.mxu1 %v23324_v16  ;;  %v10761_v15 = vsel %vm23512_vm6, %v10744_v21, %v10746_v52  ;;  %vm23513_vm10 = vmmov %vm23512_vm6 }
 0xddc   : > { %10326 = vmatprep.mubr.bf16.mxu0 %v23324_v16  ;;  %v10762_v26 = vsel %vm23513_vm10, %v10746_v52, %v10748_v22  ;;  %vm23520_vm10 = vmmov %vm23508_vm4 }
 0xde2   : > { %15973 = vmatmul.mubr.msk.bf16.gmra.mrb[88].mxu1 %vm23506_vm1, %v17860_v27  ;;  %vm23514_vm1 = vmmov %vm23512_vm6  ;;  %vm23519_vm6 = vcmask 736256  }
 0xde3   : > { %15969 = vmatmul.mubr.msk.bf16.gmra.mrb[88].mxu0 %vm23507_vm7, %v17860_v27  ;;  %10632 = vmatprep.mubr.bf16.mxu1 %v23324_v16  ;;  %v10760_v24 = vsel %vm23514_vm1, %v10742_v61, %v10744_v21  ;;  %vm23515_vm7 = vmmov %vm23514_vm1  ;;  %v11021_v42 = vsel %vm23519_vm6, %v10999_v63, %v11001_v62 }
 0xde4   : > { %10559 = vmatprep.mubr.bf16.mxu0 %v23324_v16  ;;  %v10764_v41 = vsel %vm23515_vm7, %v10752_v25, %v10754_v49  ;;  %vm23516_vm8 = vmmov %vm23514_vm1 }
 0xde5   : > { %v10765_v37 = vsel %vm23516_vm8, %v10754_v49, %v10756_v33  ;;  %vm23517_vm11 = vmmov %vm23514_vm1 }
 0xde6   : > { %v10763_v32 = vsel %vm23517_vm11, %v10750_v30, %v10752_v25  ;;  %vm23521_vm1 = vmmov %vm23508_vm4  ;;  %v23548_v30 = vld [vmem:[#allocation9_spill] sm:$0xff] }
 0xde7   : > { %vm23522_vm7 = vmmov %vm23521_vm1 }
 0xde8   : > { %vm23524_vm8 = vmmov %vm23521_vm1 }
 0xde9   : > { %vm23525_vm11 = vmmov %vm23519_vm6 }
 0xdea   : > { %15982 = vmatmul.mubr.msk.bf16.vlgmr.msra.gmra.mrb[76].mxu1 %vm23508_vm4, %v17861_v53  ;;  %v11022_v3 = vsel %vm23525_vm11, %v11001_v62, %v11003_v38 }
 0xdeb   : > { %15978 = vmatmul.mubr.msk.bf16.vlgmr.msra.gmra.mrb[76].mxu0 %vm23511_vm9, %v17861_v53  ;;  %10864 = vmatpush1.bf16.msra.mxu1 %v10759_v56  ;;  %vm23518_vm9 = vmmov %vm23508_vm4 }
 0xdec   : > { %10791 = vmatpush1.bf16.msra.mxu0 %v10757_v20  ;;  %10865 = vmatprep.subr.bf16.mxu1 %v10748_v22 }
 0xded   : > { %10792 = vmatprep.subr.bf16.mxu0 %v10761_v15  ;;  %10569 = vmatprep.mubr.bf16.mxu0 %v23324_v16  ;;  %v23549_v15 = vmax.f32 %v23548_v30, 0.0 }
 0xdee   : > { %10642 = vmatprep.mubr.bf16.mxu1 %v23324_v16 }
 0xdef   : > { %10866 = vmatpush1.bf16.msra.mxu1 %v10762_v26  ;;  %v21364_v62 = vmul.f32 2.0, %v23549_v15  ;;  %v23550_v26 = vld [vmem:[#allocation10_spill] sm:$0xff] }
 0xdf0   : > { %10793 = vmatpush1.bf16.msra.mxu0 %v10760_v24  ;;  %10867 = vmatprep.subr.bf16.mxu1 %v10756_v33  ;;  %v23546_v33 = vld [vmem:[#allocation8_spill] sm:$0xff]  ;;  %v23572_v15 = vld [vmem:[#allocation22_spill] sm:$0xff] }
 0xdf1   : > { %10794 = vmatprep.subr.bf16.mxu0 %v10764_v41  ;;  %v23547_v56 = vmax.f32 %v23546_v33, 0.0  ;;  %v23552_v41 = vld [vmem:[#allocation11_spill] sm:$0xff] }
 0xdf2   : > { %15983 = vmatmul.mubr.msk.bf16.gmra.mrb[80].mxu1 %vm23508_vm4, %v17862_v8  ;;  %vm23523_vm4 = vmmov %vm23521_vm1 }
 0xdf3   : > { %15979 = vmatmul.mubr.msk.bf16.gmra.mrb[80].mxu0 %vm23518_vm9, %v17862_v8  ;;  %10868 = vmatpush1.bf16.msra.mxu1 %v10765_v37  ;;  %vm23526_vm9 = vmmov %vm23519_vm6  ;;  %v21360_v20 = vmul.f32 2.0, %v23547_v56  ;;  %v23551_v8 = vmax.f32 %v23550_v26, 0.0  ;;  %v23573_v26 = vmax.f32 %v23572_v15, 0.0 }
 0xdf4   : > { %10795 = vmatpush1.bf16.msra.mxu0 %v10763_v32  ;;  %11126 = vmatprep.subr.bf16.mxu1 %v11003_v38  ;;  %v11020_v40 = vsel %vm23526_vm9, %v10997_v11, %v10999_v63  ;;  %vm23527_vm6 = vmmov %vm23521_vm1  ;;  %v23553_v63 = vmax.f32 %v23552_v41, 0.0  ;;  %v23554_v32 = vld [vmem:[#allocation12_spill] sm:$0xff] }
 0xdf5   : > { %11053 = vmatprep.subr.bf16.mxu0 %v11021_v42  ;;  %10579 = vmatprep.mubr.bf16.mxu0 %v23324_v16  ;;  %v21368_v24 = vmul.f32 2.0, %v23551_v8  ;;  %v23555_v38 = vmax.f32 %v23554_v32, 0.0  ;;  %v21412_v8 = vmul.f32 2.0, %v23573_v26 }
 0xdf6   : > { %10652 = vmatprep.mubr.bf16.mxu1 %v23324_v16  ;;  %v21372_v37 = vmul.f32 2.0, %v23553_v63 }
 0xdf7   : > { %v21376_v42 = vmul.f32 2.0, %v23555_v38 }
 0xdfa   : > { %15984 = vmatmul.mubr.msk.bf16.gmra.mrb[84].mxu1 %vm23520_vm10, %v17863_v9  ;;  %vm23528_vm10 = vmmov %vm23526_vm9 }
 0xdfb   : > { %15980 = vmatmul.mubr.msk.bf16.gmra.mrb[84].mxu0 %vm23521_vm1, %v17863_v9  ;;  %10662 = vmatprep.mubr.bf16.mxu1 %v23324_v16  ;;  %v11024_v31 = vsel %vm23528_vm10, %v11007_v48, %v11009_v36  ;;  %vm23529_vm1 = vmmov %vm23526_vm9  ;;  %v23556_v9 = vld [vmem:[#allocation14_spill] sm:$0xff] }
 0xdfc   : > { %10589 = vmatprep.mubr.bf16.mxu0 %v23324_v16  ;;  %v11025_v46 = vsel %vm23529_vm1, %v11009_v36, %v11011_v43  ;;  %vm23533_vm11 = vmmov %vm23529_vm1  ;;  %v23557_v11 = vmax.f32 %v23556_v9, 0.0  ;;  %v23574_v9 = vld [vmem:[#allocation13_spill] sm:$0xff] }
 0xdfd   : > { %v11028_v45 = vsel %vm23533_vm11, %v11017_v17, %v11019_v59  ;;  %vm23534_vm9 = vmmov %vm23529_vm1 }
 0xdfe   : > { %v11026_v47 = vsel %vm23534_vm9, %v11013_v51, %v11015_v2  ;;  %vm23535_vm10 = vmmov %vm23527_vm6  ;;  %v21380_v36 = vmul.f32 2.0, %v23557_v11  ;;  %v23575_v11 = vmax.f32 %v23574_v9, 0.0 }
 0xe02   : > { %15985 = vmatmul.mubr.msk.bf16.gmra.mrb[88].mxu1 %vm23522_vm7, %v17864_v54  ;;  %vm23530_vm7 = vmmov %vm23529_vm1 }
 0xe03   : > { %15981 = vmatmul.mubr.msk.bf16.gmra.mrb[88].mxu0 %vm23523_vm4, %v17864_v54  ;;  %10895 = vmatprep.mubr.bf16.mxu1 %v23324_v16  ;;  %v11023_v34 = vsel %vm23530_vm7, %v11005_v0, %v11007_v48  ;;  %vm23531_vm4 = vmmov %vm23529_vm1  ;;  %v23558_v54 = vld [vmem:[#allocation15_spill] sm:$0xff] }
 0xe04   : > { %10822 = vmatprep.mubr.bf16.mxu0 %v23324_v16  ;;  %v11027_v28 = vsel %vm23531_vm4, %v11015_v2, %v11017_v17  ;;  %vm23536_vm1 = vmmov %vm23527_vm6 }
 0xe05   : > { %vm23537_vm7 = vmmov %vm23536_vm1 }
 0xe06   : > { %vm23538_vm4 = vmmov %vm23536_vm1 }
 0xe07   : > { %vm23540_vm11 = vmmov %vm23536_vm1 }
 0xe08   : > { %vm23541_vm9 = vmmov %vm23536_vm1 }
 0xe0a   : > { %15994 = vmatmul.mubr.msk.bf16.vlgmr.msra.gmra.mrb[76].mxu1 %vm23524_vm8, %v17865_v44  ;;  %vm23532_vm8 = vmmov %vm23527_vm6 }
 0xe0b   : > { %15990 = vmatmul.mubr.msk.bf16.vlgmr.msra.gmra.mrb[76].mxu0 %vm23527_vm6, %v17865_v44  ;;  %11127 = vmatpush1.bf16.msra.mxu1 %v11022_v3  ;;  %v23560_v44 = vld [vmem:[#allocation16_spill] sm:$0xff]  ;;  %v23562_v3 = vld [vmem:[#allocation17_spill] sm:$0xff] }
 0xe0c   : > { %11054 = vmatpush1.bf16.msra.mxu0 %v11020_v40  ;;  %11128 = vmatprep.subr.bf16.mxu1 %v11011_v43  ;;  %v23559_v43 = vmax.f32 %v23558_v54, 0.0  ;;  %v23561_v17 = vmax.f32 %v23560_v44, 0.0  ;;  %v23563_v40 = vmax.f32 %v23562_v3, 0.0  ;;  %v21416_v54 = vmul.f32 2.0, %v23575_v11 }
 0xe0d   : > { %11055 = vmatprep.subr.bf16.mxu0 %v11024_v31  ;;  %10832 = vmatprep.mubr.bf16.mxu0 %v23324_v16 }
 0xe0e   : > { %10905 = vmatprep.mubr.bf16.mxu1 %v23324_v16  ;;  %v21384_v0 = vmul.f32 2.0, %v23559_v43  ;;  %v21388_v2 = vmul.f32 2.0, %v23561_v17  ;;  %v21392_v31 = vmul.f32 2.0, %v23563_v40  ;;  %v23576_v43 = vld [vmem:[#allocation23_spill] sm:$0xff] }
 0xe0f   : > { %11129 = vmatpush1.bf16.msra.mxu1 %v11025_v46  ;;  %v23564_v46 = vld [vmem:[#allocation18_spill] sm:$0xff]  ;;  %v23577_v44 = vmax.f32 %v23576_v43, 0.0 }
 0xe10   : > { %11056 = vmatpush1.bf16.msra.mxu0 %v11023_v34  ;;  %11130 = vmatprep.subr.bf16.mxu1 %v11019_v59 }
 0xe11   : > { %11057 = vmatprep.subr.bf16.mxu0 %v11027_v28  ;;  %v11242_v7 = vpop.permute.xlu1 %11241  ;;  %v23566_v28 = vld [vmem:[#allocation19_spill] sm:$0xff]  ;;  %v21420_v17 = vmul.f32 2.0, %v23577_v44 }
 0xe12   : > { %15995 = vmatmul.mubr.msk.bf16.gmra.mrb[80].mxu1 %vm23532_vm8, %v17866_v55  ;;  %vm23539_vm8 = vmmov %vm23536_vm1 }
 0xe13   : > { %15991 = vmatmul.mubr.msk.bf16.gmra.mrb[80].mxu0 %vm23527_vm6, %v17866_v55  ;;  %11131 = vmatpush1.bf16.msra.mxu1 %v11028_v45  ;;  %vm23542_vm6 = vmmov %vm23536_vm1  ;;  %v23565_v55 = vmax.f32 %v23564_v46, 0.0  ;;  %v23567_v45 = vmax.f32 %v23566_v28, 0.0 }
 0xe14   : > { %11058 = vmatpush1.bf16.msra.mxu0 %v11026_v47  ;;  %10842 = vmatprep.mubr.bf16.mxu0 %v23324_v16 }
 0xe15   : > { %10915 = vmatprep.mubr.bf16.mxu1 %v23324_v16  ;;  %v21396_v34 = vmul.f32 2.0, %v23565_v55  ;;  %v21400_v47 = vmul.f32 2.0, %v23567_v45 }
 0xe16   : > { %v21354_v39 = vpop.permute.xlu1 %11261  ;;  %v11247_v57 = vpop.permute.xlu0 %11246 }
 0xe1a   : > { %15996 = vmatmul.mubr.msk.bf16.gmra.mrb[84].mxu1 %vm23535_vm10, %v17867_v19  ;;  %vm23543_vm10 = vmmov %vm23536_vm1 }
 0xe1b   : > { %15992 = vmatmul.mubr.msk.bf16.gmra.mrb[84].mxu0 %vm23536_vm1, %v17867_v19  ;;  %10925 = vmatprep.mubr.bf16.mxu1 %v23324_v16  ;;  %v11252_v48 = vpop.permute.xlu0 %11251  ;;  %v23568_v19 = vld [vmem:[#allocation20_spill] sm:$0xff] }
 0xe1c   : > { %10852 = vmatprep.mubr.bf16.mxu0 %v23324_v16  ;;  %v21356_v4 = vpop.permute.xlu1 %11266 }
 0xe22   : > { %15997 = vmatmul.mubr.msk.bf16.gmra.mrb[88].mxu1 %vm23537_vm7, %v17868_v35  ;;  %vm23544_vm7 = vmmov %vm23536_vm1 }
 0xe23   : > { %15993 = vmatmul.mubr.msk.bf16.gmra.mrb[88].mxu0 %vm23538_vm4, %v17868_v35  ;;  %11158 = vmatprep.mubr.bf16.mxu1 %v23324_v16  ;;  %vm23545_vm4 = vmmov %vm23536_vm1  ;;  %v11257_v59 = vpop.permute.xlu1 %11256  ;;  %v23569_v35 = vmax.f32 %v23568_v19, 0.0 }
 0xe24   : > { %11085 = vmatprep.mubr.bf16.mxu0 %v23324_v16 }
 0xe2a   : > { %16006 = vmatmul.mubr.msk.bf16.vlgmr.msra.gmra.mrb[76].mxu1 %vm23539_vm8, %v17869_v10  ;;  %vm23578_vm8 = vcmp.eq.s32.totalorder %v23354_v50, 1 }
 0xe2b   : > { %16002 = vmatmul.mubr.msk.bf16.vlgmr.msra.gmra.mrb[76].mxu0 %vm23540_vm11, %v17869_v10  ;;  %11168 = vmatprep.mubr.bf16.mxu1 %v23324_v16  ;;  %v21404_v10 = vmul.f32 2.0, %v23569_v35  ;;  %vm23579_vm11 = vmmov %vm23578_vm8 }
 0xe2c   : > { %11095 = vmatprep.mubr.bf16.mxu0 %v23324_v16 }
 0xe32   : > { %16007 = vmatmul.mubr.msk.bf16.gmra.mrb[80].mxu1 %vm23541_vm9, %v17870_v14  ;;  %vm23588_vm9 = vmmov %vm23578_vm8 }
 0xe33   : > { %16003 = vmatmul.mubr.msk.bf16.gmra.mrb[80].mxu0 %vm23542_vm6, %v17870_v14  ;;  %11178 = vmatprep.mubr.bf16.mxu1 %v23324_v16  ;;  %v23570_v14 = vld [vmem:[#allocation21_spill] sm:$0xff]  ;;  %vm23589_vm6 = vmmov %vm23578_vm8 }
 0xe34   : > { %11105 = vmatprep.mubr.bf16.mxu0 %v23324_v16 }
 0xe3a   : > { %16008 = vmatmul.mubr.msk.bf16.gmra.mrb[84].mxu1 %vm23543_vm10, %v17871_v29  ;;  %vm23590_vm10 = vcmask 154624  }
 0xe3b   : > { %16004 = vmatmul.mubr.msk.bf16.gmra.mrb[84].mxu0 %vm23536_vm1, %v17871_v29  ;;  %11188 = vmatprep.mubr.bf16.mxu1 %v23324_v16  ;;  %v23571_v29 = vmax.f32 %v23570_v14, 0.0  ;;  %vm23591_vm1 = vmmov %vm23590_vm10 }
 0xe3c   : > { %11115 = vmatprep.mubr.bf16.mxu0 %v23324_v16 }
 0xe42   : > { %16009 = vmatmul.mubr.msk.bf16.gmra.mrb[88].mxu1 %vm23544_vm7, %v17872_v60  ;;  %vm23592_vm7 = vmmov %vm23591_vm1 }
 0xe43   : > { %16005 = vmatmul.mubr.msk.bf16.gmra.mrb[88].mxu0 %vm23545_vm4, %v17872_v60  ;;  %11690 = vmatprep.mubr.bf16.mxu1 %v23324_v16  ;;  %v21408_v60 = vmul.f32 2.0, %v23571_v29  ;;  %vm23593_vm4 = vmmov %vm23591_vm1 }
 0xe44   : > { %11617 = vmatprep.mubr.bf16.mxu0 %v23324_v16 }
 0xefd   : > { %v11160_v52 = vpop.f32.mrb[76].mxu1 }
 0xefe   : > { %v11087_v21 = vpop.f32.mrb[76].mxu0  ;;  %v11162_v22 = vpop.f32.mrb[77].mxu1  ;;  %v11281_v33 = vadd.f32 %v11242_v7, %v11160_v52 }
 0xeff   : > { %v11089_v27 = vpop.f32.mrb[77].mxu0  ;;  %v11164_v61 = vpop.f32.mrb[78].mxu1  ;;  %v11279_v41 = vadd.f32 %v11242_v7, %v11087_v21  ;;  %v11282_v63 = vadd.f32 %v11242_v7, %v11162_v22 }
 0xf00   : > { %v11091_v49 = vpop.f32.mrb[78].mxu0  ;;  %v11166_v25 = vpop.f32.mrb[79].mxu1  ;;  %v11280_v3 = vadd.f32 %v11242_v7, %v11089_v27  ;;  %v11285_v55 = vadd.f32 %v11247_v57, %v11164_v61  ;;  %v11313_v35 = vmax.f32 %v11281_v33, 0.0 }
 0xf01   : > { %v11093_v53 = vpop.f32.mrb[79].mxu0  ;;  %v21422_v52 = vadd.f32 %v11247_v57, %v11091_v49  ;;  %v11286_v21 = vadd.f32 %v11247_v57, %v11166_v25  ;;  %v11311_v7 = vmax.f32 %v11279_v41, 0.0  ;;  %v11314_v27 = vmax.f32 %v11282_v63, 0.0 }
 0xf02   : > { %v21424_v28 = vadd.f32 %v11247_v57, %v11093_v53  ;;  %v11312_v53 = vmax.f32 %v11280_v3, 0.0 }
 0xf03   : > { %v11315_v57 = vmax.f32 %v21422_v52, 0.0 }
 0xf04   : > { %v11316_v33 = vmax.f32 %v21424_v28, 0.0 }
 0xf05   : > { %v11170_v51 = vpop.f32.mrb[80].mxu1 }
 0xf06   : > { %v11097_v56 = vpop.f32.mrb[80].mxu0  ;;  %v11172_v30 = vpop.f32.mrb[81].mxu1  ;;  %v21428_v19 = vadd.f32 %v11252_v48, %v11170_v51  ;;  %v11317_v51 = vmax.f32 %v11285_v55, 0.0 }
 0xf07   : > { %v11099_v32 = vpop.f32.mrb[81].mxu0  ;;  %v11174_v38 = vpop.f32.mrb[82].mxu1  ;;  %v21426_v22 = vadd.f32 %v11252_v48, %v11097_v56  ;;  %v21432_v29 = vadd.f32 %v11252_v48, %v11172_v30  ;;  %v11318_v56 = vmax.f32 %v11286_v21, 0.0 }
 0xf08   : > { %v11101_v40 = vpop.f32.mrb[82].mxu0  ;;  %v11176_v46 = vpop.f32.mrb[83].mxu1  ;;  %v21430_v14 = vadd.f32 %v11252_v48, %v11099_v32  ;;  %v21434_v15 = vadd.f32 %v11257_v59, %v11174_v38 }
 0xf09   : > { %v11103_v45 = vpop.f32.mrb[83].mxu0  ;;  %v21436_v49 = vadd.f32 %v11257_v59, %v11101_v40  ;;  %v21438_v61 = vadd.f32 %v11257_v59, %v11176_v46 }
 0xf0a   : > { %v21441_v25 = vadd.f32 %v11257_v59, %v11103_v45 }
 0xf0d   : > { %v11180_v30 = vpop.f32.mrb[84].mxu1 }
 0xf0e   : > { %v11107_v38 = vpop.f32.mrb[84].mxu0  ;;  %v11297_v9 = vadd.f32 %v21354_v39, %v11180_v30  ;;  %v11182_v59 = vpop.f32.mrb[85].mxu1 }
 0xf0f   : > { %v11295_v44 = vadd.f32 %v21354_v39, %v11107_v38  ;;  %v11109_v3 = vpop.f32.mrb[85].mxu0  ;;  %v11298_v52 = vadd.f32 %v21354_v39, %v11182_v59  ;;  %v11184_v40 = vpop.f32.mrb[86].mxu1 }
 0xf10   : > { %v11329_v55 = vmax.f32 %v11297_v9, 0.0  ;;  %v11296_v28 = vadd.f32 %v21354_v39, %v11109_v3  ;;  %v11301_v21 = vadd.f32 %v21356_v4, %v11184_v40  ;;  %v11111_v45 = vpop.f32.mrb[86].mxu0  ;;  %v11186_v30 = vpop.f32.mrb[87].mxu1 }
 0xf11   : > { %v11327_v58 = vmax.f32 %v11295_v44, 0.0  ;;  %v11330_v32 = vmax.f32 %v11298_v52, 0.0  ;;  %v11299_v11 = vadd.f32 %v21356_v4, %v11111_v45  ;;  %v11113_v43 = vpop.f32.mrb[87].mxu0  ;;  %v11302_v38 = vadd.f32 %v21356_v4, %v11186_v30  ;;  %v11272_v30 = vpop.permute.xlu0 %11271 }
 0xf12   : > { %v11345_v63 = vadd.f32 %v11329_v55, %v11313_v35  ;;  %v11328_v41 = vmax.f32 %v11296_v28, 0.0  ;;  %v11333_v59 = vmax.f32 %v11301_v21, 0.0  ;;  %v11300_v26 = vadd.f32 %v21356_v4, %v11113_v43 }
 0xf13   : > { %v11343_v46 = vadd.f32 %v11327_v58, %v11311_v7  ;;  %v11346_v9 = vadd.f32 %v11330_v32, %v11314_v27  ;;  %v11331_v48 = vmax.f32 %v11299_v11, 0.0  ;;  %v11334_v39 = vmax.f32 %v11302_v38, 0.0 }
 0xf14   : > { %v11377_v3 = vadd.f32 %v21364_v62, %v11345_v63  ;;  %v11344_v40 = vadd.f32 %v11328_v41, %v11312_v53  ;;  %v11349_v23 = vadd.f32 %v11333_v59, %v11317_v51  ;;  %v11332_v44 = vmax.f32 %v11300_v26, 0.0  ;;  %v11277_v63 = vpop.permute.xlu1 %11276 }
 0xf15   : > { %v11375_v52 = vadd.f32 %v21360_v20, %v11343_v46  ;;  %v21463_v45 = vadd.f32 %v21372_v37, %v11346_v9  ;;  %v11347_v35 = vadd.f32 %v11331_v48, %v11315_v57  ;;  %v11350_v55 = vadd.f32 %v11334_v39, %v11318_v56  ;;  %v11190_v28 = vpop.f32.mrb[88].mxu1 }
 0xf16   : > { %v21467_v58 = vsel %vm1887_vm14, %v11377_v3, 0.0  ;;  %v11376_v4 = vadd.f32 %v21368_v24, %v11344_v40  ;;  %v11381_v62 = vadd.f32 %v21416_v54, %v11349_v23  ;;  %v11348_v7 = vadd.f32 %v11332_v44, %v11316_v33  ;;  %v11117_v27 = vpop.f32.mrb[88].mxu0  ;;  %v11192_v53 = vpop.f32.mrb[89].mxu1 }
 0xf17   : > { %v11391_v20 = vsel %vm1885_vm15, %v11375_v52, 0.0  ;;  %v11394_v37 = vsel %vm18402_vm0, %v21463_v45, 0.0  ;;  %v11379_v57 = vadd.f32 %v21376_v42, %v11347_v35  ;;  %v11382_v51 = vadd.f32 %v21384_v0, %v11350_v55  ;;  %v11119_v56 = vpop.f32.mrb[89].mxu0  ;;  %v11194_v48 = vpop.f32.mrb[90].mxu1 }
 0xf18   : > { %v11392_v24 = vsel %vm23578_vm8, %v11376_v4, 0.0  ;;  %v11397_v23 = vsel %vm1887_vm14, %v11381_v62, 0.0  ;;  %v11380_v54 = vadd.f32 %v21380_v36, %v11348_v7  ;;  %v11303_v33 = vadd.f32 %v11272_v30, %v11117_v27  ;;  %v11121_v26 = vpop.f32.mrb[90].mxu0  ;;  %v11196_v41 = vpop.f32.mrb[91].mxu1  ;;  %vm23594_vm8 = vmmov %vm23591_vm1 }
 0xf19   : > { %v11395_v32 = vsel %vm1885_vm15, %v11379_v57, 0.0  ;;  %v11398_v42 = vsel %vm18402_vm0, %v11382_v51, 0.0  ;;  %v11305_v0 = vadd.f32 %v11272_v30, %v11190_v28  ;;  %v11304_v11 = vadd.f32 %v11272_v30, %v11119_v56  ;;  %v11123_v43 = vpop.f32.mrb[91].mxu0 }
 0xf1a   : > { %v11396_v46 = vsel %vm23579_vm11, %v11380_v54, 0.0  ;;  %v11335_v21 = vmax.f32 %v11303_v33, 0.0  ;;  %v11306_v38 = vadd.f32 %v11272_v30, %v11192_v53  ;;  %v11307_v59 = vadd.f32 %v11277_v63, %v11121_v26  ;;  %vm23595_vm11 = vmmov %vm23591_vm1 }
 0xf1b   : > { %v11337_v36 = vmax.f32 %v11305_v0, 0.0  ;;  %v11336_v9 = vmax.f32 %v11304_v11, 0.0  ;;  %v11309_v39 = vadd.f32 %v11277_v63, %v11194_v48  ;;  %v11308_v3 = vadd.f32 %v11277_v63, %v11123_v43 }
 0xf1c   : > { %v23580_v40 = vmax.f32 %v21426_v22, 0.0  ;;  %v11338_v52 = vmax.f32 %v11306_v38, 0.0  ;;  %v11339_v45 = vmax.f32 %v11307_v59, 0.0  ;;  %v11310_v35 = vadd.f32 %v11277_v63, %v11196_v41 }
 0xf1d   : > { %v23581_v55 = vmax.f32 %v21428_v19, 0.0  ;;  %v23582_v4 = vmax.f32 %v21430_v14, 0.0  ;;  %v11341_v7 = vmax.f32 %v11309_v39, 0.0  ;;  %v11340_v27 = vmax.f32 %v11308_v3, 0.0 }
 0xf1e   : > { %v11351_v44 = vadd.f32 %v11335_v21, %v23580_v40  ;;  %v23583_v53 = vmax.f32 %v21432_v29, 0.0  ;;  %v23584_v51 = vmax.f32 %v21436_v49, 0.0  ;;  %v11342_v56 = vmax.f32 %v11310_v35, 0.0 }
 0xf1f   : > { %v11353_v28 = vadd.f32 %v11337_v36, %v23581_v55  ;;  %v11352_v62 = vadd.f32 %v11336_v9, %v23582_v4  ;;  %v23585_v19 = vmax.f32 %v21434_v15, 0.0  ;;  %v23586_v14 = vmax.f32 %v21441_v25, 0.0 }
 0xf20   : > { %v11383_v30 = vadd.f32 %v21388_v2, %v11351_v44  ;;  %v11354_v57 = vadd.f32 %v11338_v52, %v23583_v53  ;;  %v11355_v22 = vadd.f32 %v11339_v45, %v23584_v51  ;;  %v23587_v49 = vmax.f32 %v21438_v61, 0.0 }
 0xf21   : > { %v11385_v48 = vadd.f32 %v21392_v31, %v11353_v28  ;;  %v11384_v54 = vadd.f32 %v21396_v34, %v11352_v62  ;;  %v11357_v33 = vadd.f32 %v11341_v7, %v23585_v19  ;;  %v11356_v26 = vadd.f32 %v11340_v27, %v23586_v14 }
 0xf22   : > { %v11399_v2 = vsel %vm1885_vm15, %v11383_v30, 0.0  ;;  %v11386_v29 = vadd.f32 %v21400_v47, %v11354_v57  ;;  %v11387_v41 = vadd.f32 %v21404_v10, %v11355_v22  ;;  %v11358_v63 = vadd.f32 %v11342_v56, %v23587_v49 }
 0xf23   : > { %v11401_v31 = vsel %vm1887_vm14, %v11385_v48, 0.0  ;;  %v11400_v34 = vsel %vm23588_vm9, %v11384_v54, 0.0  ;;  %v11389_v15 = vadd.f32 %v21408_v60, %v11357_v33  ;;  %v11388_v25 = vadd.f32 %v21412_v8, %v11356_v26  ;;  %vm23596_vm9 = vmmov %vm23591_vm1 }
 0xf24   : > { %v11402_v0 = vsel %vm18402_vm0, %v11386_v29, 0.0  ;;  %v11403_v47 = vsel %vm1885_vm15, %v11387_v41, 0.0  ;;  %v11390_v10 = vadd.f32 %v21420_v17, %v11358_v63  ;;  %v17621_v61 = vpack.i.bf16 %v11392_v24, %v11391_v20 }
 0xf25   : > { %v11405_v11 = vsel %vm1887_vm14, %v11389_v15, 0.0  ;;  %v11404_v43 = vsel %vm23589_vm6, %v11388_v25, 0.0  ;;  %v17626_v21 = vpack.i.bf16 %v11395_v32, %v21467_v58  ;;  %v17631_v60 = vpack.i.bf16 %v11397_v23, %v11396_v46  ;;  %vm23597_vm6 = vmmov %vm23591_vm1 }
 0xf26   : > { %v11406_v8 = vsel %vm18402_vm0, %v11390_v10, 0.0  ;;  %17622 = vrot.lane.b32.xlu0 %v17621_v61, %s17998_s21  ;;  %v17636_v38 = vpack.i.bf16 %v11398_v42, %v11394_v37  ;;  %v17641_v59 = vpack.i.bf16 %v11400_v34, %v11399_v2  ;;  %v17646_v36 = vpack.i.bf16 %v11403_v47, %v11401_v31 }
 0xf27   : > { %17627 = vrot.lane.b32.xlu1 %v17626_v21, %s17998_s21  ;;  %v17651_v17 = vpack.i.bf16 %v11405_v11, %v11404_v43  ;;  %v17656_v20 = vpack.i.bf16 %v11406_v8, %v11402_v0 }
 0xf2a   : > { %17632 = vrot.lane.b32.xlu0 %v17631_v60, %s17998_s21 }
 0xf2b   : > { %17637 = vrot.lane.b32.xlu1 %v17636_v38, %s17998_s21 }
 0xf2e   : > { %17642 = vrot.lane.b32.xlu0 %v17641_v59, %s17998_s21 }
 0xf2f   : > { %17647 = vrot.lane.b32.xlu1 %v17646_v36, %s17998_s21 }
 0xf32   : > { %17652 = vrot.lane.b32.xlu0 %v17651_v17, %s17998_s21 }
 0xf33   : > { %17657 = vrot.lane.b32.xlu1 %v17656_v20, %s17998_s21 }
 0xf98   : > { %v17623_v58 = vpop.permute.xlu0 %17622 }
 0xf99   : > { %v21538_v37 = vunpack.i.l.bf16 %v17623_v58  ;;  %v17628_v24 = vpop.permute.xlu1 %17627  ;;  %v17625_v32 = vunpack.i.h.bf16 %v17623_v58 }
 0xf9a   : > { %v21540_v23 = vunpack.i.h.bf16 %v17628_v24  ;;  %v17629_v46 = vunpack.i.l.bf16 %v17628_v24 }
 0xf9b   : > { %v11483_v42 = vsel %vm23590_vm10, 0.0, %v21538_v37  ;;  %v11455_v28 = vsel %vm23592_vm7, %v21538_v37, %v17625_v32  ;;  %vm23598_vm10 = vcmask 547840   ;;  %vm23600_vm7 = vmmov %vm23593_vm4 }
 0xf9c   : > { %v11484_v9 = vsel %vm23591_vm1, 0.0, %v21540_v23  ;;  %v16029_v39 = vpack.c.bf16 %v21540_v23, %v21538_v37  ;;  %v17633_v3 = vpop.permute.xlu0 %17632  ;;  %v11456_v4 = vsel %vm23593_vm4, %v17625_v32, %v17629_v46  ;;  %vm23599_vm1 = vmmov %vm23598_vm10  ;;  %v17874_v37 = vld [vmem:[%s23188_s1 + $0x43c] sm:$0xff]  }
 0xf9d   : > { %v21548_v40 = vpack.c.bf16 %v11484_v9, %v11483_v42  ;;  %v17635_v44 = vunpack.i.h.bf16 %v17633_v3  ;;  %v17634_v52 = vunpack.i.l.bf16 %v17633_v3  ;;  %v17638_v45 = vpop.permute.xlu1 %17637 }
 0xf9e   : > { %v17640_v35 = vunpack.i.h.bf16 %v17638_v45  ;;  %v17639_v55 = vunpack.i.l.bf16 %v17638_v45 }
 0xf9f   : > { %v11458_v62 = vsel %vm23594_vm8, %v21540_v23, %v17634_v52  ;;  %v11459_v7 = vsel %vm23595_vm11, %v17634_v52, %v17635_v44  ;;  %11543 = vrot.lane.b32.xlu0 %v21548_v40, %s17989_s12  ;;  %vm23601_vm8 = vmmov %vm23593_vm4 }
 0xfa0   : > { %v21558_v27 = vpack.c.bf16 %v11458_v62, %v11455_v28  ;;  %v21560_v30 = vpack.c.bf16 %v11459_v7, %v11456_v4  ;;  %v21563_v53 = vsel %vm23596_vm9, %v17635_v44, %v17640_v35  ;;  %v21566_v57 = vsel %vm23597_vm6, %v17629_v46, %v17639_v55  ;;  %v17643_v51 = vpop.permute.xlu0 %17642  ;;  %vm23602_vm11 = vmmov %vm23593_vm4  ;;  %v17873_v4 = vld [vmem:[%s23188_s1 + $0x434] sm:$0xff]  }
 0xfa1   : > { %v11488_v22 = vsel %vm23598_vm10, %v21563_v53, 0.0  ;;  %v11487_v56 = vsel %vm23599_vm1, %v21566_v57, 0.0  ;;  %v21572_v48 = vunpack.i.l.bf16 %v17643_v51  ;;  %v17648_v54 = vpop.permute.xlu1 %17647  ;;  %v17645_v19 = vunpack.i.h.bf16 %v17643_v51  ;;  %vm23603_vm9 = vmmov %vm23593_vm4 }
 0xfa2   : > { %v21574_v33 = vunpack.i.h.bf16 %v17648_v54  ;;  %11547 = vrot.lane.b32.xlu1 %v21560_v30, %s17989_s12  ;;  %v16041_v14 = vpack.c.bf16 %v21563_v53, %v21566_v57  ;;  %v17649_v26 = vunpack.i.l.bf16 %v17648_v54  ;;  %v21582_v2 = vpack.c.bf16 %v11488_v22, %v11487_v56  ;;  %vm23604_vm6 = vmmov %vm23593_vm4  ;;  %v17876_v57 = vld [vmem:[%s23188_s1 + $0x44c] sm:$0xff]  }
 0xfa3   : > { %11545 = vrot.lane.b32.xlu0 %v21558_v27, %s17989_s12  ;;  %v11461_v34 = vsel %vm23600_vm7, %v21572_v48, %v17645_v19  ;;  %v11485_v0 = vsel %vm23593_vm4, 0.0, %v21572_v48  ;;  %vm23605_vm10 = vmmov %vm23593_vm4  ;;  %vm23607_vm7 = vcmask 547840  }
 0xfa4   : > { %v16034_v29 = vpack.c.bf16 %v21574_v33, %v21572_v48  ;;  %v17653_v41 = vpop.permute.xlu0 %17652  ;;  %v11462_v47 = vsel %vm23601_vm8, %v17645_v19, %v17649_v26  ;;  %vm23606_vm1 = vmmov %vm23593_vm4  ;;  %vm23609_vm8 = vcmask 261120   ;;  %v17877_v48 = vld [vmem:[%s23188_s1 + $0x414] sm:$0xff]  }
 0xfa5   : > { %v17655_v49 = vunpack.i.h.bf16 %v17653_v41  ;;  %v17654_v63 = vunpack.i.l.bf16 %v17653_v41  ;;  %v17658_v31 = vpop.permute.xlu1 %17657  ;;  %v11486_v8 = vsel %vm23606_vm1, 0.0, %v21574_v33  ;;  %vm23608_vm4 = vmmov %vm23607_vm7  ;;  %v17878_v41 = vld [vmem:[%s23188_s1 + $0x41c] sm:$0xff]  }
 0xfa6   : > { %v17660_v15 = vunpack.i.h.bf16 %v17658_v31  ;;  %v17659_v25 = vunpack.i.l.bf16 %v17658_v31  ;;  %11549 = vrot.lane.b32.xlu1 %v21582_v2, %s17989_s12  ;;  %v21618_v17 = vpack.c.bf16 %v11486_v8, %v11485_v0  ;;  %v17879_v31 = vld [vmem:[%s23188_s1 + $0x424] sm:$0xff]  }
 0xfa7   : > { %v11464_v10 = vsel %vm23602_vm11, %v21574_v33, %v17654_v63  ;;  %v11465_v61 = vsel %vm23603_vm9, %v17654_v63, %v17655_v49  ;;  %vm23610_vm11 = vmmov %vm23609_vm8 }
 0xfa8   : > { %v21596_v11 = vpack.c.bf16 %v11464_v10, %v11461_v34  ;;  %v21598_v43 = vpack.c.bf16 %v11465_v61, %v11462_v47  ;;  %v21601_v21 = vsel %vm23604_vm6, %v17655_v49, %v17660_v15  ;;  %v21604_v60 = vsel %vm23605_vm10, %v17649_v26, %v17659_v25  ;;  %vm23611_vm9 = vmmov %vm23609_vm8  ;;  %v17880_v25 = vld [vmem:[%s23188_s1 + $0x42c] sm:$0xff]   ;;  %v17881_v61 = vld [vmem:[%s23188_s1 + $0x454] sm:$0xff]  }
 0xfa9   : > { %v11490_v38 = vsel %vm23607_vm7, %v21601_v21, 0.0  ;;  %v11489_v59 = vsel %vm23608_vm4, %v21604_v60, 0.0  ;;  %v16044_v36 = vpack.c.bf16 %v21601_v21, %v21604_v60  ;;  %vm23612_vm6 = vmmov %vm23609_vm8 }
 0xfaa   : > { %11553 = vrot.lane.b32.xlu0 %v21596_v11, %s17989_s12  ;;  %11555 = vrot.lane.b32.xlu1 %v21598_v43, %s17989_s12  ;;  %v21620_v20 = vpack.c.bf16 %v11490_v38, %v11489_v59  ;;  %vm23613_vm10 = vmmov %vm23612_vm6 }
 0xfab   : > { %vm23614_vm1 = vmmov %vm23612_vm6 }
 0xfac   : > { %vm23615_vm7 = vmmov %vm23614_vm1 }
 0xfad   : > { %vm23616_vm4 = vmmov %vm23614_vm1 }
 0xfae   : > { %11551 = vrot.lane.b32.xlu0 %v21618_v17, %s17989_s12  ;;  %11557 = vrot.lane.b32.xlu1 %v21620_v20, %s17989_s12 }
 0xfb2   : > { %11939 = vrot.lane.b32.xlu0 %v21558_v27, %s17990_s13  ;;  %11941 = vrot.lane.b32.xlu1 %v21560_v30, %s17990_s13 }
 0xfb6   : > { %11937 = vrot.lane.b32.xlu0 %v21548_v40, %s17990_s13  ;;  %11943 = vrot.lane.b32.xlu1 %v21582_v2, %s17990_s13 }
 0xfba   : > { %11947 = vrot.lane.b32.xlu0 %v21596_v11, %s17990_s13  ;;  %11949 = vrot.lane.b32.xlu1 %v21598_v43, %s17990_s13 }
 0xfbe   : > { %11945 = vrot.lane.b32.xlu0 %v21618_v17, %s17990_s13  ;;  %11951 = vrot.lane.b32.xlu1 %v21620_v20, %s17990_s13 }
 0xfc2   : > { %12187 = vrot.lane.b32.xlu0 %v21558_v27, %s17991_s14  ;;  %12189 = vrot.lane.b32.xlu1 %v21560_v30, %s17991_s14 }
 0xfc6   : > { %12185 = vrot.lane.b32.xlu0 %v21548_v40, %s17991_s14  ;;  %12191 = vrot.lane.b32.xlu1 %v21582_v2, %s17991_s14 }
 0xfca   : > { %12195 = vrot.lane.b32.xlu0 %v21596_v11, %s17991_s14  ;;  %12197 = vrot.lane.b32.xlu1 %v21598_v43, %s17991_s14 }
 0xfce   : > { %12193 = vrot.lane.b32.xlu0 %v21618_v17, %s17991_s14  ;;  %12199 = vrot.lane.b32.xlu1 %v21620_v20, %s17991_s14 }
 0xfd2   : > { %12435 = vrot.lane.b32.xlu0 %v21558_v27, %s17992_s15  ;;  %12437 = vrot.lane.b32.xlu1 %v21560_v30, %s17992_s15 }
 0xfd6   : > { %12433 = vrot.lane.b32.xlu0 %v21548_v40, %s17992_s15  ;;  %12439 = vrot.lane.b32.xlu1 %v21582_v2, %s17992_s15 }
 0xfda   : > { %12443 = vrot.lane.b32.xlu0 %v21596_v11, %s17992_s15  ;;  %12445 = vrot.lane.b32.xlu1 %v21598_v43, %s17992_s15 }
 0xfde   : > { %12441 = vrot.lane.b32.xlu0 %v21618_v17, %s17992_s15  ;;  %12447 = vrot.lane.b32.xlu1 %v21620_v20, %s17992_s15 }
 0xfe2   : > { %12683 = vrot.lane.b32.xlu0 %v21558_v27, %s17993_s16  ;;  %12685 = vrot.lane.b32.xlu1 %v21560_v30, %s17993_s16 }
 0xfe6   : > { %12681 = vrot.lane.b32.xlu0 %v21548_v40, %s17993_s16  ;;  %12687 = vrot.lane.b32.xlu1 %v21582_v2, %s17993_s16 }
 0xfea   : > { %12691 = vrot.lane.b32.xlu0 %v21596_v11, %s17993_s16  ;;  %12693 = vrot.lane.b32.xlu1 %v21598_v43, %s17993_s16 }
 0xfee   : > { %12689 = vrot.lane.b32.xlu0 %v21618_v17, %s17993_s16  ;;  %12695 = vrot.lane.b32.xlu1 %v21620_v20, %s17993_s16 }
 0xff2   : > { %12931 = vrot.lane.b32.xlu0 %v21558_v27, %s23256_s17  ;;  %12933 = vrot.lane.b32.xlu1 %v21560_v30, %s23256_s17 }
 0xff6   : > { %12929 = vrot.lane.b32.xlu0 %v21548_v40, %s23256_s17  ;;  %12935 = vrot.lane.b32.xlu1 %v21582_v2, %s23256_s17 }
 0xffa   : > { %12939 = vrot.lane.b32.xlu0 %v21596_v11, %s23256_s17  ;;  %12941 = vrot.lane.b32.xlu1 %v21598_v43, %s23256_s17 }
 0xffe   : > { %12937 = vrot.lane.b32.xlu0 %v21618_v17, %s23256_s17  ;;  %12943 = vrot.lane.b32.xlu1 %v21620_v20, %s23256_s17 }
0x1002   : > { %13179 = vrot.lane.b32.xlu0 %v21558_v27, %s23440_s11  ;;  %13181 = vrot.lane.b32.xlu1 %v21560_v30, %s23440_s11 }
0x1006   : > { %13177 = vrot.lane.b32.xlu0 %v21548_v40, %s23440_s11  ;;  %13183 = vrot.lane.b32.xlu1 %v21582_v2, %s23440_s11 }
0x100a   : > { %13187 = vrot.lane.b32.xlu0 %v21596_v11, %s23440_s11  ;;  %13189 = vrot.lane.b32.xlu1 %v21598_v43, %s23440_s11 }
0x100e   : > { %13185 = vrot.lane.b32.xlu0 %v21618_v17, %s23440_s11  ;;  %13191 = vrot.lane.b32.xlu1 %v21620_v20, %s23440_s11 }
0x1011   : > { %v11544_v58 = vpop.permute.xlu0 %11543 }
0x1012   : > { %13427 = vrot.lane.b32.xlu0 %v21558_v27, %s23447_s19  ;;  %13429 = vrot.lane.b32.xlu1 %v21560_v30, %s23447_s19 }
0x1014   : > { %v11548_v24 = vpop.permute.xlu1 %11547 }
0x1015   : > { %v11546_v32 = vpop.permute.xlu0 %11545 }
0x1016   : > { %13425 = vrot.lane.b32.xlu0 %v21548_v40, %s23447_s19  ;;  %13431 = vrot.lane.b32.xlu1 %v21582_v2, %s23447_s19  ;;  %v11560_v42 = vsel %vm383_vm2, %v11546_v32, %v11548_v24  ;;  %v11559_v46 = vsel %vm383_vm2, %v11544_v58, %v11546_v32  ;;  %v17883_v58 = vld [vmem:[%s23188_s1 + $0x464] sm:$0xff]  }
0x1017   : > { %11585 = vmatprep.subr.bf16.mxu0 %v11560_v42  ;;  %v17884_v42 = vld [vmem:[%s23188_s1 + $0x46c] sm:$0xff]  }
0x1018   : > { %11586 = vmatpush1.bf16.msra.mxu0 %v11559_v46  ;;  %v11550_v9 = vpop.permute.xlu1 %11549 }
0x1019   : > { %11658 = vmatprep.subr.bf16.mxu1 %v11550_v9  ;;  %v11561_v3 = vsel %vm383_vm2, %v11548_v24, %v11550_v9 }
0x101a   : > { %13435 = vrot.lane.b32.xlu0 %v21596_v11, %s23447_s19  ;;  %13437 = vrot.lane.b32.xlu1 %v21598_v43, %s23447_s19 }
0x101b   : > { %11659 = vmatpush1.bf16.msra.mxu1 %v11561_v3 }
0x101c   : > { %v11554_v40 = vpop.permute.xlu0 %11553  ;;  %v11556_v44 = vpop.permute.xlu1 %11555 }
0x101d   : > { %v11563_v52 = vsel %vm383_vm2, %v11554_v40, %v11556_v44 }
0x101e   : > { %13433 = vrot.lane.b32.xlu0 %v21618_v17, %s23447_s19  ;;  %13439 = vrot.lane.b32.xlu1 %v21620_v20, %s23447_s19 }
0x101f   : > { %11587 = vmatprep.subr.bf16.mxu0 %v11563_v52 }
0x1020   : > { %v11552_v45 = vpop.permute.xlu0 %11551  ;;  %v11558_v35 = vpop.permute.xlu1 %11557 }
0x1021   : > { %v11562_v55 = vsel %vm383_vm2, %v11552_v45, %v11554_v40  ;;  %11660 = vmatprep.subr.bf16.mxu1 %v11558_v35  ;;  %v11564_v28 = vsel %vm383_vm2, %v11556_v44, %v11558_v35  ;;  %v17885_v40 = vld [vmem:[%s23188_s1 + $0x474] sm:$0xff]  }
0x1022   : > { %11588 = vmatpush1.bf16.msra.mxu0 %v11562_v55  ;;  %11661 = vmatpush1.bf16.msra.mxu1 %v11564_v28 }
0x1023   : > { %11763 = vmatprep.subr.bf16.mxu0 %v21558_v27  ;;  %16042 = vmatprep.subr.msk.bf16.mxu1 %vm18653_vm13, %v16041_v14  ;;  %v17875_v27 = vld [vmem:[%s23188_s1 + $0x444] sm:$0xff]  }
0x1024   : > { %v11942_v62 = vpop.permute.xlu1 %11941  ;;  %v11940_v7 = vpop.permute.xlu0 %11939 }
0x1025   : > { %16014 = vmatmul.mubr.msk.bf16.vlgmr.msra.gmra.mrb[92].mxu0 %vm23609_vm8, %v17873_v4  ;;  %16018 = vmatmul.mubr.msk.bf16.vlgmr.msra.gmra.mrb[92].mxu1 %vm23610_vm11, %v17873_v4  ;;  %vm23617_vm8 = vmmov %vm23614_vm1 }
0x1026   : > { %16030 = vmatpush1.bf16.msk.msra.mxu0 %vm18669_vm12, %v16029_v39  ;;  %11837 = vmatpush1.bf16.msra.mxu1 %v21560_v30  ;;  %v11954_v39 = vsel %vm672_vm3, %v11940_v7, %v11942_v62  ;;  %vm23618_vm11 = vmmov %vm23614_vm1 }
0x1027   : > { %11765 = vmatprep.subr.bf16.mxu0 %v21596_v11  ;;  %16045 = vmatprep.subr.msk.bf16.mxu1 %vm18653_vm13, %v16044_v36  ;;  %v17882_v36 = vld [vmem:[%s23188_s1 + $0x45c] sm:$0xff]  }
0x1028   : > { %11627 = vmatprep.mubr.bf16.mxu0 %v23324_v16  ;;  %11700 = vmatprep.mubr.bf16.mxu1 %v23324_v16  ;;  %v11944_v23 = vpop.permute.xlu1 %11943  ;;  %v11938_v30 = vpop.permute.xlu0 %11937 }
0x1029   : > { %v11953_v19 = vsel %vm672_vm3, %v11938_v30, %v11940_v7  ;;  %v11955_v33 = vsel %vm672_vm3, %v11942_v62, %v11944_v23  ;;  %v17886_v62 = vld [vmem:[%s23188_s1 + $0x47c] sm:$0xff]   ;;  %v17888_v30 = vld [vmem:[%s23188_s1 + $0x48c] sm:$0xff]  }
0x102a   : > { %16035 = vmatpush1.bf16.msk.msra.mxu0 %vm18669_vm12, %v16034_v29  ;;  %11839 = vmatpush1.bf16.msra.mxu1 %v21598_v43 }
0x102b   : > { %11979 = vmatprep.subr.bf16.mxu0 %v11954_v39  ;;  %12052 = vmatprep.subr.bf16.mxu1 %v11944_v23  ;;  %v17887_v23 = vld [vmem:[%s23188_s1 + $0x484] sm:$0xff]  }
0x102c   : > { %v11950_v53 = vpop.permute.xlu1 %11949  ;;  %v11948_v51 = vpop.permute.xlu0 %11947 }
0x102d   : > { %16015 = vmatmul.mubr.msk.bf16.gmra.mrb[96].mxu0 %vm23611_vm9, %v17874_v37  ;;  %16019 = vmatmul.mubr.msk.bf16.gmra.mrb[96].mxu1 %vm23612_vm6, %v17874_v37  ;;  %v11957_v14 = vsel %vm672_vm3, %v11948_v51, %v11950_v53  ;;  %vm23619_vm9 = vmmov %vm23614_vm1 }
0x102e   : > { %11637 = vmatprep.mubr.bf16.mxu0 %v23324_v16  ;;  %11710 = vmatprep.mubr.bf16.mxu1 %v23324_v16  ;;  %vm23620_vm6 = vmmov %vm23614_vm1 }
0x1030   : > { %v11952_v22 = vpop.permute.xlu1 %11951  ;;  %v11946_v56 = vpop.permute.xlu0 %11945 }
0x1031   : > { %v11956_v2 = vsel %vm672_vm3, %v11946_v56, %v11948_v51  ;;  %v11958_v29 = vsel %vm672_vm3, %v11950_v53, %v11952_v22 }
0x1034   : > { %v12190_v54 = vpop.permute.xlu1 %12189  ;;  %v12188_v26 = vpop.permute.xlu0 %12187 }
0x1035   : > { %16016 = vmatmul.mubr.msk.bf16.gmra.mrb[100].mxu0 %vm23613_vm10, %v17875_v27  ;;  %16020 = vmatmul.mubr.msk.bf16.gmra.mrb[100].mxu1 %vm23614_vm1, %v17875_v27  ;;  %v12202_v63 = vsel %vm838_vm5, %v12188_v26, %v12190_v54  ;;  %vm23621_vm10 = vmmov %vm23614_vm1 }
0x1036   : > { %11647 = vmatprep.mubr.bf16.mxu0 %v23324_v16  ;;  %11720 = vmatprep.mubr.bf16.mxu1 %v23324_v16 }
0x1038   : > { %v12192_v49 = vpop.permute.xlu1 %12191  ;;  %v12186_v34 = vpop.permute.xlu0 %12185 }
0x1039   : > { %v12201_v43 = vsel %vm838_vm5, %v12186_v34, %v12188_v26  ;;  %v12203_v21 = vsel %vm838_vm5, %v12190_v54, %v12192_v49  ;;  %v17892_v34 = vld [vmem:[%s23188_s1 + $0x4ac] sm:$0xff]  }
0x103c   : > { %v12198_v15 = vpop.permute.xlu1 %12197  ;;  %v12196_v0 = vpop.permute.xlu0 %12195 }
0x103d   : > { %16017 = vmatmul.mubr.msk.bf16.gmra.mrb[104].mxu0 %vm23615_vm7, %v17876_v57  ;;  %16021 = vmatmul.mubr.msk.bf16.gmra.mrb[104].mxu1 %vm23616_vm4, %v17876_v57  ;;  %vm23622_vm7 = vmmov %vm23614_vm1  ;;  %v12205_v60 = vsel %vm838_vm5, %v12196_v0, %v12198_v15 }
0x103e   : > { %11795 = vmatprep.mubr.bf16.mxu0 %v23324_v16  ;;  %11868 = vmatprep.mubr.bf16.mxu1 %v23324_v16  ;;  %vm23623_vm4 = vmmov %vm23614_vm1 }
0x1040   : > { %v12200_v47 = vpop.permute.xlu1 %12199  ;;  %v12194_v10 = vpop.permute.xlu0 %12193 }
0x1041   : > { %v12204_v38 = vsel %vm838_vm5, %v12194_v10, %v12196_v0  ;;  %v12206_v59 = vsel %vm838_vm5, %v12198_v15, %v12200_v47  ;;  %v18004_v0 = vmov 6   ;;  %v17940_v10 = vld [vmem:[%s23189_s2 + $0x8] sm:$0xff] }
0x1042   : > { %17661 = vset.pattern.permute.xlu0 %v18004_v0  ;;  %17662 = vset.pattern.permute.xlu1 %v18004_v0  ;;  %v17906_v0 = vld [vmem:[%s23188_s1 + $0x51c] sm:$0xff]  }
0x1043   : > { %13650 = vperm.xlu1 %17662, %v17940_v10   ;;  %v17908_v10 = vld [vmem:[%s23188_s1 + $0x52c] sm:$0xff]  }
0x1044   : > { %v12438_v11 = vpop.permute.xlu1 %12437  ;;  %v12436_v8 = vpop.permute.xlu0 %12435 }
0x1045   : > { %16036 = vmatmul.mubr.msk.bf16.vlgmr.msra.gmra.mrb[92].mxu0 %vm23617_vm8, %v17877_v48  ;;  %16046 = vmatmul.mubr.msk.bf16.vlgmr.msra.gmra.mrb[92].mxu1 %vm23618_vm11, %v17877_v48  ;;  %vm23624_vm8 = vmmov %vm23614_vm1 }
0x1046   : > { %11980 = vmatpush1.bf16.msra.mxu0 %v11953_v19  ;;  %12053 = vmatpush1.bf16.msra.mxu1 %v11955_v33  ;;  %vm23625_vm11 = vmmov %vm23614_vm1 }
0x1047   : > { %11981 = vmatprep.subr.bf16.mxu0 %v11957_v14  ;;  %12054 = vmatprep.subr.bf16.mxu1 %v11952_v22  ;;  %v17889_v22 = vld [vmem:[%s23188_s1 + $0x494] sm:$0xff]  }
0x1048   : > { %11805 = vmatprep.mubr.bf16.mxu0 %v23324_v16  ;;  %11878 = vmatprep.mubr.bf16.mxu1 %v23324_v16  ;;  %v12440_v17 = vpop.permute.xlu1 %12439  ;;  %v12434_v24 = vpop.permute.xlu0 %12433 }
0x104a   : > { %11982 = vmatpush1.bf16.msra.mxu0 %v11956_v2  ;;  %12055 = vmatpush1.bf16.msra.mxu1 %v11958_v29  ;;  %v17890_v2 = vld [vmem:[%s23188_s1 + $0x49c] sm:$0xff]  }
0x104b   : > { %12227 = vmatprep.subr.bf16.mxu0 %v12202_v63  ;;  %12300 = vmatprep.subr.bf16.mxu1 %v12192_v49  ;;  %v17891_v49 = vld [vmem:[%s23188_s1 + $0x4a4] sm:$0xff]  }
0x104c   : > { %v12446_v32 = vpop.permute.xlu1 %12445  ;;  %v12444_v46 = vpop.permute.xlu0 %12443 }
0x104d   : > { %16037 = vmatmul.mubr.msk.bf16.gmra.mrb[96].mxu0 %vm23619_vm9, %v17878_v41  ;;  %16047 = vmatmul.mubr.msk.bf16.gmra.mrb[96].mxu1 %vm23620_vm6, %v17878_v41  ;;  %vm23626_vm9 = vcmask 891904   ;;  %vm23627_vm6 = vmmov %vm23614_vm1 }
0x104e   : > { %11815 = vmatprep.mubr.bf16.mxu0 %v23324_v16  ;;  %11888 = vmatprep.mubr.bf16.mxu1 %v23324_v16  ;;  %v12450_v20 = vsel %vm23626_vm9, %v12436_v8, %v12438_v11 }
0x1050   : > { %v12448_v9 = vpop.permute.xlu1 %12447  ;;  %v12442_v3 = vpop.permute.xlu0 %12441 }
0x1054   : > { %v12686_v44 = vpop.permute.xlu1 %12685  ;;  %v12684_v55 = vpop.permute.xlu0 %12683 }
0x1055   : > { %16038 = vmatmul.mubr.msk.bf16.gmra.mrb[100].mxu0 %vm23621_vm10, %v17879_v31  ;;  %16048 = vmatmul.mubr.msk.bf16.gmra.mrb[100].mxu1 %vm23614_vm1, %v17879_v31  ;;  %vm23628_vm10 = vmmov %vm23614_vm1 }
0x1056   : > { %11825 = vmatprep.mubr.bf16.mxu0 %v23324_v16  ;;  %11898 = vmatprep.mubr.bf16.mxu1 %v23324_v16 }
0x1058   : > { %v12688_v7 = vpop.permute.xlu1 %12687  ;;  %v12682_v39 = vpop.permute.xlu0 %12681 }
0x105c   : > { %v12694_v27 = vpop.permute.xlu1 %12693  ;;  %v12692_v53 = vpop.permute.xlu0 %12691 }
0x105d   : > { %16039 = vmatmul.mubr.msk.bf16.gmra.mrb[104].mxu0 %vm23622_vm7, %v17880_v25  ;;  %16049 = vmatmul.mubr.msk.bf16.gmra.mrb[104].mxu1 %vm23623_vm4, %v17880_v25  ;;  %vm23629_vm7 = vmmov %vm23614_vm1 }
0x105e   : > { %12011 = vmatprep.mubr.bf16.mxu0 %v23324_v16  ;;  %12084 = vmatprep.mubr.bf16.mxu1 %v23324_v16  ;;  %vm23630_vm4 = vmmov %vm23614_vm1 }
0x1060   : > { %v12696_v57 = vpop.permute.xlu1 %12695  ;;  %v12690_v51 = vpop.permute.xlu0 %12689 }
0x1064   : > { %v12934_v56 = vpop.permute.xlu1 %12933  ;;  %v12932_v33 = vpop.permute.xlu0 %12931 }
0x1065   : > { %16054 = vmatmul.mubr.msk.bf16.vlgmr.msra.gmra.mrb[92].mxu0 %vm23624_vm8, %v17881_v61  ;;  %16058 = vmatmul.mubr.msk.bf16.vlgmr.msra.gmra.mrb[92].mxu1 %vm23625_vm11, %v17881_v61  ;;  %vm23631_vm8 = vmmov %vm23614_vm1 }
0x1066   : > { %12228 = vmatpush1.bf16.msra.mxu0 %v12201_v43  ;;  %12301 = vmatpush1.bf16.msra.mxu1 %v12203_v21  ;;  %vm23632_vm11 = vmmov %vm23626_vm9  ;;  %v17941_v21 = vld [vmem:[%s23189_s2 + $0x18] sm:$0xff] }
0x1067   : > { %12229 = vmatprep.subr.bf16.mxu0 %v12205_v60  ;;  %12302 = vmatprep.subr.bf16.mxu1 %v12200_v47  ;;  %v12449_v52 = vsel %vm23632_vm11, %v12434_v24, %v12436_v8  ;;  %vm23633_vm9 = vmmov %vm23614_vm1  ;;  %v17939_v47 = vld [vmem:[%s23189_s2] sm:$0xff]  ;;  %v17942_v60 = vld [vmem:[%s23189_s2 + $0x10] sm:$0xff] }
0x1068   : > { %12021 = vmatprep.mubr.bf16.mxu0 %v23324_v16  ;;  %12094 = vmatprep.mubr.bf16.mxu1 %v23324_v16  ;;  %v12936_v29 = vpop.permute.xlu1 %12935  ;;  %v12930_v63 = vpop.permute.xlu0 %12929  ;;  %v17943_v24 = vld [vmem:[%s23189_s2 + $0x28] sm:$0xff] }
0x1069   : > { %13646 = vperm.xlu0 %17661, %v17939_v47   ;;  %13654 = vperm.xlu1 %17662, %v17942_v60   ;;  %v17907_v47 = vld [vmem:[%s23188_s1 + $0x524] sm:$0xff]  }
0x106a   : > { %12230 = vmatpush1.bf16.msra.mxu0 %v12204_v38  ;;  %12303 = vmatpush1.bf16.msra.mxu1 %v12206_v59 }
0x106b   : > { %12475 = vmatprep.subr.bf16.mxu0 %v12450_v20  ;;  %12548 = vmatprep.subr.bf16.mxu1 %v12440_v17 }
0x106c   : > { %v12942_v31 = vpop.permute.xlu1 %12941  ;;  %v12940_v15 = vpop.permute.xlu0 %12939 }
0x106d   : > { %16055 = vmatmul.mubr.msk.bf16.gmra.mrb[96].mxu0 %vm23627_vm6, %v17882_v36  ;;  %16059 = vmatmul.mubr.msk.bf16.gmra.mrb[96].mxu1 %vm23628_vm10, %v17882_v36  ;;  %vm23634_vm6 = vmmov %vm23614_vm1 }
0x106e   : > { %12031 = vmatprep.mubr.bf16.mxu0 %v23324_v16  ;;  %12104 = vmatprep.mubr.bf16.mxu1 %v23324_v16  ;;  %vm23635_vm10 = vmmov %vm23632_vm11 }
0x106f   : > { %v12451_v45 = vsel %vm23635_vm10, %v12438_v11, %v12440_v17  ;;  %vm23640_vm11 = vmmov %vm23634_vm6  ;;  %v17893_v11 = vld [vmem:[%s23188_s1 + $0x4b4] sm:$0xff]   ;;  %13658 = vperm.xlu0 %17661, %v17941_v21  }
0x1070   : > { %v12944_v25 = vpop.permute.xlu1 %12943  ;;  %v12938_v61 = vpop.permute.xlu0 %12937 }
0x1073   : > { %13666 = vperm.xlu0 %17661, %v17943_v24  }
0x1074   : > { %v13182_v43 = vpop.permute.xlu1 %13181  ;;  %v13180_v36 = vpop.permute.xlu0 %13179 }
0x1075   : > { %16056 = vmatmul.mubr.msk.bf16.gmra.mrb[100].mxu0 %vm23614_vm1, %v17883_v58  ;;  %16060 = vmatmul.mubr.msk.bf16.gmra.mrb[100].mxu1 %vm23629_vm7, %v17883_v58  ;;  %vm23636_vm1 = vmmov %vm23635_vm10  ;;  %v17894_v58 = vld [vmem:[%s23188_s1 + $0x4bc] sm:$0xff]  }
0x1076   : > { %12041 = vmatprep.mubr.bf16.mxu0 %v23324_v16  ;;  %12114 = vmatprep.mubr.bf16.mxu1 %v23324_v16  ;;  %v12453_v35 = vsel %vm23636_vm1, %v12444_v46, %v12446_v32  ;;  %vm23637_vm7 = vmmov %vm23636_vm1 }
0x1077   : > { %v12452_v28 = vsel %vm23637_vm7, %v12442_v3, %v12444_v46  ;;  %vm23642_vm10 = vmmov %vm23634_vm6  ;;  %v17946_v3 = vld [vmem:[%s23189_s2 + $0x30] sm:$0xff] }
0x107d   : > { %16057 = vmatmul.mubr.msk.bf16.gmra.mrb[104].mxu0 %vm23630_vm4, %v17884_v42  ;;  %16061 = vmatmul.mubr.msk.bf16.gmra.mrb[104].mxu1 %vm23631_vm8, %v17884_v42  ;;  %vm23638_vm4 = vmmov %vm23636_vm1  ;;  %vm23639_vm8 = vcmask 883712   ;;  %v13184_v42 = vpop.permute.xlu1 %13183 }
0x107e   : > { %12259 = vmatprep.mubr.bf16.mxu0 %v23324_v16  ;;  %12332 = vmatprep.mubr.bf16.mxu1 %v23324_v16  ;;  %v12454_v4 = vsel %vm23638_vm4, %v12446_v32, %v12448_v9  ;;  %v12698_v37 = vsel %vm23639_vm8, %v12684_v55, %v12686_v44  ;;  %vm23643_vm1 = vmmov %vm23634_vm6  ;;  %v17944_v32 = vld [vmem:[%s23189_s2 + $0x20] sm:$0xff] }
0x107f   : > { %vm23644_vm7 = vmmov %vm23643_vm1  ;;  %13662 = vperm.xlu1 %17662, %v17944_v32  }
0x1080   : > { %vm23645_vm4 = vmmov %vm23639_vm8 }
0x1081   : > { %v12697_v48 = vsel %vm23645_vm4, %v12682_v39, %v12684_v55  ;;  %vm23646_vm8 = vmmov %vm23643_vm1 }
0x1083   : > { %13670 = vperm.xlu1 %17662, %v17946_v3  }
0x1085   : > { %16066 = vmatmul.mubr.msk.bf16.vlgmr.msra.gmra.mrb[92].mxu0 %vm23633_vm9, %v17885_v40  ;;  %16070 = vmatmul.mubr.msk.bf16.vlgmr.msra.gmra.mrb[92].mxu1 %vm23634_vm6, %v17885_v40  ;;  %vm23641_vm9 = vmmov %vm23634_vm6  ;;  %v17895_v40 = vld [vmem:[%s23188_s1 + $0x4c4] sm:$0xff]  }
0x1086   : > { %12476 = vmatpush1.bf16.msra.mxu0 %v12449_v52  ;;  %12549 = vmatpush1.bf16.msra.mxu1 %v12451_v45  ;;  %v13190_v52 = vpop.permute.xlu1 %13189  ;;  %v17896_v45 = vld [vmem:[%s23188_s1 + $0x4cc] sm:$0xff]  }
0x1087   : > { %12477 = vmatprep.subr.bf16.mxu0 %v12453_v35  ;;  %12550 = vmatprep.subr.bf16.mxu1 %v12448_v9  ;;  %v17945_v9 = vld [vmem:[%s23189_s2 + $0x38] sm:$0xff] }
0x1088   : > { %12269 = vmatprep.mubr.bf16.mxu0 %v23324_v16  ;;  %12342 = vmatprep.mubr.bf16.mxu1 %v23324_v16 }
0x1089   : > { %13674 = vperm.xlu0 %17661, %v17945_v9  }
0x108a   : > { %12478 = vmatpush1.bf16.msra.mxu0 %v12452_v28  ;;  %12551 = vmatpush1.bf16.msra.mxu1 %v12454_v4  ;;  %v13192_v55 = vpop.permute.xlu1 %13191  ;;  %v17897_v4 = vld [vmem:[%s23188_s1 + $0x4d4] sm:$0xff]  }
0x108b   : > { %12723 = vmatprep.subr.bf16.mxu0 %v12698_v37  ;;  %12796 = vmatprep.subr.bf16.mxu1 %v12688_v7 }
0x108d   : > { %16067 = vmatmul.mubr.msk.bf16.gmra.mrb[96].mxu0 %vm23640_vm11, %v17886_v62  ;;  %16071 = vmatmul.mubr.msk.bf16.gmra.mrb[96].mxu1 %vm23641_vm9, %v17886_v62  ;;  %vm23647_vm11 = vmmov %vm23643_vm1 }
0x108e   : > { %12279 = vmatprep.mubr.bf16.mxu0 %v23324_v16  ;;  %12352 = vmatprep.mubr.bf16.mxu1 %v23324_v16  ;;  %vm23648_vm9 = vmmov %vm23645_vm4  ;;  %v13430_v62 = vpop.permute.xlu1 %13429 }
0x108f   : > { %v12699_v54 = vsel %vm23648_vm9, %v12686_v44, %v12688_v7  ;;  %v13178_v44 = vpop.permute.xlu0 %13177 }
0x1093   : > { %v13188_v35 = vpop.permute.xlu0 %13187 }
0x1095   : > { %16068 = vmatmul.mubr.msk.bf16.gmra.mrb[100].mxu0 %vm23634_vm6, %v17887_v23  ;;  %16072 = vmatmul.mubr.msk.bf16.gmra.mrb[100].mxu1 %vm23642_vm10, %v17887_v23  ;;  %vm23649_vm6 = vmmov %vm23645_vm4 }
0x1096   : > { %12289 = vmatprep.mubr.bf16.mxu0 %v23324_v16  ;;  %12362 = vmatprep.mubr.bf16.mxu1 %v23324_v16  ;;  %v12701_v19 = vsel %vm23649_vm6, %v12692_v53, %v12694_v27  ;;  %vm23650_vm10 = vmmov %vm23645_vm4 }
0x1097   : > { %v12700_v14 = vsel %vm23650_vm10, %v12690_v51, %v12692_v53  ;;  %v13186_v28 = vpop.permute.xlu0 %13185  ;;  %v17898_v53 = vld [vmem:[%s23188_s1 + $0x4dc] sm:$0xff]  }
0x109b   : > { %v13428_v39 = vpop.permute.xlu0 %13427 }
0x109d   : > { %16069 = vmatmul.mubr.msk.bf16.gmra.mrb[104].mxu0 %vm23643_vm1, %v17888_v30  ;;  %16073 = vmatmul.mubr.msk.bf16.gmra.mrb[104].mxu1 %vm23644_vm7, %v17888_v30  ;;  %vm23651_vm1 = vmmov %vm23645_vm4  ;;  %vm23652_vm7 = vcmask 752640  }
0x109e   : > { %12507 = vmatprep.mubr.bf16.mxu0 %v23324_v16  ;;  %12580 = vmatprep.mubr.bf16.mxu1 %v23324_v16  ;;  %v12702_v26 = vsel %vm23651_vm1, %v12694_v27, %v12696_v57  ;;  %v12946_v41 = vsel %vm23652_vm7, %v12932_v33, %v12934_v56  ;;  %vm23653_vm4 = vmmov %vm23646_vm8 }
0x109f   : > { %vm23656_vm9 = vmmov %vm23653_vm4 }
0x10a0   : > { %vm23657_vm6 = vmmov %vm23653_vm4 }
0x10a1   : > { %vm23658_vm10 = vmmov %vm23653_vm4 }
0x10a2   : > { %vm23659_vm1 = vmmov %vm23652_vm7 }
0x10a3   : > { %v12945_v8 = vsel %vm23659_vm1, %v12930_v63, %v12932_v33  ;;  %vm23660_vm7 = vmmov %vm23653_vm4  ;;  %v17901_v33 = vld [vmem:[%s23188_s1 + $0x4f4] sm:$0xff]  }
0x10a5   : > { %16078 = vmatmul.mubr.msk.bf16.vlgmr.msra.gmra.mrb[92].mxu0 %vm23646_vm8, %v17889_v22  ;;  %16082 = vmatmul.mubr.msk.bf16.vlgmr.msra.gmra.mrb[92].mxu1 %vm23647_vm11, %v17889_v22  ;;  %vm23654_vm8 = vmmov %vm23653_vm4  ;;  %v17899_v22 = vld [vmem:[%s23188_s1 + $0x4e4] sm:$0xff]  }
0x10a6   : > { %12724 = vmatpush1.bf16.msra.mxu0 %v12697_v48  ;;  %12797 = vmatpush1.bf16.msra.mxu1 %v12699_v54  ;;  %vm23655_vm11 = vmmov %vm23653_vm4  ;;  %v13426_v48 = vpop.permute.xlu0 %13425 }
0x10a7   : > { %12725 = vmatprep.subr.bf16.mxu0 %v12701_v19  ;;  %12798 = vmatprep.subr.bf16.mxu1 %v12696_v57  ;;  %v13432_v57 = vpop.permute.xlu1 %13431 }
0x10a8   : > { %12517 = vmatprep.mubr.bf16.mxu0 %v23324_v16  ;;  %12590 = vmatprep.mubr.bf16.mxu1 %v23324_v16 }
0x10aa   : > { %12726 = vmatpush1.bf16.msra.mxu0 %v12700_v14  ;;  %12799 = vmatpush1.bf16.msra.mxu1 %v12702_v26  ;;  %v13436_v54 = vpop.permute.xlu0 %13435 }
0x10ab   : > { %12971 = vmatprep.subr.bf16.mxu0 %v12946_v41  ;;  %13044 = vmatprep.subr.bf16.mxu1 %v12936_v29  ;;  %v13438_v19 = vpop.permute.xlu1 %13437 }
0x10ad   : > { %16079 = vmatmul.mubr.msk.bf16.gmra.mrb[96].mxu0 %vm23653_vm4, %v17890_v2  ;;  %16083 = vmatmul.mubr.msk.bf16.gmra.mrb[96].mxu1 %vm23654_vm8, %v17890_v2  ;;  %vm23661_vm8 = vmmov %vm23659_vm1 }
0x10ae   : > { %12527 = vmatprep.mubr.bf16.mxu0 %v23324_v16  ;;  %12600 = vmatprep.mubr.bf16.mxu1 %v23324_v16  ;;  %v12947_v38 = vsel %vm23661_vm8, %v12934_v56, %v12936_v29  ;;  %v17900_v56 = vld [vmem:[%s23188_s1 + $0x4ec] sm:$0xff]   ;;  %v13434_v2 = vpop.permute.xlu0 %13433 }
0x10af   : > { %v13440_v29 = vpop.permute.xlu1 %13439 }
0x10b5   : > { %16080 = vmatmul.mubr.msk.bf16.gmra.mrb[100].mxu0 %vm23655_vm11, %v17891_v49  ;;  %16084 = vmatmul.mubr.msk.bf16.gmra.mrb[100].mxu1 %vm23656_vm9, %v17891_v49  ;;  %vm23662_vm11 = vmmov %vm23659_vm1 }
0x10b6   : > { %12537 = vmatprep.mubr.bf16.mxu0 %v23324_v16  ;;  %12610 = vmatprep.mubr.bf16.mxu1 %v23324_v16  ;;  %v12949_v59 = vsel %vm23662_vm11, %v12940_v15, %v12942_v31  ;;  %vm23663_vm9 = vmmov %vm23659_vm1 }
0x10b7   : > { %v12948_v17 = vsel %vm23663_vm9, %v12938_v61, %v12940_v15  ;;  %v17904_v15 = vld [vmem:[%s23188_s1 + $0x50c] sm:$0xff]  }
0x10bd   : > { %16081 = vmatmul.mubr.msk.bf16.gmra.mrb[104].mxu0 %vm23657_vm6, %v17892_v34  ;;  %16085 = vmatmul.mubr.msk.bf16.gmra.mrb[104].mxu1 %vm23658_vm10, %v17892_v34  ;;  %vm23664_vm6 = vmmov %vm23659_vm1  ;;  %vm23665_vm10 = vcmask 744448   ;;  %v17903_v34 = vld [vmem:[%s23188_s1 + $0x504] sm:$0xff]  }
0x10be   : > { %12755 = vmatprep.mubr.bf16.mxu0 %v23324_v16  ;;  %12828 = vmatprep.mubr.bf16.mxu1 %v23324_v16  ;;  %v12950_v20 = vsel %vm23664_vm6, %v12942_v31, %v12944_v25  ;;  %v13194_v46 = vsel %vm23665_vm10, %v13180_v36, %v13182_v43  ;;  %vm23666_vm1 = vmmov %vm23653_vm4  ;;  %v17902_v31 = vld [vmem:[%s23188_s1 + $0x4fc] sm:$0xff]  }
0x10bf   : > { %vm23669_vm8 = vmmov %vm23666_vm1 }
0x10c0   : > { %vm23670_vm11 = vmmov %vm23666_vm1 }
0x10c1   : > { %vm23671_vm9 = vmmov %vm23666_vm1 }
0x10c2   : > { %vm23672_vm6 = vmmov %vm23665_vm10 }
0x10c3   : > { %v13193_v7 = vsel %vm23672_vm6, %v13178_v44, %v13180_v36  ;;  %vm23673_vm10 = vmmov %vm23666_vm1 }
0x10c5   : > { %16090 = vmatmul.mubr.msk.bf16.vlgmr.msra.gmra.mrb[92].mxu0 %vm23660_vm7, %v17893_v11  ;;  %16094 = vmatmul.mubr.msk.bf16.vlgmr.msra.gmra.mrb[92].mxu1 %vm23653_vm4, %v17893_v11  ;;  %vm23667_vm7 = vmmov %vm23666_vm1  ;;  %v13651_v11 = vpop.permute.xlu1 %13650 }
0x10c6   : > { %12972 = vmatpush1.bf16.msra.mxu0 %v12945_v8  ;;  %13045 = vmatpush1.bf16.msra.mxu1 %v12947_v38  ;;  %vm23668_vm4 = vmmov %vm23666_vm1 }
0x10c7   : > { %12973 = vmatprep.subr.bf16.mxu0 %v12949_v59  ;;  %13046 = vmatprep.subr.bf16.mxu1 %v12944_v25  ;;  %v17905_v25 = vld [vmem:[%s23188_s1 + $0x514] sm:$0xff]  }
0x10c8   : > { %12765 = vmatprep.mubr.bf16.mxu0 %v23324_v16  ;;  %12838 = vmatprep.mubr.bf16.mxu1 %v23324_v16 }
0x10ca   : > { %12974 = vmatpush1.bf16.msra.mxu0 %v12948_v17  ;;  %13047 = vmatpush1.bf16.msra.mxu1 %v12950_v20 }
0x10cb   : > { %13219 = vmatprep.subr.bf16.mxu0 %v13194_v46  ;;  %13292 = vmatprep.subr.bf16.mxu1 %v13184_v42 }
0x10cd   : > { %16091 = vmatmul.mubr.msk.bf16.gmra.mrb[96].mxu0 %vm23666_vm1, %v17894_v58  ;;  %16095 = vmatmul.mubr.msk.bf16.gmra.mrb[96].mxu1 %vm23667_vm7, %v17894_v58  ;;  %vm23674_vm7 = vmmov %vm23672_vm6 }
0x10ce   : > { %12775 = vmatprep.mubr.bf16.mxu0 %v23324_v16  ;;  %12848 = vmatprep.mubr.bf16.mxu1 %v23324_v16  ;;  %v13195_v37 = vsel %vm23674_vm7, %v13182_v43, %v13184_v42  ;;  %vm23681_vm7 = vmmov %vm23666_vm1 }
0x10d5   : > { %16092 = vmatmul.mubr.msk.bf16.gmra.mrb[100].mxu0 %vm23668_vm4, %v17895_v40  ;;  %16096 = vmatmul.mubr.msk.bf16.gmra.mrb[100].mxu1 %vm23669_vm8, %v17895_v40  ;;  %vm23675_vm4 = vmmov %vm23672_vm6 }
0x10d6   : > { %12785 = vmatprep.mubr.bf16.mxu0 %v23324_v16  ;;  %12858 = vmatprep.mubr.bf16.mxu1 %v23324_v16  ;;  %v13197_v23 = vsel %vm23675_vm4, %v13188_v35, %v13190_v52  ;;  %vm23676_vm8 = vmmov %vm23675_vm4 }
0x10d7   : > { %v13196_v27 = vsel %vm23676_vm8, %v13186_v28, %v13188_v35  ;;  %vm23679_vm6 = vmmov %vm23666_vm1 }
0x10d8   : > { %vm23683_vm8 = vmmov %vm23666_vm1 }
0x10dd   : > { %16093 = vmatmul.mubr.msk.bf16.gmra.mrb[104].mxu0 %vm23670_vm11, %v17896_v45  ;;  %16097 = vmatmul.mubr.msk.bf16.gmra.mrb[104].mxu1 %vm23671_vm9, %v17896_v45  ;;  %vm23677_vm11 = vmmov %vm23675_vm4  ;;  %vm23678_vm9 = vcmask 736256  }
0x10de   : > { %13003 = vmatprep.mubr.bf16.mxu0 %v23324_v16  ;;  %13076 = vmatprep.mubr.bf16.mxu1 %v23324_v16  ;;  %v13198_v30 = vsel %vm23677_vm11, %v13190_v52, %v13192_v55  ;;  %v13442_v51 = vsel %vm23678_vm9, %v13428_v39, %v13430_v62  ;;  %vm23682_vm4 = vmmov %vm23666_vm1 }
0x10df   : > { %vm23684_vm11 = vmmov %vm23678_vm9 }
0x10e0   : > { %v13441_v14 = vsel %vm23684_vm11, %v13426_v48, %v13428_v39  ;;  %vm23685_vm9 = vmmov %vm23666_vm1 }
0x10e5   : > { %16102 = vmatmul.mubr.msk.bf16.vlgmr.msra.gmra.mrb[92].mxu0 %vm23673_vm10, %v17897_v4  ;;  %16106 = vmatmul.mubr.msk.bf16.vlgmr.msra.gmra.mrb[92].mxu1 %vm23666_vm1, %v17897_v4  ;;  %vm23680_vm10 = vmmov %vm23666_vm1 }
0x10e6   : > { %13220 = vmatpush1.bf16.msra.mxu0 %v13193_v7  ;;  %13293 = vmatpush1.bf16.msra.mxu1 %v13195_v37 }
0x10e7   : > { %13221 = vmatprep.subr.bf16.mxu0 %v13197_v23  ;;  %13294 = vmatprep.subr.bf16.mxu1 %v13192_v55 }
0x10e8   : > { %13013 = vmatprep.mubr.bf16.mxu0 %v23324_v16  ;;  %13086 = vmatprep.mubr.bf16.mxu1 %v23324_v16  ;;  %v13647_v61 = vpop.permute.xlu0 %13646 }
0x10ea   : > { %13222 = vmatpush1.bf16.msra.mxu0 %v13196_v27  ;;  %13295 = vmatpush1.bf16.msra.mxu1 %v13198_v30  ;;  %v13655_v30 = vpop.permute.xlu1 %13654 }
0x10eb   : > { %13467 = vmatprep.subr.bf16.mxu0 %v13442_v51  ;;  %13540 = vmatprep.subr.bf16.mxu1 %v13432_v57 }
0x10ed   : > { %16103 = vmatmul.mubr.msk.bf16.gmra.mrb[96].mxu0 %vm23679_vm6, %v17898_v53  ;;  %16107 = vmatmul.mubr.msk.bf16.gmra.mrb[96].mxu1 %vm23680_vm10, %v17898_v53  ;;  %vm23686_vm6 = vmmov %vm23666_vm1 }
0x10ee   : > { %13023 = vmatprep.mubr.bf16.mxu0 %v23324_v16  ;;  %13096 = vmatprep.mubr.bf16.mxu1 %v23324_v16  ;;  %vm23687_vm10 = vmmov %vm23684_vm11  ;;  %v13659_v27 = vpop.permute.xlu0 %13658 }
0x10ef   : > { %v13443_v26 = vsel %vm23687_vm10, %v13430_v62, %v13432_v57  ;;  %vm23692_vm11 = vmmov %vm23686_vm6 }
0x10f5   : > { %16104 = vmatmul.mubr.msk.bf16.gmra.mrb[100].mxu0 %vm23666_vm1, %v17899_v22  ;;  %16108 = vmatmul.mubr.msk.bf16.gmra.mrb[100].mxu1 %vm23681_vm7, %v17899_v22  ;;  %vm23688_vm1 = vmmov %vm23687_vm10 }
0x10f6   : > { %13033 = vmatprep.mubr.bf16.mxu0 %v23324_v16  ;;  %13106 = vmatprep.mubr.bf16.mxu1 %v23324_v16  ;;  %v13445_v41 = vsel %vm23688_vm1, %v13436_v54, %v13438_v19  ;;  %vm23689_vm7 = vmmov %vm23688_vm1 }
0x10f7   : > { %v13444_v49 = vsel %vm23689_vm7, %v13434_v2, %v13436_v54  ;;  %vm23694_vm10 = vmmov %vm23686_vm6 }
0x10fd   : > { %16105 = vmatmul.mubr.msk.bf16.gmra.mrb[104].mxu0 %vm23682_vm4, %v17900_v56  ;;  %16109 = vmatmul.mubr.msk.bf16.gmra.mrb[104].mxu1 %vm23683_vm8, %v17900_v56  ;;  %vm23690_vm4 = vmmov %vm23688_vm1 }
0x10fe   : > { %13251 = vmatprep.mubr.bf16.mxu0 %v23324_v16  ;;  %13324 = vmatprep.mubr.bf16.mxu1 %v23324_v16  ;;  %v13446_v63 = vsel %vm23690_vm4, %v13438_v19, %v13440_v29  ;;  %vm23691_vm8 = vmmov %vm23686_vm6 }
0x10ff   : > { %vm23695_vm1 = vmmov %vm23686_vm6 }
0x1100   : > { %vm23696_vm7 = vmmov %vm23695_vm1 }
0x1101   : > { %vm23697_vm4 = vmmov %vm23695_vm1 }
0x1105   : > { %16114 = vmatmul.mubr.msk.bf16.vlgmr.msra.gmra.mrb[92].mxu0 %vm23685_vm9, %v17901_v33  ;;  %16118 = vmatmul.mubr.msk.bf16.vlgmr.msra.gmra.mrb[92].mxu1 %vm23686_vm6, %v17901_v33  ;;  %vm23693_vm9 = vmmov %vm23686_vm6 }
0x1106   : > { %13468 = vmatpush1.bf16.msra.mxu0 %v13441_v14  ;;  %13541 = vmatpush1.bf16.msra.mxu1 %v13443_v26 }
0x1107   : > { %13469 = vmatprep.subr.bf16.mxu0 %v13445_v41  ;;  %13542 = vmatprep.subr.bf16.mxu1 %v13440_v29 }
0x1108   : > { %13261 = vmatprep.mubr.bf16.mxu0 %v23324_v16  ;;  %13334 = vmatprep.mubr.bf16.mxu1 %v23324_v16 }
0x110a   : > { %13470 = vmatpush1.bf16.msra.mxu0 %v13444_v49  ;;  %13543 = vmatpush1.bf16.msra.mxu1 %v13446_v63 }
0x110d   : > { %16115 = vmatmul.mubr.msk.bf16.gmra.mrb[96].mxu0 %vm23691_vm8, %v17902_v31  ;;  %16119 = vmatmul.mubr.msk.bf16.gmra.mrb[96].mxu1 %vm23692_vm11, %v17902_v31  ;;  %vm23698_vm8 = vmmov %vm23695_vm1 }
0x110e   : > { %13271 = vmatprep.mubr.bf16.mxu0 %v23324_v16  ;;  %13344 = vmatprep.mubr.bf16.mxu1 %v23324_v16  ;;  %vm23699_vm11 = vmmov %vm23695_vm1 }
0x1115   : > { %16116 = vmatmul.mubr.msk.bf16.gmra.mrb[100].mxu0 %vm23693_vm9, %v17903_v34  ;;  %16120 = vmatmul.mubr.msk.bf16.gmra.mrb[100].mxu1 %vm23686_vm6, %v17903_v34  ;;  %vm23700_vm9 = vmmov %vm23695_vm1 }
0x1116   : > { %13281 = vmatprep.mubr.bf16.mxu0 %v23324_v16  ;;  %13354 = vmatprep.mubr.bf16.mxu1 %v23324_v16  ;;  %vm23701_vm6 = vmmov %vm23695_vm1 }
0x111d   : > { %16117 = vmatmul.mubr.msk.bf16.gmra.mrb[104].mxu0 %vm23694_vm10, %v17904_v15  ;;  %16121 = vmatmul.mubr.msk.bf16.gmra.mrb[104].mxu1 %vm23695_vm1, %v17904_v15  ;;  %vm23702_vm10 = vmmov %vm23695_vm1 }
0x111e   : > { %13499 = vmatprep.mubr.bf16.mxu0 %v23324_v16  ;;  %13572 = vmatprep.mubr.bf16.mxu1 %v23324_v16 }
0x1125   : > { %16126 = vmatmul.mubr.msk.bf16.vlgmr.msra.gmra.mrb[92].mxu0 %vm23696_vm7, %v17905_v25  ;;  %16130 = vmatmul.mubr.msk.bf16.vlgmr.msra.gmra.mrb[92].mxu1 %vm23697_vm4, %v17905_v25  ;;  %vm23703_vm7 = vcmp.eq.s32.totalorder %v23354_v50, 1 }
0x1126   : > { %13509 = vmatprep.mubr.bf16.mxu0 %v23324_v16  ;;  %13582 = vmatprep.mubr.bf16.mxu1 %v23324_v16  ;;  %vm23704_vm4 = vmmov %vm23703_vm7 }
0x112d   : > { %16127 = vmatmul.mubr.msk.bf16.gmra.mrb[96].mxu0 %vm23698_vm8, %v17906_v0  ;;  %16131 = vmatmul.mubr.msk.bf16.gmra.mrb[96].mxu1 %vm23699_vm11, %v17906_v0  ;;  %vm23705_vm8 = vmmov %vm23704_vm4 }
0x112e   : > { %13519 = vmatprep.mubr.bf16.mxu0 %v23324_v16  ;;  %13592 = vmatprep.mubr.bf16.mxu1 %v23324_v16  ;;  %vm23706_vm11 = vmmov %vm23704_vm4 }
0x1135   : > { %16128 = vmatmul.mubr.msk.bf16.gmra.mrb[100].mxu0 %vm23700_vm9, %v17907_v47  ;;  %16132 = vmatmul.mubr.msk.bf16.gmra.mrb[100].mxu1 %vm23701_vm6, %v17907_v47  ;;  %vm23707_vm9 = vmmov %vm23704_vm4 }
0x1136   : > { %13529 = vmatprep.mubr.bf16.mxu0 %v23324_v16  ;;  %13602 = vmatprep.mubr.bf16.mxu1 %v23324_v16  ;;  %vm23708_vm6 = vmmov %vm23704_vm4 }
0x113d   : > { %16129 = vmatmul.mubr.msk.bf16.gmra.mrb[104].mxu0 %vm23702_vm10, %v17908_v10  ;;  %16133 = vmatmul.mubr.msk.bf16.gmra.mrb[104].mxu1 %vm23695_vm1, %v17908_v10  ;;  %vm23709_vm10 = vmmov %vm23704_vm4 }
0x113e   : > { %14071 = vmatprep.mubr.bf16.mxu0 %v23324_v16  ;;  %14111 = vmatprep.mubr.bf16.mxu1 %v23324_v16  ;;  %vm23710_vm1 = vmmov %vm23704_vm4 }
0x11f8   : > { %v13501_v43 = vpop.f32.mrb[92].mxu0  ;;  %v13574_v21 = vpop.f32.mrb[92].mxu1 }
0x11f9   : > { %v13677_v60 = vadd.f32 %v13647_v61, %v13501_v43  ;;  %v13679_v8 = vadd.f32 %v13647_v61, %v13574_v21  ;;  %v13503_v38 = vpop.f32.mrb[93].mxu0  ;;  %v13576_v59 = vpop.f32.mrb[93].mxu1 }
0x11fa   : > { %v13678_v36 = vadd.f32 %v13647_v61, %v13503_v38  ;;  %v13680_v17 = vadd.f32 %v13647_v61, %v13576_v59  ;;  %v13505_v20 = vpop.f32.mrb[94].mxu0  ;;  %v13578_v58 = vpop.f32.mrb[94].mxu1 }
0x11fb   : > { %v13709_v24 = vmax.f32 %v13677_v60, 0.0  ;;  %v13711_v32 = vmax.f32 %v13679_v8, 0.0  ;;  %v13681_v42 = vadd.f32 %v13651_v11, %v13505_v20  ;;  %v13507_v46 = vpop.f32.mrb[95].mxu0  ;;  %v13683_v9 = vadd.f32 %v13651_v11, %v13578_v58  ;;  %v13580_v3 = vpop.f32.mrb[95].mxu1 }
0x11fc   : > { %v13710_v40 = vmax.f32 %v13678_v36, 0.0  ;;  %v13712_v44 = vmax.f32 %v13680_v17, 0.0  ;;  %v13682_v52 = vadd.f32 %v13651_v11, %v13507_v46  ;;  %v13684_v45 = vadd.f32 %v13651_v11, %v13580_v3  ;;  %v13663_v46 = vpop.permute.xlu1 %13662 }
0x11fd   : > { %v13741_v35 = vsel %vm1885_vm15, %v13709_v24, 0.0  ;;  %v13713_v55 = vmax.f32 %v13681_v42, 0.0  ;;  %v13715_v28 = vmax.f32 %v13683_v9, 0.0  ;;  %v13743_v37 = vsel %vm1887_vm14, %v13711_v32, 0.0  ;;  %v13667_v42 = vpop.permute.xlu0 %13666 }
0x11fe   : > { %v13742_v4 = vsel %vm23703_vm7, %v13710_v40, 0.0  ;;  %v13714_v62 = vmax.f32 %v13682_v52, 0.0  ;;  %v13716_v7 = vmax.f32 %v13684_v45, 0.0  ;;  %v13744_v57 = vsel %vm18402_vm0, %v13712_v44, 0.0 }
0x11ff   : > { %v17663_v23 = vpack.i.bf16 %v13742_v4, %v13741_v35  ;;  %v13747_v39 = vsel %vm1887_vm14, %v13715_v28, 0.0  ;;  %v13745_v53 = vsel %vm1885_vm15, %v13713_v55, 0.0 }
0x1200   : > { %v13746_v51 = vsel %vm23704_vm4, %v13714_v62, 0.0  ;;  %v13748_v22 = vsel %vm18402_vm0, %v13716_v7, 0.0  ;;  %v13511_v56 = vpop.f32.mrb[96].mxu0  ;;  %v13584_v48 = vpop.f32.mrb[96].mxu1  ;;  %v17668_v54 = vpack.i.bf16 %v13745_v53, %v13743_v37 }
0x1201   : > { %v17673_v19 = vpack.i.bf16 %v13747_v39, %v13746_v51  ;;  %v17678_v33 = vpack.i.bf16 %v13748_v22, %v13744_v57  ;;  %17664 = vrot.lane.b32.xlu1 %v17663_v23, %s17998_s21  ;;  %v13513_v14 = vpop.f32.mrb[97].mxu0  ;;  %v13685_v26 = vadd.f32 %v13655_v30, %v13511_v56  ;;  %v13586_v2 = vpop.f32.mrb[97].mxu1  ;;  %v13687_v29 = vadd.f32 %v13655_v30, %v13584_v48 }
0x1202   : > { %v13686_v41 = vadd.f32 %v13655_v30, %v13513_v14  ;;  %v13688_v49 = vadd.f32 %v13655_v30, %v13586_v2  ;;  %v13515_v63 = vpop.f32.mrb[98].mxu0  ;;  %v13588_v31 = vpop.f32.mrb[98].mxu1  ;;  %17669 = vrot.lane.b32.xlu0 %v17668_v54, %s17998_s21 }
0x1203   : > { %v13717_v34 = vmax.f32 %v13685_v26, 0.0  ;;  %v13689_v15 = vadd.f32 %v13659_v27, %v13515_v63  ;;  %v13719_v25 = vmax.f32 %v13687_v29, 0.0  ;;  %v13691_v0 = vadd.f32 %v13659_v27, %v13588_v31  ;;  %v13517_v47 = vpop.f32.mrb[99].mxu0  ;;  %v13590_v10 = vpop.f32.mrb[99].mxu1 }
0x1204   : > { %v13718_v61 = vmax.f32 %v13686_v41, 0.0  ;;  %v13720_v11 = vmax.f32 %v13688_v49, 0.0  ;;  %v13690_v43 = vadd.f32 %v13659_v27, %v13517_v47  ;;  %v13692_v21 = vadd.f32 %v13659_v27, %v13590_v10  ;;  %v13675_v63 = vpop.permute.xlu0 %13674 }
0x1205   : > { %v13749_v60 = vsel %vm1885_vm15, %v13717_v34, 0.0  ;;  %v13721_v8 = vmax.f32 %v13689_v15, 0.0  ;;  %v13723_v38 = vmax.f32 %v13691_v0, 0.0  ;;  %17674 = vrot.lane.b32.xlu1 %v17673_v19, %s17998_s21  ;;  %v13751_v58 = vsel %vm1887_vm14, %v13719_v25, 0.0  ;;  %v13671_v0 = vpop.permute.xlu1 %13670 }
0x1206   : > { %v13750_v59 = vsel %vm23705_vm8, %v13718_v61, 0.0  ;;  %v13722_v36 = vmax.f32 %v13690_v43, 0.0  ;;  %v13724_v17 = vmax.f32 %v13692_v21, 0.0  ;;  %17679 = vrot.lane.b32.xlu0 %v17678_v33, %s17998_s21  ;;  %v13752_v9 = vsel %vm18402_vm0, %v13720_v11, 0.0 }
0x1207   : > { %v17683_v20 = vpack.i.bf16 %v13750_v59, %v13749_v60  ;;  %v13753_v24 = vsel %vm1885_vm15, %v13721_v8, 0.0  ;;  %v13755_v32 = vsel %vm1887_vm14, %v13723_v38, 0.0 }
0x1208   : > { %v17688_v3 = vpack.i.bf16 %v13753_v24, %v13751_v58  ;;  %v13754_v40 = vsel %vm23706_vm11, %v13722_v36, 0.0  ;;  %v13756_v44 = vsel %vm18402_vm0, %v13724_v17, 0.0  ;;  %v13521_v52 = vpop.f32.mrb[100].mxu0  ;;  %v13594_v45 = vpop.f32.mrb[100].mxu1 }
0x1209   : > { %v17693_v35 = vpack.i.bf16 %v13755_v32, %v13754_v40  ;;  %v17698_v55 = vpack.i.bf16 %v13756_v44, %v13752_v9  ;;  %v13523_v28 = vpop.f32.mrb[101].mxu0  ;;  %v13693_v4 = vadd.f32 %v13663_v46, %v13521_v52  ;;  %v13596_v62 = vpop.f32.mrb[101].mxu1  ;;  %17684 = vrot.lane.b32.xlu1 %v17683_v20, %s17998_s21  ;;  %v13695_v7 = vadd.f32 %v13663_v46, %v13594_v45 }
0x120a   : > { %v13694_v37 = vadd.f32 %v13663_v46, %v13523_v28  ;;  %v13696_v23 = vadd.f32 %v13663_v46, %v13596_v62  ;;  %v13525_v39 = vpop.f32.mrb[102].mxu0  ;;  %v13598_v27 = vpop.f32.mrb[102].mxu1  ;;  %17689 = vrot.lane.b32.xlu0 %v17688_v3, %s17998_s21 }
0x120b   : > { %v13725_v30 = vmax.f32 %v13693_v4, 0.0  ;;  %v13697_v53 = vadd.f32 %v13667_v42, %v13525_v39  ;;  %v13727_v57 = vmax.f32 %v13695_v7, 0.0  ;;  %v13699_v51 = vadd.f32 %v13667_v42, %v13598_v27  ;;  %v13527_v22 = vpop.f32.mrb[103].mxu0  ;;  %v13600_v56 = vpop.f32.mrb[103].mxu1 }
0x120c   : > { %v13726_v48 = vmax.f32 %v13694_v37, 0.0  ;;  %v13728_v54 = vmax.f32 %v13696_v23, 0.0  ;;  %v13698_v19 = vadd.f32 %v13667_v42, %v13527_v22  ;;  %v13700_v33 = vadd.f32 %v13667_v42, %v13600_v56 }
0x120d   : > { %v13757_v14 = vsel %vm1885_vm15, %v13725_v30, 0.0  ;;  %v13729_v26 = vmax.f32 %v13697_v53, 0.0  ;;  %v13731_v2 = vmax.f32 %v13699_v51, 0.0  ;;  %17694 = vrot.lane.b32.xlu1 %v17693_v35, %s17998_s21  ;;  %v13759_v34 = vsel %vm1887_vm14, %v13727_v57, 0.0 }
0x120e   : > { %v13758_v29 = vsel %vm23707_vm9, %v13726_v48, 0.0  ;;  %v13730_v41 = vmax.f32 %v13698_v19, 0.0  ;;  %v13732_v49 = vmax.f32 %v13700_v33, 0.0  ;;  %17699 = vrot.lane.b32.xlu0 %v17698_v55, %s17998_s21  ;;  %v13760_v47 = vsel %vm18402_vm0, %v13728_v54, 0.0 }
0x120f   : > { %v17703_v31 = vpack.i.bf16 %v13758_v29, %v13757_v14  ;;  %v13761_v15 = vsel %vm1885_vm15, %v13729_v26, 0.0  ;;  %v13763_v25 = vsel %vm1887_vm14, %v13731_v2, 0.0 }
0x1210   : > { %v17708_v10 = vpack.i.bf16 %v13761_v15, %v13759_v34  ;;  %v13762_v61 = vsel %vm23708_vm6, %v13730_v41, 0.0  ;;  %v13764_v11 = vsel %vm18402_vm0, %v13732_v49, 0.0  ;;  %v13531_v43 = vpop.f32.mrb[104].mxu0  ;;  %v13604_v21 = vpop.f32.mrb[104].mxu1 }
0x1211   : > { %v17713_v60 = vpack.i.bf16 %v13763_v25, %v13762_v61  ;;  %v17718_v8 = vpack.i.bf16 %v13764_v11, %v13760_v47  ;;  %v13701_v38 = vadd.f32 %v13671_v0, %v13531_v43  ;;  %v13703_v59 = vadd.f32 %v13671_v0, %v13604_v21  ;;  %v13533_v36 = vpop.f32.mrb[105].mxu0  ;;  %v13606_v17 = vpop.f32.mrb[105].mxu1  ;;  %17704 = vrot.lane.b32.xlu1 %v17703_v31, %s17998_s21 }
0x1212   : > { %v13702_v20 = vadd.f32 %v13671_v0, %v13533_v36  ;;  %v13704_v58 = vadd.f32 %v13671_v0, %v13606_v17  ;;  %v13535_v24 = vpop.f32.mrb[106].mxu0  ;;  %v13608_v32 = vpop.f32.mrb[106].mxu1  ;;  %17709 = vrot.lane.b32.xlu0 %v17708_v10, %s17998_s21 }
0x1213   : > { %v13733_v42 = vmax.f32 %v13701_v38, 0.0  ;;  %v13735_v46 = vmax.f32 %v13703_v59, 0.0  ;;  %v13705_v9 = vadd.f32 %v13675_v63, %v13535_v24  ;;  %v13707_v3 = vadd.f32 %v13675_v63, %v13608_v32  ;;  %v13537_v40 = vpop.f32.mrb[107].mxu0  ;;  %v13610_v44 = vpop.f32.mrb[107].mxu1 }
0x1214   : > { %v13734_v52 = vmax.f32 %v13702_v20, 0.0  ;;  %v13736_v45 = vmax.f32 %v13704_v58, 0.0  ;;  %v13706_v35 = vadd.f32 %v13675_v63, %v13537_v40  ;;  %v13708_v55 = vadd.f32 %v13675_v63, %v13610_v44 }
0x1215   : > { %v13765_v28 = vsel %vm1885_vm15, %v13733_v42, 0.0  ;;  %v13737_v4 = vmax.f32 %v13705_v9, 0.0  ;;  %v13739_v62 = vmax.f32 %v13707_v3, 0.0  ;;  %17714 = vrot.lane.b32.xlu1 %v17713_v60, %s17998_s21  ;;  %v13767_v39 = vsel %vm1887_vm14, %v13735_v46, 0.0 }
0x1216   : > { %v13766_v7 = vsel %vm23709_vm10, %v13734_v52, 0.0  ;;  %v13738_v37 = vmax.f32 %v13706_v35, 0.0  ;;  %v13740_v23 = vmax.f32 %v13708_v55, 0.0  ;;  %17719 = vrot.lane.b32.xlu0 %v17718_v8, %s17998_s21  ;;  %v13768_v57 = vsel %vm18402_vm0, %v13736_v45, 0.0 }
0x1217   : > { %v17723_v27 = vpack.i.bf16 %v13766_v7, %v13765_v28  ;;  %v13769_v30 = vsel %vm1885_vm15, %v13737_v4, 0.0  ;;  %v13771_v53 = vsel %vm1887_vm14, %v13739_v62, 0.0  ;;  %vm23711_vm14 = vcmask 154624  }
0x1218   : > { %v17728_v51 = vpack.i.bf16 %v13769_v30, %v13767_v39  ;;  %v13770_v22 = vsel %vm23710_vm1, %v13738_v37, 0.0  ;;  %v13772_v56 = vsel %vm18402_vm0, %v13740_v23, 0.0  ;;  %vm23712_vm15 = vmmov %vm23711_vm14 }
0x1219   : > { %v17733_v48 = vpack.i.bf16 %v13771_v53, %v13770_v22  ;;  %v17738_v54 = vpack.i.bf16 %v13772_v56, %v13768_v57  ;;  %17724 = vrot.lane.b32.xlu1 %v17723_v27, %s17998_s21  ;;  %vm23713_vm0 = vmmov %vm23711_vm14 }
0x121a   : > { %17729 = vrot.lane.b32.xlu0 %v17728_v51, %s17998_s21  ;;  %vm23714_vm7 = vmmov %vm23713_vm0 }
0x121b   : > { %vm23715_vm4 = vmmov %vm23713_vm0 }
0x121c   : > { %vm23716_vm8 = vmmov %vm23713_vm0 }
0x121d   : > { %17734 = vrot.lane.b32.xlu1 %v17733_v48, %s17998_s21  ;;  %vm23717_vm11 = vmmov %vm23713_vm0 }
0x121e   : > { %17739 = vrot.lane.b32.xlu0 %v17738_v54, %s17998_s21  ;;  %vm23718_vm9 = vmmov %vm23713_vm0  ;;  %s15503_s21 = sshll.u32 %s18079_s28, 1 }
0x121f   : > { %vm23719_vm6 = vmmov %vm23713_vm0 }
0x1220   : > { %vm23720_vm10 = vmmov %vm23713_vm0 }
0x1221   : > { %vm23721_vm1 = vmmov %vm23713_vm0 }
0x1273   : > { %v17665_v5 = vpop.permute.xlu1 %17664 }
0x1274   : > { %v22166_v12 = vunpack.i.l.bf16 %v17665_v5  ;;  %v17670_v19 = vpop.permute.xlu0 %17669  ;;  %v17667_v50 = vunpack.i.h.bf16 %v17665_v5 }
0x1275   : > { %v22168_v33 = vunpack.i.h.bf16 %v17670_v19  ;;  %v17671_v14 = vunpack.i.l.bf16 %v17670_v19 }
0x1276   : > { %v13925_v6 = vsel %vm23711_vm14, 0.0, %v22166_v12  ;;  %v13869_v37 = vsel %vm23720_vm10, %v22166_v12, %v17667_v50  ;;  %vm23722_vm14 = vmmov %vm23713_vm0 }
0x1277   : > { %v13926_v26 = vsel %vm23712_vm15, 0.0, %v22168_v33  ;;  %v17675_v29 = vpop.permute.xlu1 %17674  ;;  %v13870_v25 = vsel %vm23713_vm0, %v17667_v50, %v17671_v14  ;;  %vm23723_vm15 = vcmask 547840   ;;  %vm23731_vm10 = vmmov %vm23721_vm1 }
0x1278   : > { %v22176_v41 = vpack.c.bf16 %v13926_v26, %v13925_v6  ;;  %v17677_v49 = vunpack.i.h.bf16 %v17675_v29  ;;  %v17676_v63 = vunpack.i.l.bf16 %v17675_v29  ;;  %v17680_v31 = vpop.permute.xlu0 %17679  ;;  %vm23724_vm0 = vmmov %vm23723_vm15 }
0x1279   : > { %v17682_v34 = vunpack.i.h.bf16 %v17680_v31  ;;  %v17681_v15 = vunpack.i.l.bf16 %v17680_v31 }
0x127a   : > { %v13873_v0 = vsel %vm23714_vm7, %v17676_v63, %v17677_v49  ;;  %13975 = vrot.lane.b32.xlu1 %v22176_v41, %s17989_s12  ;;  %v13872_v28 = vsel %vm23719_vm6, %v22168_v33, %v17676_v63  ;;  %vm23725_vm7 = vmmov %vm23721_vm1 }
0x127b   : > { %v22182_v47 = vpack.c.bf16 %v13873_v0, %v13870_v25  ;;  %v22185_v10 = vsel %vm23715_vm4, %v17671_v14, %v17681_v15  ;;  %v22188_v61 = vsel %vm23716_vm8, %v17677_v49, %v17682_v34  ;;  %v22190_v11 = vpop.permute.xlu1 %17684  ;;  %v22268_v30 = vpack.c.bf16 %v13872_v28, %v13869_v37  ;;  %vm23726_vm4 = vmmov %vm23721_vm1 }
0x127c   : > { %v22193_v43 = vunpack.i.l.bf16 %v22190_v11  ;;  %v22195_v21 = vpop.permute.xlu0 %17689  ;;  %v13933_v53 = vsel %vm23723_vm15, %v22185_v10, 0.0  ;;  %v13934_v57 = vsel %vm23724_vm0, %v22188_v61, 0.0  ;;  %vm23727_vm8 = vmmov %vm23721_vm1  ;;  %v17687_v0 = vunpack.i.h.bf16 %v22190_v11 }
0x127d   : > { %v22198_v60 = vunpack.i.h.bf16 %v22195_v21  ;;  %13979 = vrot.lane.b32.xlu0 %v22182_v47, %s17989_s12  ;;  %v17691_v20 = vunpack.i.l.bf16 %v22195_v21  ;;  %v22288_v54 = vpack.c.bf16 %v13934_v57, %v13933_v53  ;;  %vm23730_vm6 = vmmov %vm23721_vm1 }
0x127e   : > { %14203 = vrot.lane.b32.xlu1 %v22176_v41, %s17990_s13  ;;  %v13927_v15 = vsel %vm23727_vm8, 0.0, %v22193_v43  ;;  %vm23733_vm15 = vmmov %vm23724_vm0 }
0x127f   : > { %v22208_v59 = vpop.permute.xlu1 %17694 }
0x1280   : > { %v17697_v36 = vunpack.i.h.bf16 %v22208_v59  ;;  %v17700_v17 = vpop.permute.xlu0 %17699  ;;  %v17696_v34 = vunpack.i.l.bf16 %v22208_v59  ;;  %v13875_v59 = vsel %vm23721_vm1, %v22193_v43, %v17687_v0 }
0x1281   : > { %v17702_v58 = vunpack.i.h.bf16 %v17700_v17  ;;  %v17701_v24 = vunpack.i.l.bf16 %v17700_v17  ;;  %14207 = vrot.lane.b32.xlu0 %v22182_v47, %s17990_s13 }
0x1282   : > { %14349 = vrot.lane.b32.xlu1 %v22176_v41, %s17991_s14  ;;  %v13878_v21 = vsel %vm23731_vm10, %v22198_v60, %v17696_v34 }
0x1283   : > { %v22219_v32 = vsel %vm23717_vm11, %v17691_v20, %v17701_v24  ;;  %v22224_v42 = vsel %vm23718_vm9, %v17697_v36, %v17702_v58  ;;  %v22226_v46 = vpop.permute.xlu1 %17704  ;;  %vm23728_vm11 = vmmov %vm23721_vm1  ;;  %v13876_v24 = vsel %vm23730_vm6, %v17687_v0, %v17691_v20 }
0x1284   : > { %v22229_v9 = vunpack.i.l.bf16 %v22226_v46  ;;  %v22231_v3 = vpop.permute.xlu0 %17709  ;;  %v13928_v25 = vsel %vm23728_vm11, 0.0, %v22198_v60  ;;  %vm23729_vm9 = vmmov %vm23721_vm1  ;;  %v17707_v53 = vunpack.i.h.bf16 %v22226_v46 }
0x1285   : > { %v22234_v40 = vunpack.i.h.bf16 %v22231_v3  ;;  %14353 = vrot.lane.b32.xlu0 %v22182_v47, %s17991_s14  ;;  %v17711_v4 = vunpack.i.l.bf16 %v22231_v3  ;;  %v22330_v17 = vpack.c.bf16 %v13928_v25, %v13927_v15  ;;  %v13879_v58 = vsel %vm23729_vm9, %v17696_v34, %v17697_v36 }
0x1286   : > { %14495 = vrot.lane.b32.xlu1 %v22176_v41, %s17992_s15  ;;  %v22342_v11 = vpack.c.bf16 %v13879_v58, %v13876_v24  ;;  %v22360_v36 = vpack.c.bf16 %v13878_v21, %v13875_v59 }
0x1287   : > { %v22244_v45 = vpop.permute.xlu1 %17714 }
0x1288   : > { %v17717_v35 = vunpack.i.h.bf16 %v22244_v45  ;;  %v17720_v55 = vpop.permute.xlu0 %17719 }
0x1289   : > { %v17722_v62 = vunpack.i.h.bf16 %v17720_v55  ;;  %v17721_v7 = vunpack.i.l.bf16 %v17720_v55  ;;  %14499 = vrot.lane.b32.xlu0 %v22182_v47, %s17992_s15  ;;  %v13936_v55 = vsel %vm23733_vm15, %v22224_v42, 0.0 }
0x128a   : > { %14641 = vrot.lane.b32.xlu1 %v22176_v41, %s17993_s16 }
0x128b   : > { %v22259_v23 = vsel %vm23721_vm1, %v17711_v4, %v17721_v7  ;;  %v22264_v39 = vsel %vm23722_vm14, %v17717_v35, %v17722_v62  ;;  %v22266_v27 = vpop.permute.xlu1 %17724  ;;  %vm23732_vm14 = vmmov %vm23724_vm0  ;;  %v17716_v62 = vunpack.i.l.bf16 %v22244_v45 }
0x128c   : > { %v22275_v51 = vunpack.i.l.bf16 %v22266_v27  ;;  %v22277_v22 = vpop.permute.xlu0 %17729  ;;  %v13935_v20 = vsel %vm23732_vm14, %v22219_v32, 0.0  ;;  %vm23734_vm0 = vmmov %vm23721_vm1  ;;  %v17727_v24 = vunpack.i.h.bf16 %v22266_v27 }
0x128d   : > { %v22280_v56 = vunpack.i.h.bf16 %v22277_v22  ;;  %14645 = vrot.lane.b32.xlu0 %v22182_v47, %s17993_s16  ;;  %v17731_v14 = vunpack.i.l.bf16 %v22277_v22  ;;  %v22370_v28 = vpack.c.bf16 %v13936_v55, %v13935_v20  ;;  %v13929_v7 = vsel %vm23734_vm0, 0.0, %v22229_v9  ;;  %vm23737_vm8 = vmmov %vm23734_vm0 }
0x128e   : > { %13977 = vrot.lane.b32.xlu1 %v22268_v30, %s17989_s12  ;;  %vm23738_vm11 = vmmov %vm23734_vm0 }
0x128f   : > { %v22292_v19 = vpop.permute.xlu1 %17734  ;;  %v13884_v3 = vsel %vm23738_vm11, %v22234_v40, %v17716_v62  ;;  %vm23739_vm9 = vmmov %vm23734_vm0  ;;  %v13888_v59 = vsel %vm23734_vm0, %v17727_v24, %v17731_v14 }
0x1290   : > { %v17737_v50 = vunpack.i.h.bf16 %v22292_v19  ;;  %v17740_v6 = vpop.permute.xlu0 %17739  ;;  %v13881_v45 = vsel %vm23739_vm9, %v22229_v9, %v17707_v53  ;;  %vm23740_vm6 = vmmov %vm23732_vm14  ;;  %v17736_v58 = vunpack.i.l.bf16 %v22292_v19  ;;  %vm23767_vm9 = vcmask 891904  }
0x1291   : > { %v17742_v26 = vunpack.i.h.bf16 %v17740_v6  ;;  %v17741_v29 = vunpack.i.l.bf16 %v17740_v6  ;;  %13981 = vrot.lane.b32.xlu0 %v22288_v54, %s17989_s12  ;;  %vm23741_vm10 = vmmov %vm23740_vm6 }
0x1292   : > { %14205 = vrot.lane.b32.xlu1 %v22268_v30, %s17990_s13  ;;  %vm23742_vm1 = vmmov %vm23734_vm0 }
0x1293   : > { %v22303_v49 = vsel %vm23725_vm7, %v17731_v14, %v17741_v29  ;;  %v22308_v63 = vsel %vm23726_vm4, %v17737_v50, %v17742_v26  ;;  %vm23735_vm7 = vmmov %vm23734_vm0  ;;  %v13882_v26 = vsel %vm23737_vm8, %v17707_v53, %v17711_v4  ;;  %v13937_v4 = vsel %vm23740_vm6, %v22259_v23, 0.0 }
0x1294   : > { %v13930_v37 = vsel %vm23735_vm7, 0.0, %v22234_v40  ;;  %vm23736_vm4 = vmmov %vm23734_vm0  ;;  %v13938_v29 = vsel %vm23741_vm10, %v22264_v39, 0.0  ;;  %v13931_v15 = vsel %vm23742_vm1, 0.0, %v22275_v51  ;;  %vm14035_vm10 = vcmask 523264  }
0x1295   : > { %14209 = vrot.lane.b32.xlu0 %v22288_v54, %s17990_s13  ;;  %v22390_v57 = vpack.c.bf16 %v13930_v37, %v13929_v7  ;;  %v13885_v6 = vsel %vm23736_vm4, %v17716_v62, %v17717_v35  ;;  %v22420_v35 = vpack.c.bf16 %v13884_v3, %v13881_v45  ;;  %v22430_v34 = vpack.c.bf16 %v13938_v29, %v13937_v4  ;;  %vm23743_vm14 = vmmov %vm23734_vm0 }
0x1296   : > { %14351 = vrot.lane.b32.xlu1 %v22268_v30, %s17991_s14  ;;  %v22402_v46 = vpack.c.bf16 %v13885_v6, %v13882_v26  ;;  %v13932_v25 = vsel %vm23743_vm14, 0.0, %v22280_v56  ;;  %vm23744_vm15 = vmmov %vm23734_vm0  ;;  %vm23774_vm1 = vcmask 883712   ;;  %v23784_v13 = vpack.c.bf16 %v22308_v63, %v22303_v49 }
0x1297   : > { %v22448_v0 = vpack.c.bf16 %v13932_v25, %v13931_v15  ;;  %v13891_v21 = vsel %vm23744_vm15, %v17736_v58, %v17737_v50  ;;  %vm23745_vm7 = vmmov %vm23734_vm0 }
0x1298   : > { %v22466_v20 = vpack.c.bf16 %v13891_v21, %v13888_v59  ;;  %v13890_v19 = vsel %vm23745_vm7, %v22280_v56, %v17736_v58  ;;  %vm23746_vm4 = vmmov %vm23734_vm0 }
0x1299   : > { %14355 = vrot.lane.b32.xlu0 %v22288_v54, %s17991_s14  ;;  %v13887_v22 = vsel %vm23746_vm4, %v22275_v51, %v17727_v24  ;;  %vm23747_vm8 = vmmov %vm23740_vm6 }
0x129a   : > { %14497 = vrot.lane.b32.xlu1 %v22268_v30, %s17992_s15  ;;  %v22480_v14 = vpack.c.bf16 %v13890_v19, %v13887_v22  ;;  %v13939_v7 = vsel %vm23747_vm8, %v22303_v49, 0.0  ;;  %vm23748_vm11 = vmmov %vm23740_vm6 }
0x129b   : > { %v13940_v37 = vsel %vm23748_vm11, %v22308_v63, 0.0  ;;  %vm23769_vm6 = vmmov %vm23767_vm9 }
0x129c   : > { %v22500_v6 = vpack.c.bf16 %v13940_v37, %v13939_v7  ;;  %vm23776_vm14 = vmmov %vm23774_vm1 }
0x129d   : > { %14501 = vrot.lane.b32.xlu0 %v22288_v54, %s17992_s15  ;;  %vm23812_vm8 = vmmov %vm23774_vm1 }
0x129e   : > { %14643 = vrot.lane.b32.xlu1 %v22268_v30, %s17993_s16 }
0x12a1   : > { %14647 = vrot.lane.b32.xlu0 %v22288_v54, %s17993_s16 }
0x12a2   : > { %13983 = vrot.lane.b32.xlu1 %v22330_v17, %s17989_s12 }
0x12a5   : > { %13987 = vrot.lane.b32.xlu0 %v22342_v11, %s17989_s12 }
0x12a6   : > { %14211 = vrot.lane.b32.xlu1 %v22330_v17, %s17990_s13 }
0x12a9   : > { %14215 = vrot.lane.b32.xlu0 %v22342_v11, %s17990_s13 }
0x12aa   : > { %14357 = vrot.lane.b32.xlu1 %v22330_v17, %s17991_s14 }
0x12ad   : > { %14361 = vrot.lane.b32.xlu0 %v22342_v11, %s17991_s14 }
0x12ae   : > { %14503 = vrot.lane.b32.xlu1 %v22330_v17, %s17992_s15 }
0x12b1   : > { %14507 = vrot.lane.b32.xlu0 %v22342_v11, %s17992_s15 }
0x12b2   : > { %13985 = vrot.lane.b32.xlu1 %v22360_v36, %s17989_s12 }
0x12b5   : > { %13989 = vrot.lane.b32.xlu0 %v22370_v28, %s17989_s12 }
0x12b6   : > { %14213 = vrot.lane.b32.xlu1 %v22360_v36, %s17990_s13 }
0x12b9   : > { %14217 = vrot.lane.b32.xlu0 %v22370_v28, %s17990_s13 }
0x12ba   : > { %14359 = vrot.lane.b32.xlu1 %v22360_v36, %s17991_s14 }
0x12bd   : > { %14363 = vrot.lane.b32.xlu0 %v22370_v28, %s17991_s14 }
0x12be   : > { %14505 = vrot.lane.b32.xlu1 %v22360_v36, %s17992_s15 }
0x12c1   : > { %14509 = vrot.lane.b32.xlu0 %v22370_v28, %s17992_s15 }
0x12c2   : > { %13991 = vrot.lane.b32.xlu1 %v22390_v57, %s17989_s12 }
0x12c5   : > { %13995 = vrot.lane.b32.xlu0 %v22402_v46, %s17989_s12 }
0x12c6   : > { %14219 = vrot.lane.b32.xlu1 %v22390_v57, %s17990_s13 }
0x12c9   : > { %14223 = vrot.lane.b32.xlu0 %v22402_v46, %s17990_s13 }
0x12ca   : > { %14365 = vrot.lane.b32.xlu1 %v22390_v57, %s17991_s14 }
0x12cd   : > { %14369 = vrot.lane.b32.xlu0 %v22402_v46, %s17991_s14 }
0x12ce   : > { %14511 = vrot.lane.b32.xlu1 %v22390_v57, %s17992_s15 }
0x12d1   : > { %14515 = vrot.lane.b32.xlu0 %v22402_v46, %s17992_s15 }
0x12d2   : > { %13993 = vrot.lane.b32.xlu1 %v22420_v35, %s17989_s12 }
0x12d5   : > { %13997 = vrot.lane.b32.xlu0 %v22430_v34, %s17989_s12 }
0x12d6   : > { %14221 = vrot.lane.b32.xlu1 %v22420_v35, %s17990_s13 }
0x12d9   : > { %14225 = vrot.lane.b32.xlu0 %v22430_v34, %s17990_s13 }
0x12da   : > { %14367 = vrot.lane.b32.xlu1 %v22420_v35, %s17991_s14 }
0x12dd   : > { %14371 = vrot.lane.b32.xlu0 %v22430_v34, %s17991_s14 }
0x12de   : > { %14513 = vrot.lane.b32.xlu1 %v22420_v35, %s17992_s15 }
0x12e1   : > { %14517 = vrot.lane.b32.xlu0 %v22430_v34, %s17992_s15 }
0x12e2   : > { %13999 = vrot.lane.b32.xlu1 %v22448_v0, %s17989_s12 }
0x12e5   : > { %14653 = vrot.lane.b32.xlu0 %v22342_v11, %s17993_s16 }
0x12e6   : > { %14227 = vrot.lane.b32.xlu1 %v22448_v0, %s17990_s13 }
0x12e9   : > { %14003 = vrot.lane.b32.xlu0 %v22466_v20, %s17989_s12 }
0x12ea   : > { %14373 = vrot.lane.b32.xlu1 %v22448_v0, %s17991_s14 }
0x12ec   : > { %v13976_v27 = vpop.permute.xlu1 %13975 }
0x12ed   : > { %14231 = vrot.lane.b32.xlu0 %v22466_v20, %s17990_s13 }
0x12ee   : > { %14519 = vrot.lane.b32.xlu1 %v22448_v0, %s17992_s15 }
0x12ef   : > { %v13980_v50 = vpop.permute.xlu0 %13979 }
0x12f0   : > { %v22482_v55 = vpop.permute.xlu1 %14203 }
0x12f1   : > { %14377 = vrot.lane.b32.xlu0 %v22466_v20, %s17991_s14 }
0x12f2   : > { %14001 = vrot.lane.b32.xlu1 %v22480_v14, %s17989_s12 }
0x12f3   : > { %v22488_v62 = vpop.permute.xlu0 %14207 }
0x12f4   : > { %v22494_v53 = vpop.permute.xlu1 %14349 }
0x12f5   : > { %14523 = vrot.lane.b32.xlu0 %v22466_v20, %s17992_s15 }
0x12f6   : > { %14651 = vrot.lane.b32.xlu1 %v22360_v36, %s17993_s16 }
0x12f7   : > { %v22502_v26 = vpop.permute.xlu0 %14353 }
0x12f8   : > { %v22504_v3 = vpop.permute.xlu1 %14495 }
0x12f9   : > { %23749 = vst [vmem:[#allocation3_spill] sm:$0xff] %v22504_v3  ;;  %14005 = vrot.lane.b32.xlu0 %v22500_v6, %s17989_s12  ;;  %s23754_s12 = smov 92  }
0x12fa   : > { %14649 = vrot.lane.b32.xlu1 %v22330_v17, %s17993_s16 }
0x12fb   : > { %v22510_v45 = vpop.permute.xlu0 %14499 }
0x12fc   : > { %23750 = vst [vmem:[#allocation4_spill] sm:$0xff] %v22510_v45  ;;  %v22512_v4 = vpop.permute.xlu1 %14641 }
0x12fd   : > { %23751 = vst [vmem:[#allocation7_spill] sm:$0xff] %v22512_v4  ;;  %14655 = vrot.lane.b32.xlu0 %v22370_v28, %s17993_s16 }
0x12fe   : > { %14229 = vrot.lane.b32.xlu1 %v22480_v14, %s17990_s13 }
0x12ff   : > { %v22518_v29 = vpop.permute.xlu0 %14645 }
0x1300   : > { %23752 = vst [vmem:[#allocation8_spill] sm:$0xff] %v22518_v29  ;;  %v13978_v15 = vpop.permute.xlu1 %13977 }
0x1301   : > { %14661 = vrot.lane.b32.xlu0 %v22402_v46, %s17993_s16  ;;  %v14008_v25 = vsel %vm383_vm2, %v13978_v15, %v13980_v50  ;;  %v14007_v58 = vsel %vm383_vm2, %v13976_v27, %v13978_v15 }
0x1302   : > { %14375 = vrot.lane.b32.xlu1 %v22480_v14, %s17991_s14  ;;  %14039 = vmatprep.subr.bf16.mxu0 %v14008_v25 }
0x1303   : > { %v13982_v24 = vpop.permute.xlu0 %13981  ;;  %14040 = vmatpush1.bf16.msra.mxu0 %v14007_v58 }
0x1304   : > { %14079 = vmatprep.subr.bf16.mxu1 %v13982_v24  ;;  %v22526_v21 = vpop.permute.xlu1 %14205  ;;  %v14009_v59 = vsel %vm383_vm2, %v13980_v50, %v13982_v24 }
0x1305   : > { %14663 = vrot.lane.b32.xlu0 %v22430_v34, %s17993_s16  ;;  %14080 = vmatpush1.bf16.msra.mxu1 %v14009_v59 }
0x1306   : > { %14521 = vrot.lane.b32.xlu1 %v22480_v14, %s17992_s15 }
0x1307   : > { %v22533_v19 = vpop.permute.xlu0 %14209 }
0x1308   : > { %v22535_v27 = vpop.permute.xlu1 %14351 }
0x1309   : > { %14669 = vrot.lane.b32.xlu0 %v22466_v20, %s17993_s16 }
0x130a   : > { %14659 = vrot.lane.b32.xlu1 %v22420_v35, %s17993_s16 }
0x130b   : > { %v22541_v22 = vpop.permute.xlu0 %14355 }
0x130c   : > { %v22543_v50 = vpop.permute.xlu1 %14497 }
0x130d   : > { %23753 = vst [vmem:[#allocation9_spill] sm:$0xff] %v22543_v50  ;;  %14791 = vrot.lane.b32.xlu0 %v22182_v47, %s23754_s12 }
0x130e   : > { %14657 = vrot.lane.b32.xlu1 %v22390_v57, %s17993_s16 }
0x130f   : > { %v22549_v7 = vpop.permute.xlu0 %14501 }
0x1310   : > { %23755 = vst [vmem:[#allocation10_spill] sm:$0xff] %v22549_v7  ;;  %v22551_v37 = vpop.permute.xlu1 %14643 }
0x1311   : > { %23756 = vst [vmem:[#allocation11_spill] sm:$0xff] %v22551_v37  ;;  %14793 = vrot.lane.b32.xlu0 %v22288_v54, %s23754_s12 }
0x1312   : > { %14667 = vrot.lane.b32.xlu1 %v22480_v14, %s17993_s16 }
0x1313   : > { %v22557_v15 = vpop.permute.xlu0 %14647 }
0x1314   : > { %23757 = vst [vmem:[#allocation12_spill] sm:$0xff] %v22557_v15  ;;  %v13984_v25 = vpop.permute.xlu1 %13983 }
0x1315   : > { %14799 = vrot.lane.b32.xlu0 %v22342_v11, %s23754_s12 }
0x1316   : > { %14665 = vrot.lane.b32.xlu1 %v22448_v0, %s17993_s16 }
0x1317   : > { %v13988_v58 = vpop.permute.xlu0 %13987 }
0x1318   : > { %v22563_v24 = vpop.permute.xlu1 %14211 }
0x1319   : > { %14233 = vrot.lane.b32.xlu0 %v22500_v6, %s17990_s13 }
0x131a   : > { %14789 = vrot.lane.b32.xlu1 %v22268_v30, %s23754_s12 }
0x131b   : > { %v22569_v59 = vpop.permute.xlu0 %14215 }
0x131c   : > { %v22571_v31 = vpop.permute.xlu1 %14357 }
0x131d   : > { %23758 = vst [vmem:[#allocation14_spill] sm:$0xff] %v22571_v31  ;;  %14801 = vrot.lane.b32.xlu0 %v22370_v28, %s23754_s12 }
0x131e   : > { %14787 = vrot.lane.b32.xlu1 %v22176_v41, %s23754_s12 }
0x131f   : > { %v22577_v5 = vpop.permute.xlu0 %14361 }
0x1320   : > { %v22579_v48 = vpop.permute.xlu1 %14503 }
0x1321   : > { %23759 = vst [vmem:[#allocation15_spill] sm:$0xff] %v22579_v48  ;;  %14807 = vrot.lane.b32.xlu0 %v22402_v46, %s23754_s12 }
0x1322   : > { %14797 = vrot.lane.b32.xlu1 %v22360_v36, %s23754_s12 }
0x1323   : > { %v22585_v52 = vpop.permute.xlu0 %14507 }
0x1324   : > { %23760 = vst [vmem:[#allocation16_spill] sm:$0xff] %v22585_v52  ;;  %v13986_v44 = vpop.permute.xlu1 %13985 }
0x1325   : > { %14809 = vrot.lane.b32.xlu0 %v22430_v34, %s23754_s12  ;;  %v14011_v38 = vsel %vm383_vm2, %v13986_v44, %v13988_v58  ;;  %v14010_v8 = vsel %vm383_vm2, %v13984_v25, %v13986_v44 }
0x1326   : > { %14795 = vrot.lane.b32.xlu1 %v22330_v17, %s23754_s12  ;;  %14041 = vmatprep.subr.bf16.mxu0 %v14011_v38 }
0x1327   : > { %v13990_v2 = vpop.permute.xlu0 %13989  ;;  %14042 = vmatpush1.bf16.msra.mxu0 %v14010_v8 }
0x1328   : > { %14081 = vmatprep.subr.bf16.mxu1 %v13990_v2  ;;  %v22593_v18 = vpop.permute.xlu1 %14213  ;;  %v14012_v15 = vsel %vm383_vm2, %v13988_v58, %v13990_v2 }
0x1329   : > { %14379 = vrot.lane.b32.xlu0 %v22500_v6, %s17991_s14  ;;  %14082 = vmatpush1.bf16.msra.mxu1 %v14012_v15  ;;  %v14238_v63 = vsel %vm672_vm3, %v22563_v24, %v22593_v18  ;;  %v14202_v24 = vld [vmem:[%s23188_s1 + $0x53c] sm:$0x3] }
0x132a   : > { %14805 = vrot.lane.b32.xlu1 %v22420_v35, %s23754_s12 }
0x132b   : > { %v22600_v4 = vpop.permute.xlu0 %14217 }
0x132c   : > { %v22602_v44 = vpop.permute.xlu1 %14359 }
0x132d   : > { %14815 = vrot.lane.b32.xlu0 %v22466_v20, %s23754_s12 }
0x132e   : > { %14803 = vrot.lane.b32.xlu1 %v22390_v57, %s23754_s12 }
0x132f   : > { %v22608_v8 = vpop.permute.xlu0 %14363 }
0x1330   : > { %23761 = vst [vmem:[#allocation17_spill] sm:$0xff] %v22608_v8  ;;  %v22610_v2 = vpop.permute.xlu1 %14505 }
0x1331   : > { %23762 = vst [vmem:[#allocation18_spill] sm:$0xff] %v22610_v2  ;;  %14937 = vrot.lane.b32.xlu0 %v22182_v47, %s23440_s11 }
0x1332   : > { %14813 = vrot.lane.b32.xlu1 %v22480_v14, %s23754_s12 }
0x1333   : > { %v22616_v38 = vpop.permute.xlu0 %14509 }
0x1334   : > { %23763 = vst [vmem:[#allocation19_spill] sm:$0xff] %v22616_v38  ;;  %v13992_v15 = vpop.permute.xlu1 %13991 }
0x1335   : > { %14939 = vrot.lane.b32.xlu0 %v22288_v54, %s23440_s11 }
0x1336   : > { %14811 = vrot.lane.b32.xlu1 %v22448_v0, %s23754_s12 }
0x1337   : > { %v13996_v25 = vpop.permute.xlu0 %13995 }
0x1338   : > { %v22622_v58 = vpop.permute.xlu1 %14219 }
0x1339   : > { %14525 = vrot.lane.b32.xlu0 %v22500_v6, %s17992_s15 }
0x133a   : > { %14935 = vrot.lane.b32.xlu1 %v22268_v30, %s23440_s11 }
0x133b   : > { %v22628_v37 = vpop.permute.xlu0 %14223 }
0x133c   : > { %v14366_v29 = vpop.permute.xlu1 %14365 }
0x133d   : > { %14945 = vrot.lane.b32.xlu0 %v22342_v11, %s23440_s11 }
0x133e   : > { %14933 = vrot.lane.b32.xlu1 %v22176_v41, %s23440_s11 }
0x133f   : > { %v22634_v38 = vpop.permute.xlu0 %14369 }
0x1340   : > { %23764 = vst [vmem:[#allocation20_spill] sm:$0xff] %v22634_v38  ;;  %v14512_v7 = vpop.permute.xlu1 %14511 }
0x1341   : > { %14947 = vrot.lane.b32.xlu0 %v22370_v28, %s23440_s11 }
0x1342   : > { %14943 = vrot.lane.b32.xlu1 %v22360_v36, %s23440_s11 }
0x1343   : > { %v22640_v48 = vpop.permute.xlu0 %14515 }
0x1344   : > { %23765 = vst [vmem:[#allocation21_spill] sm:$0xff] %v22640_v48  ;;  %v13994_v2 = vpop.permute.xlu1 %13993 }
0x1345   : > { %v14013_v52 = vsel %vm383_vm2, %v13992_v15, %v13994_v2  ;;  %14953 = vrot.lane.b32.xlu0 %v22402_v46, %s23440_s11  ;;  %v14014_v3 = vsel %vm383_vm2, %v13994_v2, %v13996_v25 }
0x1346   : > { %14941 = vrot.lane.b32.xlu1 %v22330_v17, %s23440_s11  ;;  %14043 = vmatprep.subr.bf16.mxu0 %v14014_v3 }
0x1347   : > { %v13998_v50 = vpop.permute.xlu0 %13997  ;;  %14044 = vmatpush1.bf16.msra.mxu0 %v14013_v52 }
0x1348   : > { %v14015_v45 = vsel %vm383_vm2, %v13996_v25, %v13998_v50  ;;  %14083 = vmatprep.subr.bf16.mxu1 %v13998_v50  ;;  %v22649_v8 = vpop.permute.xlu1 %14221 }
0x1349   : > { %14671 = vrot.lane.b32.xlu0 %v22500_v6, %s17993_s16  ;;  %14084 = vmatpush1.bf16.msra.mxu1 %v14015_v45  ;;  %s18007_s16 = smov 112  }
0x134a   : > { %14951 = vrot.lane.b32.xlu1 %v22420_v35, %s23440_s11 }
0x134b   : > { %v22655_v15 = vpop.permute.xlu0 %14225 }
0x134c   : > { %v14368_v2 = vpop.permute.xlu1 %14367 }
0x134d   : > { %v22658_v31 = vsel %vm838_vm5, %v14366_v29, %v14368_v2  ;;  %14955 = vrot.lane.b32.xlu0 %v22430_v34, %s23440_s11  ;;  %v22664_v52 = vsel %vm838_vm5, %v14368_v2, %v22634_v38 }
0x134e   : > { %14949 = vrot.lane.b32.xlu1 %v22390_v57, %s23440_s11 }
0x134f   : > { %v22668_v3 = vpop.permute.xlu0 %14371 }
0x1350   : > { %23766 = vst [vmem:[#allocation22_spill] sm:$0xff] %v22668_v3  ;;  %v14514_v45 = vpop.permute.xlu1 %14513 }
0x1351   : > { %v22671_v50 = vsel %vm23767_vm9, %v14512_v7, %v14514_v45  ;;  %14961 = vrot.lane.b32.xlu0 %v22466_v20, %s23440_s11  ;;  %v22677_v29 = vsel %vm23769_vm6, %v14514_v45, %v22640_v48  ;;  %vm23816_vm9 = vmmov %vm23774_vm1 }
0x1352   : > { %23768 = vst [vmem:[#allocation13_spill] sm:$0xff] %v22671_v50  ;;  %23770 = vst [vmem:[#allocation23_spill] sm:$0xff] %v22677_v29  ;;  %14959 = vrot.lane.b32.xlu1 %v22480_v14, %s23440_s11 }
0x1353   : > { %v22681_v25 = vpop.permute.xlu0 %14517 }
0x1354   : > { %23771 = vst [vmem:[#allocation24_spill] sm:$0xff] %v22681_v25  ;;  %v14000_v2 = vpop.permute.xlu1 %13999 }
0x1355   : > { %15083 = vrot.lane.b32.xlu0 %v22182_v47, %s23447_s19 }
0x1356   : > { %14957 = vrot.lane.b32.xlu1 %v22448_v0, %s23440_s11 }
0x1357   : > { %v22687_v7 = vpop.permute.xlu0 %14653 }
0x1358   : > { %v22689_v50 = vpop.permute.xlu1 %14227 }
0x1359   : > { %14817 = vrot.lane.b32.xlu0 %v22500_v6, %s23754_s12 }
0x135a   : > { %15081 = vrot.lane.b32.xlu1 %v22268_v30, %s23447_s19 }
0x135b   : > { %v14004_v45 = vpop.permute.xlu0 %14003 }
0x135c   : > { %v22695_v48 = vpop.permute.xlu1 %14373 }
0x135d   : > { %23772 = vst [vmem:[#allocation25_spill] sm:$0xff] %v22695_v48  ;;  %15085 = vrot.lane.b32.xlu0 %v22288_v54, %s23447_s19 }
0x135e   : > { %15079 = vrot.lane.b32.xlu1 %v22176_v41, %s23447_s19 }
0x135f   : > { %v22701_v25 = vpop.permute.xlu0 %14231 }
0x1360   : > { %v22703_v29 = vpop.permute.xlu1 %14519 }
0x1361   : > { %23773 = vst [vmem:[#allocation26_spill] sm:$0xff] %v22703_v29  ;;  %15091 = vrot.lane.b32.xlu0 %v22342_v11, %s23447_s19  ;;  %v13958_v29 = vld [vmem:[%s23188_s1 + $0x538] sm:$0x3] }
0x1362   : > { %15089 = vrot.lane.b32.xlu1 %v22360_v36, %s23447_s19 }
0x1363   : > { %v22709_v38 = vpop.permute.xlu0 %14377 }
0x1364   : > { %v14002_v3 = vpop.permute.xlu1 %14001 }
0x1365   : > { %v14016_v48 = vsel %vm383_vm2, %v14000_v2, %v14002_v3  ;;  %15093 = vrot.lane.b32.xlu0 %v22370_v28, %s23447_s19  ;;  %v14017_v41 = vsel %vm383_vm2, %v14002_v3, %v14004_v45 }
0x1366   : > { %15087 = vrot.lane.b32.xlu1 %v22330_v17, %s23447_s19  ;;  %14045 = vmatprep.subr.bf16.mxu0 %v14017_v41  ;;  %v23775_v17 = vpack.c.bf16 %v22168_v33, %v22166_v12  ;;  %v23777_v12 = vpack.c.bf16 %v22188_v61, %v22185_v10  ;;  %v23779_v10 = vpack.c.bf16 %v22224_v42, %v22219_v32 }
0x1367   : > { %v22717_v54 = vpop.permute.xlu0 %14523  ;;  %14046 = vmatpush1.bf16.msra.mxu0 %v14016_v48  ;;  %v23781_v32 = vpack.c.bf16 %v22264_v39, %v22259_v23  ;;  %v13957_v23 = vld [vmem:[%s23188_s1 + $0x534] sm:$0x3] }
0x1368   : > { %14122 = vmatprep.subr.bf16.mxu0 %v22268_v30  ;;  %v14652_v2 = vpop.permute.xlu1 %14651 }
0x1369   : > { %14963 = vrot.lane.b32.xlu0 %v22500_v6, %s23440_s11  ;;  %v22727_v28 = vsel %vm23774_vm1, %v14652_v2, %v22687_v7  ;;  %s15504_s11 = sshll.u32 %s23877_s22, 2 }
0x136a   : > { %15097 = vrot.lane.b32.xlu1 %v22420_v35, %s23447_s19  ;;  %16134 = vmatmul.mubr.msk.bf16.vlgmr.msra.gmra.mrb[108].mxu0 %vm14035_vm10, %v13958_v29 }
0x136b   : > { %v14006_v48 = vpop.permute.xlu0 %14005  ;;  %16140 = vmatpush1.bf16.msk.msra.mxu0 %vm18669_vm12, %v23775_v17  ;;  %14154 = vmatprep.mubr.bf16.mxu0 %v23324_v16 }
0x136c   : > { %v14018_v30 = vsel %vm383_vm2, %v14004_v45, %v14006_v48  ;;  %14085 = vmatprep.subr.bf16.mxu1 %v14006_v48  ;;  %14124 = vmatprep.subr.bf16.mxu0 %v22360_v36  ;;  %v14650_v3 = vpop.permute.xlu1 %14649  ;;  %v23778_v36 = vpack.c.bf16 %v22198_v60, %v22193_v43  ;;  %v23780_v43 = vpack.c.bf16 %v22234_v40, %v22229_v9  ;;  %v18005_v60 = vmov 7   ;;  %vm23783_vm2 = vmmov %vm23774_vm1  ;;  %v23786_v48 = vld [vmem:[#allocation17_spill] sm:$0xff] }
0x136d   : > { %v22741_v41 = vsel %vm23776_vm14, %v14650_v3, %v14652_v2  ;;  %15099 = vrot.lane.b32.xlu0 %v22402_v46, %s23447_s19  ;;  %14086 = vmatpush1.bf16.msra.mxu1 %v14018_v30  ;;  %v23782_v9 = vpack.c.bf16 %v22280_v56, %v22275_v51  ;;  %v14236_v40 = vsel %vm672_vm3, %v22526_v21, %v22488_v62  ;;  %v23788_v3 = vld [vmem:[#allocation22_spill] sm:$0xff]  ;;  %vm23819_vm14 = vmmov %vm23774_vm1 }
0x136e   : > { %16159 = vmatprep.subr.msk.bf16.mxu1 %vm18653_vm13, %v23777_v12  ;;  %15095 = vrot.lane.b32.xlu1 %v22390_v57, %s23447_s19  ;;  %v14235_v51 = vsel %vm672_vm3, %v22482_v55, %v22526_v21  ;;  %v14239_v57 = vsel %vm672_vm3, %v22593_v18, %v22569_v59  ;;  %v14241_v18 = vsel %vm672_vm3, %v22622_v58, %v22649_v8 }
0x136f   : > { %v22752_v33 = vpop.permute.xlu0 %14655  ;;  %16145 = vmatpush1.bf16.msk.msra.mxu0 %vm18669_vm12, %v23778_v36  ;;  %17743 = vset.pattern.permute.xlu1 %v18005_v60  ;;  %v23790_v36 = vld [vmem:[#allocation9_spill] sm:$0xff] }
0x1370   : > { %14126 = vmatprep.subr.bf16.mxu0 %v22420_v35  ;;  %v14230_v45 = vpop.permute.xlu1 %14229  ;;  %16135 = vmatmul.mubr.msk.bf16.vlgmr.msra.gmra.mrb[108].mxu1 %vm14035_vm10, %v13958_v29  ;;  %v14242_v35 = vsel %vm672_vm3, %v22649_v8, %v22628_v37  ;;  %v14381_v8 = vsel %vm838_vm5, %v22494_v53, %v22535_v27  ;;  %v23785_v53 = vld [vmem:[#allocation14_spill] sm:$0xff] }
0x1371   : > { %15101 = vrot.lane.b32.xlu0 %v22430_v34, %s23447_s19  ;;  %14163 = vmatpush1.bf16.msra.mxu1 %v22182_v47 }
0x1372   : > { %16162 = vmatprep.subr.msk.bf16.mxu1 %vm18653_vm13, %v23779_v10  ;;  %15105 = vrot.lane.b32.xlu1 %v22480_v14, %s23447_s19  ;;  %v14348_v10 = vld [vmem:[%s23188_s1 + $0x540] sm:$0x3] }
0x1373   : > { %v22771_v61 = vpop.permute.xlu0 %14661  ;;  %16150 = vmatpush1.bf16.msk.msra.mxu0 %vm18669_vm12, %v23780_v43  ;;  %14194 = vmatprep.mubr.bf16.mxu1 %v23324_v16 }
0x1374   : > { %14128 = vmatprep.subr.bf16.mxu0 %v22480_v14  ;;  %v22780_v47 = vpop.permute.xlu1 %14375  ;;  %17744 = vset.pattern.permute.xlu0 %v18005_v60  ;;  %v14245_v14 = vsel %vm672_vm3, %v14230_v45, %v22701_v25 }
0x1375   : > { %15107 = vrot.lane.b32.xlu0 %v22466_v20, %s23447_s19  ;;  %14165 = vmatpush1.bf16.msra.mxu1 %v22342_v11 }
0x1376   : > { %16165 = vmatprep.subr.msk.bf16.mxu1 %vm18653_vm13, %v23781_v32  ;;  %15103 = vrot.lane.b32.xlu1 %v22448_v0, %s23447_s19  ;;  %v14237_v0 = vsel %vm672_vm3, %v22488_v62, %v22533_v19  ;;  %v14240_v62 = vsel %vm672_vm3, %v22569_v59, %v22600_v4 }
0x1377   : > { %v22792_v42 = vpop.permute.xlu0 %14663  ;;  %16155 = vmatpush1.bf16.msk.msra.mxu0 %vm18669_vm12, %v23782_v9 }
0x1378   : > { %v22808_v39 = vsel %vm23783_vm2, %v22771_v61, %v22792_v42  ;;  %14266 = vmatprep.subr.bf16.mxu0 %v14236_v40  ;;  %v22810_v11 = vpop.permute.xlu1 %14521  ;;  %v23795_v40 = vld [vmem:[#allocation16_spill] sm:$0xff]  ;;  %vm23820_vm2 = vmmov %vm23774_vm1 }
0x1379   : > { %15109 = vrot.lane.b32.xlu0 %v22500_v6, %s23447_s19  ;;  %14167 = vmatpush1.bf16.msra.mxu1 %v22402_v46  ;;  %v14244_v6 = vsel %vm672_vm3, %v22689_v50, %v14230_v45  ;;  %v14385_v50 = vsel %vm838_vm5, %v22602_v44, %v22577_v5  ;;  %s311_s19 = sadd.s32 %s15504_s11, %s15503_s21 }
0x137a   : > { %16168 = vmatprep.subr.msk.bf16.mxu1 %vm18653_vm13, %v23784_v13  ;;  %16156 = vmatmul.mubr.msk.bf16.vlgmr.msra.gmra.mrb[112].mxu0 %vm14035_vm10, %v13957_v23  ;;  %s15507_s9 = sshll.u32 %s311_s19, 2  ;;  %s312_s17 = scalar_lea.vmem %s23191_s4, %s311_s19 }
0x137b   : > { %v22824_v56 = vpop.permute.xlu0 %14669  ;;  %14267 = vmatpush1.bf16.msra.mxu0 %v14235_v51  ;;  %14298 = vmatprep.mubr.bf16.mxu0 %v23324_v16  ;;  %s321_s29 = scalar_lea.vmem %s23192_s5, %s15507_s9  ;;  %s330_s22 = scalar_lea.vmem %s23193_s6, %s15507_s9 }
0x137c   : > { %14268 = vmatprep.subr.bf16.mxu0 %v14239_v57  ;;  %v22830_v49 = vpop.permute.xlu1 %14659  ;;  %15225 = vperm.xlu1 %17743, %v17947_v1   ;;  %v23798_v1 = vld [vmem:[#allocation15_spill] sm:$0xff] }
0x137d   : > { %14169 = vmatpush1.bf16.msra.mxu1 %v22466_v20 }
0x137e   : > { %14306 = vmatprep.subr.bf16.mxu1 %v22533_v19  ;;  %v14382_v19 = vsel %vm838_vm5, %v22535_v27, %v22502_v26  ;;  %v14384_v27 = vsel %vm838_vm5, %v23785_v53, %v22602_v44  ;;  %v14391_v44 = vsel %vm838_vm5, %v22780_v47, %v22709_v38 }
0x137f   : > { %v22840_v46 = vpop.permute.xlu0 %14791  ;;  %14269 = vmatpush1.bf16.msra.mxu0 %v14238_v63 }
0x1380   : > { %14270 = vmatprep.subr.bf16.mxu0 %v14242_v35  ;;  %v22845_v34 = vpop.permute.xlu1 %14657  ;;  %16169 = vmatmul.mubr.msk.bf16.vlgmr.msra.gmra.mrb[112].mxu1 %vm14035_vm10, %v13957_v23  ;;  %v23796_v23 = vld [vmem:[#allocation18_spill] sm:$0xff] }
0x1381   : > { %14307 = vmatpush1.bf16.msra.mxu1 %v14237_v0  ;;  %14338 = vmatprep.mubr.bf16.mxu1 %v23324_v16  ;;  %v23800_v35 = vld [vmem:[#allocation10_spill] sm:$0xff] }
0x1382   : > { %14308 = vmatprep.subr.bf16.mxu1 %v22600_v4  ;;  %v14243_v4 = vsel %vm672_vm3, %v22628_v37, %v22655_v15 }
0x1383   : > { %v22856_v20 = vpop.permute.xlu0 %14793  ;;  %14271 = vmatpush1.bf16.msra.mxu0 %v14241_v18  ;;  %v23801_v18 = vld [vmem:[#allocation23_spill] sm:$0xff] }
0x1384   : > { %14272 = vmatprep.subr.bf16.mxu0 %v14245_v14  ;;  %v22860_v55 = vpop.permute.xlu1 %14667 }
0x1385   : > { %14309 = vmatpush1.bf16.msra.mxu1 %v14240_v62  ;;  %v23803_v62 = vld [vmem:[#allocation19_spill] sm:$0xff] }
0x1386   : > { %14310 = vmatprep.subr.bf16.mxu1 %v22655_v15 }
0x1387   : > { %v22868_v21 = vpop.permute.xlu0 %14799  ;;  %14273 = vmatpush1.bf16.msra.mxu0 %v14244_v6 }
0x1388   : > { %14412 = vmatprep.subr.bf16.mxu0 %v14382_v19  ;;  %v22879_v59 = vpop.permute.xlu1 %14665  ;;  %v23804_v19 = vld [vmem:[#allocation13_spill] sm:$0xff] }
0x1389   : > { %14311 = vmatpush1.bf16.msra.mxu1 %v14243_v4 }
0x138a   : > { %16170 = vmatmul.mubr.msk.bf16.vlgmr.msra.gmra.mrb[116].mxu0 %vm14035_vm10, %v14202_v24 }
0x138b   : > { %v14234_v58 = vpop.permute.xlu0 %14233  ;;  %14413 = vmatpush1.bf16.msra.mxu0 %v14381_v8  ;;  %14444 = vmatprep.mubr.bf16.mxu0 %v23324_v16 }
0x138c   : > { %v14246_v37 = vsel %vm672_vm3, %v22701_v25, %v14234_v58  ;;  %14312 = vmatprep.subr.bf16.mxu1 %v14234_v58  ;;  %14414 = vmatprep.subr.bf16.mxu0 %v14385_v50  ;;  %v22891_v15 = vpop.permute.xlu1 %14789  ;;  %v14383_v25 = vsel %vm838_vm5, %v22502_v26, %v22541_v22  ;;  %v14386_v26 = vsel %vm838_vm5, %v22577_v5, %v23786_v48  ;;  %vm23791_vm3 = vmmov %vm23769_vm6  ;;  %v23792_v5 = vld [vmem:[#allocation20_spill] sm:$0xff]  ;;  %v23807_v58 = vld [vmem:[#allocation26_spill] sm:$0xff] }
0x138d   : > { %14313 = vmatpush1.bf16.msra.mxu1 %v14246_v37  ;;  %v14389_v43 = vsel %vm838_vm5, %v23792_v5, %v23788_v3  ;;  %vm23794_vm12 = vmmov %vm23791_vm3  ;;  %v23809_v37 = vld [vmem:[#allocation24_spill] sm:$0xff] }
0x138e   : > { %14452 = vmatprep.subr.bf16.mxu1 %v22541_v22  ;;  %v23787_v22 = vld [vmem:[#allocation25_spill] sm:$0xff]  ;;  %vm23797_vm13 = vmmov %vm23791_vm3 }
0x138f   : > { %v22897_v29 = vpop.permute.xlu0 %14801  ;;  %14415 = vmatpush1.bf16.msra.mxu0 %v14384_v27  ;;  %v14390_v30 = vsel %vm838_vm5, %v23787_v22, %v22780_v47  ;;  %v23793_v47 = vld [vmem:[#allocation3_spill] sm:$0xff]  ;;  %v14531_v13 = vsel %vm23797_vm13, %v23796_v23, %v23795_v40  ;;  %vm23799_vm15 = vmmov %vm23791_vm3  ;;  %v23810_v27 = vld [vmem:[#allocation8_spill] sm:$0xff] }
0x1390   : > { %16171 = vmatmul.mubr.msk.bf16.vlgmr.msra.gmra.mrb[116].mxu1 %vm14035_vm10, %v14202_v24  ;;  %14416 = vmatprep.subr.bf16.mxu0 %v22664_v52  ;;  %v22901_v2 = vpop.permute.xlu1 %14787  ;;  %v14527_v32 = vsel %vm23794_vm12, %v23793_v47, %v23790_v36  ;;  %v14530_v63 = vsel %vm23799_vm15, %v23798_v1, %v23796_v23  ;;  %vm23805_vm0 = vmmov %vm23791_vm3  ;;  %vm23824_vm15 = vcmask 752640  }
0x1391   : > { %14453 = vmatpush1.bf16.msra.mxu1 %v14383_v25  ;;  %14484 = vmatprep.mubr.bf16.mxu1 %v23324_v16  ;;  %v14537_v24 = vsel %vm23805_vm0, %v22810_v11, %v22717_v54  ;;  %vm23806_vm7 = vmmov %vm23805_vm0  ;;  %v23811_v25 = vld [vmem:[#allocation11_spill] sm:$0xff] }
0x1392   : > { %14454 = vmatprep.subr.bf16.mxu1 %v23786_v48  ;;  %v14532_v4 = vsel %vm23806_vm7, %v23795_v40, %v23803_v62  ;;  %vm23808_vm4 = vmmov %vm23805_vm0  ;;  %v14674_v48 = vsel %vm23812_vm8, %v23811_v25, %v23810_v27  ;;  %v14820_v40 = vsel %vm23824_vm15, %v22891_v15, %v22840_v46 }
0x1393   : > { %v22908_v17 = vpop.permute.xlu0 %14807  ;;  %14417 = vmatpush1.bf16.msra.mxu0 %v22658_v31  ;;  %v23789_v31 = vld [vmem:[#allocation4_spill] sm:$0xff]  ;;  %v14536_v50 = vsel %vm23808_vm4, %v23807_v58, %v22810_v11  ;;  %vm23814_vm11 = vmmov %vm23805_vm0  ;;  %v23815_v11 = vld [vmem:[#allocation7_spill] sm:$0xff] }
0x1394   : > { %14418 = vmatprep.subr.bf16.mxu0 %v14391_v44  ;;  %v22914_v52 = vpop.permute.xlu1 %14797  ;;  %v14528_v45 = vsel %vm23791_vm3, %v23790_v36, %v23789_v31  ;;  %v14494_v44 = vld [vmem:[%s23188_s1 + $0x544] sm:$0x3]  ;;  %vm23817_vm6 = vmmov %vm23805_vm0 }
0x1395   : > { %14455 = vmatpush1.bf16.msra.mxu1 %v14386_v26  ;;  %v23813_v26 = vld [vmem:[#allocation21_spill] sm:$0xff]  ;;  %vm23822_vm12 = vmmov %vm23774_vm1 }
0x1396   : > { %14456 = vmatprep.subr.bf16.mxu1 %v23788_v3  ;;  %v14535_v22 = vsel %vm23814_vm11, %v23813_v26, %v23809_v37  ;;  %v14673_v3 = vsel %vm23816_vm9, %v23815_v11, %v23811_v25  ;;  %vm23823_vm13 = vmmov %vm23774_vm1 }
0x1397   : > { %v22923_v12 = vpop.permute.xlu0 %14809  ;;  %14419 = vmatpush1.bf16.msra.mxu0 %v14390_v30  ;;  %vm23827_vm7 = vmmov %vm23774_vm1 }
0x1398   : > { %14558 = vmatprep.subr.bf16.mxu0 %v14528_v45  ;;  %v22934_v60 = vpop.permute.xlu1 %14795 }
0x1399   : > { %14457 = vmatpush1.bf16.msra.mxu1 %v14389_v43  ;;  %v14680_v43 = vsel %vm23774_vm1, %v22830_v49, %v22771_v61 }
0x139a   : > { %16172 = vmatmul.mubr.msk.bf16.vlgmr.msra.gmra.mrb[120].mxu0 %vm14035_vm10, %v14348_v10 }
0x139b   : > { %v14380_v9 = vpop.permute.xlu0 %14379  ;;  %14559 = vmatpush1.bf16.msra.mxu0 %v14527_v32  ;;  %14590 = vmatprep.mubr.bf16.mxu0 %v23324_v16  ;;  %v14678_v32 = vsel %vm23822_vm12, %v22687_v7, %v22752_v33  ;;  %v14640_v7 = vld [vmem:[%s23188_s1 + $0x548] sm:$0x3] }
0x139c   : > { %v14392_v51 = vsel %vm838_vm5, %v22709_v38, %v14380_v9  ;;  %14458 = vmatprep.subr.bf16.mxu1 %v14380_v9  ;;  %14560 = vmatprep.subr.bf16.mxu0 %v14531_v13  ;;  %v22946_v57 = vpop.permute.xlu1 %14805  ;;  %vm23802_vm5 = vmmov %vm23791_vm3 }
0x139d   : > { %14459 = vmatpush1.bf16.msra.mxu1 %v14392_v51  ;;  %v14529_v38 = vsel %vm23802_vm5, %v23789_v31, %v23800_v35  ;;  %vm23821_vm3 = vmmov %vm23774_vm1 }
0x139e   : > { %14598 = vmatprep.subr.bf16.mxu1 %v23800_v35  ;;  %v14683_v61 = vsel %vm23821_vm3, %v22860_v55, %v22824_v56  ;;  %vm23825_vm5 = vmmov %vm23824_vm15 }
0x139f   : > { %v22952_v0 = vpop.permute.xlu0 %14815  ;;  %14561 = vmatpush1.bf16.msra.mxu0 %v14530_v63  ;;  %vm23826_vm0 = vmmov %vm23825_vm5 }
0x13a0   : > { %16173 = vmatmul.mubr.msk.bf16.vlgmr.msra.gmra.mrb[120].mxu1 %vm14035_vm10, %v14348_v10  ;;  %14562 = vmatprep.subr.bf16.mxu0 %v23801_v18  ;;  %v22956_v14 = vpop.permute.xlu1 %14803  ;;  %v23818_v10 = vld [vmem:[#allocation12_spill] sm:$0xff]  ;;  %vm23828_vm4 = vmmov %vm23826_vm0 }
0x13a1   : > { %14599 = vmatpush1.bf16.msra.mxu1 %v14529_v38  ;;  %14630 = vmatprep.mubr.bf16.mxu1 %v23324_v16  ;;  %vm23829_vm8 = vmmov %vm23826_vm0 }
0x13a2   : > { %14600 = vmatprep.subr.bf16.mxu1 %v23803_v62  ;;  %v14826_v13 = vsel %vm23829_vm8, %v22946_v57, %v22908_v17  ;;  %vm23830_vm11 = vmmov %vm23826_vm0 }
0x13a3   : > { %v22963_v6 = vpop.permute.xlu0 %14937  ;;  %14563 = vmatpush1.bf16.msra.mxu0 %v23804_v19  ;;  %vm23831_vm9 = vmmov %vm23826_vm0 }
0x13a4   : > { %14564 = vmatprep.subr.bf16.mxu0 %v14537_v24  ;;  %v22972_v8 = vpop.permute.xlu1 %14813  ;;  %vm23833_vm1 = vmmov %vm23826_vm0 }
0x13a5   : > { %14601 = vmatpush1.bf16.msra.mxu1 %v14532_v4  ;;  %vm23836_vm3 = vmmov %vm23826_vm0 }
0x13a6   : > { %14602 = vmatprep.subr.bf16.mxu1 %v23809_v37  ;;  %vm23839_vm15 = vmmov %vm23826_vm0 }
0x13a7   : > { %v22978_v53 = vpop.permute.xlu0 %14939  ;;  %14565 = vmatpush1.bf16.msra.mxu0 %v14536_v50 }
0x13a8   : > { %14704 = vmatprep.subr.bf16.mxu0 %v14674_v48  ;;  %v22989_v30 = vpop.permute.xlu1 %14811 }
0x13a9   : > { %14603 = vmatpush1.bf16.msra.mxu1 %v14535_v22 }
0x13aa   : > { %16174 = vmatmul.mubr.msk.bf16.vlgmr.msra.gmra.mrb[124].mxu0 %vm14035_vm10, %v14494_v44 }
0x13ab   : > { %v14526_v31 = vpop.permute.xlu0 %14525  ;;  %14705 = vmatpush1.bf16.msra.mxu0 %v14673_v3  ;;  %14736 = vmatprep.mubr.bf16.mxu0 %v23324_v16 }
0x13ac   : > { %v14538_v36 = vsel %vm23817_vm6, %v22717_v54, %v14526_v31  ;;  %14604 = vmatprep.subr.bf16.mxu1 %v14526_v31  ;;  %14706 = vmatprep.subr.bf16.mxu0 %v22727_v28  ;;  %v22999_v45 = vpop.permute.xlu1 %14935  ;;  %v14675_v28 = vsel %vm23819_vm14, %v23810_v27, %v23818_v10  ;;  %vm23832_vm6 = vmmov %vm23826_vm0 }
0x13ad   : > { %14605 = vmatpush1.bf16.msra.mxu1 %v14538_v36  ;;  %vm23834_vm14 = vmmov %vm23826_vm0 }
0x13ae   : > { %14744 = vmatprep.subr.bf16.mxu1 %v23818_v10 }
0x13af   : > { %v23002_v5 = vpop.permute.xlu0 %14945  ;;  %14707 = vmatpush1.bf16.msra.mxu0 %v22741_v41  ;;  %v14679_v41 = vsel %vm23820_vm2, %v22845_v34, %v22830_v49  ;;  %v14682_v49 = vsel %vm23823_vm13, %v22879_v59, %v22860_v55  ;;  %v14819_v55 = vsel %vm23825_vm5, %v22901_v2, %v22891_v15  ;;  %v14823_v59 = vsel %vm23826_vm0, %v22914_v52, %v22868_v21 }
0x13b0   : > { %16175 = vmatmul.mubr.msk.bf16.vlgmr.msra.gmra.mrb[124].mxu1 %vm14035_vm10, %v14494_v44  ;;  %14708 = vmatprep.subr.bf16.mxu0 %v14680_v43  ;;  %v23009_v54 = vpop.permute.xlu1 %14933  ;;  %v14822_v15 = vsel %vm23828_vm4, %v22934_v60, %v22914_v52  ;;  %v14825_v52 = vsel %vm23831_vm9, %v22956_v14, %v22946_v57  ;;  %v14828_v57 = vsel %vm23834_vm14, %v22989_v30, %v22972_v8  ;;  %vm23835_vm2 = vcmask 744448   ;;  %v14932_v44 = vld [vmem:[%s23188_s1 + $0x550] sm:$0x3] }
0x13b1   : > { %14745 = vmatpush1.bf16.msra.mxu1 %v14675_v28  ;;  %14776 = vmatprep.mubr.bf16.mxu1 %v23324_v16  ;;  %v14966_v35 = vsel %vm23835_vm2, %v22999_v45, %v22963_v6  ;;  %vm23837_vm12 = vmmov %vm23835_vm2 }
0x13b2   : > { %14746 = vmatprep.subr.bf16.mxu1 %v22752_v33  ;;  %v14965_v14 = vsel %vm23837_vm12, %v23009_v54, %v22999_v45  ;;  %vm23838_vm13 = vmmov %vm23835_vm2 }
0x13b3   : > { %v23019_v47 = vpop.permute.xlu0 %14947  ;;  %14709 = vmatpush1.bf16.msra.mxu0 %v14679_v41  ;;  %vm23840_vm5 = vmmov %vm23835_vm2 }
0x13b4   : > { %14710 = vmatprep.subr.bf16.mxu0 %v14683_v61  ;;  %v23027_v9 = vpop.permute.xlu1 %14943  ;;  %vm23841_vm0 = vmmov %vm23835_vm2 }
0x13b5   : > { %14747 = vmatpush1.bf16.msra.mxu1 %v14678_v32  ;;  %v14969_v62 = vsel %vm23838_vm13, %v23027_v9, %v23002_v5  ;;  %vm23843_vm4 = vmmov %vm23841_vm0 }
0x13b6   : > { %14748 = vmatprep.subr.bf16.mxu1 %v22792_v42  ;;  %vm23844_vm8 = vmmov %vm23841_vm0 }
0x13b7   : > { %v23033_v34 = vpop.permute.xlu0 %14953  ;;  %14711 = vmatpush1.bf16.msra.mxu0 %v14682_v49  ;;  %vm23846_vm9 = vmmov %vm23841_vm0 }
0x13b8   : > { %14850 = vmatprep.subr.bf16.mxu0 %v14820_v40  ;;  %v14942_v33 = vpop.permute.xlu1 %14941 }
0x13b9   : > { %14749 = vmatpush1.bf16.msra.mxu1 %v22808_v39  ;;  %v14968_v19 = vsel %vm23840_vm5, %v14942_v33, %v23027_v9 }
0x13ba   : > { %16176 = vmatmul.mubr.msk.bf16.vlgmr.msra.gmra.mrb[128].mxu0 %vm14035_vm10, %v14640_v7 }
0x13bb   : > { %v14672_v42 = vpop.permute.xlu0 %14671  ;;  %14851 = vmatpush1.bf16.msra.mxu0 %v14819_v55  ;;  %14882 = vmatprep.mubr.bf16.mxu0 %v23324_v16 }
0x13bc   : > { %v14684_v23 = vsel %vm23827_vm7, %v22824_v56, %v14672_v42  ;;  %14750 = vmatprep.subr.bf16.mxu1 %v14672_v42  ;;  %14852 = vmatprep.subr.bf16.mxu0 %v14823_v59  ;;  %v14952_v39 = vpop.permute.xlu1 %14951  ;;  %v14821_v56 = vsel %vm23830_vm11, %v22840_v46, %v22856_v20  ;;  %v14829_v46 = vsel %vm23832_vm6, %v22972_v8, %v22952_v0  ;;  %vm23842_vm7 = vmmov %vm23841_vm0  ;;  %vm23847_vm6 = vcmask 736256  }
0x13bd   : > { %14751 = vmatpush1.bf16.msra.mxu1 %v14684_v23  ;;  %v14972_v4 = vsel %vm23841_vm0, %v14952_v39, %v23033_v34  ;;  %v14967_v8 = vsel %vm23842_vm7, %v22963_v6, %v22978_v53  ;;  %vm23845_vm11 = vmmov %vm23841_vm0 }
0x13be   : > { %14890 = vmatprep.subr.bf16.mxu1 %v22856_v20  ;;  %v14824_v20 = vsel %vm23833_vm1, %v22868_v21, %v22897_v29  ;;  %v14786_v21 = vld [vmem:[%s23188_s1 + $0x54c] sm:$0x3]  ;;  %v14970_v6 = vsel %vm23845_vm11, %v23002_v5, %v23019_v47  ;;  %vm23848_vm1 = vmmov %vm23841_vm0 }
0x13bf   : > { %v23056_v2 = vpop.permute.xlu0 %14955  ;;  %14853 = vmatpush1.bf16.msra.mxu0 %v14822_v15  ;;  %vm23849_vm14 = vmmov %vm23847_vm6 }
0x13c0   : > { %16177 = vmatmul.mubr.msk.bf16.vlgmr.msra.gmra.mrb[128].mxu1 %vm14035_vm10, %v14640_v7  ;;  %14854 = vmatprep.subr.bf16.mxu0 %v14826_v13  ;;  %v14950_v51 = vpop.permute.xlu1 %14949  ;;  %v14973_v26 = vsel %vm23848_vm1, %v23033_v34, %v23056_v2  ;;  %vm23850_vm2 = vmmov %vm23847_vm6 }
0x13c1   : > { %14891 = vmatpush1.bf16.msra.mxu1 %v14821_v56  ;;  %14922 = vmatprep.mubr.bf16.mxu1 %v23324_v16  ;;  %v14971_v58 = vsel %vm23843_vm4, %v14950_v51, %v14952_v39  ;;  %vm23852_vm12 = vmmov %vm23850_vm2 }
0x13c2   : > { %14892 = vmatprep.subr.bf16.mxu1 %v22897_v29  ;;  %v14827_v29 = vsel %vm23836_vm3, %v22908_v17, %v22923_v12  ;;  %vm23851_vm3 = vmmov %vm23841_vm0 }
0x13c3   : > { %v23070_v60 = vpop.permute.xlu0 %14961  ;;  %14855 = vmatpush1.bf16.msra.mxu0 %v14825_v52  ;;  %vm23853_vm13 = vmmov %vm23850_vm2 }
0x13c4   : > { %14856 = vmatprep.subr.bf16.mxu0 %v14829_v46  ;;  %v14960_v1 = vpop.permute.xlu1 %14959  ;;  %vm23855_vm5 = vmmov %vm23850_vm2 }
0x13c5   : > { %14893 = vmatpush1.bf16.msra.mxu1 %v14824_v20  ;;  %v14975_v37 = vsel %vm23844_vm8, %v14960_v1, %v23070_v60  ;;  %vm23856_vm0 = vmmov %vm23850_vm2 }
0x13c6   : > { %14894 = vmatprep.subr.bf16.mxu1 %v22923_v12  ;;  %vm23857_vm7 = vmmov %vm23856_vm0 }
0x13c7   : > { %v23082_v63 = vpop.permute.xlu0 %15083  ;;  %14857 = vmatpush1.bf16.msra.mxu0 %v14828_v57  ;;  %vm23858_vm4 = vmmov %vm23856_vm0 }
0x13c8   : > { %14996 = vmatprep.subr.bf16.mxu0 %v14966_v35  ;;  %v14958_v18 = vpop.permute.xlu1 %14957  ;;  %vm23859_vm8 = vmmov %vm23856_vm0 }
0x13c9   : > { %14895 = vmatpush1.bf16.msra.mxu1 %v14827_v29  ;;  %v14974_v27 = vsel %vm23846_vm9, %v14958_v18, %v14960_v1  ;;  %vm23860_vm11 = vmmov %vm23856_vm0  ;;  %vm15252_vm9 = vcmask 129028  }
0x13ca   : > { %16178 = vmatmul.mubr.msk.bf16.vlgmr.msra.gmra.mrb[132].mxu0 %vm14035_vm10, %v14786_v21 }
0x13cb   : > { %v14818_v38 = vpop.permute.xlu0 %14817  ;;  %14997 = vmatpush1.bf16.msra.mxu0 %v14965_v14  ;;  %15028 = vmatprep.mubr.bf16.mxu0 %v23324_v16 }
0x13cc   : > { %v14830_v17 = vsel %vm23839_vm15, %v22952_v0, %v14818_v38  ;;  %14896 = vmatprep.subr.bf16.mxu1 %v14818_v38  ;;  %14998 = vmatprep.subr.bf16.mxu0 %v14969_v62  ;;  %v15082_v12 = vpop.permute.xlu1 %15081  ;;  %vm23854_vm15 = vmmov %vm23850_vm2 }
0x13cd   : > { %14897 = vmatpush1.bf16.msra.mxu1 %v14830_v17  ;;  %v15112_v48 = vsel %vm23847_vm6, %v15082_v12, %v23082_v63  ;;  %vm15248_vm6 = vcmask 916480  }
0x13ce   : > { %15036 = vmatprep.subr.bf16.mxu1 %v22978_v53 }
0x13cf   : > { %v15086_v24 = vpop.permute.xlu0 %15085  ;;  %14999 = vmatpush1.bf16.msra.mxu0 %v14968_v19 }
0x13d0   : > { %16179 = vmatmul.mubr.msk.bf16.vlgmr.msra.gmra.mrb[132].mxu1 %vm14035_vm10, %v14786_v21  ;;  %15000 = vmatprep.subr.bf16.mxu0 %v14972_v4  ;;  %v15080_v0 = vpop.permute.xlu1 %15079  ;;  %v15113_v5 = vsel %vm23853_vm13, %v23082_v63, %v15086_v24 }
0x13d1   : > { %15037 = vmatpush1.bf16.msra.mxu1 %v14967_v8  ;;  %15068 = vmatprep.mubr.bf16.mxu1 %v23324_v16  ;;  %v15111_v30 = vsel %vm23849_vm14, %v15080_v0, %v15082_v12 }
0x13d2   : > { %15038 = vmatprep.subr.bf16.mxu1 %v23019_v47 }
0x13d3   : > { %v15092_v50 = vpop.permute.xlu0 %15091  ;;  %15001 = vmatpush1.bf16.msra.mxu0 %v14971_v58 }
0x13d4   : > { %15002 = vmatprep.subr.bf16.mxu0 %v14975_v37  ;;  %v15090_v53 = vpop.permute.xlu1 %15089 }
0x13d5   : > { %15039 = vmatpush1.bf16.msra.mxu1 %v14970_v6  ;;  %v15115_v3 = vsel %vm23850_vm2, %v15090_v53, %v15092_v50 }
0x13d6   : > { %15040 = vmatprep.subr.bf16.mxu1 %v23056_v2 }
0x13d7   : > { %v15094_v25 = vpop.permute.xlu0 %15093  ;;  %15003 = vmatpush1.bf16.msra.mxu0 %v14974_v27 }
0x13d8   : > { %15142 = vmatprep.subr.bf16.mxu0 %v15112_v48  ;;  %v15088_v22 = vpop.permute.xlu1 %15087  ;;  %v15116_v47 = vsel %vm23856_vm0, %v15092_v50, %v15094_v25 }
0x13d9   : > { %15041 = vmatpush1.bf16.msra.mxu1 %v14973_v26  ;;  %v15114_v45 = vsel %vm23852_vm12, %v15088_v22, %v15090_v53 }
0x13da   : > { %16180 = vmatmul.mubr.msk.bf16.vlgmr.msra.gmra.mrb[136].mxu0 %vm14035_vm10, %v14932_v44 }
0x13db   : > { %v14964_v11 = vpop.permute.xlu0 %14963  ;;  %15143 = vmatpush1.bf16.msra.mxu0 %v15111_v30  ;;  %15174 = vmatprep.mubr.bf16.mxu0 %v23324_v16 }
0x13dc   : > { %v14976_v31 = vsel %vm23851_vm3, %v23070_v60, %v14964_v11  ;;  %15042 = vmatprep.subr.bf16.mxu1 %v14964_v11  ;;  %15144 = vmatprep.subr.bf16.mxu0 %v15115_v3  ;;  %v15098_v36 = vpop.permute.xlu1 %15097 }
0x13dd   : > { %15043 = vmatpush1.bf16.msra.mxu1 %v14976_v31 }
0x13de   : > { %15182 = vmatprep.subr.bf16.mxu1 %v15086_v24 }
0x13df   : > { %v15100_v10 = vpop.permute.xlu0 %15099  ;;  %15145 = vmatpush1.bf16.msra.mxu0 %v15114_v45 }
0x13e0   : > { %16181 = vmatmul.mubr.msk.bf16.vlgmr.msra.gmra.mrb[136].mxu1 %vm14035_vm10, %v14932_v44  ;;  %v15096_v43 = vpop.permute.xlu1 %15095  ;;  %v15118_v54 = vsel %vm23854_vm15, %v15098_v36, %v15100_v10 }
0x13e1   : > { %v15117_v28 = vsel %vm23855_vm5, %v15096_v43, %v15098_v36  ;;  %15146 = vmatprep.subr.bf16.mxu0 %v15118_v54  ;;  %15183 = vmatpush1.bf16.msra.mxu1 %v15113_v5 }
0x13e2   : > { %15184 = vmatprep.subr.bf16.mxu1 %v15094_v25  ;;  %15214 = vmatprep.mubr.bf16.mxu1 %v23324_v16  ;;  %v15078_v16 = vld [vmem:[%s23188_s1 + $0x554] sm:$0x3] }
0x13e3   : > { %v15102_v41 = vpop.permute.xlu0 %15101  ;;  %15147 = vmatpush1.bf16.msra.mxu0 %v15117_v28 }
0x13e4   : > { %v15106_v61 = vpop.permute.xlu1 %15105  ;;  %v15119_v9 = vsel %vm23857_vm7, %v15100_v10, %v15102_v41 }
0x13e5   : > { %15185 = vmatpush1.bf16.msra.mxu1 %v15116_v47 }
0x13e6   : > { %15186 = vmatprep.subr.bf16.mxu1 %v15102_v41 }
0x13e7   : > { %v15108_v32 = vpop.permute.xlu0 %15107 }
0x13e8   : > { %v15104_v49 = vpop.permute.xlu1 %15103  ;;  %v15121_v34 = vsel %vm23858_vm4, %v15106_v61, %v15108_v32 }
0x13e9   : > { %v15120_v40 = vsel %vm23859_vm8, %v15104_v49, %v15106_v61  ;;  %15148 = vmatprep.subr.bf16.mxu0 %v15121_v34  ;;  %15187 = vmatpush1.bf16.msra.mxu1 %v15119_v9 }
0x13ea   : > { %15149 = vmatpush1.bf16.msra.mxu0 %v15120_v40 }
0x13eb   : > { %v15110_v7 = vpop.permute.xlu0 %15109 }
0x13ec   : > { %v15122_v33 = vsel %vm23860_vm11, %v15108_v32, %v15110_v7  ;;  %15188 = vmatprep.subr.bf16.mxu1 %v15110_v7 }
0x13ed   : > { %16182 = vmatmul.mubr.msk.bf16.vlgmr.msra.gmra.mrb[140].mxu0 %vm14035_vm10, %v15078_v16  ;;  %15189 = vmatpush1.bf16.msra.mxu1 %v15122_v33 }
0x13f0   : > { %16183 = vmatmul.mubr.msk.bf16.vlgmr.msra.gmra.mrb[140].mxu1 %vm14035_vm10, %v15078_v16  ;;  %vm15251_vm10 = vcmask 1042432  }
0x13f1   : > { %vm15253_vm1 = vmor %vm15252_vm9, %vm15251_vm10 }
0x143d   : > { %v14073_v55 = vpop.f32.mrb[108].mxu0 }
0x143e   : > { %v14074_v42 = vpop.f32.mrb[109].mxu0 }
0x143f   : > { %v14076_v59 = vpop.f32.mrb[110].mxu0 }
0x1440   : > { %v14077_v23 = vpop.f32.mrb[111].mxu0 }
0x1443   : > { %v14113_v39 = vpop.f32.mrb[108].mxu1 }
0x1444   : > { %v14115_v15 = vpop.f32.mrb[109].mxu1 }
0x1445   : > { %v14116_v2 = vpop.f32.mrb[110].mxu1 }
0x1446   : > { %v14117_v13 = vpop.f32.mrb[111].mxu1 }
0x144d   : > { %v14156_v56 = vpop.f32.mrb[112].mxu0 }
0x144e   : > { %v14157_v51 = vpop.f32.mrb[113].mxu0 }
0x144f   : > { %v14158_v52 = vadd.f32 %v14157_v51, %v14074_v42  ;;  %v14159_v60 = vpop.f32.mrb[114].mxu0 }
0x1450   : > { %v14160_v46 = vpop.f32.mrb[115].mxu0 }
0x1453   : > { %v14196_v20 = vpop.f32.mrb[112].mxu1 }
0x1454   : > { %v14197_v1 = vadd.f32 %v14196_v20, %v14113_v39  ;;  %v14198_v57 = vpop.f32.mrb[113].mxu1 }
0x1455   : > { %v14199_v63 = vpop.f32.mrb[114].mxu1 }
0x1456   : > { %v14200_v35 = vpop.f32.mrb[115].mxu1  ;;  %v15226_v63 = vpop.permute.xlu1 %15225 }
0x145d   : > { %v14300_v21 = vpop.f32.mrb[116].mxu0 }
0x145e   : > { %v14301_v29 = vpop.f32.mrb[117].mxu0 }
0x145f   : > { %v14346_v18 = vadd.f32 %v14301_v29, %v14158_v52  ;;  %v14303_v14 = vpop.f32.mrb[118].mxu0 }
0x1460   : > { %v14304_v38 = vpop.f32.mrb[119].mxu0 }
0x1463   : > { %v14340_v62 = vpop.f32.mrb[116].mxu1 }
0x1464   : > { %v14347_v17 = vadd.f32 %v14340_v62, %v14197_v1  ;;  %v14342_v12 = vpop.f32.mrb[117].mxu1 }
0x1465   : > { %v14343_v19 = vpop.f32.mrb[118].mxu1 }
0x1466   : > { %v14344_v24 = vpop.f32.mrb[119].mxu1 }
0x146d   : > { %v14446_v4 = vpop.f32.mrb[120].mxu0 }
0x146e   : > { %v14447_v8 = vpop.f32.mrb[121].mxu0 }
0x146f   : > { %v14492_v0 = vadd.f32 %v14447_v8, %v14346_v18  ;;  %v14449_v58 = vpop.f32.mrb[122].mxu0 }
0x1470   : > { %v14450_v50 = vpop.f32.mrb[123].mxu0 }
0x1473   : > { %v14486_v37 = vpop.f32.mrb[120].mxu1 }
0x1474   : > { %v14493_v6 = vadd.f32 %v14486_v37, %v14347_v17  ;;  %v14488_v53 = vpop.f32.mrb[121].mxu1  ;;  %v18006_v37 = vmov 1966171168  }
0x1475   : > { %v14489_v27 = vpop.f32.mrb[122].mxu1 }
0x1476   : > { %v14490_v25 = vpop.f32.mrb[123].mxu1 }
0x1477   : > { %v23861_v25 = vld [vmem:[#allocation2_spill] sm:$0xff] }
0x147d   : > { %v14592_v48 = vpop.f32.mrb[124].mxu0 }
0x147e   : > { %v14593_v44 = vpop.f32.mrb[125].mxu0 }
0x147f   : > { %v14638_v26 = vadd.f32 %v14593_v44, %v14492_v0  ;;  %v14595_v22 = vpop.f32.mrb[126].mxu0 }
0x1480   : > { %v14596_v30 = vpop.f32.mrb[127].mxu0 }
0x1483   : > { %v14632_v11 = vpop.f32.mrb[124].mxu1 }
0x1484   : > { %v14639_v3 = vadd.f32 %v14632_v11, %v14493_v6  ;;  %v14634_v31 = vpop.f32.mrb[125].mxu1  ;;  %v15256_v6 = vunpack.c.l.s4 %v18006_v37  ;;  %v23862_v11 = vld [vmem:[#allocation5_spill] sm:$0xff] }
0x1485   : > { %v14635_v36 = vpop.f32.mrb[126].mxu1 }
0x1486   : > { %v14636_v45 = vpop.f32.mrb[127].mxu1  ;;  %v15257_v53 = vunpack.c.0.s8 %v15256_v6 }
0x1488   : > { %v15260_v48 = vsub.s32 %v15257_v53, %v23861_v25 }
0x148d   : > { %v14738_v10 = vpop.f32.mrb[128].mxu0 }
0x148e   : > { %v14739_v5 = vpop.f32.mrb[129].mxu0 }
0x148f   : > { %v14784_v43 = vadd.f32 %v14739_v5, %v14638_v26  ;;  %v14741_v54 = vpop.f32.mrb[130].mxu0 }
0x1490   : > { %v14742_v28 = vpop.f32.mrb[131].mxu0 }
0x1493   : > { %v14778_v41 = vpop.f32.mrb[128].mxu1 }
0x1494   : > { %v14785_v47 = vadd.f32 %v14778_v41, %v14639_v3  ;;  %v14780_v61 = vpop.f32.mrb[129].mxu1  ;;  %v23863_v3 = vld [vmem:[#allocation6_spill] sm:$0xff] }
0x1495   : > { %v14781_v32 = vpop.f32.mrb[130].mxu1  ;;  %v23864_v31 = vcombine.low %v23862_v11, %v23863_v3  ;;  %v23865_v61 = vlaneseq }
0x1496   : > { %v14782_v9 = vpop.f32.mrb[131].mxu1 }
0x1497   : > { %vm15278_vm14 = vcmp.lt.s32.totalorder %v23865_v61, 144 }
0x149d   : > { %v14884_v49 = vpop.f32.mrb[132].mxu0 }
0x149e   : > { %v14885_v34 = vpop.f32.mrb[133].mxu0 }
0x149f   : > { %v14930_v40 = vadd.f32 %v14885_v34, %v14784_v43  ;;  %v14887_v16 = vpop.f32.mrb[134].mxu0 }
0x14a0   : > { %v14888_v7 = vpop.f32.mrb[135].mxu0 }
0x14a3   : > { %v14924_v33 = vpop.f32.mrb[132].mxu1 }
0x14a4   : > { %v14931_v55 = vadd.f32 %v14924_v33, %v14785_v47  ;;  %v14926_v42 = vpop.f32.mrb[133].mxu1 }
0x14a5   : > { %v14927_v59 = vpop.f32.mrb[134].mxu1 }
0x14a6   : > { %v14928_v23 = vpop.f32.mrb[135].mxu1 }
0x14ad   : > { %v15030_v39 = vpop.f32.mrb[136].mxu0 }
0x14ae   : > { %v15031_v15 = vpop.f32.mrb[137].mxu0 }
0x14af   : > { %v15076_v2 = vadd.f32 %v15031_v15, %v14930_v40  ;;  %v15033_v13 = vpop.f32.mrb[138].mxu0 }
0x14b0   : > { %v15034_v56 = vpop.f32.mrb[139].mxu0 }
0x14b3   : > { %v15070_v51 = vpop.f32.mrb[136].mxu1 }
0x14b4   : > { %v15077_v52 = vadd.f32 %v15070_v51, %v14931_v55  ;;  %v15072_v60 = vpop.f32.mrb[137].mxu1 }
0x14b5   : > { %v15073_v46 = vpop.f32.mrb[138].mxu1 }
0x14b6   : > { %v15074_v20 = vpop.f32.mrb[139].mxu1 }
0x14c0   : > { %v15176_v1 = vpop.f32.mrb[140].mxu0 }
0x14c1   : > { %v15177_v57 = vpop.f32.mrb[141].mxu0 }
0x14c2   : > { %v15222_v35 = vadd.f32 %v15177_v57, %v15076_v2  ;;  %v15179_v21 = vpop.f32.mrb[142].mxu0 }
0x14c3   : > { %v15216_v29 = vpop.f32.mrb[140].mxu1  ;;  %v15180_v18 = vpop.f32.mrb[143].mxu0 }
0x14c4   : > { %v15223_v14 = vadd.f32 %v15216_v29, %v15077_v52  ;;  %v15228_v38 = vadd.f32 %v15226_v63, %v15222_v35  ;;  %v15218_v62 = vpop.f32.mrb[141].mxu1 }
0x14c5   : > { %v15219_v17 = vpop.f32.mrb[142].mxu1 }
0x14c6   : > { %v15229_v12 = vadd.f32 %v15226_v63, %v15223_v14  ;;  %v16184_v19 = vmul.f32 -1.442695, %v15228_v38  ;;  %v15220_v24 = vpop.f32.mrb[143].mxu1 }
0x14c8   : > { %17925 = vpow2.f32 %v16184_v19  ;;  %v16185_v4 = vmul.f32 -1.442695, %v15229_v12 }
0x14ca   : > { %17927 = vpow2.f32 %v16185_v4 }
0x14d2   : > { %v17926_v8 = vpop.eup %17925 }
0x14d3   : > { %v15236_v0 = vadd.f32 1.0, %v17926_v8 }
0x14d4   : > { %v17928_v58 = vpop.eup %17927 }
0x14d5   : > { %v15237_v50 = vadd.f32 1.0, %v17928_v58  ;;  %17929 = vrcp.f32 %v15236_v0 }
0x14d7   : > { %17931 = vrcp.f32 %v15237_v50 }
0x14df   : > { %v17930_v27 = vpop.eup %17929 }
0x14e1   : > { %v17932_v44 = vpop.eup %17931 }
0x14e2   : > { %v15244_v26 = vcombine.low %v17930_v27, %v17932_v44 }
0x14e4   : > { %15245 = vrot.lane.b32.xlu0 %v15244_v26, %s18007_s16  ;;  %v15261_v22 = vrot.slane %v15244_v26, %v15260_v48 }
0x14e6   : > { %v15262_v30 = vcombine.high %v15261_v22, %v15261_v22 }
0x14e8   : > { %15294 = vrot.lane.b32.xlu0 %v23864_v31, %s18007_s16  ;;  %v15269_v36 = vrot.slane %v15262_v30, %v15260_v48 }
0x14ea   : > { %v15270_v45 = vcombine.high %v15269_v36, %v15269_v36 }
0x14ec   : > { %15271 = vrot.lane.b32.xlu1 %v15270_v45, %s18007_s16 }
0x1556   : > { %v15246_v10 = vpop.permute.xlu0 %15245 }
0x1557   : > { %v15247_v5 = vrot.slane %v15246_v10, 4 }
0x1559   : > { %v15249_v43 = vsel %vm15248_vm6, %v15246_v10, %v15247_v5 }
0x155a   : > { %15254 = vst.msk [vmem:[%s321_s29] sm:$0x77] %vm15253_vm1, %v15249_v43  ;;  %v15295_v54 = vpop.permute.xlu0 %15294 }
0x155b   : > { %v15296_v28 = vrot.slane %v15295_v54, 4 }
0x155d   : > { %v15297_v41 = vsel %vm15248_vm6, %v15295_v54, %v15296_v28 }
0x155e   : > { %15299 = vst.msk [vmem:[%s330_s22] sm:$0x77] %vm15253_vm1, %v15297_v41  ;;  %v15272_v47 = vpop.permute.xlu1 %15271 }
0x155f   : > { %v15273_v32 = vrot.slane %v15272_v47, 1 }
0x1561   : > { %v15274_v9 = vsel %vm15248_vm6, %v15272_v47, %v15273_v32 }
0x1562   : > { %15280 = vst.msk [vmem:[%s312_s17] sm:$0x3] %vm15278_vm14, %v15274_v9 }
0x1563 PF: > { %s17_s25 = sadd.s32 1, %s17986_s25   ;;  %s23866_s21 = smov %s17978_s23 }
0x1564   : > { %p14_p7 = scmp.ge.s32.totalorder %s17_s25, 6   ;;  %s23867_s22 = smov %s17982_s24 }
0x1565   : > { %s23868_s23 = smov %s23871_s26  ;;  %s23869_s24 = smov %s23875_s27 }
0x1566   :  { %16 = sbr.rel (!%p14_p7) target bundleno = 3 (0x3), region = 90 }

</bundles_post_ra>
